<compile_context>
chip_gen: v7x
topology: tpu7x:2x2x1
jax: 0.10.0
libtpu: 0.0.40
codegen_flags: <defaults>
</compile_context>

<pallas_src>
import functools

import jax
import jax.numpy as jnp
from jax.experimental import pallas as pl
from jax.experimental.pallas import tpu as pltpu

SQRT_HALF = 0.7071067811865476

# XLA-style f32 rational approximation of erf (accurate to ~f32 precision;
# inputs clamped to [-4, 4]).
_ERF_ALPHA = (-2.72614225801306e-10, 2.77068142495902e-08, -2.10102402082508e-06,
              -5.69250639462346e-05, -7.34990630326855e-04, -2.95459980854025e-03,
              -1.60960333262415e-02)
_ERF_BETA = (-1.45660718464996e-05, -2.13374055278905e-04, -1.68282697438203e-03,
             -7.37332916720468e-03, -1.42647390514189e-02)


def _erf_f32(x):
    """erf for use INSIDE the Pallas kernel (EUP reciprocal + 1 Newton step)."""
    x = jnp.clip(x, -4.0, 4.0)
    x2 = x * x
    num = jnp.float32(_ERF_ALPHA[0])
    for c in _ERF_ALPHA[1:]:
        num = num * x2 + jnp.float32(c)
    den = jnp.float32(_ERF_BETA[0])
    for c in _ERF_BETA[1:]:
        den = den * x2 + jnp.float32(c)
    # Approximate reciprocal on the EUP slot (free vs. VALU divide), refined by
    # one Newton-Raphson step to keep full f32 accuracy for the chained erfs.
    inv = pl.reciprocal(den, approx=True)
    inv = inv * (2.0 - den * inv)
    return x * num * inv


def _gelu_exact(x):
    return (x * 0.5) * (_erf_f32(x * SQRT_HALF) + 1.0)


# ----------------------------------------------------------------------------
# Fused kernel: one grid step == one image (all HW pixels, channels on lanes).
#   conv1 (im2col matmul, bias folded) -> GELU -> v10/v11
#   conv2 (1x1 matmul)                 -> v13 -> v18
#   conv3 (9 shifted matmuls on v10)   -> v19 (padded to 128 lanes)
#   v20 = v18 * v19_padded             -> GELU -> v25 (first 64 lanes valid)
# ----------------------------------------------------------------------------
def fused_kernel(p1_ref, w1_ref, w2_ref, b2_ref, w3_ref, b3_ref,
                 out_ref, vpad_ref, *, W, P):
    hw = p1_ref.shape[1]
    p1 = p1_ref[0]                                            # (HW, 56)

    # conv1: bias is folded into the matmul (ones column in p1 / b1 row in w1).
    v1 = jnp.dot(p1, w1_ref[...], preferred_element_type=jnp.float32)
    v6 = _gelu_exact(v1)                                       # v2..v6
    v10 = _erf_f32(v6 * SQRT_HALF) + 1.0                       # v7..v10
    v11 = (v6 * 0.5) * v10
    v12 = jnp.dot(v6, w2_ref[...],
                  preferred_element_type=jnp.float32) + b2_ref[...]
    v13 = v11 * v12
    v18 = _gelu_exact(v13)                                     # v14..v18

    # ---- conv3 (3x3, pad 1) on v10, fully in VMEM ----
    # Flattened-pixel buffer with P zero rows of halo at top and bottom.
    vpad_ref[...] = jnp.zeros_like(vpad_ref)
    vpad_ref[pl.ds(P, hw), :] = v10

    # Column masks for the horizontal taps (row boundaries are handled by the
    # zero halo rows; column wrap-around is handled by these masks).
    col = jax.lax.broadcasted_iota(jnp.int32, (hw, 128), 0) % W
    mask_l = col != 0
    mask_r = col != (W - 1)

    acc = jnp.zeros((hw, 128), jnp.float32)
    for ky in range(3):
        for kx in range(3):
            start = P + (ky - 1) * W + (kx - 1)                # static offset
            shifted = vpad_ref[pl.ds(start, hw), :]
            if kx == 0:
                shifted = jnp.where(mask_l, shifted, 0.0)
            elif kx == 2:
                shifted = jnp.where(mask_r, shifted, 0.0)
            acc = acc + jnp.dot(shifted, w3_ref[ky * 3 + kx],
                                preferred_element_type=jnp.float32)
    v19 = acc + b3_ref[...]                                    # (HW, 128), cols 64:128 == 0

    # TODO(synk): original PyTorch does v18(128ch) * v19(64ch), which is a
    # broadcasting error; we use the first 64 channels of v18 (lanes 64:128 of
    # v19 are zero-padded so the extra lanes are just discarded later).
    v20 = v18 * v19
    out_ref[0] = _gelu_exact(v20)                              # v21..v25 (v26 dead)


# ----------------------------------------------------------------------------
# Glue helpers
# ----------------------------------------------------------------------------
def _im2col(x_nhwc, k, pad):
    """x: (N, H, W, C) -> (N, H, W, k*k*C), patch order (ky, kx, c)."""
    n, h, w, _ = x_nhwc.shape
    xp = jnp.pad(x_nhwc, ((0, 0), (pad, pad), (pad, pad), (0, 0)))
    cols = [xp[:, ky:ky + h, kx:kx + w, :] for ky in range(k) for kx in range(k)]
    return jnp.concatenate(cols, axis=-1)


def model_forward(x_nchw, params):
    """x_nchw: (N, 1, H, W) float32 -> (N, 64, H, W) float32."""
    w1, b1, w2, b2, w3, b3, _w4, _b4 = params
    n, cin, h, w = x_nchw.shape
    assert cin == 1
    hw = h * w

    # conv1 im2col (only 49 f32/pixel since cin=1): (N, HW, 49) -> pad to 56
    # with a ones column at index 49 so the bias folds into the matmul.
    x_nhwc = jnp.transpose(x_nchw, (0, 2, 3, 1))               # (N,H,W,1)
    p1 = _im2col(x_nhwc, 7, 3).reshape(n, hw, 49)
    p1 = jnp.concatenate(
        [p1, jnp.ones((n, hw, 1), jnp.float32), jnp.zeros((n, hw, 6), jnp.float32)],
        axis=-1)                                               # (N, HW, 56)

    w1m = jnp.transpose(w1[:, 0], (1, 2, 0)).reshape(49, 128)  # (ky*7+kx, cout)
    w1m = jnp.concatenate(
        [w1m, b1.reshape(1, 128), jnp.zeros((6, 128), jnp.float32)], axis=0)  # (56,128)

    w2m = jnp.transpose(w2[:, :, 0, 0], (1, 0))                # (128, 128)
    b2m = b2.reshape(1, 128)

    # conv3 weights as 9 taps of (cin=128, cout padded 64->128 for lane density).
    w3m = jnp.transpose(w3, (2, 3, 1, 0)).reshape(9, 128, 64)
    w3m = jnp.pad(w3m, ((0, 0), (0, 0), (0, 64)))              # (9, 128, 128)
    b3m = jnp.pad(b3.reshape(1, 64), ((0, 0), (0, 64)))        # (1, 128)

    # Halo rows (in flattened pixel space) for the 3x3 conv; multiple of 8 so
    # the v10 store into the scratch stays sublane-aligned.
    P = ((w + 1 + 7) // 8) * 8

    out = pl.pallas_call(
        functools.partial(fused_kernel, W=w, P=P),
        out_shape=jax.ShapeDtypeStruct((n, hw, 128), jnp.float32),
        grid=(n,),
        in_specs=[
            pl.BlockSpec((1, hw, 56), lambda i: (i, 0, 0)),
            pl.BlockSpec((56, 128), lambda i: (0, 0)),
            pl.BlockSpec((128, 128), lambda i: (0, 0)),
            pl.BlockSpec((1, 128), lambda i: (0, 0)),
            pl.BlockSpec((9, 128, 128), lambda i: (0, 0, 0)),
            pl.BlockSpec((1, 128), lambda i: (0, 0)),
        ],
        out_specs=pl.BlockSpec((1, hw, 128), lambda i: (i, 0, 0)),
        scratch_shapes=[pltpu.VMEM((hw + 2 * P, 128), jnp.float32)],
        compiler_params=pltpu.CompilerParams(
            dimension_semantics=("parallel",)),
        # Per-step VMEM use is ~3 MiB (weights + one image of activations),
        # well under the default scoped limit on v5e/v6e/v7x.
    )(p1, w1m, w2m, b2m, w3m, b3m)

    v25 = out[:, :, :64]                                       # drop padded lanes
    return jnp.transpose(v25.reshape(n, h, w, 64), (0, 3, 1, 2))  # NCHW


# ----------------------------------------------------------------------------
# Deterministic parameter init (PyTorch Conv2d default: U(-1/sqrt(fan_in), ...))
# ----------------------------------------------------------------------------
def init_params(key):
    keys = jax.random.split(key, 8)

    def conv_init(kw, kb, cout, cin, k):
        bound = 1.0 / (cin * k * k) ** 0.5
        w = jax.random.uniform(kw, (cout, cin, k, k), jnp.float32, -bound, bound)
        b = jax.random.uniform(kb, (cout,), jnp.float32, -bound, bound)
        return w, b

    w1, b1 = conv_init(keys[0], keys[1], 128, 1, 7)
    w2, b2 = conv_init(keys[2], keys[3], 128, 128, 1)
    w3, b3 = conv_init(keys[4], keys[5], 64, 128, 3)
    w4, b4 = conv_init(keys[6], keys[7], 1, 64, 7)   # defined but unused in forward
    return (w1, b1, w2, b2, w3, b3, w4, b4)


# Pure-JAX reference (lax.conv) for a sanity check of the kernel.
def reference_forward(x, params):
    w1, b1, w2, b2, w3, b3, _w4, _b4 = params
    erf = jax.scipy.special.erf

    def conv(x, w, b, pad):
        out = jax.lax.conv_general_dilated(
            x, w, (1, 1), [(pad, pad), (pad, pad)],
            dimension_numbers=("NCHW", "OIHW", "NCHW"))
        return out + b[None, :, None, None]

    v1 = conv(x, w1, b1, 3)
    v6 = (v1 * 0.5) * (erf(v1 * SQRT_HALF) + 1.0)
    v10 = erf(v6 * SQRT_HALF) + 1.0
    v11 = (v6 * 0.5) * v10
    v12 = conv(v6, w2, b2, 0)
    v13 = v11 * v12
    v18 = (v13 * 0.5) * (erf(v13 * SQRT_HALF) + 1.0)
    v19 = conv(v10, w3, b3, 1)
    v20 = v18[:, :64] * v19          # same channel reconcile as the kernel path
    v25 = (v20 * 0.5) * (erf(v20 * SQRT_HALF) + 1.0)
    return v25


if __name__ == "__main__":
    key = jax.random.PRNGKey(0)
    k_x, k_p = jax.random.split(key)

    # Small input consistent with the module (conv1 expects 1 input channel).
    x = jax.random.normal(k_x, (2, 1, 16, 16), dtype=jnp.float32)
    params = init_params(k_p)

    out = jax.block_until_ready(jax.jit(model_forward)(x, params))
    ref = jax.block_until_ready(reference_forward(x, params))

    max_err = float(jnp.max(jnp.abs(out - ref)))
    assert out.shape == (2, 64, 16, 16), out.shape
    assert max_err < 2e-3, f"mismatch vs reference: {max_err}"

    print("KERNEL_OK")
</pallas_src>

<mosaic_0001>
module attributes {stable_mosaic.version = 11 : i64} {
  func.func @fused_kernel(%arg0: i32, %arg1: memref<1x256x56xf32, #tpu.memory_space<vmem>>, %arg2: memref<56x128xf32, #tpu.memory_space<vmem>>, %arg3: memref<128x128xf32, #tpu.memory_space<vmem>>, %arg4: memref<1x128xf32, #tpu.memory_space<vmem>>, %arg5: memref<9x128x128xf32, #tpu.memory_space<vmem>>, %arg6: memref<1x128xf32, #tpu.memory_space<vmem>>, %arg7: memref<1x256x128xf32, #tpu.memory_space<vmem>>, %arg8: memref<304x128xf32, #tpu.memory_space<vmem>>) attributes {dimension_semantics = [#tpu.dimension_semantics<parallel>], iteration_bounds = array<i64: 2>, scalar_prefetch = 0 : i64, scratch_operands = 1 : i64, tpu.core_type = #tpu.core_type<tc>, window_params = [{transform_indices = @transform_0, window_bounds = array<i64: 1, 256, 56>}, {pipeline_mode = #tpu.pipeline_mode<synchronous>, transform_indices = @transform_1, window_bounds = array<i64: 56, 128>}, {pipeline_mode = #tpu.pipeline_mode<synchronous>, transform_indices = @transform_2, window_bounds = array<i64: 128, 128>}, {pipeline_mode = #tpu.pipeline_mode<synchronous>, transform_indices = @transform_3, window_bounds = array<i64: 1, 128>}, {pipeline_mode = #tpu.pipeline_mode<synchronous>, transform_indices = @transform_4, window_bounds = array<i64: 9, 128, 128>}, {pipeline_mode = #tpu.pipeline_mode<synchronous>, transform_indices = @transform_5, window_bounds = array<i64: 1, 128>}, {transform_indices = @transform_6, window_bounds = array<i64: 1, 256, 128>}]} {
    %c0 = arith.constant 0 : index
    %c0_0 = arith.constant 0 : index
    %c0_1 = arith.constant 0 : index
    %0 = vector.load %arg1[%c0, %c0_0, %c0_1] : memref<1x256x56xf32, #tpu.memory_space<vmem>>, vector<1x256x56xf32>
    %1 = vector.shape_cast %0 : vector<1x256x56xf32> to vector<256x56xf32>
    %c0_2 = arith.constant 0 : index
    %c0_3 = arith.constant 0 : index
    %2 = vector.load %arg2[%c0_2, %c0_3] : memref<56x128xf32, #tpu.memory_space<vmem>>, vector<56x128xf32>
    %cst = arith.constant dense<0.000000e+00> : vector<256x128xf32>
    %3 = tpu.matmul %1, %2, %cst {dimension_numbers = #tpu.dot_dimension_numbers<[1], [0], [0], [1], [0, 0, 1, 1], [], []>} : vector<256x56xf32>, vector<56x128xf32>, vector<256x128xf32> -> vector<256x128xf32>
    %cst_4 = arith.constant 5.000000e-01 : f32
    %4 = vector.broadcast %cst_4 : f32 to vector<256x128xf32>
    %5 = arith.mulf %3, %4 : vector<256x128xf32>
    %cst_5 = arith.constant 0.707106769 : f32
    %6 = vector.broadcast %cst_5 : f32 to vector<256x128xf32>
    %7 = arith.mulf %3, %6 : vector<256x128xf32>
    %cst_6 = arith.constant -4.000000e+00 : f32
    %cst_7 = arith.constant 4.000000e+00 : f32
    %8 = vector.broadcast %cst_6 : f32 to vector<256x128xf32>
    %9 = arith.maximumf %8, %7 : vector<256x128xf32>
    %10 = vector.broadcast %cst_7 : f32 to vector<256x128xf32>
    %11 = arith.minimumf %10, %9 : vector<256x128xf32>
    %12 = arith.mulf %11, %11 : vector<256x128xf32>
    %cst_8 = arith.constant -2.72614237E-10 : f32
    %13 = vector.broadcast %cst_8 : f32 to vector<256x128xf32>
    %14 = arith.mulf %13, %12 : vector<256x128xf32>
    %cst_9 = arith.constant 2.77068146E-8 : f32
    %15 = vector.broadcast %cst_9 : f32 to vector<256x128xf32>
    %16 = arith.addf %14, %15 : vector<256x128xf32>
    %17 = arith.mulf %16, %12 : vector<256x128xf32>
    %cst_10 = arith.constant -2.10102394E-6 : f32
    %18 = vector.broadcast %cst_10 : f32 to vector<256x128xf32>
    %19 = arith.addf %17, %18 : vector<256x128xf32>
    %20 = arith.mulf %19, %12 : vector<256x128xf32>
    %cst_11 = arith.constant -5.69250624E-5 : f32
    %21 = vector.broadcast %cst_11 : f32 to vector<256x128xf32>
    %22 = arith.addf %20, %21 : vector<256x128xf32>
    %23 = arith.mulf %22, %12 : vector<256x128xf32>
    %cst_12 = arith.constant -7.34990637E-4 : f32
    %24 = vector.broadcast %cst_12 : f32 to vector<256x128xf32>
    %25 = arith.addf %23, %24 : vector<256x128xf32>
    %26 = arith.mulf %25, %12 : vector<256x128xf32>
    %cst_13 = arith.constant -2.954600e-03 : f32
    %27 = vector.broadcast %cst_13 : f32 to vector<256x128xf32>
    %28 = arith.addf %26, %27 : vector<256x128xf32>
    %29 = arith.mulf %28, %12 : vector<256x128xf32>
    %cst_14 = arith.constant -0.0160960332 : f32
    %30 = vector.broadcast %cst_14 : f32 to vector<256x128xf32>
    %31 = arith.addf %29, %30 : vector<256x128xf32>
    %cst_15 = arith.constant -1.45660715E-5 : f32
    %32 = vector.broadcast %cst_15 : f32 to vector<256x128xf32>
    %33 = arith.mulf %32, %12 : vector<256x128xf32>
    %cst_16 = arith.constant -2.13374049E-4 : f32
    %34 = vector.broadcast %cst_16 : f32 to vector<256x128xf32>
    %35 = arith.addf %33, %34 : vector<256x128xf32>
    %36 = arith.mulf %35, %12 : vector<256x128xf32>
    %cst_17 = arith.constant -0.00168282702 : f32
    %37 = vector.broadcast %cst_17 : f32 to vector<256x128xf32>
    %38 = arith.addf %36, %37 : vector<256x128xf32>
    %39 = arith.mulf %38, %12 : vector<256x128xf32>
    %cst_18 = arith.constant -0.00737332925 : f32
    %40 = vector.broadcast %cst_18 : f32 to vector<256x128xf32>
    %41 = arith.addf %39, %40 : vector<256x128xf32>
    %42 = arith.mulf %41, %12 : vector<256x128xf32>
    %cst_19 = arith.constant -0.0142647391 : f32
    %43 = vector.broadcast %cst_19 : f32 to vector<256x128xf32>
    %44 = arith.addf %42, %43 : vector<256x128xf32>
    %45 = tpu.reciprocal %44 {approx = true} : vector<256x128xf32> -> vector<256x128xf32>
    %46 = arith.mulf %44, %45 : vector<256x128xf32>
    %cst_20 = arith.constant 2.000000e+00 : f32
    %47 = vector.broadcast %cst_20 : f32 to vector<256x128xf32>
    %48 = arith.subf %47, %46 : vector<256x128xf32>
    %49 = arith.mulf %45, %48 : vector<256x128xf32>
    %50 = arith.mulf %11, %31 : vector<256x128xf32>
    %51 = arith.mulf %50, %49 : vector<256x128xf32>
    %cst_21 = arith.constant 1.000000e+00 : f32
    %52 = vector.broadcast %cst_21 : f32 to vector<256x128xf32>
    %53 = arith.addf %51, %52 : vector<256x128xf32>
    %54 = arith.mulf %5, %53 : vector<256x128xf32>
    %cst_22 = arith.constant 0.707106769 : f32
    %55 = vector.broadcast %cst_22 : f32 to vector<256x128xf32>
    %56 = arith.mulf %54, %55 : vector<256x128xf32>
    %cst_23 = arith.constant -4.000000e+00 : f32
    %cst_24 = arith.constant 4.000000e+00 : f32
    %57 = vector.broadcast %cst_23 : f32 to vector<256x128xf32>
    %58 = arith.maximumf %57, %56 : vector<256x128xf32>
    %59 = vector.broadcast %cst_24 : f32 to vector<256x128xf32>
    %60 = arith.minimumf %59, %58 : vector<256x128xf32>
    %61 = arith.mulf %60, %60 : vector<256x128xf32>
    %cst_25 = arith.constant -2.72614237E-10 : f32
    %62 = vector.broadcast %cst_25 : f32 to vector<256x128xf32>
    %63 = arith.mulf %62, %61 : vector<256x128xf32>
    %cst_26 = arith.constant 2.77068146E-8 : f32
    %64 = vector.broadcast %cst_26 : f32 to vector<256x128xf32>
    %65 = arith.addf %63, %64 : vector<256x128xf32>
    %66 = arith.mulf %65, %61 : vector<256x128xf32>
    %cst_27 = arith.constant -2.10102394E-6 : f32
    %67 = vector.broadcast %cst_27 : f32 to vector<256x128xf32>
    %68 = arith.addf %66, %67 : vector<256x128xf32>
    %69 = arith.mulf %68, %61 : vector<256x128xf32>
    %cst_28 = arith.constant -5.69250624E-5 : f32
    %70 = vector.broadcast %cst_28 : f32 to vector<256x128xf32>
    %71 = arith.addf %69, %70 : vector<256x128xf32>
    %72 = arith.mulf %71, %61 : vector<256x128xf32>
    %cst_29 = arith.constant -7.34990637E-4 : f32
    %73 = vector.broadcast %cst_29 : f32 to vector<256x128xf32>
    %74 = arith.addf %72, %73 : vector<256x128xf32>
    %75 = arith.mulf %74, %61 : vector<256x128xf32>
    %cst_30 = arith.constant -2.954600e-03 : f32
    %76 = vector.broadcast %cst_30 : f32 to vector<256x128xf32>
    %77 = arith.addf %75, %76 : vector<256x128xf32>
    %78 = arith.mulf %77, %61 : vector<256x128xf32>
    %cst_31 = arith.constant -0.0160960332 : f32
    %79 = vector.broadcast %cst_31 : f32 to vector<256x128xf32>
    %80 = arith.addf %78, %79 : vector<256x128xf32>
    %cst_32 = arith.constant -1.45660715E-5 : f32
    %81 = vector.broadcast %cst_32 : f32 to vector<256x128xf32>
    %82 = arith.mulf %81, %61 : vector<256x128xf32>
    %cst_33 = arith.constant -2.13374049E-4 : f32
    %83 = vector.broadcast %cst_33 : f32 to vector<256x128xf32>
    %84 = arith.addf %82, %83 : vector<256x128xf32>
    %85 = arith.mulf %84, %61 : vector<256x128xf32>
    %cst_34 = arith.constant -0.00168282702 : f32
    %86 = vector.broadcast %cst_34 : f32 to vector<256x128xf32>
    %87 = arith.addf %85, %86 : vector<256x128xf32>
    %88 = arith.mulf %87, %61 : vector<256x128xf32>
    %cst_35 = arith.constant -0.00737332925 : f32
    %89 = vector.broadcast %cst_35 : f32 to vector<256x128xf32>
    %90 = arith.addf %88, %89 : vector<256x128xf32>
    %91 = arith.mulf %90, %61 : vector<256x128xf32>
    %cst_36 = arith.constant -0.0142647391 : f32
    %92 = vector.broadcast %cst_36 : f32 to vector<256x128xf32>
    %93 = arith.addf %91, %92 : vector<256x128xf32>
    %94 = tpu.reciprocal %93 {approx = true} : vector<256x128xf32> -> vector<256x128xf32>
    %95 = arith.mulf %93, %94 : vector<256x128xf32>
    %cst_37 = arith.constant 2.000000e+00 : f32
    %96 = vector.broadcast %cst_37 : f32 to vector<256x128xf32>
    %97 = arith.subf %96, %95 : vector<256x128xf32>
    %98 = arith.mulf %94, %97 : vector<256x128xf32>
    %99 = arith.mulf %60, %80 : vector<256x128xf32>
    %100 = arith.mulf %99, %98 : vector<256x128xf32>
    %cst_38 = arith.constant 1.000000e+00 : f32
    %101 = vector.broadcast %cst_38 : f32 to vector<256x128xf32>
    %102 = arith.addf %100, %101 : vector<256x128xf32>
    %cst_39 = arith.constant 5.000000e-01 : f32
    %103 = vector.broadcast %cst_39 : f32 to vector<256x128xf32>
    %104 = arith.mulf %54, %103 : vector<256x128xf32>
    %105 = arith.mulf %104, %102 : vector<256x128xf32>
    %c0_40 = arith.constant 0 : index
    %c0_41 = arith.constant 0 : index
    %106 = vector.load %arg3[%c0_40, %c0_41] : memref<128x128xf32, #tpu.memory_space<vmem>>, vector<128x128xf32>
    %cst_42 = arith.constant dense<0.000000e+00> : vector<256x128xf32>
    %107 = tpu.matmul %54, %106, %cst_42 {dimension_numbers = #tpu.dot_dimension_numbers<[1], [0], [0], [1], [0, 0, 1, 1], [], []>} : vector<256x128xf32>, vector<128x128xf32>, vector<256x128xf32> -> vector<256x128xf32>
    %c0_43 = arith.constant 0 : index
    %c0_44 = arith.constant 0 : index
    %108 = vector.load %arg4[%c0_43, %c0_44] : memref<1x128xf32, #tpu.memory_space<vmem>>, vector<1x128xf32>
    %109 = vector.broadcast %108 : vector<1x128xf32> to vector<256x128xf32>
    %110 = arith.addf %107, %109 : vector<256x128xf32>
    %111 = arith.mulf %105, %110 : vector<256x128xf32>
    %cst_45 = arith.constant 5.000000e-01 : f32
    %112 = vector.broadcast %cst_45 : f32 to vector<256x128xf32>
    %113 = arith.mulf %111, %112 : vector<256x128xf32>
    %cst_46 = arith.constant 0.707106769 : f32
    %114 = vector.broadcast %cst_46 : f32 to vector<256x128xf32>
    %115 = arith.mulf %111, %114 : vector<256x128xf32>
    %cst_47 = arith.constant -4.000000e+00 : f32
    %cst_48 = arith.constant 4.000000e+00 : f32
    %116 = vector.broadcast %cst_47 : f32 to vector<256x128xf32>
    %117 = arith.maximumf %116, %115 : vector<256x128xf32>
    %118 = vector.broadcast %cst_48 : f32 to vector<256x128xf32>
    %119 = arith.minimumf %118, %117 : vector<256x128xf32>
    %120 = arith.mulf %119, %119 : vector<256x128xf32>
    %cst_49 = arith.constant -2.72614237E-10 : f32
    %121 = vector.broadcast %cst_49 : f32 to vector<256x128xf32>
    %122 = arith.mulf %121, %120 : vector<256x128xf32>
    %cst_50 = arith.constant 2.77068146E-8 : f32
    %123 = vector.broadcast %cst_50 : f32 to vector<256x128xf32>
    %124 = arith.addf %122, %123 : vector<256x128xf32>
    %125 = arith.mulf %124, %120 : vector<256x128xf32>
    %cst_51 = arith.constant -2.10102394E-6 : f32
    %126 = vector.broadcast %cst_51 : f32 to vector<256x128xf32>
    %127 = arith.addf %125, %126 : vector<256x128xf32>
    %128 = arith.mulf %127, %120 : vector<256x128xf32>
    %cst_52 = arith.constant -5.69250624E-5 : f32
    %129 = vector.broadcast %cst_52 : f32 to vector<256x128xf32>
    %130 = arith.addf %128, %129 : vector<256x128xf32>
    %131 = arith.mulf %130, %120 : vector<256x128xf32>
    %cst_53 = arith.constant -7.34990637E-4 : f32
    %132 = vector.broadcast %cst_53 : f32 to vector<256x128xf32>
    %133 = arith.addf %131, %132 : vector<256x128xf32>
    %134 = arith.mulf %133, %120 : vector<256x128xf32>
    %cst_54 = arith.constant -2.954600e-03 : f32
    %135 = vector.broadcast %cst_54 : f32 to vector<256x128xf32>
    %136 = arith.addf %134, %135 : vector<256x128xf32>
    %137 = arith.mulf %136, %120 : vector<256x128xf32>
    %cst_55 = arith.constant -0.0160960332 : f32
    %138 = vector.broadcast %cst_55 : f32 to vector<256x128xf32>
    %139 = arith.addf %137, %138 : vector<256x128xf32>
    %cst_56 = arith.constant -1.45660715E-5 : f32
    %140 = vector.broadcast %cst_56 : f32 to vector<256x128xf32>
    %141 = arith.mulf %140, %120 : vector<256x128xf32>
    %cst_57 = arith.constant -2.13374049E-4 : f32
    %142 = vector.broadcast %cst_57 : f32 to vector<256x128xf32>
    %143 = arith.addf %141, %142 : vector<256x128xf32>
    %144 = arith.mulf %143, %120 : vector<256x128xf32>
    %cst_58 = arith.constant -0.00168282702 : f32
    %145 = vector.broadcast %cst_58 : f32 to vector<256x128xf32>
    %146 = arith.addf %144, %145 : vector<256x128xf32>
    %147 = arith.mulf %146, %120 : vector<256x128xf32>
    %cst_59 = arith.constant -0.00737332925 : f32
    %148 = vector.broadcast %cst_59 : f32 to vector<256x128xf32>
    %149 = arith.addf %147, %148 : vector<256x128xf32>
    %150 = arith.mulf %149, %120 : vector<256x128xf32>
    %cst_60 = arith.constant -0.0142647391 : f32
    %151 = vector.broadcast %cst_60 : f32 to vector<256x128xf32>
    %152 = arith.addf %150, %151 : vector<256x128xf32>
    %153 = tpu.reciprocal %152 {approx = true} : vector<256x128xf32> -> vector<256x128xf32>
    %154 = arith.mulf %152, %153 : vector<256x128xf32>
    %cst_61 = arith.constant 2.000000e+00 : f32
    %155 = vector.broadcast %cst_61 : f32 to vector<256x128xf32>
    %156 = arith.subf %155, %154 : vector<256x128xf32>
    %157 = arith.mulf %153, %156 : vector<256x128xf32>
    %158 = arith.mulf %119, %139 : vector<256x128xf32>
    %159 = arith.mulf %158, %157 : vector<256x128xf32>
    %cst_62 = arith.constant 1.000000e+00 : f32
    %160 = vector.broadcast %cst_62 : f32 to vector<256x128xf32>
    %161 = arith.addf %159, %160 : vector<256x128xf32>
    %162 = arith.mulf %113, %161 : vector<256x128xf32>
    %cst_63 = arith.constant 0.000000e+00 : f32
    %163 = vector.broadcast %cst_63 : f32 to vector<304x128xf32>
    %c0_64 = arith.constant 0 : index
    %c0_65 = arith.constant 0 : index
    %164 = vector.load %arg8[%c0_64, %c0_65] : memref<304x128xf32, #tpu.memory_space<vmem>>, vector<304x128xf32>
    tpu.vector_store %arg8[%c0_64, %c0_65], %163 {strides = array<i32>} : memref<304x128xf32, #tpu.memory_space<vmem>>, vector<304x128xf32>,
    %c24 = arith.constant 24 : index
    %c0_66 = arith.constant 0 : index
    %165 = vector.load %arg8[%c24, %c0_66] : memref<304x128xf32, #tpu.memory_space<vmem>>, vector<256x128xf32>
    tpu.vector_store %arg8[%c24, %c0_66], %102 {strides = array<i32>} : memref<304x128xf32, #tpu.memory_space<vmem>>, vector<256x128xf32>,
    %166 = tpu.iota {dimensions = array<i32: 0>} : vector<256x128xi32>
    %c16_i32 = arith.constant 16 : i32
    %c0_i32 = arith.constant 0 : i32
    %167 = arith.cmpi eq, %c16_i32, %c0_i32 : i32
    %c1_i32 = arith.constant 1 : i32
    %168 = arith.select %167, %c1_i32, %c16_i32 : i32
    %169 = vector.broadcast %168 : i32 to vector<256x128xi32>
    %170 = arith.remsi %166, %169 : vector<256x128xi32>
    %c0_i32_67 = arith.constant 0 : i32
    %171 = vector.broadcast %c0_i32_67 : i32 to vector<256x128xi32>
    %172 = arith.cmpi ne, %170, %171 : vector<256x128xi32>
    %c0_i32_68 = arith.constant 0 : i32
    %173 = vector.broadcast %c0_i32_68 : i32 to vector<256x128xi32>
    %174 = arith.cmpi slt, %170, %173 : vector<256x128xi32>
    %c0_i32_69 = arith.constant 0 : i32
    %175 = arith.cmpi slt, %168, %c0_i32_69 : i32
    %176 = vector.broadcast %175 : i1 to vector<256x128xi1>
    %177 = vector.broadcast %176 : vector<256x128xi1> to vector<256x128xi1>
    %178 = arith.xori %174, %177 : vector<256x128xi1>
    %179 = arith.andi %178, %172 : vector<256x128xi1>
    %180 = vector.broadcast %168 : i32 to vector<256x128xi32>
    %181 = arith.addi %170, %180 : vector<256x128xi32>
    %182 = arith.select %179, %181, %170 : vector<256x128xi1>, vector<256x128xi32>
    %c0_i32_70 = arith.constant 0 : i32
    %183 = vector.broadcast %c0_i32_70 : i32 to vector<256x128xi32>
    %184 = arith.cmpi ne, %182, %183 : vector<256x128xi32>
    %c15_i32 = arith.constant 15 : i32
    %185 = vector.broadcast %c15_i32 : i32 to vector<256x128xi32>
    %186 = arith.cmpi ne, %182, %185 : vector<256x128xi32>
    %cst_71 = arith.constant 0.000000e+00 : f32
    %187 = vector.broadcast %cst_71 : f32 to vector<256x128xf32>
    %c7 = arith.constant 7 : index
    %c0_72 = arith.constant 0 : index
    %188 = vector.load %arg8[%c7, %c0_72] : memref<304x128xf32, #tpu.memory_space<vmem>>, vector<256x128xf32>
    %cst_73 = arith.constant 0.000000e+00 : f32
    %189 = vector.broadcast %cst_73 : f32 to vector<256x128xf32>
    %190 = arith.select %184, %188, %189 : vector<256x128xi1>, vector<256x128xf32>
    %c0_74 = arith.constant 0 : index
    %c0_75 = arith.constant 0 : index
    %c0_76 = arith.constant 0 : index
    %191 = vector.load %arg5[%c0_74, %c0_75, %c0_76] : memref<9x128x128xf32, #tpu.memory_space<vmem>>, vector<1x128x128xf32>
    %192 = vector.shape_cast %191 : vector<1x128x128xf32> to vector<128x128xf32>
    %cst_77 = arith.constant dense<0.000000e+00> : vector<256x128xf32>
    %193 = tpu.matmul %190, %192, %cst_77 {dimension_numbers = #tpu.dot_dimension_numbers<[1], [0], [0], [1], [0, 0, 1, 1], [], []>} : vector<256x128xf32>, vector<128x128xf32>, vector<256x128xf32> -> vector<256x128xf32>
    %194 = arith.addf %187, %193 : vector<256x128xf32>
    %c8 = arith.constant 8 : index
    %c0_78 = arith.constant 0 : index
    %195 = vector.load %arg8[%c8, %c0_78] : memref<304x128xf32, #tpu.memory_space<vmem>>, vector<256x128xf32>
    %c1 = arith.constant 1 : index
    %c0_79 = arith.constant 0 : index
    %c0_80 = arith.constant 0 : index
    %196 = vector.load %arg5[%c1, %c0_79, %c0_80] : memref<9x128x128xf32, #tpu.memory_space<vmem>>, vector<1x128x128xf32>
    %197 = vector.shape_cast %196 : vector<1x128x128xf32> to vector<128x128xf32>
    %cst_81 = arith.constant dense<0.000000e+00> : vector<256x128xf32>
    %198 = tpu.matmul %195, %197, %cst_81 {dimension_numbers = #tpu.dot_dimension_numbers<[1], [0], [0], [1], [0, 0, 1, 1], [], []>} : vector<256x128xf32>, vector<128x128xf32>, vector<256x128xf32> -> vector<256x128xf32>
    %199 = arith.addf %194, %198 : vector<256x128xf32>
    %c9 = arith.constant 9 : index
    %c0_82 = arith.constant 0 : index
    %200 = vector.load %arg8[%c9, %c0_82] : memref<304x128xf32, #tpu.memory_space<vmem>>, vector<256x128xf32>
    %cst_83 = arith.constant 0.000000e+00 : f32
    %201 = vector.broadcast %cst_83 : f32 to vector<256x128xf32>
    %202 = arith.select %186, %200, %201 : vector<256x128xi1>, vector<256x128xf32>
    %c2 = arith.constant 2 : index
    %c0_84 = arith.constant 0 : index
    %c0_85 = arith.constant 0 : index
    %203 = vector.load %arg5[%c2, %c0_84, %c0_85] : memref<9x128x128xf32, #tpu.memory_space<vmem>>, vector<1x128x128xf32>
    %204 = vector.shape_cast %203 : vector<1x128x128xf32> to vector<128x128xf32>
    %cst_86 = arith.constant dense<0.000000e+00> : vector<256x128xf32>
    %205 = tpu.matmul %202, %204, %cst_86 {dimension_numbers = #tpu.dot_dimension_numbers<[1], [0], [0], [1], [0, 0, 1, 1], [], []>} : vector<256x128xf32>, vector<128x128xf32>, vector<256x128xf32> -> vector<256x128xf32>
    %206 = arith.addf %199, %205 : vector<256x128xf32>
    %c23 = arith.constant 23 : index
    %c0_87 = arith.constant 0 : index
    %207 = vector.load %arg8[%c23, %c0_87] : memref<304x128xf32, #tpu.memory_space<vmem>>, vector<256x128xf32>
    %cst_88 = arith.constant 0.000000e+00 : f32
    %208 = vector.broadcast %cst_88 : f32 to vector<256x128xf32>
    %209 = arith.select %184, %207, %208 : vector<256x128xi1>, vector<256x128xf32>
    %c3 = arith.constant 3 : index
    %c0_89 = arith.constant 0 : index
    %c0_90 = arith.constant 0 : index
    %210 = vector.load %arg5[%c3, %c0_89, %c0_90] : memref<9x128x128xf32, #tpu.memory_space<vmem>>, vector<1x128x128xf32>
    %211 = vector.shape_cast %210 : vector<1x128x128xf32> to vector<128x128xf32>
    %cst_91 = arith.constant dense<0.000000e+00> : vector<256x128xf32>
    %212 = tpu.matmul %209, %211, %cst_91 {dimension_numbers = #tpu.dot_dimension_numbers<[1], [0], [0], [1], [0, 0, 1, 1], [], []>} : vector<256x128xf32>, vector<128x128xf32>, vector<256x128xf32> -> vector<256x128xf32>
    %213 = arith.addf %206, %212 : vector<256x128xf32>
    %c24_92 = arith.constant 24 : index
    %c0_93 = arith.constant 0 : index
    %214 = vector.load %arg8[%c24_92, %c0_93] : memref<304x128xf32, #tpu.memory_space<vmem>>, vector<256x128xf32>
    %c4 = arith.constant 4 : index
    %c0_94 = arith.constant 0 : index
    %c0_95 = arith.constant 0 : index
    %215 = vector.load %arg5[%c4, %c0_94, %c0_95] : memref<9x128x128xf32, #tpu.memory_space<vmem>>, vector<1x128x128xf32>
    %216 = vector.shape_cast %215 : vector<1x128x128xf32> to vector<128x128xf32>
    %cst_96 = arith.constant dense<0.000000e+00> : vector<256x128xf32>
    %217 = tpu.matmul %214, %216, %cst_96 {dimension_numbers = #tpu.dot_dimension_numbers<[1], [0], [0], [1], [0, 0, 1, 1], [], []>} : vector<256x128xf32>, vector<128x128xf32>, vector<256x128xf32> -> vector<256x128xf32>
    %218 = arith.addf %213, %217 : vector<256x128xf32>
    %c25 = arith.constant 25 : index
    %c0_97 = arith.constant 0 : index
    %219 = vector.load %arg8[%c25, %c0_97] : memref<304x128xf32, #tpu.memory_space<vmem>>, vector<256x128xf32>
    %cst_98 = arith.constant 0.000000e+00 : f32
    %220 = vector.broadcast %cst_98 : f32 to vector<256x128xf32>
    %221 = arith.select %186, %219, %220 : vector<256x128xi1>, vector<256x128xf32>
    %c5 = arith.constant 5 : index
    %c0_99 = arith.constant 0 : index
    %c0_100 = arith.constant 0 : index
    %222 = vector.load %arg5[%c5, %c0_99, %c0_100] : memref<9x128x128xf32, #tpu.memory_space<vmem>>, vector<1x128x128xf32>
    %223 = vector.shape_cast %222 : vector<1x128x128xf32> to vector<128x128xf32>
    %cst_101 = arith.constant dense<0.000000e+00> : vector<256x128xf32>
    %224 = tpu.matmul %221, %223, %cst_101 {dimension_numbers = #tpu.dot_dimension_numbers<[1], [0], [0], [1], [0, 0, 1, 1], [], []>} : vector<256x128xf32>, vector<128x128xf32>, vector<256x128xf32> -> vector<256x128xf32>
    %225 = arith.addf %218, %224 : vector<256x128xf32>
    %c39 = arith.constant 39 : index
    %c0_102 = arith.constant 0 : index
    %226 = vector.load %arg8[%c39, %c0_102] : memref<304x128xf32, #tpu.memory_space<vmem>>, vector<256x128xf32>
    %cst_103 = arith.constant 0.000000e+00 : f32
    %227 = vector.broadcast %cst_103 : f32 to vector<256x128xf32>
    %228 = arith.select %184, %226, %227 : vector<256x128xi1>, vector<256x128xf32>
    %c6 = arith.constant 6 : index
    %c0_104 = arith.constant 0 : index
    %c0_105 = arith.constant 0 : index
    %229 = vector.load %arg5[%c6, %c0_104, %c0_105] : memref<9x128x128xf32, #tpu.memory_space<vmem>>, vector<1x128x128xf32>
    %230 = vector.shape_cast %229 : vector<1x128x128xf32> to vector<128x128xf32>
    %cst_106 = arith.constant dense<0.000000e+00> : vector<256x128xf32>
    %231 = tpu.matmul %228, %230, %cst_106 {dimension_numbers = #tpu.dot_dimension_numbers<[1], [0], [0], [1], [0, 0, 1, 1], [], []>} : vector<256x128xf32>, vector<128x128xf32>, vector<256x128xf32> -> vector<256x128xf32>
    %232 = arith.addf %225, %231 : vector<256x128xf32>
    %c40 = arith.constant 40 : index
    %c0_107 = arith.constant 0 : index
    %233 = vector.load %arg8[%c40, %c0_107] : memref<304x128xf32, #tpu.memory_space<vmem>>, vector<256x128xf32>
    %c7_108 = arith.constant 7 : index
    %c0_109 = arith.constant 0 : index
    %c0_110 = arith.constant 0 : index
    %234 = vector.load %arg5[%c7_108, %c0_109, %c0_110] : memref<9x128x128xf32, #tpu.memory_space<vmem>>, vector<1x128x128xf32>
    %235 = vector.shape_cast %234 : vector<1x128x128xf32> to vector<128x128xf32>
    %cst_111 = arith.constant dense<0.000000e+00> : vector<256x128xf32>
    %236 = tpu.matmul %233, %235, %cst_111 {dimension_numbers = #tpu.dot_dimension_numbers<[1], [0], [0], [1], [0, 0, 1, 1], [], []>} : vector<256x128xf32>, vector<128x128xf32>, vector<256x128xf32> -> vector<256x128xf32>
    %237 = arith.addf %232, %236 : vector<256x128xf32>
    %c41 = arith.constant 41 : index
    %c0_112 = arith.constant 0 : index
    %238 = vector.load %arg8[%c41, %c0_112] : memref<304x128xf32, #tpu.memory_space<vmem>>, vector<256x128xf32>
    %cst_113 = arith.constant 0.000000e+00 : f32
    %239 = vector.broadcast %cst_113 : f32 to vector<256x128xf32>
    %240 = arith.select %186, %238, %239 : vector<256x128xi1>, vector<256x128xf32>
    %c8_114 = arith.constant 8 : index
    %c0_115 = arith.constant 0 : index
    %c0_116 = arith.constant 0 : index
    %241 = vector.load %arg5[%c8_114, %c0_115, %c0_116] : memref<9x128x128xf32, #tpu.memory_space<vmem>>, vector<1x128x128xf32>
    %242 = vector.shape_cast %241 : vector<1x128x128xf32> to vector<128x128xf32>
    %cst_117 = arith.constant dense<0.000000e+00> : vector<256x128xf32>
    %243 = tpu.matmul %240, %242, %cst_117 {dimension_numbers = #tpu.dot_dimension_numbers<[1], [0], [0], [1], [0, 0, 1, 1], [], []>} : vector<256x128xf32>, vector<128x128xf32>, vector<256x128xf32> -> vector<256x128xf32>
    %244 = arith.addf %237, %243 : vector<256x128xf32>
    %c0_118 = arith.constant 0 : index
    %c0_119 = arith.constant 0 : index
    %245 = vector.load %arg6[%c0_118, %c0_119] : memref<1x128xf32, #tpu.memory_space<vmem>>, vector<1x128xf32>
    %246 = vector.broadcast %245 : vector<1x128xf32> to vector<256x128xf32>
    %247 = arith.addf %244, %246 : vector<256x128xf32>
    %248 = arith.mulf %162, %247 : vector<256x128xf32>
    %cst_120 = arith.constant 5.000000e-01 : f32
    %249 = vector.broadcast %cst_120 : f32 to vector<256x128xf32>
    %250 = arith.mulf %248, %249 : vector<256x128xf32>
    %cst_121 = arith.constant 0.707106769 : f32
    %251 = vector.broadcast %cst_121 : f32 to vector<256x128xf32>
    %252 = arith.mulf %248, %251 : vector<256x128xf32>
    %cst_122 = arith.constant -4.000000e+00 : f32
    %cst_123 = arith.constant 4.000000e+00 : f32
    %253 = vector.broadcast %cst_122 : f32 to vector<256x128xf32>
    %254 = arith.maximumf %253, %252 : vector<256x128xf32>
    %255 = vector.broadcast %cst_123 : f32 to vector<256x128xf32>
    %256 = arith.minimumf %255, %254 : vector<256x128xf32>
    %257 = arith.mulf %256, %256 : vector<256x128xf32>
    %cst_124 = arith.constant -2.72614237E-10 : f32
    %258 = vector.broadcast %cst_124 : f32 to vector<256x128xf32>
    %259 = arith.mulf %258, %257 : vector<256x128xf32>
    %cst_125 = arith.constant 2.77068146E-8 : f32
    %260 = vector.broadcast %cst_125 : f32 to vector<256x128xf32>
    %261 = arith.addf %259, %260 : vector<256x128xf32>
    %262 = arith.mulf %261, %257 : vector<256x128xf32>
    %cst_126 = arith.constant -2.10102394E-6 : f32
    %263 = vector.broadcast %cst_126 : f32 to vector<256x128xf32>
    %264 = arith.addf %262, %263 : vector<256x128xf32>
    %265 = arith.mulf %264, %257 : vector<256x128xf32>
    %cst_127 = arith.constant -5.69250624E-5 : f32
    %266 = vector.broadcast %cst_127 : f32 to vector<256x128xf32>
    %267 = arith.addf %265, %266 : vector<256x128xf32>
    %268 = arith.mulf %267, %257 : vector<256x128xf32>
    %cst_128 = arith.constant -7.34990637E-4 : f32
    %269 = vector.broadcast %cst_128 : f32 to vector<256x128xf32>
    %270 = arith.addf %268, %269 : vector<256x128xf32>
    %271 = arith.mulf %270, %257 : vector<256x128xf32>
    %cst_129 = arith.constant -2.954600e-03 : f32
    %272 = vector.broadcast %cst_129 : f32 to vector<256x128xf32>
    %273 = arith.addf %271, %272 : vector<256x128xf32>
    %274 = arith.mulf %273, %257 : vector<256x128xf32>
    %cst_130 = arith.constant -0.0160960332 : f32
    %275 = vector.broadcast %cst_130 : f32 to vector<256x128xf32>
    %276 = arith.addf %274, %275 : vector<256x128xf32>
    %cst_131 = arith.constant -1.45660715E-5 : f32
    %277 = vector.broadcast %cst_131 : f32 to vector<256x128xf32>
    %278 = arith.mulf %277, %257 : vector<256x128xf32>
    %cst_132 = arith.constant -2.13374049E-4 : f32
    %279 = vector.broadcast %cst_132 : f32 to vector<256x128xf32>
    %280 = arith.addf %278, %279 : vector<256x128xf32>
    %281 = arith.mulf %280, %257 : vector<256x128xf32>
    %cst_133 = arith.constant -0.00168282702 : f32
    %282 = vector.broadcast %cst_133 : f32 to vector<256x128xf32>
    %283 = arith.addf %281, %282 : vector<256x128xf32>
    %284 = arith.mulf %283, %257 : vector<256x128xf32>
    %cst_134 = arith.constant -0.00737332925 : f32
    %285 = vector.broadcast %cst_134 : f32 to vector<256x128xf32>
    %286 = arith.addf %284, %285 : vector<256x128xf32>
    %287 = arith.mulf %286, %257 : vector<256x128xf32>
    %cst_135 = arith.constant -0.0142647391 : f32
    %288 = vector.broadcast %cst_135 : f32 to vector<256x128xf32>
    %289 = arith.addf %287, %288 : vector<256x128xf32>
    %290 = tpu.reciprocal %289 {approx = true} : vector<256x128xf32> -> vector<256x128xf32>
    %291 = arith.mulf %289, %290 : vector<256x128xf32>
    %cst_136 = arith.constant 2.000000e+00 : f32
    %292 = vector.broadcast %cst_136 : f32 to vector<256x128xf32>
    %293 = arith.subf %292, %291 : vector<256x128xf32>
    %294 = arith.mulf %290, %293 : vector<256x128xf32>
    %295 = arith.mulf %256, %276 : vector<256x128xf32>
    %296 = arith.mulf %295, %294 : vector<256x128xf32>
    %cst_137 = arith.constant 1.000000e+00 : f32
    %297 = vector.broadcast %cst_137 : f32 to vector<256x128xf32>
    %298 = arith.addf %296, %297 : vector<256x128xf32>
    %299 = arith.mulf %250, %298 : vector<256x128xf32>
    %c0_138 = arith.constant 0 : index
    %c0_139 = arith.constant 0 : index
    %c0_140 = arith.constant 0 : index
    %300 = vector.load %arg7[%c0_138, %c0_139, %c0_140] : memref<1x256x128xf32, #tpu.memory_space<vmem>>, vector<1x256x128xf32>
    %301 = vector.shape_cast %300 : vector<1x256x128xf32> to vector<256x128xf32>
    %302 = vector.shape_cast %299 : vector<256x128xf32> to vector<1x256x128xf32>
    tpu.vector_store %arg7[%c0_138, %c0_139, %c0_140], %302 {strides = array<i32>} : memref<1x256x128xf32, #tpu.memory_space<vmem>>, vector<1x256x128xf32>,
    return
  }
  func.func @transform_0(%arg0: i32) -> (i32, i32, i32) {
    %c0_i32 = arith.constant 0 : i32
    %c0_i32_0 = arith.constant 0 : i32
    %c0_i32_1 = arith.constant 0 : i32
    return %arg0, %c0_i32, %c0_i32_0 : i32, i32, i32
  }
  func.func @transform_1(%arg0: i32) -> (i32, i32) {
    %c0_i32 = arith.constant 0 : i32
    %c0_i32_0 = arith.constant 0 : i32
    %c0_i32_1 = arith.constant 0 : i32
    return %c0_i32, %c0_i32_0 : i32, i32
  }
  func.func @transform_2(%arg0: i32) -> (i32, i32) {
    %c0_i32 = arith.constant 0 : i32
    %c0_i32_0 = arith.constant 0 : i32
    %c0_i32_1 = arith.constant 0 : i32
    return %c0_i32, %c0_i32_0 : i32, i32
  }
  func.func @transform_3(%arg0: i32) -> (i32, i32) {
    %c0_i32 = arith.constant 0 : i32
    %c0_i32_0 = arith.constant 0 : i32
    %c0_i32_1 = arith.constant 0 : i32
    return %c0_i32, %c0_i32_0 : i32, i32
  }
  func.func @transform_4(%arg0: i32) -> (i32, i32, i32) {
    %c0_i32 = arith.constant 0 : i32
    %c0_i32_0 = arith.constant 0 : i32
    %c0_i32_1 = arith.constant 0 : i32
    %c0_i32_2 = arith.constant 0 : i32
    return %c0_i32, %c0_i32_0, %c0_i32_1 : i32, i32, i32
  }
  func.func @transform_5(%arg0: i32) -> (i32, i32) {
    %c0_i32 = arith.constant 0 : i32
    %c0_i32_0 = arith.constant 0 : i32
    %c0_i32_1 = arith.constant 0 : i32
    return %c0_i32, %c0_i32_0 : i32, i32
  }
  func.func @transform_6(%arg0: i32) -> (i32, i32, i32) {
    %c0_i32 = arith.constant 0 : i32
    %c0_i32_0 = arith.constant 0 : i32
    %c0_i32_1 = arith.constant 0 : i32
    return %arg0, %c0_i32, %c0_i32_0 : i32, i32, i32
  }
}

</mosaic_0001>

<bundles_post_ra>
// kernel: model_forward.1
= control target key start
LH: loop header
LB: loop body
LE: loop exit
PB: predicated region body
PF: predicated region fallthrough
CT: control target
= control target key end

     0   :  { %11 = vsyncpa [#allocation4], 0  ;;  %s16721_s0 = inlined_call_operand.vmem [shape: f32[2,256,56], index: 0, kind: input, shape index: {}]   ;;  %s16722_s1 = inlined_call_operand.vmem [shape: f32[56,128], index: 1, kind: input, shape index: {}]   ;;  %s16723_s2 = inlined_call_operand.vmem [shape: f32[128,128], index: 2, kind: input, shape index: {}]   ;;  %s16724_s3 = inlined_call_operand.vmem [shape: f32[1,128], index: 3, kind: input, shape index: {}]   ;;  %s16725_s4 = inlined_call_operand.vmem [shape: f32[9,128,128], index: 4, kind: input, shape index: {}]   ;;  %s16726_s5 = inlined_call_operand.vmem [shape: f32[1,128], index: 5, kind: input, shape index: {}]   ;;  %s16727_s6 = inlined_call_operand.hbm [shape: f32[2,256,128], index: 6, kind: output, shape index: {}]  }
   0x1   :  { %13 = vsyncpa [#allocation4 + $0x1], 0  ;;  %s11543_s21 = smov 0   ;;  %s11545_s22 = smov 0  }
   0x2   :  { %s11547_s23 = smov 0   ;;  %s11549_s24 = smov 0  }
   0x3 LB: > { %s11564_s25 = sadd.s32 4294967295, %s11502_s24   ;;  %s8726_s26 = sadd.s32 4294967294, %s11502_s24   ;;  %s11502_s24 = sphi %s11549_s24, %s17441_s24   ;;  %s11498_s23 = sphi %s11547_s23, %s17440_s23   ;;  %s11494_s22 = sphi %s11545_s22, %s17439_s22   ;;  %s11490_s21 = sphi %s11543_s21, %s17438_s21  }
   0x4   : > { %s11568_s27 = sadd.s32 1, %s11502_s24   ;;  %s157_s28 = sadd.s32 1, %s11498_s23 }
   0x5   : > { %s154_s29 = ssub.s32 %s11502_s24, %s11568_s27  ;;  %p167_p0 = scmp.ne.s32.totalorder %s11498_s23, %s11494_s22 }
   0x6   : > { %p155_p1 = scmp.eq.s32.totalorder %s154_s29, 0  ;;  %p168_p2 = scmp.eq.s32.totalorder %s11564_s25, 1 }
   0x7   : > { %p173_p3 = scmp.ne.s32.totalorder %s11494_s22, %s11490_s21  ;;  %p174_p4 = scmp.eq.s32.totalorder %s8726_s26, 1 }
   0x8   : > { %s11579_s30 = scalar_select %p155_p1, %s11498_s23, %s157_s28  }
   0x9   : > { %p11581_p5 = por %p168_p2, %p167_p0  ;;  %p11585_p6 = por %p174_p4, %p173_p3 }
   0xa   : > { %p8729_p7 = scmp.ge.s32.totalorder %s11502_s24, 1  ;;  %p215_p8 = scmp.lt.s32.totalorder %s11502_s24, 3 }
   0xc   : > { %p216_p9 = pnand %p8729_p7, %p215_p8 }
   0xe   : > { %219 = sbr.rel (%p216_p9) target bundleno = 1608 (0x648), region = 44 }
  0x15   : > { %v282_v0 = vld [vmem:[%s16722_s1] sm:$0xff]  ;;  %v283_v1 = vld [vmem:[%s16722_s1 + $0x8] sm:$0xff]  ;;  %v284_v2 = vld [vmem:[%s16722_s1 + $0x10] sm:$0xff]  ;;  %p245_p10 = scmp.lt.s32.totalorder %s11564_s25, 1  ;;  %vm289_vm0 = vcmask 457728   ;;  %v11504_v42 = vmov 0.0  }
  0x16   : > { %v10507_v3 = vpack.c.bf16 %v283_v1, %v282_v0  ;;  %v285_v4 = vld [vmem:[%s16722_s1 + $0x18] sm:$0xff]  ;;  %v286_v6 = vld [vmem:[%s16722_s1 + $0x20] sm:$0xff]  ;;  %v287_v7 = vld [vmem:[%s16722_s1 + $0x28] sm:$0xff]  ;;  %4059 = vst [vmem:[#allocation2] sm:$0xff] %v11504_v42  ;;  %s242_s9 = sand.u32 1, %s11494_s22   ;;  %s9125_s16 = sshll.u32 %s11564_s25, 12 }
  0x17   : > { %v10511_v5 = vpack.c.bf16 %v285_v4, %v284_v2  ;;  %s246_s26 = scalar_select %p245_p10, %s11564_s25, 1  ;;  %v10515_v8 = vpack.c.bf16 %v287_v7, %v286_v6  ;;  %v288_v11 = vld [vmem:[%s16722_s1 + $0x30] sm:$0xff]  ;;  %4060 = vst [vmem:[#allocation2 + $0x8] sm:$0xff] %v11504_v42  ;;  %4061 = vst [vmem:[#allocation2 + $0x10] sm:$0xff] %v11504_v42 }
  0x18   : > { %10508 = vmatprep.subr.bf16.mxu0 %v10507_v3  ;;  %10839 = vmatprep.subr.bf16.mxu1 %v10507_v3  ;;  %4094 = vst [vmem:[#allocation2 + $0x118] sm:$0xff] %v11504_v42  ;;  %4095 = vst [vmem:[#allocation2 + $0x120] sm:$0xff] %v11504_v42  ;;  %s16673_s20 = scalar_lea.hbm %s16727_s6, %s9125_s16 }
  0x19   : > { %10510 = vmatpush3.bf16.msra.mxu0 %v10507_v3  ;;  %10843 = vmatpush3.bf16.msra.mxu1 %v10507_v3  ;;  %s9124_s28 = sshll.u32 %s246_s26, 8  ;;  %4096 = vst [vmem:[#allocation2 + $0x128] sm:$0xff] %v11504_v42  ;;  %s16680_s26 = scalar_lea.sflag [#allocation4], %s242_s9 }
  0x1a   : > { %10512 = vmatprep.subr.bf16.mxu0 %v10511_v5  ;;  %10840 = vmatprep.subr.bf16.mxu1 %v10511_v5  ;;  %s11614_s10 = scalar_lea.vmem %s16721_s0, %s9124_s28  ;;  %s11505_s28 = smov [#allocation3]  }
  0x1b   : > { %v250_v9 = vld [vmem:[%s11614_s10] sm:$0xff]  ;;  %v251_v12 = vld [vmem:[%s11614_s10 + $0x8] sm:$0xff]  ;;  %v252_v14 = vld [vmem:[%s11614_s10 + $0x10] sm:$0xff]  ;;  %s11444_s29 = sshll.u32 %s11505_s28, 4  ;;  %s11445_s29 = int_to_ptr.vmem [resolvable:$false] %s11444_s29 }
  0x1c   : > { %v266_v10 = vld [vmem:[%s11614_s10 + $0x80] sm:$0xff]  ;;  %9659 = vmatprep.mubr.msk.f32.mxu0 %vm289_vm0, %v250_v9  ;;  %v267_v13 = vld [vmem:[%s11614_s10 + $0x88] sm:$0xff]  ;;  %v268_v15 = vld [vmem:[%s11614_s10 + $0x90] sm:$0xff] }
  0x1d   : > { %9683 = vmatprep.mubr.msk.f32.mxu1 %vm289_vm0, %v266_v10  ;;  %10514 = vmatpush3.bf16.msra.mxu0 %v10511_v5  ;;  %v253_v16 = vld [vmem:[%s11614_s10 + $0x18] sm:$0xff]  ;;  %v254_v18 = vld [vmem:[%s11614_s10 + $0x20] sm:$0xff]  ;;  %v255_v20 = vld [vmem:[%s11614_s10 + $0x28] sm:$0xff] }
  0x1e   : > { %10844 = vmatpush3.bf16.msra.mxu1 %v10511_v5  ;;  %10516 = vmatprep.subr.bf16.mxu0 %v10515_v8  ;;  %v269_v17 = vld [vmem:[%s11614_s10 + $0x98] sm:$0xff]  ;;  %v270_v19 = vld [vmem:[%s11614_s10 + $0xa0] sm:$0xff]  ;;  %v271_v21 = vld [vmem:[%s11614_s10 + $0xa8] sm:$0xff] }
  0x1f   : > { %10841 = vmatprep.subr.bf16.mxu1 %v10515_v8  ;;  %v256_v22 = vld [vmem:[%s11614_s10 + $0x30] sm:$0xff]  ;;  %v257_v24 = vld [vmem:[%s11614_s10 + $0x38] sm:$0xff]  ;;  %v258_v26 = vld [vmem:[%s11614_s10 + $0x40] sm:$0xff] }
  0x20   : > { %v272_v23 = vld [vmem:[%s11614_s10 + $0xb0] sm:$0xff]  ;;  %v273_v25 = vld [vmem:[%s11614_s10 + $0xb8] sm:$0xff]  ;;  %v274_v27 = vld [vmem:[%s11614_s10 + $0xc0] sm:$0xff] }
  0x21   : > { %10518 = vmatpush3.bf16.msra.mxu0 %v10515_v8  ;;  %v259_v28 = vld [vmem:[%s11614_s10 + $0x48] sm:$0xff]  ;;  %v260_v30 = vld [vmem:[%s11614_s10 + $0x50] sm:$0xff]  ;;  %v261_v32 = vld [vmem:[%s11614_s10 + $0x58] sm:$0xff] }
  0x22   : > { %10845 = vmatpush3.bf16.msra.mxu1 %v10515_v8  ;;  %9657 = vmatprep.subr.mxu0 %v288_v11  ;;  %v275_v29 = vld [vmem:[%s11614_s10 + $0xc8] sm:$0xff]  ;;  %v276_v31 = vld [vmem:[%s11614_s10 + $0xd0] sm:$0xff]  ;;  %v277_v33 = vld [vmem:[%s11614_s10 + $0xd8] sm:$0xff] }
  0x23   : > { %10842 = vmatprep.subr.mxu1 %v288_v11  ;;  %v262_v34 = vld [vmem:[%s11614_s10 + $0x60] sm:$0xff]  ;;  %v263_v36 = vld [vmem:[%s11614_s10 + $0x68] sm:$0xff]  ;;  %v264_v38 = vld [vmem:[%s11614_s10 + $0x70] sm:$0xff] }
  0x24   : > { %v278_v35 = vld [vmem:[%s11614_s10 + $0xe0] sm:$0xff]  ;;  %v279_v37 = vld [vmem:[%s11614_s10 + $0xe8] sm:$0xff]  ;;  %v280_v39 = vld [vmem:[%s11614_s10 + $0xf0] sm:$0xff] }
  0x25   : > { %9658 = vmatpush3.msra.mxu0 %v288_v11  ;;  %v265_v40 = vld [vmem:[%s11614_s10 + $0x78] sm:$0xff] }
  0x26   : > { %10846 = vmatpush3.msra.mxu1 %v288_v11  ;;  %9660 = vmatmul.mubr.msk.f32.vlgmr.msra.gmra.mrb[0].mxu0 %vm289_vm0, %v251_v12  ;;  %v281_v41 = vld [vmem:[%s11614_s10 + $0xf8] sm:$0xff]  ;;  %s15895_s10 = sshll.u32 %s242_s9, 8 }
  0x27   : > { %9684 = vmatmul.mubr.msk.f32.vlgmr.msra.gmra.mrb[0].mxu1 %vm289_vm0, %v267_v13  ;;  %9662 = vmatprep.mubr.msk.f32.mxu0 %vm289_vm0, %v252_v14  ;;  %s15910_s11 = scalar_lea.vmem [#allocation3], %s15895_s10  ;;  %s11446_s10 = scalar_lea.vmem %s11445_s29, 8192 }
  0x28   : > { %9686 = vmatprep.mubr.msk.f32.mxu1 %vm289_vm0, %v268_v15  ;;  %s8664_s17 = sshll.u32 %s15910_s11, 4  ;;  %s16675_s17 = int_to_ptr.vmem [resolvable:$true] %s8664_s17 }
  0x29   : > { %s11440_s25 = scalar_lea.vmem %s16675_s17, 4096  ;;  %p11447_p0 = scmp.lt.s32.totalorder %s16675_s17, %s11445_s29 }
  0x2a   : > { %9663 = vmatmul.mubr.msk.f32.gmra.mrb[2].mxu0 %vm289_vm0, %v253_v16  ;;  %p11441_p11 = scmp.ne.s32.totalorder %s16675_s17, %s11440_s25  ;;  %p11448_p1 = scmp.lt.s32.totalorder %s11446_s10, %s11440_s25 }
  0x2b   : > { %9687 = vmatmul.mubr.msk.f32.gmra.mrb[2].mxu1 %vm289_vm0, %v269_v17  ;;  %9665 = vmatprep.mubr.msk.f32.mxu0 %vm289_vm0, %v254_v18 }
  0x2c   : > { %9689 = vmatprep.mubr.msk.f32.mxu1 %vm289_vm0, %v270_v19  ;;  %p11442_p12 = pnand %p11441_p11, %p11581_p5  ;;  %p11449_p2 = por %p11448_p1, %p11447_p0 }
  0x2e   : > { %9666 = vmatmul.mubr.msk.f32.gmra.mrb[4].mxu0 %vm289_vm0, %v255_v20  ;;  %p11443_p13 = pneg %p11442_p12 }
  0x2f   : > { %9690 = vmatmul.mubr.msk.f32.gmra.mrb[4].mxu1 %vm289_vm0, %v271_v21  ;;  %9668 = vmatprep.mubr.msk.f32.mxu0 %vm289_vm0, %v256_v22 }
  0x30   : > { %9692 = vmatprep.mubr.msk.f32.mxu1 %vm289_vm0, %v272_v23  ;;  %p11450_p3 = pnand %p11449_p2, %p11443_p13 }
  0x32   : > { %9669 = vmatmul.mubr.msk.f32.gmra.mrb[6].mxu0 %vm289_vm0, %v257_v24 }
  0x33   : > { %9693 = vmatmul.mubr.msk.f32.gmra.mrb[6].mxu1 %vm289_vm0, %v273_v25  ;;  %9671 = vmatprep.mubr.msk.f32.mxu0 %vm289_vm0, %v258_v26 }
  0x34   : > { %9695 = vmatprep.mubr.msk.f32.mxu1 %vm289_vm0, %v274_v27 }
  0x36   : > { %9672 = vmatmul.mubr.msk.f32.gmra.mrb[8].mxu0 %vm289_vm0, %v259_v28 }
  0x37   : > { %9696 = vmatmul.mubr.msk.f32.gmra.mrb[8].mxu1 %vm289_vm0, %v275_v29  ;;  %9674 = vmatprep.mubr.msk.f32.mxu0 %vm289_vm0, %v260_v30 }
  0x38   : > { %9698 = vmatprep.mubr.msk.f32.mxu1 %vm289_vm0, %v276_v31 }
  0x3a   : > { %9675 = vmatmul.mubr.msk.f32.gmra.mrb[10].mxu0 %vm289_vm0, %v261_v32 }
  0x3b   : > { %9699 = vmatmul.mubr.msk.f32.gmra.mrb[10].mxu1 %vm289_vm0, %v277_v33  ;;  %9677 = vmatprep.mubr.msk.f32.mxu0 %vm289_vm0, %v262_v34 }
  0x3c   : > { %9701 = vmatprep.mubr.msk.f32.mxu1 %vm289_vm0, %v278_v35 }
  0x3e   : > { %9678 = vmatmul.mubr.msk.f32.gmra.mrb[12].mxu0 %vm289_vm0, %v263_v36 }
  0x3f   : > { %9702 = vmatmul.mubr.msk.f32.gmra.mrb[12].mxu1 %vm289_vm0, %v279_v37  ;;  %9680 = vmatprep.mubr.msk.f32.mxu0 %vm289_vm0, %v264_v38 }
  0x40   : > { %9704 = vmatprep.mubr.msk.f32.mxu1 %vm289_vm0, %v280_v39 }
  0x42   : > { %9681 = vmatmul.mubr.msk.f32.gmra.mrb[14].mxu0 %vm289_vm0, %v265_v40 }
  0x43   : > { %9705 = vmatmul.mubr.msk.f32.gmra.mrb[14].mxu1 %vm289_vm0, %v281_v41 }
  0xf9   : > { %v9661_v43 = vpop.f32.mrb[0].mxu0 }
  0xfa   : > { %v11683_v44 = vpop.f32.mrb[0].mxu1  ;;  %v644_v45 = vmul.f32 0.70710677, %v9661_v43  ;;  %v11686_v47 = vpop.f32.mrb[1].mxu0  ;;  %v11714_v60 = vmul.f32 0.5, %v9661_v43 }
  0xfb   : > { %v660_v46 = vmul.f32 0.70710677, %v11683_v44  ;;  %v11688_v48 = vpop.f32.mrb[1].mxu1  ;;  %v643_v51 = vmul.f32 0.70710677, %v11686_v47 }
  0xfc   : > { %v11690_v49 = vclamps-f32 %v644_v45, 4.0  ;;  %v659_v52 = vmul.f32 0.70710677, %v11688_v48 }
  0xfd   : > { %v11692_v50 = vclamps-f32 %v660_v46, 4.0  ;;  %v11696_v53 = vpop.f32.mrb[2].mxu0  ;;  %v11708_v57 = vclamps-f32 %v643_v51, 4.0 }
  0xfe   : > { %v11698_v54 = vpop.f32.mrb[2].mxu1  ;;  %v11702_v55 = vmul.f32 %v11690_v49, %v11690_v49  ;;  %v11710_v58 = vpop.f32.mrb[3].mxu0  ;;  %v11716_v61 = vclamps-f32 %v659_v52, 4.0  ;;  %v646_v62 = vmul.f32 0.70710677, %v11696_v53 }
  0xff   : > { %v11706_v56 = vmul.f32 %v11692_v50, %v11692_v50  ;;  %v11712_v59 = vpop.f32.mrb[3].mxu1  ;;  %v662_v63 = vmul.f32 0.70710677, %v11698_v54  ;;  %v11725_v3 = vmul.f32 %v11708_v57, %v11708_v57 }
 0x100   : > { %v772_v0 = vmul.f32 -2.7261424e-10, %v11702_v55  ;;  %v1156_v1 = vmul.f32 -1.45660715e-05, %v11702_v55  ;;  %v11730_v5 = vmul.f32 %v11716_v61, %v11716_v61  ;;  %v11732_v6 = vclamps-f32 %v646_v62, 4.0 }
 0x101   : > { %v788_v2 = vmul.f32 -2.7261424e-10, %v11706_v56  ;;  %v1172_v4 = vmul.f32 -1.45660715e-05, %v11706_v56  ;;  %v11734_v7 = vclamps-f32 %v662_v63, 4.0  ;;  %v11736_v8 = vpop.f32.mrb[4].mxu0 }
 0x102   : > { %v11738_v9 = vpop.f32.mrb[4].mxu1  ;;  %v804_v10 = vadd.f32 2.7706815e-08, %v772_v0  ;;  %v1188_v11 = vadd.f32 -0.00021337405, %v1156_v1  ;;  %v11744_v16 = vmul.f32 %v11732_v6, %v11732_v6  ;;  %v11750_v21 = vpop.f32.mrb[5].mxu0 }
 0x103   : > { %v820_v12 = vadd.f32 2.7706815e-08, %v788_v2  ;;  %v1204_v13 = vadd.f32 -0.00021337405, %v1172_v4  ;;  %v771_v14 = vmul.f32 -2.7261424e-10, %v11725_v3  ;;  %v11758_v30 = vmul.f32 %v11734_v7, %v11734_v7 }
 0x104   : > { %v1155_v15 = vmul.f32 -1.45660715e-05, %v11725_v3  ;;  %v836_v17 = vmul.f32 %v804_v10, %v11702_v55  ;;  %v1220_v18 = vmul.f32 %v1188_v11, %v11702_v55  ;;  %v787_v20 = vmul.f32 -2.7261424e-10, %v11730_v5  ;;  %v11752_v22 = vpop.f32.mrb[5].mxu1 }
 0x105   : > { %v852_v19 = vmul.f32 %v820_v12, %v11706_v56  ;;  %v1236_v23 = vmul.f32 %v1204_v13, %v11706_v56  ;;  %v803_v24 = vadd.f32 2.7706815e-08, %v771_v14  ;;  %v1171_v26 = vmul.f32 -1.45660715e-05, %v11730_v5  ;;  %v11773_v11 = vpop.f32.mrb[6].mxu0 }
 0x106   : > { %v1187_v25 = vadd.f32 -0.00021337405, %v1155_v15  ;;  %v868_v27 = vadd.f32 -2.101024e-06, %v836_v17  ;;  %v1252_v28 = vadd.f32 -0.001682827, %v1220_v18 }
 0x107   : > { %v884_v29 = vadd.f32 -2.101024e-06, %v852_v19  ;;  %v1268_v31 = vadd.f32 -0.001682827, %v1236_v23  ;;  %v835_v32 = vmul.f32 %v803_v24, %v11725_v3  ;;  %v819_v34 = vadd.f32 2.7706815e-08, %v787_v20 }
 0x108   : > { %v1219_v33 = vmul.f32 %v1187_v25, %v11725_v3  ;;  %v900_v35 = vmul.f32 %v868_v27, %v11702_v55  ;;  %v1284_v36 = vmul.f32 %v1252_v28, %v11702_v55  ;;  %v1203_v38 = vadd.f32 -0.00021337405, %v1171_v26 }
 0x109   : > { %v916_v37 = vmul.f32 %v884_v29, %v11706_v56  ;;  %v1300_v39 = vmul.f32 %v1268_v31, %v11706_v56  ;;  %v867_v40 = vadd.f32 -2.101024e-06, %v835_v32  ;;  %v851_v42 = vmul.f32 %v819_v34, %v11730_v5 }
 0x10a   : > { %v1251_v41 = vadd.f32 -0.001682827, %v1219_v33  ;;  %v932_v43 = vadd.f32 -5.6925062e-05, %v900_v35  ;;  %v1316_v45 = vadd.f32 -0.0073733293, %v1284_v36  ;;  %v1235_v51 = vmul.f32 %v1203_v38, %v11730_v5 }
 0x10b   : > { %v948_v46 = vadd.f32 -5.6925062e-05, %v916_v37  ;;  %v1332_v52 = vadd.f32 -0.0073733293, %v1300_v39  ;;  %v899_v62 = vmul.f32 %v867_v40, %v11725_v3  ;;  %v883_v0 = vadd.f32 -2.101024e-06, %v851_v42 }
 0x10c   : > { %v1283_v63 = vmul.f32 %v1251_v41, %v11725_v3  ;;  %v964_v1 = vmul.f32 %v932_v43, %v11702_v55  ;;  %v1348_v2 = vmul.f32 %v1316_v45, %v11702_v55  ;;  %v1267_v10 = vadd.f32 -0.001682827, %v1235_v51 }
 0x10d   : > { %v980_v4 = vmul.f32 %v948_v46, %v11706_v56  ;;  %v1364_v12 = vmul.f32 %v1332_v52, %v11706_v56  ;;  %v931_v13 = vadd.f32 -5.6925062e-05, %v899_v62  ;;  %v915_v15 = vmul.f32 %v883_v0, %v11730_v5 }
 0x10e   : > { %v1315_v14 = vadd.f32 -0.0073733293, %v1283_v63  ;;  %v996_v17 = vadd.f32 -0.00073499064, %v964_v1  ;;  %v1380_v18 = vadd.f32 -0.014264739, %v1348_v2  ;;  %v1299_v20 = vmul.f32 %v1267_v10, %v11730_v5 }
 0x10f   : > { %v1012_v19 = vadd.f32 -0.00073499064, %v980_v4  ;;  %v1396_v23 = vadd.f32 -0.014264739, %v1364_v12  ;;  %v963_v24 = vmul.f32 %v931_v13, %v11725_v3  ;;  %v947_v26 = vadd.f32 -5.6925062e-05, %v915_v15 }
 0x110   : > { %v1347_v25 = vmul.f32 %v1315_v14, %v11725_v3  ;;  %v1028_v27 = vmul.f32 %v996_v17, %v11702_v55  ;;  %11145 = vrcp.f32 %v1380_v18  ;;  %v1331_v29 = vadd.f32 -0.0073733293, %v1299_v20 }
 0x111   : > { %v1044_v28 = vmul.f32 %v1012_v19, %v11706_v56  ;;  %11147 = vrcp.f32 %v1396_v23  ;;  %v995_v31 = vadd.f32 -0.00073499064, %v963_v24  ;;  %v979_v33 = vmul.f32 %v947_v26, %v11730_v5 }
 0x112   : > { %v1379_v32 = vadd.f32 -0.014264739, %v1347_v25  ;;  %v1060_v34 = vadd.f32 -0.0029546, %v1028_v27  ;;  %v1363_v36 = vmul.f32 %v1331_v29, %v11730_v5  ;;  %v774_v37 = vmul.f32 -2.7261424e-10, %v11744_v16 }
 0x113   : > { %v1076_v35 = vadd.f32 -0.0029546, %v1044_v28  ;;  %v1027_v38 = vmul.f32 %v995_v31, %v11725_v3  ;;  %v1011_v39 = vadd.f32 -0.00073499064, %v979_v33  ;;  %v1158_v40 = vmul.f32 -1.45660715e-05, %v11744_v16 }
 0x114   : > { %11149 = vrcp.f32 %v1379_v32  ;;  %v1092_v41 = vmul.f32 %v1060_v34, %v11702_v55  ;;  %v1395_v43 = vadd.f32 -0.014264739, %v1363_v36  ;;  %v806_v45 = vadd.f32 2.7706815e-08, %v774_v37 }
 0x115   : > { %v1108_v42 = vmul.f32 %v1076_v35, %v11706_v56  ;;  %v1059_v46 = vadd.f32 -0.0029546, %v1027_v38  ;;  %v1043_v51 = vmul.f32 %v1011_v39, %v11730_v5  ;;  %v1190_v52 = vadd.f32 -0.00021337405, %v1158_v40 }
 0x116   : > { %v790_v62 = vmul.f32 -2.7261424e-10, %v11758_v30  ;;  %v1124_v63 = vadd.f32 -0.016096033, %v1092_v41  ;;  %11151 = vrcp.f32 %v1395_v43  ;;  %v838_v1 = vmul.f32 %v806_v45, %v11744_v16 }
 0x117   : > { %v1140_v0 = vadd.f32 -0.016096033, %v1108_v42  ;;  %v1091_v2 = vmul.f32 %v1059_v46, %v11725_v3  ;;  %v1075_v4 = vadd.f32 -0.0029546, %v1043_v51  ;;  %v1222_v55 = vmul.f32 %v1190_v52, %v11744_v16  ;;  %v11815_v51 = vpop.f32.mrb[6].mxu1 }
 0x118   : > { %v822_v10 = vadd.f32 2.7706815e-08, %v790_v62  ;;  %v1540_v56 = vmul.f32 %v11690_v49, %v1124_v63  ;;  %v628_v12 = vmul.f32 0.5, %v11683_v44  ;;  %v870_v13 = vadd.f32 -2.101024e-06, %v838_v1 }
 0x119   : > { %v1174_v14 = vmul.f32 -1.45660715e-05, %v11758_v30  ;;  %v1123_v15 = vadd.f32 -0.016096033, %v1091_v2  ;;  %v1107_v17 = vmul.f32 %v1075_v4, %v11730_v5  ;;  %v1254_v19 = vadd.f32 -0.001682827, %v1222_v55 }
 0x11a   : > { %v854_v20 = vmul.f32 %v822_v10, %v11758_v30  ;;  %v11146_v24 = vpop.eup %11145  ;;  %v1556_v3 = vmul.f32 %v11692_v50, %v1140_v0  ;;  %v902_v25 = vmul.f32 %v870_v13, %v11744_v16  ;;  %v645_v27 = vmul.f32 0.70710677, %v11710_v58 }
 0x11b   : > { %v1206_v26 = vadd.f32 -0.00021337405, %v1174_v14  ;;  %v11148_v49 = vpop.eup %11147  ;;  %v1444_v28 = vmul.f32 %v11146_v24, %v1380_v18  ;;  %v1539_v44 = vmul.f32 %v11708_v57, %v1123_v15  ;;  %v1139_v29 = vadd.f32 -0.016096033, %v1107_v17 }
 0x11c   : > { %v1286_v31 = vmul.f32 %v1254_v19, %v11744_v16  ;;  %v1460_v33 = vmul.f32 %v11148_v49, %v1396_v23  ;;  %v934_v5 = vadd.f32 -5.6925062e-05, %v902_v25  ;;  %v886_v34 = vadd.f32 -2.101024e-06, %v854_v20 }
 0x11d   : > { %v1238_v35 = vmul.f32 %v1206_v26, %v11758_v30  ;;  %v1476_v37 = vsub.f32 2.0, %v1444_v28  ;;  %v1555_v50 = vmul.f32 %v11716_v61, %v1139_v29  ;;  %v11806_v39 = vclamps-f32 %v645_v27, 4.0 }
 0x11e   : > { %v11150_v36 = vpop.eup %11149  ;;  %v1318_v38 = vadd.f32 -0.0073733293, %v1286_v31  ;;  %v1492_v40 = vsub.f32 2.0, %v1460_v33  ;;  %v966_v18 = vmul.f32 %v934_v5, %v11744_v16  ;;  %v918_v57 = vmul.f32 %v886_v34, %v11758_v30 }
 0x11f   : > { %v1443_v41 = vmul.f32 %v11150_v36, %v1379_v32  ;;  %v1508_v42 = vmul.f32 %v11146_v24, %v1476_v37  ;;  %v1270_v45 = vadd.f32 -0.001682827, %v1238_v35  ;;  %v11813_v46 = vmul.f32 %v11806_v39, %v11806_v39 }
 0x120   : > { %v1350_v23 = vmul.f32 %v1318_v38, %v11744_v16  ;;  %v11152_v61 = vpop.eup %11151  ;;  %v1524_v52 = vmul.f32 %v11148_v49, %v1492_v40  ;;  %v998_v63 = vadd.f32 -0.00073499064, %v966_v18  ;;  %v950_v0 = vadd.f32 -5.6925062e-05, %v918_v57 }
 0x121   : > { %v1475_v62 = vsub.f32 2.0, %v1443_v41  ;;  %v1572_v32 = vmul.f32 %v1540_v56, %v1508_v42  ;;  %v1459_v1 = vmul.f32 %v11152_v61, %v1395_v43  ;;  %v1302_v4 = vmul.f32 %v1270_v45, %v11758_v30 }
 0x122   : > { %v1382_v2 = vadd.f32 -0.014264739, %v1350_v23  ;;  %v1588_v55 = vmul.f32 %v1556_v3, %v1524_v52  ;;  %v1030_v13 = vmul.f32 %v998_v63, %v11744_v16  ;;  %v982_v14 = vmul.f32 %v950_v0, %v11758_v30 }
 0x123   : > { %v1507_v10 = vmul.f32 %v11150_v36, %v1475_v62  ;;  %v1604_v15 = vadd.f32 1.0, %v1572_v32  ;;  %v1491_v17 = vsub.f32 2.0, %v1459_v1  ;;  %v1334_v19 = vadd.f32 -0.0073733293, %v1302_v4 }
 0x124   : > { %11153 = vrcp.f32 %v1382_v2  ;;  %v1620_v20 = vadd.f32 1.0, %v1588_v55  ;;  %v1062_v25 = vadd.f32 -0.0029546, %v1030_v13  ;;  %v1014_v26 = vadd.f32 -0.00073499064, %v982_v14  ;;  %v11873_v55 = vpop.f32.mrb[7].mxu0 }
 0x125   : > { %v1571_v24 = vmul.f32 %v1539_v44, %v1507_v10  ;;  %v11821_v56 = vmul.f32 %v1604_v15, %v11714_v60  ;;  %v1523_v43 = vmul.f32 %v11152_v61, %v1491_v17  ;;  %v1366_v27 = vmul.f32 %v1334_v19, %v11758_v30 }
 0x126   : > { %v773_v3 = vmul.f32 -2.7261424e-10, %v11813_v46  ;;  %v11825_v49 = vmul.f32 %v1620_v20, %v628_v12  ;;  %v611_v28 = vmul.f32 0.5, %v11686_v47  ;;  %v1046_v31 = vmul.f32 %v1014_v26, %v11758_v30 }
 0x127   : > { %16882 = vst [vmem:[#allocation6_spill] sm:$0xff] %v11821_v56  ;;  %v1603_v29 = vadd.f32 1.0, %v1571_v24  ;;  %v1668_v33 = vmul.f32 0.70710677, %v11821_v56  ;;  %v1587_v44 = vmul.f32 %v1555_v50, %v1523_v43  ;;  %v1094_v5 = vmul.f32 %v1062_v25, %v11744_v16 }
 0x128   : > { %16883 = vst [vmem:[#allocation7_spill] sm:$0xff] %v11825_v49  ;;  %v805_v34 = vadd.f32 2.7706815e-08, %v773_v3  ;;  %v1684_v60 = vmul.f32 0.70710677, %v11825_v49  ;;  %v627_v36 = vmul.f32 0.5, %v11688_v48 }
 0x129   : > { %v11832_v35 = vmul.f32 %v1603_v29, %v611_v28  ;;  %v1078_v37 = vadd.f32 -0.0029546, %v1046_v31  ;;  %v11835_v12 = vclamps-f32 %v1668_v33, 4.0  ;;  %v1619_v38 = vadd.f32 1.0, %v1587_v44 }
 0x12a   : > { %v11837_v47 = vadd.f32 -0.014264739, %v1366_v27  ;;  %v837_v40 = vmul.f32 %v805_v34, %v11813_v46  ;;  %v11840_v41 = vclamps-f32 %v1684_v60, 4.0  ;;  %v11844_v16 = vmul.f32 0.5, %v11696_v53 }
 0x12b   : > { %16884 = vst [vmem:[#allocation8_spill] sm:$0xff] %v11832_v35  ;;  %v1667_v50 = vmul.f32 0.70710677, %v11832_v35  ;;  %v1110_v18 = vmul.f32 %v1078_v37, %v11758_v30  ;;  %9739 = vmatprep.mubr.f32.mxu1 %v11832_v35  ;;  %v11850_v48 = vmul.f32 %v11835_v12, %v11835_v12  ;;  %v11852_v57 = vmul.f32 %v1619_v38, %v627_v36 }
 0x12c   : > { %v1126_v42 = vadd.f32 -0.016096033, %v1094_v5  ;;  %v11855_v23 = vmul.f32 0.5, %v11698_v54  ;;  %v11859_v45 = vmul.f32 %v11840_v41, %v11840_v41  ;;  %v869_v30 = vadd.f32 -2.101024e-06, %v837_v40 }
 0x12d   : > { %16885 = vst [vmem:[#allocation9_spill] sm:$0xff] %v11852_v57  ;;  %v11861_v53 = vclamps-f32 %v1667_v50, 4.0  ;;  %v1142_v61 = vadd.f32 -0.016096033, %v1110_v18  ;;  %v1796_v62 = vmul.f32 -2.7261424e-10, %v11850_v48  ;;  %11155 = vrcp.f32 %v11837_v47 }
 0x12e   : > { %v11154_v52 = vpop.eup %11153  ;;  %v2180_v63 = vmul.f32 -1.45660715e-05, %v11850_v48  ;;  %v1683_v0 = vmul.f32 0.70710677, %v11852_v57  ;;  %v1812_v54 = vmul.f32 -2.7261424e-10, %v11859_v45  ;;  %v11878_v15 = vmul.f32 %v11732_v6, %v1126_v42 }
 0x12f   : > { %v2196_v32 = vmul.f32 -1.45660715e-05, %v11859_v45  ;;  %v11871_v1 = vmul.f32 %v11861_v53, %v11861_v53  ;;  %v1446_v4 = vmul.f32 %v11154_v52, %v1382_v2  ;;  %v1828_v10 = vadd.f32 2.7706815e-08, %v1796_v62  ;;  %v11902_v18 = vpop.f32.mrb[7].mxu1 }
 0x130   : > { %v2212_v13 = vadd.f32 -0.00021337405, %v2180_v63  ;;  %v11875_v14 = vclamps-f32 %v1683_v0, 4.0  ;;  %v1844_v17 = vadd.f32 2.7706815e-08, %v1812_v54  ;;  %v11882_v24 = vmul.f32 %v869_v30, %v11813_v46 }
 0x131   : > { %v2228_v19 = vadd.f32 -0.00021337405, %v2196_v32  ;;  %v1795_v20 = vmul.f32 -2.7261424e-10, %v11871_v1  ;;  %v1860_v25 = vmul.f32 %v1828_v10, %v11850_v48  ;;  %v2179_v26 = vmul.f32 -1.45660715e-05, %v11871_v1 }
 0x132   : > { %v2244_v2 = vmul.f32 %v2212_v13, %v11850_v48  ;;  %v11889_v43 = vmul.f32 %v11875_v14, %v11875_v14  ;;  %v1876_v6 = vmul.f32 %v1844_v17, %v11859_v45  ;;  %v1478_v28 = vsub.f32 2.0, %v1446_v4 }
 0x133   : > { %v2260_v27 = vmul.f32 %v2228_v19, %v11859_v45  ;;  %v1827_v3 = vadd.f32 2.7706815e-08, %v1795_v20  ;;  %v1892_v29 = vadd.f32 -2.101024e-06, %v1860_v25  ;;  %v2211_v33 = vadd.f32 -0.00021337405, %v2179_v26 }
 0x134   : > { %v2276_v31 = vadd.f32 -0.001682827, %v2244_v2  ;;  %v11894_v44 = vmul.f32 %v11734_v7, %v1142_v61  ;;  %v1908_v5 = vadd.f32 -2.101024e-06, %v1876_v6  ;;  %v1811_v36 = vmul.f32 -2.7261424e-10, %v11889_v43 }
 0x135   : > { %v2292_v34 = vadd.f32 -0.001682827, %v2260_v27  ;;  %v1859_v60 = vmul.f32 %v1827_v3, %v11871_v1  ;;  %v1924_v37 = vmul.f32 %v1892_v29, %v11850_v48  ;;  %v2243_v40 = vmul.f32 %v2211_v33, %v11871_v1 }
 0x136   : > { %v2308_v38 = vmul.f32 %v2276_v31, %v11850_v48  ;;  %v2195_v50 = vmul.f32 -1.45660715e-05, %v11889_v43  ;;  %v1940_v42 = vmul.f32 %v1908_v5, %v11859_v45  ;;  %v1843_v30 = vadd.f32 2.7706815e-08, %v1811_v36 }
 0x137   : > { %v2324_v7 = vmul.f32 %v2292_v34, %v11859_v45  ;;  %v1891_v61 = vadd.f32 -2.101024e-06, %v1859_v60  ;;  %v11156_v62 = vpop.eup %11155  ;;  %v1956_v63 = vadd.f32 -5.6925062e-05, %v1924_v37  ;;  %v2275_v54 = vadd.f32 -0.001682827, %v2243_v40 }
 0x138   : > { %v2340_v0 = vadd.f32 -0.0073733293, %v2308_v38  ;;  %v1510_v32 = vmul.f32 %v11154_v52, %v1478_v28  ;;  %v1972_v4 = vadd.f32 -5.6925062e-05, %v1940_v42  ;;  %v1875_v17 = vmul.f32 %v1843_v30, %v11889_v43 }
 0x139   : > { %v2356_v10 = vadd.f32 -0.0073733293, %v2324_v7  ;;  %v1923_v13 = vmul.f32 %v1891_v61, %v11871_v1  ;;  %v1988_v19 = vmul.f32 %v1956_v63, %v11850_v48  ;;  %v2307_v25 = vmul.f32 %v2275_v54, %v11871_v1 }
 0x13a   : > { %v2372_v20 = vmul.f32 %v2340_v0, %v11850_v48  ;;  %v2227_v2 = vadd.f32 -0.00021337405, %v2195_v50  ;;  %v2004_v26 = vmul.f32 %v1972_v4, %v11859_v45  ;;  %v1907_v3 = vadd.f32 -2.101024e-06, %v1875_v17 }
 0x13b   : > { %v2388_v6 = vmul.f32 %v2356_v10, %v11859_v45  ;;  %v1955_v27 = vadd.f32 -5.6925062e-05, %v1923_v13  ;;  %v2020_v52 = vadd.f32 -0.00073499064, %v1988_v19  ;;  %v2339_v29 = vadd.f32 -0.0073733293, %v2307_v25 }
 0x13c   : > { %v2404_v28 = vadd.f32 -0.014264739, %v2372_v20  ;;  %v2259_v31 = vmul.f32 %v2227_v2, %v11889_v43  ;;  %v2036_v33 = vadd.f32 -0.00073499064, %v2004_v26  ;;  %v1939_v60 = vmul.f32 %v1907_v3, %v11889_v43 }
 0x13d   : > { %v2420_v5 = vadd.f32 -0.014264739, %v2388_v6  ;;  %v1987_v34 = vmul.f32 %v1955_v27, %v11871_v1  ;;  %v2052_v36 = vmul.f32 %v2020_v52, %v11850_v48  ;;  %v2371_v37 = vmul.f32 %v2339_v29, %v11871_v1  ;;  %v11934_v29 = vpop.f32.mrb[8].mxu0 }
 0x13e   : > { %11157 = vrcp.f32 %v2404_v28  ;;  %v2291_v38 = vadd.f32 -0.001682827, %v2259_v31  ;;  %v2068_v40 = vmul.f32 %v2036_v33, %v11859_v45  ;;  %v1971_v42 = vadd.f32 -5.6925062e-05, %v1939_v60 }
 0x13f   : > { %11159 = vrcp.f32 %v2420_v5  ;;  %v2019_v50 = vadd.f32 -0.00073499064, %v1987_v34  ;;  %v2084_v7 = vadd.f32 -0.0029546, %v2052_v36  ;;  %v2403_v61 = vadd.f32 -0.014264739, %v2371_v37 }
 0x140   : > { %v2323_v30 = vmul.f32 %v2291_v38, %v11889_v43  ;;  %v1574_v63 = vmul.f32 %v11878_v15, %v1510_v32  ;;  %v2100_v0 = vadd.f32 -0.0029546, %v2068_v40  ;;  %v2003_v4 = vmul.f32 %v1971_v42, %v11889_v43 }
 0x141   : > { %v2051_v54 = vmul.f32 %v2019_v50, %v11871_v1  ;;  %v1462_v10 = vmul.f32 %v11156_v62, %v11837_v47  ;;  %v2116_v13 = vmul.f32 %v2084_v7, %v11850_v48  ;;  %11161 = vrcp.f32 %v2403_v61 }
 0x142   : > { %v2355_v17 = vadd.f32 -0.0073733293, %v2323_v30  ;;  %v1606_v19 = vadd.f32 1.0, %v1574_v63  ;;  %v2132_v20 = vmul.f32 %v2100_v0, %v11859_v45  ;;  %v2035_v2 = vadd.f32 -0.00073499064, %v2003_v4 }
 0x143   : > { %v2083_v25 = vadd.f32 -0.0029546, %v2051_v54  ;;  %v1494_v26 = vsub.f32 2.0, %v1462_v10  ;;  %v933_v32 = vadd.f32 -5.6925062e-05, %v11882_v24  ;;  %v11940_v36 = vmul.f32 0.5, %v11710_v58 }
 0x144   : > { %v2387_v6 = vmul.f32 %v2355_v17, %v11889_v43  ;;  %v11928_v15 = vmul.f32 %v1606_v19, %v11844_v16  ;;  %v1157_v27 = vmul.f32 -1.45660715e-05, %v11813_v46  ;;  %v2148_v47 = vadd.f32 -0.016096033, %v2116_v13 }
 0x145   : > { %v2115_v48 = vmul.f32 %v2083_v25, %v11871_v1  ;;  %v2067_v3 = vmul.f32 %v2035_v2, %v11889_v43  ;;  %v1526_v52 = vmul.f32 %v11156_v62, %v1494_v26  ;;  %v2164_v45 = vadd.f32 -0.016096033, %v2132_v20 }
 0x146   : > { %16886 = vst [vmem:[#allocation10_spill] sm:$0xff] %v11928_v15  ;;  %v2419_v31 = vadd.f32 -0.014264739, %v2387_v6  ;;  %v1670_v33 = vmul.f32 0.70710677, %v11928_v15  ;;  %v965_v34 = vmul.f32 %v933_v32, %v11813_v46  ;;  %v11946_v30 = vmul.f32 0.5, %v11712_v59 }
 0x147   : > { %v2147_v16 = vadd.f32 -0.016096033, %v2115_v48  ;;  %v2099_v60 = vadd.f32 -0.0029546, %v2067_v3  ;;  %v1590_v24 = vmul.f32 %v11894_v44, %v1526_v52  ;;  %v1189_v38 = vadd.f32 -0.00021337405, %v1157_v27 }
 0x148   : > { %v11158_v37 = vpop.eup %11157  ;;  %11163 = vrcp.f32 %v2419_v31  ;;  %v11942_v1 = vclamps-f32 %v1670_v33, 4.0  ;;  %v997_v62 = vadd.f32 -0.00073499064, %v965_v34  ;;  %v2564_v63 = vmul.f32 %v11835_v12, %v2148_v47  ;;  %v11966_v48 = vpop.f32.mrb[8].mxu1 }
 0x149   : > { %v11160_v40 = vpop.eup %11159  ;;  %v2468_v50 = vmul.f32 %v11158_v37, %v2404_v28  ;;  %v2131_v42 = vmul.f32 %v2099_v60, %v11889_v43  ;;  %v1622_v7 = vadd.f32 1.0, %v1590_v24  ;;  %v2580_v58 = vmul.f32 %v11840_v41, %v2164_v45 }
 0x14a   : > { %v2484_v44 = vmul.f32 %v11160_v40, %v2420_v5  ;;  %v11952_v0 = vmul.f32 %v11942_v1, %v11942_v1  ;;  %v2563_v4 = vmul.f32 %v11861_v53, %v2147_v16  ;;  %v1221_v43 = vmul.f32 %v1189_v38, %v11813_v46 }
 0x14b   : > { %v2500_v54 = vsub.f32 2.0, %v2468_v50  ;;  %v11956_v28 = vmul.f32 %v1622_v7, %v11855_v23  ;;  %v11162_v10 = vpop.eup %11161  ;;  %v1029_v41 = vmul.f32 %v997_v62, %v11813_v46  ;;  %v2163_v20 = vadd.f32 -0.016096033, %v2131_v42 }
 0x14c   : > { %v2516_v13 = vsub.f32 2.0, %v2484_v44  ;;  %v1798_v17 = vmul.f32 -2.7261424e-10, %v11952_v0  ;;  %v2182_v12 = vmul.f32 -1.45660715e-05, %v11952_v0  ;;  %v2467_v19 = vmul.f32 %v11162_v10, %v2403_v61 }
 0x14d   : > { %16887 = vst [vmem:[#allocation11_spill] sm:$0xff] %v11956_v28  ;;  %v2532_v5 = vmul.f32 %v11158_v37, %v2500_v54  ;;  %v1686_v25 = vmul.f32 0.70710677, %v11956_v28  ;;  %v661_v23 = vmul.f32 0.70710677, %v11712_v59 }
 0x14e   : > { %v2548_v2 = vmul.f32 %v11160_v40, %v2516_v13  ;;  %v1830_v53 = vadd.f32 2.7706815e-08, %v1798_v17  ;;  %v2214_v26 = vadd.f32 -0.00021337405, %v2182_v12  ;;  %v2499_v32 = vsub.f32 2.0, %v2467_v19 }
 0x14f   : > { %v2596_v6 = vmul.f32 %v2564_v63, %v2532_v5  ;;  %v11964_v27 = vclamps-f32 %v1686_v25, 4.0  ;;  %v1253_v47 = vadd.f32 -0.001682827, %v1221_v43  ;;  %v1061_v45 = vadd.f32 -0.0029546, %v1029_v41 }
 0x150   : > { %v2612_v3 = vmul.f32 %v2580_v58, %v2548_v2  ;;  %v1862_v52 = vmul.f32 %v1830_v53, %v11952_v0  ;;  %v2246_v61 = vmul.f32 %v2214_v26, %v11952_v0  ;;  %v2531_v34 = vmul.f32 %v11162_v10, %v2499_v32 }
 0x151   : > { %v2628_v33 = vadd.f32 1.0, %v2596_v6  ;;  %v11972_v16 = vmul.f32 %v11964_v27, %v11964_v27  ;;  %v1285_v59 = vmul.f32 %v1253_v47, %v11813_v46  ;;  %v11975_v38 = vclamps-f32 %v661_v23, 4.0 }
 0x152   : > { %v11164_v60 = vpop.eup %11163  ;;  %v2644_v24 = vadd.f32 1.0, %v2612_v3  ;;  %v1894_v37 = vadd.f32 -2.101024e-06, %v1862_v52  ;;  %v2278_v62 = vadd.f32 -0.001682827, %v2246_v61  ;;  %v2595_v40 = vmul.f32 %v2563_v4, %v2531_v34 }
 0x153   : > { %4098 = vst [vmem:[#allocation2 + $0x20] sm:$0xff] %v2628_v33  ;;  %v2483_v50 = vmul.f32 %v11164_v60, %v2419_v31  ;;  %v1814_v42 = vmul.f32 -2.7261424e-10, %v11972_v16  ;;  %v2198_v7 = vmul.f32 -1.45660715e-05, %v11972_v16  ;;  %v2579_v63 = vmul.f32 %v11875_v14, %v2163_v20 }
 0x154   : > { %4114 = vst [vmem:[#allocation2 + $0xa0] sm:$0xff] %v2644_v24  ;;  %v1926_v44 = vmul.f32 %v1894_v37, %v11952_v0  ;;  %v2310_v58 = vmul.f32 %v2278_v62, %v11952_v0  ;;  %v1317_v54 = vadd.f32 -0.0073733293, %v1285_v59  ;;  %v2627_v43 = vadd.f32 1.0, %v2595_v40 }
 0x155   : > { %v2515_v10 = vsub.f32 2.0, %v2483_v50  ;;  %v1846_v13 = vadd.f32 2.7706815e-08, %v1814_v42  ;;  %v2230_v17 = vadd.f32 -0.00021337405, %v2198_v7  ;;  %v1093_v31 = vmul.f32 %v1061_v45, %v11813_v46 }
 0x156   : > { %v1958_v12 = vadd.f32 -5.6925062e-05, %v1926_v44  ;;  %v2342_v41 = vadd.f32 -0.0073733293, %v2310_v58  ;;  %v1349_v4 = vmul.f32 %v1317_v54, %v11813_v46  ;;  %4097 = vst [vmem:[#allocation2 + $0x18] sm:$0xff] %v2627_v43  ;;  %v11988_v20 = vmul.f32 %v11975_v38, %v11975_v38 }
 0x157   : > { %v2547_v5 = vmul.f32 %v11164_v60, %v2515_v10  ;;  %v1878_v19 = vmul.f32 %v1846_v13, %v11972_v16  ;;  %v2262_v14 = vmul.f32 %v2230_v17, %v11972_v16  ;;  %v648_v26 = vmul.f32 0.70710677, %v11736_v8 }
 0x158   : > { %v1990_v25 = vmul.f32 %v1958_v12, %v11952_v0  ;;  %v2374_v2 = vmul.f32 %v2342_v41, %v11952_v0  ;;  %v1381_v53 = vadd.f32 -0.014264739, %v1349_v4  ;;  %v789_v32 = vmul.f32 -2.7261424e-10, %v11988_v20 }
 0x159   : > { %v2611_v23 = vmul.f32 %v2579_v63, %v2547_v5  ;;  %v1910_v6 = vadd.f32 -2.101024e-06, %v1878_v19  ;;  %v2294_v46 = vadd.f32 -0.001682827, %v2262_v14  ;;  %v1173_v52 = vmul.f32 -1.45660715e-05, %v11988_v20 }
 0x15a   : > { %v2022_v47 = vadd.f32 -0.00073499064, %v1990_v25  ;;  %v2406_v3 = vadd.f32 -0.014264739, %v2374_v2  ;;  %11165 = vrcp.f32 %v1381_v53  ;;  %v821_v34 = vadd.f32 2.7706815e-08, %v789_v32 }
 0x15b   : > { %v2643_v61 = vadd.f32 1.0, %v2611_v23  ;;  %v1942_v45 = vmul.f32 %v1910_v6, %v11972_v16  ;;  %v2326_v33 = vmul.f32 %v2294_v46, %v11972_v16  ;;  %v1205_v60 = vadd.f32 -0.00021337405, %v1173_v52 }
 0x15c   : > { %v2054_v59 = vmul.f32 %v2022_v47, %v11952_v0  ;;  %11167 = vrcp.f32 %v2406_v3  ;;  %v11998_v24 = vclamps-f32 %v648_v26, 4.0  ;;  %v853_v40 = vmul.f32 %v821_v34, %v11988_v20 }
 0x15d   : > { %4113 = vst [vmem:[#allocation2 + $0x98] sm:$0xff] %v2643_v61  ;;  %v1974_v37 = vadd.f32 -5.6925062e-05, %v1942_v45  ;;  %v2358_v62 = vadd.f32 -0.0073733293, %v2326_v33  ;;  %v12002_v50 = vmul.f32 0.5, %v11736_v8  ;;  %v1237_v7 = vmul.f32 %v1205_v60, %v11988_v20 }
 0x15e   : > { %v2086_v42 = vadd.f32 -0.0029546, %v2054_v59  ;;  %v12007_v63 = vmul.f32 %v11998_v24, %v11998_v24  ;;  %v664_v44 = vmul.f32 0.70710677, %v11738_v9  ;;  %v1125_v43 = vadd.f32 -0.016096033, %v1093_v31 }
 0x15f   : > { %v2006_v58 = vmul.f32 %v1974_v37, %v11972_v16  ;;  %v2390_v54 = vmul.f32 %v2358_v62, %v11972_v16  ;;  %v885_v10 = vadd.f32 -2.101024e-06, %v853_v40  ;;  %v1269_v13 = vadd.f32 -0.001682827, %v1237_v7 }
 0x160   : > { %v776_v17 = vmul.f32 -2.7261424e-10, %v12007_v63  ;;  %v1160_v8 = vmul.f32 -1.45660715e-05, %v12007_v63  ;;  %v12015_v5 = vclamps-f32 %v664_v44, 4.0  ;;  %v2118_v19 = vmul.f32 %v2086_v42, %v11952_v0 }
 0x161   : > { %v2038_v12 = vadd.f32 -0.00073499064, %v2006_v58  ;;  %v2422_v41 = vadd.f32 -0.014264739, %v2390_v54  ;;  %v917_v4 = vmul.f32 %v885_v10, %v11988_v20  ;;  %v1301_v14 = vmul.f32 %v1269_v13, %v11988_v20 }
 0x162   : > { %v808_v25 = vadd.f32 2.7706815e-08, %v776_v17  ;;  %v1192_v2 = vadd.f32 -0.00021337405, %v1160_v8  ;;  %v12022_v23 = vmul.f32 %v12015_v5, %v12015_v5  ;;  %v1541_v46 = vmul.f32 %v11806_v39, %v1125_v43 }
 0x163   : > { %v2070_v31 = vmul.f32 %v2038_v12, %v11972_v16  ;;  %11169 = vrcp.f32 %v2422_v41  ;;  %v949_v26 = vadd.f32 -5.6925062e-05, %v917_v4  ;;  %v1333_v32 = vadd.f32 -0.0073733293, %v1301_v14 }
 0x164   : > { %v11166_v6 = vpop.eup %11165  ;;  %v840_v47 = vmul.f32 %v808_v25, %v12007_v63  ;;  %v1224_v0 = vmul.f32 %v1192_v2, %v12007_v63  ;;  %v792_v33 = vmul.f32 -2.7261424e-10, %v12022_v23  ;;  %v2150_v59 = vadd.f32 -0.016096033, %v2118_v19 }
 0x165   : > { %v2102_v52 = vadd.f32 -0.0029546, %v2070_v31  ;;  %v1445_v61 = vmul.f32 %v11166_v6, %v1381_v53  ;;  %v981_v45 = vmul.f32 %v949_v26, %v11988_v20  ;;  %v1365_v60 = vmul.f32 %v1333_v32, %v11988_v20 }
 0x166   : > { %v11168_v34 = vpop.eup %11167  ;;  %v872_v37 = vadd.f32 -2.101024e-06, %v840_v47  ;;  %v1256_v62 = vadd.f32 -0.001682827, %v1224_v0  ;;  %v1176_v7 = vmul.f32 -1.45660715e-05, %v12022_v23  ;;  %v2566_v19 = vmul.f32 %v11942_v1, %v2150_v59 }
 0x167   : > { %v2470_v40 = vmul.f32 %v11168_v34, %v2406_v3  ;;  %v1477_v42 = vsub.f32 2.0, %v1445_v61  ;;  %v1013_v39 = vadd.f32 -0.00073499064, %v981_v45  ;;  %v1397_v44 = vadd.f32 -0.014264739, %v1365_v60  ;;  %v12040_v61 = vpop.f32.mrb[9].mxu0 }
 0x168   : > { %v904_v58 = vmul.f32 %v872_v37, %v12007_v63  ;;  %v1288_v53 = vmul.f32 %v1256_v62, %v12007_v63  ;;  %v824_v54 = vadd.f32 2.7706815e-08, %v792_v33  ;;  %v2134_v10 = vmul.f32 %v2102_v52, %v11972_v16 }
 0x169   : > { %v2502_v43 = vsub.f32 2.0, %v2470_v40  ;;  %v1509_v13 = vmul.f32 %v11166_v6, %v1477_v42  ;;  %v1045_v17 = vmul.f32 %v1013_v39, %v11988_v20  ;;  %11171 = vrcp.f32 %v1397_v44 }
 0x16a   : > { %v936_v8 = vadd.f32 -5.6925062e-05, %v904_v58  ;;  %v1320_v12 = vadd.f32 -0.0073733293, %v1288_v53  ;;  %v856_v3 = vmul.f32 %v824_v54, %v12022_v23  ;;  %v1208_v32 = vadd.f32 -0.00021337405, %v1176_v7 }
 0x16b   : > { %v2534_v4 = vmul.f32 %v11168_v34, %v2502_v43  ;;  %v1573_v14 = vmul.f32 %v1541_v46, %v1509_v13  ;;  %v1077_v25 = vadd.f32 -0.0029546, %v1045_v17  ;;  %v2166_v47 = vadd.f32 -0.016096033, %v2134_v10 }
 0x16c   : > { %v968_v2 = vmul.f32 %v936_v8, %v12007_v63  ;;  %v1352_v31 = vmul.f32 %v1320_v12, %v12007_v63  ;;  %v888_v26 = vadd.f32 -2.101024e-06, %v856_v3  ;;  %v647_v52 = vmul.f32 0.70710677, %v11750_v21 }
 0x16d   : > { %v11170_v16 = vpop.eup %11169  ;;  %v2598_v6 = vmul.f32 %v2566_v19, %v2534_v4  ;;  %v1605_v0 = vadd.f32 1.0, %v1573_v14  ;;  %v1109_v60 = vmul.f32 %v1077_v25, %v11988_v20  ;;  %v1240_v37 = vmul.f32 %v1208_v32, %v12022_v23 }
 0x16e   : > { %v2486_v45 = vmul.f32 %v11170_v16, %v2422_v41  ;;  %v1000_v33 = vadd.f32 -0.00073499064, %v968_v2  ;;  %v1384_v34 = vadd.f32 -0.014264739, %v1352_v31  ;;  %v920_v1 = vmul.f32 %v888_v26, %v12022_v23 }
 0x16f   : > { %v2630_v46 = vadd.f32 1.0, %v2598_v6  ;;  %v12044_v59 = vmul.f32 %v1605_v0, %v11940_v36  ;;  %v12051_v39 = vmul.f32 0.5, %v11738_v9  ;;  %v1272_v7 = vadd.f32 -0.001682827, %v1240_v37 }
 0x170   : > { %v2518_v62 = vsub.f32 2.0, %v2486_v45  ;;  %v1032_v40 = vmul.f32 %v1000_v33, %v12007_v63  ;;  %11173 = vrcp.f32 %v1384_v34  ;;  %v952_v42 = vadd.f32 -5.6925062e-05, %v920_v1 }
 0x171   : > { %16888 = vst [vmem:[#allocation12_spill] sm:$0xff] %v12044_v59  ;;  %4100 = vst [vmem:[#allocation2 + $0x30] sm:$0xff] %v2630_v46  ;;  %v1669_v41 = vmul.f32 0.70710677, %v12044_v59  ;;  %v12053_v58 = vclamps-f32 %v647_v52, 4.0  ;;  %v2582_v53 = vmul.f32 %v11964_v27, %v2166_v47  ;;  %v1304_v13 = vmul.f32 %v1272_v7, %v12022_v23 }
 0x172   : > { %v2550_v36 = vmul.f32 %v11170_v16, %v2518_v62  ;;  %v1064_v20 = vadd.f32 -0.0029546, %v1032_v40  ;;  %v984_v54 = vmul.f32 %v952_v42, %v12022_v23  ;;  %v1141_v10 = vadd.f32 -0.016096033, %v1109_v60 }
 0x173   : > { %v12057_v43 = vclamps-f32 %v1669_v41, 4.0  ;;  %v12062_v17 = vmul.f32 %v12053_v58, %v12053_v58  ;;  %v11172_v9 = vpop.eup %11171  ;;  %v663_v4 = vmul.f32 0.70710677, %v11752_v22  ;;  %v1336_v14 = vadd.f32 -0.0073733293, %v1304_v13  ;;  %v2724_v13 = vld [vmem:[%s16723_s2 + $0x8] sm:$0xff] }
 0x174   : > { %v2614_v8 = vmul.f32 %v2582_v53, %v2550_v36  ;;  %v1096_v12 = vmul.f32 %v1064_v20, %v12007_v63  ;;  %v1016_v3 = vadd.f32 -0.00073499064, %v984_v54  ;;  %v1461_v19 = vmul.f32 %v11172_v9, %v1397_v44 }
 0x175   : > { %v12068_v27 = vmul.f32 %v12057_v43, %v12057_v43  ;;  %v775_v25 = vmul.f32 -2.7261424e-10, %v12062_v17  ;;  %v1159_v32 = vmul.f32 -1.45660715e-05, %v12062_v17  ;;  %v1368_v47 = vmul.f32 %v1336_v14, %v12022_v23 }
 0x176   : > { %v2646_v2 = vadd.f32 1.0, %v2614_v8  ;;  %v1128_v31 = vadd.f32 -0.016096033, %v1096_v12  ;;  %v1048_v26 = vmul.f32 %v1016_v3, %v12022_v23  ;;  %v1493_v6 = vsub.f32 2.0, %v1461_v19 }
 0x177   : > { %v1797_v16 = vmul.f32 -2.7261424e-10, %v12068_v27  ;;  %v2181_v63 = vmul.f32 -1.45660715e-05, %v12068_v27  ;;  %v1557_v0 = vmul.f32 %v11975_v38, %v1141_v10  ;;  %v807_v52 = vadd.f32 2.7706815e-08, %v775_v25 }
 0x178   : > { %4116 = vst [vmem:[#allocation2 + $0xb0] sm:$0xff] %v2646_v2  ;;  %v1080_v44 = vadd.f32 -0.0029546, %v1048_v26  ;;  %v1191_v45 = vadd.f32 -0.00021337405, %v1159_v32  ;;  %v1525_v46 = vmul.f32 %v11172_v9, %v1493_v6  ;;  %v12082_v41 = vclamps-f32 %v663_v4, 4.0 }
 0x179   : > { %v1829_v33 = vadd.f32 2.7706815e-08, %v1797_v16  ;;  %v2213_v1 = vadd.f32 -0.00021337405, %v2181_v63  ;;  %v12077_v60 = vadd.f32 -0.014264739, %v1368_v47  ;;  %v839_v40 = vmul.f32 %v807_v52, %v12062_v17 }
 0x17a   : > { %v11174_v37 = vpop.eup %11173  ;;  %v1112_v62 = vmul.f32 %v1080_v44, %v12022_v23  ;;  %v1223_v42 = vmul.f32 %v1191_v45, %v12062_v17  ;;  %v1589_v36 = vmul.f32 %v1557_v0, %v1525_v46  ;;  %v1544_v20 = vmul.f32 %v11998_v24, %v1128_v31  ;;  %v2723_v23 = vld [vmem:[%s16723_s2] sm:$0xff]  ;;  %v12105_v26 = vpop.f32.mrb[9].mxu1 }
 0x17b   : > { %v1861_v7 = vmul.f32 %v1829_v33, %v12068_v27  ;;  %v2245_v38 = vmul.f32 %v2213_v1, %v12068_v27  ;;  %v1448_v53 = vmul.f32 %v11174_v37, %v1384_v34  ;;  %11175 = vrcp.f32 %v12077_v60 }
 0x17c   : > { %v871_v54 = vadd.f32 -2.101024e-06, %v839_v40  ;;  %v1255_v10 = vadd.f32 -0.001682827, %v1223_v42  ;;  %v1621_v12 = vadd.f32 1.0, %v1589_v36  ;;  %v12098_v19 = vmul.f32 %v12082_v41, %v12082_v41 }
 0x17d   : > { %v1893_v9 = vadd.f32 -2.101024e-06, %v1861_v7  ;;  %v2277_v8 = vadd.f32 -0.001682827, %v2245_v38  ;;  %v1480_v3 = vsub.f32 2.0, %v1448_v53  ;;  %v10519_v6 = vpack.c.bf16 %v2724_v13, %v2723_v23 }
 0x17e   : > { %v1144_v4 = vadd.f32 -0.016096033, %v1112_v62  ;;  %v903_v34 = vmul.f32 %v871_v54, %v12062_v17  ;;  %v1287_v24 = vmul.f32 %v1255_v10, %v12062_v17  ;;  %v12103_v2 = vmul.f32 %v1621_v12, %v11946_v30 }
 0x17f   : > { %v1925_v14 = vmul.f32 %v1893_v9, %v12068_v27  ;;  %v2309_v25 = vmul.f32 %v2277_v8, %v12068_v27  ;;  %v1512_v31 = vmul.f32 %v11174_v37, %v1480_v3  ;;  %v791_v63 = vmul.f32 -2.7261424e-10, %v12098_v19  ;;  %10520 = vmatprep.subr.bf16.mxu1 %v10519_v6 }
 0x180   : > { %16889 = vst [vmem:[#allocation13_spill] sm:$0xff] %v12103_v2  ;;  %v935_v32 = vadd.f32 -5.6925062e-05, %v903_v34  ;;  %v1319_v16 = vadd.f32 -0.0073733293, %v1287_v24  ;;  %10522 = vmatpush3.bf16.msra.mxu1 %v10519_v6 }
 0x181   : > { %v1957_v47 = vadd.f32 -5.6925062e-05, %v1925_v14  ;;  %v2341_v0 = vadd.f32 -0.0073733293, %v2309_v25  ;;  %v1685_v44 = vmul.f32 0.70710677, %v12103_v2  ;;  %v1576_v52 = vmul.f32 %v1544_v20, %v1512_v31 }
 0x182   : > { %v967_v45 = vmul.f32 %v935_v32, %v12062_v17  ;;  %v1351_v33 = vmul.f32 %v1319_v16, %v12062_v17  ;;  %v823_v1 = vadd.f32 2.7706815e-08, %v791_v63  ;;  %v1175_v30 = vmul.f32 -1.45660715e-05, %v12098_v19 }
 0x183   : > { %v1989_v46 = vmul.f32 %v1957_v47, %v12068_v27  ;;  %v2373_v37 = vmul.f32 %v2341_v0, %v12068_v27  ;;  %v12114_v62 = vclamps-f32 %v1685_v44, 4.0  ;;  %v1608_v40 = vadd.f32 1.0, %v1576_v52 }
 0x184   : > { %v999_v42 = vadd.f32 -0.00073499064, %v967_v45  ;;  %v1383_v7 = vadd.f32 -0.014264739, %v1351_v33  ;;  %v855_v38 = vmul.f32 %v823_v1, %v12098_v19  ;;  %v1207_v36 = vadd.f32 -0.00021337405, %v1175_v30 }
 0x185   : > { %v2021_v53 = vadd.f32 -0.00073499064, %v1989_v46  ;;  %v2405_v20 = vadd.f32 -0.014264739, %v2373_v37  ;;  %v12119_v54 = vmul.f32 %v12114_v62, %v12114_v62  ;;  %v12122_v10 = vmul.f32 %v1608_v40, %v12002_v50  ;;  %v11176_v23 = vpop.eup %11175 }
 0x186   : > { %v1031_v13 = vmul.f32 %v999_v42, %v12062_v17  ;;  %11177 = vrcp.f32 %v1383_v7  ;;  %v887_v9 = vadd.f32 -2.101024e-06, %v855_v38  ;;  %v1239_v8 = vmul.f32 %v1207_v36, %v12098_v19  ;;  %v12147_v36 = vpop.f32.mrb[10].mxu0 }
 0x187   : > { %16890 = vst [vmem:[#allocation14_spill] sm:$0xff] %v12122_v10  ;;  %v2053_v12 = vmul.f32 %v2021_v53, %v12068_v27  ;;  %11179 = vrcp.f32 %v2405_v20  ;;  %v1813_v3 = vmul.f32 -2.7261424e-10, %v12119_v54  ;;  %v2197_v34 = vmul.f32 -1.45660715e-05, %v12119_v54 }
 0x188   : > { %v1672_v24 = vmul.f32 0.70710677, %v12122_v10  ;;  %v1464_v14 = vmul.f32 %v11176_v23, %v12077_v60  ;;  %v1063_v50 = vadd.f32 -0.0029546, %v1031_v13  ;;  %v919_v25 = vmul.f32 %v887_v9, %v12098_v19 }
 0x189   : > { %v2085_v31 = vadd.f32 -0.0029546, %v2053_v12  ;;  %v1845_v32 = vadd.f32 2.7706815e-08, %v1813_v3  ;;  %v2229_v16 = vadd.f32 -0.00021337405, %v2197_v34  ;;  %v1560_v63 = vmul.f32 %v12015_v5, %v1144_v4 }
 0x18a   : > { %v12133_v6 = vclamps-f32 %v1672_v24, 4.0  ;;  %v1496_v47 = vsub.f32 2.0, %v1464_v14  ;;  %v1095_v0 = vmul.f32 %v1063_v50, %v12062_v17  ;;  %v951_v44 = vadd.f32 -5.6925062e-05, %v919_v25 }
 0x18b   : > { %v2117_v52 = vmul.f32 %v2085_v31, %v12068_v27  ;;  %v1877_v45 = vmul.f32 %v1845_v32, %v12119_v54  ;;  %v2261_v60 = vmul.f32 %v2229_v16, %v12119_v54  ;;  %v1271_v33 = vadd.f32 -0.001682827, %v1239_v8  ;;  %v12154_v32 = vpop.f32.mrb[10].mxu1 }
 0x18c   : > { %v12141_v1 = vmul.f32 %v12133_v6, %v12133_v6  ;;  %v1528_v30 = vmul.f32 %v11176_v23, %v1496_v47  ;;  %v1127_v46 = vadd.f32 -0.016096033, %v1095_v0  ;;  %v983_v5 = vmul.f32 %v951_v44, %v12098_v19 }
 0x18d   : > { %v2149_v4 = vadd.f32 -0.016096033, %v2117_v52  ;;  %v1909_v37 = vadd.f32 -2.101024e-06, %v1877_v45  ;;  %v2293_v40 = vadd.f32 -0.001682827, %v2261_v60  ;;  %v1303_v9 = vmul.f32 %v1271_v33, %v12098_v19 }
 0x18e   : > { %v1800_v17 = vmul.f32 -2.7261424e-10, %v12141_v1  ;;  %v2184_v27 = vmul.f32 -1.45660715e-05, %v12141_v1  ;;  %v1592_v42 = vmul.f32 %v1560_v63, %v1528_v30  ;;  %v615_v38 = vmul.f32 0.5, %v11750_v21 }
 0x18f   : > { %v1941_v53 = vmul.f32 %v1909_v37, %v12119_v54  ;;  %v2325_v13 = vmul.f32 %v2293_v40, %v12119_v54  ;;  %v1015_v23 = vadd.f32 -0.00073499064, %v983_v5  ;;  %v1543_v24 = vmul.f32 %v12053_v58, %v1127_v46 }
 0x190   : > { %v11178_v8 = vpop.eup %11177  ;;  %v1832_v12 = vadd.f32 2.7706815e-08, %v1800_v17  ;;  %v2216_v3 = vadd.f32 -0.00021337405, %v2184_v27  ;;  %v1624_v34 = vadd.f32 1.0, %v1592_v42 }
 0x191   : > { %v11180_v14 = vpop.eup %11179  ;;  %v1973_v50 = vadd.f32 -5.6925062e-05, %v1941_v53  ;;  %v2357_v25 = vadd.f32 -0.0073733293, %v2325_v13  ;;  %v1447_v31 = vmul.f32 %v11178_v8, %v1383_v7  ;;  %v1047_v21 = vmul.f32 %v1015_v23, %v12098_v19 }
 0x192   : > { %v2469_v16 = vmul.f32 %v11180_v14, %v2405_v20  ;;  %v1864_v63 = vmul.f32 %v1832_v12, %v12141_v1  ;;  %v2248_v47 = vmul.f32 %v2216_v3, %v12141_v1  ;;  %v12159_v0 = vmul.f32 %v1624_v34, %v12051_v39 }
 0x193   : > { %v2005_v44 = vmul.f32 %v1973_v50, %v12119_v54  ;;  %v2389_v58 = vmul.f32 %v2357_v25, %v12119_v54  ;;  %v1479_v52 = vsub.f32 2.0, %v1447_v31  ;;  %v1079_v45 = vadd.f32 -0.0029546, %v1047_v21 }
 0x194   : > { %16891 = vst [vmem:[#allocation15_spill] sm:$0xff] %v12159_v0  ;;  %v2501_v60 = vsub.f32 2.0, %v2469_v16  ;;  %v2565_v7 = vmul.f32 %v12057_v43, %v2149_v4  ;;  %v1896_v33 = vadd.f32 -2.101024e-06, %v1864_v63  ;;  %v2280_v30 = vadd.f32 -0.001682827, %v2248_v47 }
 0x195   : > { %v2037_v46 = vadd.f32 -0.00073499064, %v2005_v44  ;;  %v2421_v20 = vadd.f32 -0.014264739, %v2389_v58  ;;  %v1688_v5 = vmul.f32 0.70710677, %v12159_v0  ;;  %v1511_v37 = vmul.f32 %v11178_v8, %v1479_v52 }
 0x196   : > { %v2533_v40 = vmul.f32 %v11180_v14, %v2501_v60  ;;  %v1928_v39 = vmul.f32 %v1896_v33, %v12141_v1  ;;  %v2312_v17 = vmul.f32 %v2280_v30, %v12141_v1  ;;  %v1111_v27 = vmul.f32 %v1079_v45, %v12098_v19 }
 0x197   : > { %v2069_v42 = vmul.f32 %v2037_v46, %v12119_v54  ;;  %11181 = vrcp.f32 %v2421_v20  ;;  %v12169_v53 = vclamps-f32 %v1688_v5, 4.0  ;;  %v1575_v43 = vmul.f32 %v1543_v24, %v1511_v37 }
 0x198   : > { %v2597_v4 = vmul.f32 %v2565_v7, %v2533_v40  ;;  %v1960_v13 = vadd.f32 -5.6925062e-05, %v1928_v39  ;;  %v2344_v23 = vadd.f32 -0.0073733293, %v2312_v17  ;;  %v12172_v12 = vmul.f32 0.5, %v11752_v22 }
 0x199   : > { %v2101_v8 = vadd.f32 -0.0029546, %v2069_v42  ;;  %v12176_v3 = vmul.f32 %v12169_v53, %v12169_v53  ;;  %v1607_v34 = vadd.f32 1.0, %v1575_v43  ;;  %v1335_v14 = vadd.f32 -0.0073733293, %v1303_v9 }
 0x19a   : > { %v2629_v50 = vadd.f32 1.0, %v2597_v4  ;;  %v1992_v25 = vmul.f32 %v1960_v13, %v12141_v1  ;;  %v2376_v31 = vmul.f32 %v2344_v23, %v12141_v1  ;;  %v1143_v21 = vadd.f32 -0.016096033, %v1111_v27 }
 0x19b   : > { %v2133_v24 = vmul.f32 %v2101_v8, %v12119_v54  ;;  %v1816_v16 = vmul.f32 -2.7261424e-10, %v12176_v3  ;;  %v2200_v22 = vmul.f32 -1.45660715e-05, %v12176_v3  ;;  %v12183_v63 = vmul.f32 %v1607_v34, %v615_v38  ;;  %v2725_v8 = vld [vmem:[%s16723_s2 + $0x10] sm:$0xff]  ;;  %v12220_v34 = vpop.f32.mrb[11].mxu0 }
 0x19c   : > { %4099 = vst [vmem:[#allocation2 + $0x28] sm:$0xff] %v2629_v50  ;;  %v2024_v47 = vadd.f32 -0.00073499064, %v1992_v25  ;;  %v2408_v44 = vadd.f32 -0.014264739, %v2376_v31  ;;  %v1367_v58 = vmul.f32 %v1335_v14, %v12098_v19  ;;  %v12194_v46 = vmul.f32 %v12082_v41, %v1143_v21 }
 0x19d   : > { %16892 = vst [vmem:[#allocation16_spill] sm:$0xff] %v12183_v63  ;;  %v650_v9 = vmul.f32 0.70710677, %v11773_v11  ;;  %v2165_v52 = vadd.f32 -0.016096033, %v2133_v24 }
 0x19e   : > { %v1848_v45 = vadd.f32 2.7706815e-08, %v1816_v16  ;;  %v2232_v60 = vadd.f32 -0.00021337405, %v2200_v22  ;;  %v2056_v7 = vmul.f32 %v2024_v47, %v12141_v1  ;;  %11183 = vrcp.f32 %v2408_v44 }
 0x19f   : > { %v1671_v54 = vmul.f32 0.70710677, %v12183_v63  ;;  %v12189_v33 = vadd.f32 -0.014264739, %v1367_v58  ;;  %v12196_v19 = vclamps-f32 %v650_v9, 4.0  ;;  %v2581_v17 = vmul.f32 %v12114_v62, %v2165_v52  ;;  %v2726_v62 = vld [vmem:[%s16723_s2 + $0x18] sm:$0xff] }
 0x1a0   : > { %v1880_v38 = vmul.f32 %v1848_v45, %v12176_v3  ;;  %v2264_v30 = vmul.f32 %v2232_v60, %v12176_v3  ;;  %v2088_v5 = vadd.f32 -0.0029546, %v2056_v7  ;;  %v666_v40 = vmul.f32 0.70710677, %v11815_v51 }
 0x1a1   : > { %v12198_v37 = vclamps-f32 %v1671_v54, 4.0  ;;  %11185 = vrcp.f32 %v12189_v33  ;;  %v11182_v39 = vpop.eup %11181  ;;  %v12205_v43 = vmul.f32 %v12196_v19, %v12196_v19  ;;  %v10523_v58 = vpack.c.bf16 %v2726_v62, %v2725_v8 }
 0x1a2   : > { %v1912_v27 = vadd.f32 -2.101024e-06, %v1880_v38  ;;  %v2296_v42 = vadd.f32 -0.001682827, %v2264_v30  ;;  %v2485_v41 = vmul.f32 %v11182_v39, %v2421_v20  ;;  %v2120_v4 = vmul.f32 %v2088_v5, %v12141_v1 }
 0x1a3   : > { %v12210_v13 = vmul.f32 %v12198_v37, %v12198_v37  ;;  %v12212_v23 = vclamps-f32 %v666_v40, 4.0  ;;  %v778_v14 = vmul.f32 -2.7261424e-10, %v12205_v43  ;;  %v1162_v50 = vmul.f32 -1.45660715e-05, %v12205_v43  ;;  %10524 = vmatprep.subr.bf16.mxu1 %v10523_v58 }
 0x1a4   : > { %v1944_v20 = vmul.f32 %v1912_v27, %v12176_v3  ;;  %v2328_v1 = vmul.f32 %v2296_v42, %v12176_v3  ;;  %v2517_v25 = vsub.f32 2.0, %v2485_v41  ;;  %v2152_v31 = vadd.f32 -0.016096033, %v2120_v4  ;;  %10526 = vmatpush3.bf16.msra.mxu1 %v10523_v58 }
 0x1a5   : > { %v1799_v21 = vmul.f32 -2.7261424e-10, %v12210_v13  ;;  %v12229_v24 = vmul.f32 %v12212_v23, %v12212_v23  ;;  %v2183_v47 = vmul.f32 -1.45660715e-05, %v12210_v13  ;;  %v810_v60 = vadd.f32 2.7706815e-08, %v778_v14 }
 0x1a6   : > { %v1976_v16 = vadd.f32 -5.6925062e-05, %v1944_v20  ;;  %v2360_v22 = vadd.f32 -0.0073733293, %v2328_v1  ;;  %v2549_v9 = vmul.f32 %v11182_v39, %v2517_v25  ;;  %v2568_v52 = vmul.f32 %v12133_v6, %v2152_v31 }
 0x1a7   : > { %v1831_v45 = vadd.f32 2.7706815e-08, %v1799_v21  ;;  %v2215_v38 = vadd.f32 -0.00021337405, %v2183_v47  ;;  %v1194_v30 = vadd.f32 -0.00021337405, %v1162_v50  ;;  %v842_v42 = vmul.f32 %v810_v60, %v12205_v43 }
 0x1a8   : > { %v2008_v7 = vmul.f32 %v1976_v16, %v12176_v3  ;;  %v2392_v54 = vmul.f32 %v2360_v22, %v12176_v3  ;;  %v11184_v5 = vpop.eup %11183  ;;  %v2613_v40 = vmul.f32 %v2581_v17, %v2549_v9  ;;  %v794_v41 = vmul.f32 -2.7261424e-10, %v12229_v24 }
 0x1a9   : > { %v1863_v27 = vmul.f32 %v1831_v45, %v12210_v13  ;;  %v2472_v39 = vmul.f32 %v11184_v5, %v2408_v44  ;;  %v2247_v8 = vmul.f32 %v2215_v38, %v12210_v13  ;;  %v874_v14 = vadd.f32 -2.101024e-06, %v842_v42 }
 0x1aa   : > { %v2040_v6 = vadd.f32 -0.00073499064, %v2008_v7  ;;  %v2424_v4 = vadd.f32 -0.014264739, %v2392_v54  ;;  %v2645_v20 = vadd.f32 1.0, %v2613_v40  ;;  %v1226_v50 = vmul.f32 %v1194_v30, %v12205_v43 }
 0x1ab   : > { %v11186_v62 = vpop.eup %11185  ;;  %v1895_v1 = vadd.f32 -2.101024e-06, %v1863_v27  ;;  %v2504_v25 = vsub.f32 2.0, %v2472_v39  ;;  %v2279_v31 = vadd.f32 -0.001682827, %v2247_v8  ;;  %v906_v16 = vmul.f32 %v874_v14, %v12205_v43 }
 0x1ac   : > { %v2072_v17 = vmul.f32 %v2040_v6, %v12176_v3  ;;  %11187 = vrcp.f32 %v2424_v4  ;;  %4115 = vst [vmem:[#allocation2 + $0xa8] sm:$0xff] %v2645_v20  ;;  %v1463_v44 = vmul.f32 %v11186_v62, %v12189_v33  ;;  %v1258_v22 = vadd.f32 -0.001682827, %v1226_v50 }
 0x1ad   : > { %v1927_v21 = vmul.f32 %v1895_v1, %v12210_v13  ;;  %v2536_v47 = vmul.f32 %v11184_v5, %v2504_v25  ;;  %v2311_v9 = vmul.f32 %v2279_v31, %v12210_v13  ;;  %v826_v45 = vadd.f32 2.7706815e-08, %v794_v41  ;;  %v12254_v25 = vpop.f32.mrb[11].mxu1 }
 0x1ae   : > { %v2104_v58 = vadd.f32 -0.0029546, %v2072_v17  ;;  %v1495_v7 = vsub.f32 2.0, %v1463_v44  ;;  %v938_v54 = vadd.f32 -5.6925062e-05, %v906_v16  ;;  %v1290_v38 = vmul.f32 %v1258_v22, %v12205_v43 }
 0x1af   : > { %v1959_v60 = vadd.f32 -5.6925062e-05, %v1927_v21  ;;  %v2600_v30 = vmul.f32 %v2568_v52, %v2536_v47  ;;  %v2343_v27 = vadd.f32 -0.0073733293, %v2311_v9  ;;  %v858_v42 = vmul.f32 %v826_v45, %v12229_v24 }
 0x1b0   : > { %v2136_v40 = vmul.f32 %v2104_v58, %v12176_v3  ;;  %v1527_v39 = vmul.f32 %v11186_v62, %v1495_v7  ;;  %v970_v5 = vmul.f32 %v938_v54, %v12205_v43  ;;  %v1322_v6 = vadd.f32 -0.0073733293, %v1290_v38 }
 0x1b1   : > { %v1991_v33 = vmul.f32 %v1959_v60, %v12210_v13  ;;  %v2632_v8 = vadd.f32 1.0, %v2600_v30  ;;  %v2375_v41 = vmul.f32 %v2343_v27, %v12210_v13  ;;  %v890_v20 = vadd.f32 -2.101024e-06, %v858_v42 }
 0x1b2   : > { %v649_v1 = vmul.f32 0.70710677, %v11873_v55  ;;  %v1591_v52 = vmul.f32 %v12194_v46, %v1527_v39  ;;  %v1002_v50 = vadd.f32 -0.00073499064, %v970_v5  ;;  %v1354_v3 = vmul.f32 %v1322_v6, %v12205_v43 }
 0x1b3   : > { %v2023_v14 = vadd.f32 -0.00073499064, %v1991_v33  ;;  %4102 = vst [vmem:[#allocation2 + $0x40] sm:$0xff] %v2632_v8  ;;  %v2168_v17 = vadd.f32 -0.016096033, %v2136_v40  ;;  %v922_v31 = vmul.f32 %v890_v20, %v12229_v24 }
 0x1b4   : > { %v2407_v62 = vadd.f32 -0.014264739, %v2375_v41  ;;  %v1178_v21 = vmul.f32 -1.45660715e-05, %v12229_v24  ;;  %v1623_v16 = vadd.f32 1.0, %v1591_v52  ;;  %v1034_v22 = vmul.f32 %v1002_v50, %v12205_v43 }
 0x1b5   : > { %v2055_v44 = vmul.f32 %v2023_v14, %v12210_v13  ;;  %v1386_v47 = vadd.f32 -0.014264739, %v1354_v3  ;;  %v954_v46 = vadd.f32 -5.6925062e-05, %v922_v31  ;;  %v12260_v45 = vclamps-f32 %v649_v1, 4.0 }
 0x1b6   : > { %v11188_v58 = vpop.eup %11187  ;;  %11189 = vrcp.f32 %v2407_v62  ;;  %v1210_v9 = vadd.f32 -0.00021337405, %v1178_v21  ;;  %v12263_v54 = vmul.f32 %v1623_v16, %v12172_v12  ;;  %v1066_v38 = vadd.f32 -0.0029546, %v1034_v22 }
 0x1b7   : > { %v2488_v60 = vmul.f32 %v11188_v58, %v2424_v4  ;;  %v2087_v7 = vadd.f32 -0.0029546, %v2055_v44  ;;  %11191 = vrcp.f32 %v1386_v47  ;;  %v986_v30 = vmul.f32 %v954_v46, %v12229_v24 }
 0x1b8   : > { %16893 = vst [vmem:[#allocation17_spill] sm:$0xff] %v12263_v54  ;;  %v1242_v40 = vmul.f32 %v1210_v9, %v12229_v24  ;;  %v12269_v27 = vmul.f32 %v12260_v45, %v12260_v45  ;;  %v1687_v39 = vmul.f32 0.70710677, %v12263_v54  ;;  %v1098_v4 = vmul.f32 %v1066_v38, %v12205_v43 }
 0x1b9   : > { %v2520_v42 = vsub.f32 2.0, %v2488_v60  ;;  %v2119_v33 = vmul.f32 %v2087_v7, %v12210_v13  ;;  %v1018_v5 = vadd.f32 -0.00073499064, %v986_v30  ;;  %v2584_v41 = vmul.f32 %v12169_v53, %v2168_v17 }
 0x1ba   : > { %v1274_v12 = vadd.f32 -0.001682827, %v1242_v40  ;;  %v777_v6 = vmul.f32 -2.7261424e-10, %v12269_v27  ;;  %v12276_v1 = vclamps-f32 %v1687_v39, 4.0  ;;  %v618_v46 = vmul.f32 0.5, %v11773_v11 }
 0x1bb   : > { %v2552_v8 = vmul.f32 %v11188_v58, %v2520_v42  ;;  %v2151_v20 = vadd.f32 -0.016096033, %v2119_v33  ;;  %v1050_v14 = vmul.f32 %v1018_v5, %v12229_v24  ;;  %v1161_v13 = vmul.f32 -1.45660715e-05, %v12269_v27 }
 0x1bc   : > { %v1306_v52 = vmul.f32 %v1274_v12, %v12229_v24  ;;  %v809_v50 = vadd.f32 2.7706815e-08, %v777_v6  ;;  %v12283_v43 = vmul.f32 %v12276_v1, %v12276_v1  ;;  %v1130_v31 = vadd.f32 -0.016096033, %v1098_v4 }
 0x1bd   : > { %v2616_v3 = vmul.f32 %v2584_v41, %v2552_v8  ;;  %v1082_v21 = vadd.f32 -0.0029546, %v1050_v14  ;;  %v1193_v17 = vadd.f32 -0.00021337405, %v1161_v13  ;;  %v2567_v60 = vmul.f32 %v12198_v37, %v2151_v20 }
 0x1be   : > { %v1338_v44 = vadd.f32 -0.0073733293, %v1306_v52  ;;  %v841_v53 = vmul.f32 %v809_v50, %v12269_v27  ;;  %v1815_v22 = vmul.f32 -2.7261424e-10, %v12283_v43  ;;  %v2199_v58 = vmul.f32 -1.45660715e-05, %v12283_v43 }
 0x1bf   : > { %v2648_v16 = vadd.f32 1.0, %v2616_v3  ;;  %v1225_v30 = vmul.f32 %v1193_v17, %v12269_v27  ;;  %v1114_v39 = vmul.f32 %v1082_v21, %v12229_v24  ;;  %v665_v11 = vmul.f32 0.70710677, %v11902_v18 }
 0x1c0   : > { %v11190_v9 = vpop.eup %11189  ;;  %v1370_v7 = vmul.f32 %v1338_v44, %v12229_v24  ;;  %v873_v38 = vadd.f32 -2.101024e-06, %v841_v53  ;;  %v1847_v42 = vadd.f32 2.7706815e-08, %v1815_v22  ;;  %v2231_v33 = vadd.f32 -0.00021337405, %v2199_v58 }
 0x1c1   : > { %4118 = vst [vmem:[#allocation2 + $0xc0] sm:$0xff] %v2648_v16  ;;  %v2471_v40 = vmul.f32 %v11190_v9, %v2407_v62  ;;  %v11192_v4 = vpop.eup %11191  ;;  %v1257_v6 = vadd.f32 -0.001682827, %v1225_v30  ;;  %v1546_v14 = vmul.f32 %v12196_v19, %v1130_v31  ;;  %v1146_v21 = vadd.f32 -0.016096033, %v1114_v39 }
 0x1c2   : > { %v1402_v5 = vadd.f32 -0.014264739, %v1370_v7  ;;  %v905_v12 = vmul.f32 %v873_v38, %v12269_v27  ;;  %v1879_v37 = vmul.f32 %v1847_v42, %v12283_v43  ;;  %v2263_v41 = vmul.f32 %v2231_v33, %v12283_v43 }
 0x1c3   : > { %v2503_v8 = vsub.f32 2.0, %v2471_v40  ;;  %v1450_v20 = vmul.f32 %v11192_v4, %v1386_v47  ;;  %v1289_v52 = vmul.f32 %v1257_v6, %v12269_v27  ;;  %v12300_v17 = vclamps-f32 %v665_v11, 4.0 }
 0x1c4   : > { %11193 = vrcp.f32 %v1402_v5  ;;  %v937_v62 = vadd.f32 -5.6925062e-05, %v905_v12  ;;  %v1911_v50 = vadd.f32 -2.101024e-06, %v1879_v37  ;;  %v2295_v13 = vadd.f32 -0.001682827, %v2263_v41 }
 0x1c5   : > { %v2535_v24 = vmul.f32 %v11190_v9, %v2503_v8  ;;  %v1482_v3 = vsub.f32 2.0, %v1450_v20  ;;  %v1321_v53 = vadd.f32 -0.0073733293, %v1289_v52  ;;  %v12307_v9 = vmul.f32 %v12300_v17, %v12300_v17  ;;  %v12317_v37 = vpop.f32.mrb[12].mxu0 }
 0x1c6   : > { %v969_v44 = vmul.f32 %v937_v62, %v12269_v27  ;;  %v1943_v22 = vmul.f32 %v1911_v50, %v12283_v43  ;;  %v2327_v47 = vmul.f32 %v2295_v13, %v12283_v43  ;;  %v652_v7 = vmul.f32 0.70710677, %v11934_v29 }
 0x1c7   : > { %v2599_v16 = vmul.f32 %v2567_v60, %v2535_v24  ;;  %v1514_v19 = vmul.f32 %v11192_v4, %v1482_v3  ;;  %v1353_v58 = vmul.f32 %v1321_v53, %v12269_v27  ;;  %v793_v39 = vmul.f32 -2.7261424e-10, %v12307_v9 }
 0x1c8   : > { %v1001_v31 = vadd.f32 -0.00073499064, %v969_v44  ;;  %v1975_v30 = vadd.f32 -5.6925062e-05, %v1943_v22  ;;  %v2359_v40 = vadd.f32 -0.0073733293, %v2327_v47 }
 0x1c9   : > { %v2631_v38 = vadd.f32 1.0, %v2599_v16  ;;  %v1578_v42 = vmul.f32 %v1546_v14, %v1514_v19  ;;  %v1385_v33 = vadd.f32 -0.014264739, %v1353_v58  ;;  %v1177_v4 = vmul.f32 -1.45660715e-05, %v12307_v9 }
 0x1ca   : > { %v1033_v60 = vmul.f32 %v1001_v31, %v12269_v27  ;;  %v2007_v12 = vmul.f32 %v1975_v30, %v12283_v43  ;;  %v2391_v6 = vmul.f32 %v2359_v40, %v12283_v43  ;;  %v12315_v8 = vclamps-f32 %v652_v7, 4.0 }
 0x1cb   : > { %4101 = vst [vmem:[#allocation2 + $0x38] sm:$0xff] %v2631_v38  ;;  %v1610_v11 = vadd.f32 1.0, %v1578_v42  ;;  %11195 = vrcp.f32 %v1385_v33  ;;  %v825_v20 = vadd.f32 2.7706815e-08, %v793_v39  ;;  %v1209_v14 = vadd.f32 -0.00021337405, %v1177_v4 }
 0x1cc   : > { %v1065_v41 = vadd.f32 -0.0029546, %v1033_v60  ;;  %v2039_v62 = vadd.f32 -0.00073499064, %v2007_v12  ;;  %v2423_v52 = vadd.f32 -0.014264739, %v2391_v6  ;;  %v12323_v50 = vmul.f32 %v12315_v8, %v12315_v8 }
 0x1cd   : > { %v12319_v24 = vmul.f32 %v1610_v11, %v618_v46  ;;  %v634_v3 = vmul.f32 0.5, %v11815_v51  ;;  %v857_v53 = vmul.f32 %v825_v20, %v12307_v9  ;;  %v1241_v16 = vmul.f32 %v1209_v14, %v12307_v9 }
 0x1ce   : > { %v11194_v13 = vpop.eup %11193  ;;  %v1097_v44 = vmul.f32 %v1065_v41, %v12269_v27  ;;  %v2071_v22 = vmul.f32 %v2039_v62, %v12283_v43  ;;  %11197 = vrcp.f32 %v2423_v52  ;;  %v1562_v19 = vmul.f32 %v12212_v23, %v1146_v21 }
 0x1cf   : > { %16894 = vst [vmem:[#allocation18_spill] sm:$0xff] %v12319_v24  ;;  %v1674_v47 = vmul.f32 0.70710677, %v12319_v24  ;;  %v1466_v46 = vmul.f32 %v11194_v13, %v1402_v5  ;;  %v889_v58 = vadd.f32 -2.101024e-06, %v857_v53  ;;  %v12336_v40 = vmul.f32 0.5, %v11873_v55 }
 0x1d0   : > { %v1129_v31 = vadd.f32 -0.016096033, %v1097_v44  ;;  %v1273_v7 = vadd.f32 -0.001682827, %v1241_v16  ;;  %v2103_v38 = vadd.f32 -0.0029546, %v2071_v22 }
 0x1d1   : > { %v12332_v30 = vclamps-f32 %v1674_v47, 4.0  ;;  %v1498_v51 = vsub.f32 2.0, %v1466_v46  ;;  %v780_v27 = vmul.f32 -2.7261424e-10, %v12323_v50  ;;  %v921_v42 = vmul.f32 %v889_v58, %v12307_v9 }
 0x1d2   : > { %v1305_v60 = vmul.f32 %v1273_v7, %v12307_v9  ;;  %v1164_v5 = vmul.f32 -1.45660715e-05, %v12323_v50  ;;  %v2135_v23 = vmul.f32 %v2103_v38, %v12283_v43  ;;  %v1545_v12 = vmul.f32 %v12260_v45, %v1129_v31  ;;  %v12354_v31 = vpop.f32.mrb[12].mxu1 }
 0x1d3   : > { %v12344_v21 = vmul.f32 %v12332_v30, %v12332_v30  ;;  %v1530_v39 = vmul.f32 %v11194_v13, %v1498_v51  ;;  %v812_v4 = vadd.f32 2.7706815e-08, %v780_v27  ;;  %v953_v6 = vadd.f32 -5.6925062e-05, %v921_v42 }
 0x1d4   : > { %v1337_v11 = vadd.f32 -0.0073733293, %v1305_v60  ;;  %v1196_v55 = vadd.f32 -0.00021337405, %v1164_v5  ;;  %v2167_v41 = vadd.f32 -0.016096033, %v2135_v23 }
 0x1d5   : > { %v1802_v20 = vmul.f32 -2.7261424e-10, %v12344_v21  ;;  %v2186_v14 = vmul.f32 -1.45660715e-05, %v12344_v21  ;;  %v1594_v62 = vmul.f32 %v1562_v19, %v1530_v39  ;;  %v11196_v44 = vpop.eup %11195  ;;  %v985_v43 = vmul.f32 %v953_v6, %v12307_v9 }
 0x1d6   : > { %v1369_v53 = vmul.f32 %v1337_v11, %v12307_v9  ;;  %v844_v16 = vmul.f32 %v812_v4, %v12323_v50  ;;  %v1228_v13 = vmul.f32 %v1196_v55, %v12323_v50  ;;  %v2583_v45 = vmul.f32 %v12276_v1, %v2167_v41 }
 0x1d7   : > { %v1834_v22 = vadd.f32 2.7706815e-08, %v1802_v20  ;;  %v2218_v47 = vadd.f32 -0.00021337405, %v2186_v14  ;;  %v1626_v46 = vadd.f32 1.0, %v1594_v62  ;;  %v1449_v58 = vmul.f32 %v11196_v44, %v1385_v33 }
 0x1d8   : > { %v1017_v7 = vadd.f32 -0.00073499064, %v985_v43  ;;  %v1401_v38 = vadd.f32 -0.014264739, %v1369_v53  ;;  %v876_v19 = vadd.f32 -2.101024e-06, %v844_v16  ;;  %v11198_v51 = vpop.eup %11197 }
 0x1d9   : > { %v1866_v27 = vmul.f32 %v1834_v22, %v12344_v21  ;;  %v2250_v42 = vmul.f32 %v2218_v47, %v12344_v21  ;;  %v12358_v60 = vmul.f32 %v1626_v46, %v634_v3  ;;  %v1260_v5 = vadd.f32 -0.001682827, %v1228_v13 }
 0x1da   : > { %v2487_v23 = vmul.f32 %v11198_v51, %v2423_v52  ;;  %v1481_v39 = vsub.f32 2.0, %v1449_v58  ;;  %v1049_v1 = vmul.f32 %v1017_v7, %v12307_v9  ;;  %11199 = vrcp.f32 %v1401_v38 }
 0x1db   : > { %16895 = vst [vmem:[#allocation19_spill] sm:$0xff] %v12358_v60  ;;  %v1898_v4 = vadd.f32 -2.101024e-06, %v1866_v27  ;;  %v2282_v6 = vadd.f32 -0.001682827, %v2250_v42  ;;  %v908_v11 = vmul.f32 %v876_v19, %v12323_v50  ;;  %v1292_v14 = vmul.f32 %v1260_v5, %v12323_v50 }
 0x1dc   : > { %v1690_v33 = vmul.f32 0.70710677, %v12358_v60  ;;  %v2519_v55 = vsub.f32 2.0, %v2487_v23  ;;  %v1513_v41 = vmul.f32 %v11196_v44, %v1481_v39  ;;  %v1081_v20 = vadd.f32 -0.0029546, %v1049_v1 }
 0x1dd   : > { %v1930_v3 = vmul.f32 %v1898_v4, %v12344_v21  ;;  %v2314_v62 = vmul.f32 %v2282_v6, %v12344_v21  ;;  %v940_v43 = vadd.f32 -5.6925062e-05, %v908_v11  ;;  %v1324_v22 = vadd.f32 -0.0073733293, %v1292_v14 }
 0x1de   : > { %v12366_v52 = vclamps-f32 %v1690_v33, 4.0  ;;  %v2551_v53 = vmul.f32 %v11198_v51, %v2519_v55  ;;  %v1577_v16 = vmul.f32 %v1545_v12, %v1513_v41  ;;  %v1113_v13 = vmul.f32 %v1081_v20, %v12307_v9 }
 0x1df   : > { %v1962_v47 = vadd.f32 -5.6925062e-05, %v1930_v3  ;;  %v2346_v46 = vadd.f32 -0.0073733293, %v2314_v62  ;;  %v972_v58 = vmul.f32 %v940_v43, %v12323_v50  ;;  %v633_v27 = vmul.f32 0.5, %v11902_v18 }
 0x1e0   : > { %v12371_v44 = vmul.f32 %v12366_v52, %v12366_v52  ;;  %v2615_v7 = vmul.f32 %v2583_v45, %v2551_v53  ;;  %v1609_v19 = vadd.f32 1.0, %v1577_v16  ;;  %v1356_v42 = vmul.f32 %v1324_v22, %v12323_v50 }
 0x1e1   : > { %v1994_v51 = vmul.f32 %v1962_v47, %v12344_v21  ;;  %v2378_v12 = vmul.f32 %v2346_v46, %v12344_v21  ;;  %v1145_v1 = vadd.f32 -0.016096033, %v1113_v13  ;;  %v1004_v4 = vadd.f32 -0.00073499064, %v972_v58 }
 0x1e2   : > { %v1818_v9 = vmul.f32 -2.7261424e-10, %v12371_v44  ;;  %v2202_v5 = vmul.f32 -1.45660715e-05, %v12371_v44  ;;  %v2647_v23 = vadd.f32 1.0, %v2615_v7  ;;  %v12381_v39 = vmul.f32 %v1609_v19, %v12336_v40  ;;  %v12397_v19 = vpop.f32.mrb[13].mxu0 }
 0x1e3   : > { %v2026_v45 = vadd.f32 -0.00073499064, %v1994_v51  ;;  %v2410_v6 = vadd.f32 -0.014264739, %v2378_v12  ;;  %v1036_v41 = vmul.f32 %v1004_v4, %v12323_v50  ;;  %v1388_v20 = vadd.f32 -0.014264739, %v1356_v42 }
 0x1e4   : > { %16896 = vst [vmem:[#allocation20_spill] sm:$0xff] %v12381_v39  ;;  %v1850_v33 = vadd.f32 2.7706815e-08, %v1818_v9  ;;  %v11200_v18 = vpop.eup %11199  ;;  %4117 = vst [vmem:[#allocation2 + $0xb8] sm:$0xff] %v2647_v23  ;;  %v2234_v11 = vadd.f32 -0.00021337405, %v2202_v5  ;;  %v1561_v47 = vmul.f32 %v12300_v17, %v1145_v1 }
 0x1e5   : > { %v1673_v55 = vmul.f32 0.70710677, %v12381_v39  ;;  %v2058_v14 = vmul.f32 %v2026_v45, %v12344_v21  ;;  %11201 = vrcp.f32 %v2410_v6  ;;  %v1465_v40 = vmul.f32 %v11200_v18, %v1401_v38 }
 0x1e6   : > { %v1882_v3 = vmul.f32 %v1850_v33, %v12371_v44  ;;  %v2266_v62 = vmul.f32 %v2234_v11, %v12371_v44  ;;  %v1068_v53 = vadd.f32 -0.0029546, %v1036_v41  ;;  %11203 = vrcp.f32 %v1388_v20 }
 0x1e7   : > { %v12388_v43 = vclamps-f32 %v1673_v55, 4.0  ;;  %v2090_v16 = vadd.f32 -0.0029546, %v2058_v14  ;;  %v1497_v22 = vsub.f32 2.0, %v1465_v40  ;;  %v668_v38 = vmul.f32 0.70710677, %v11966_v48 }
 0x1e8   : > { %v1914_v13 = vadd.f32 -2.101024e-06, %v1882_v3  ;;  %v2298_v46 = vadd.f32 -0.001682827, %v2266_v62  ;;  %v1100_v7 = vmul.f32 %v1068_v53, %v12323_v50  ;;  %v651_v9 = vmul.f32 0.70710677, %v12040_v61 }
 0x1e9   : > { %v12393_v58 = vmul.f32 %v12388_v43, %v12388_v43  ;;  %v2122_v42 = vmul.f32 %v2090_v16, %v12344_v21  ;;  %v1529_v12 = vmul.f32 %v11200_v18, %v1497_v22  ;;  %v12405_v33 = vclamps-f32 %v668_v38, 4.0 }
 0x1ea   : > { %v1946_v51 = vmul.f32 %v1914_v13, %v12371_v44  ;;  %v2330_v17 = vmul.f32 %v2298_v46, %v12371_v44  ;;  %v1132_v1 = vadd.f32 -0.016096033, %v1100_v7 }
 0x1eb   : > { %v1801_v5 = vmul.f32 -2.7261424e-10, %v12393_v58  ;;  %v2185_v23 = vmul.f32 -1.45660715e-05, %v12393_v58  ;;  %v2154_v4 = vadd.f32 -0.016096033, %v2122_v42  ;;  %v1593_v45 = vmul.f32 %v1561_v47, %v1529_v12 }
 0x1ec   : > { %v1978_v50 = vadd.f32 -5.6925062e-05, %v1946_v51  ;;  %v2362_v11 = vadd.f32 -0.0073733293, %v2330_v17  ;;  %v1548_v14 = vmul.f32 %v12315_v8, %v1132_v1  ;;  %v12411_v3 = vmul.f32 %v12405_v33, %v12405_v33  ;;  %v12423_v1 = vpop.f32.mrb[13].mxu1 }
 0x1ed   : > { %v1833_v55 = vadd.f32 2.7706815e-08, %v1801_v5  ;;  %v2217_v21 = vadd.f32 -0.00021337405, %v2185_v23  ;;  %v1625_v18 = vadd.f32 1.0, %v1593_v45  ;;  %v2570_v40 = vmul.f32 %v12332_v30, %v2154_v4 }
 0x1ee   : > { %v2010_v41 = vmul.f32 %v1978_v50, %v12371_v44  ;;  %v2394_v62 = vmul.f32 %v2362_v11, %v12371_v44  ;;  %v796_v46 = vmul.f32 -2.7261424e-10, %v12411_v3  ;;  %v1180_v8 = vmul.f32 -1.45660715e-05, %v12411_v3 }
 0x1ef   : > { %v1865_v53 = vmul.f32 %v1833_v55, %v12393_v58  ;;  %v2249_v16 = vmul.f32 %v2217_v21, %v12393_v58  ;;  %v11202_v13 = vpop.eup %11201  ;;  %v12417_v47 = vmul.f32 %v1625_v18, %v633_v27 }
 0x1f0   : > { %v2042_v22 = vadd.f32 -0.00073499064, %v2010_v41  ;;  %v11204_v7 = vpop.eup %11203  ;;  %v2474_v38 = vmul.f32 %v11202_v13, %v2410_v6  ;;  %v2426_v42 = vadd.f32 -0.014264739, %v2394_v62  ;;  %v828_v23 = vadd.f32 2.7706815e-08, %v796_v46 }
 0x1f1   : > { %16897 = vst [vmem:[#allocation21_spill] sm:$0xff] %v12417_v47  ;;  %v1897_v51 = vadd.f32 -2.101024e-06, %v1865_v53  ;;  %v2281_v12 = vadd.f32 -0.001682827, %v2249_v16  ;;  %v1452_v5 = vmul.f32 %v11204_v7, %v1388_v20 }
 0x1f2   : > { %v2074_v30 = vmul.f32 %v2042_v22, %v12371_v44  ;;  %v1689_v17 = vmul.f32 0.70710677, %v12417_v47  ;;  %v2506_v4 = vsub.f32 2.0, %v2474_v38  ;;  %11205 = vrcp.f32 %v2426_v42 }
 0x1f3   : > { %v1929_v27 = vmul.f32 %v1897_v51, %v12393_v58  ;;  %v2313_v50 = vmul.f32 %v2281_v12, %v12393_v58  ;;  %v1484_v6 = vsub.f32 2.0, %v1452_v5  ;;  %v860_v55 = vmul.f32 %v828_v23, %v12411_v3 }
 0x1f4   : > { %v2106_v45 = vadd.f32 -0.0029546, %v2074_v30  ;;  %v12427_v11 = vclamps-f32 %v1689_v17, 4.0  ;;  %v2538_v21 = vmul.f32 %v11202_v13, %v2506_v4  ;;  %v1212_v62 = vadd.f32 -0.00021337405, %v1180_v8 }
 0x1f5   : > { %v1961_v41 = vadd.f32 -5.6925062e-05, %v1929_v27  ;;  %v2345_v18 = vadd.f32 -0.0073733293, %v2313_v50  ;;  %v1516_v53 = vmul.f32 %v11204_v7, %v1484_v6  ;;  %v892_v16 = vadd.f32 -2.101024e-06, %v860_v55 }
 0x1f6   : > { %v12432_v20 = vmul.f32 %v12427_v11, %v12427_v11  ;;  %v12434_v22 = vclamps-f32 %v651_v9, 4.0  ;;  %v2602_v46 = vmul.f32 %v2570_v40, %v2538_v21  ;;  %v1244_v12 = vmul.f32 %v1212_v62, %v12411_v3 }
 0x1f7   : > { %v1993_v38 = vmul.f32 %v1961_v41, %v12393_v58  ;;  %v2377_v51 = vmul.f32 %v2345_v18, %v12393_v58  ;;  %v2138_v13 = vmul.f32 %v2106_v45, %v12371_v44  ;;  %v1580_v17 = vmul.f32 %v1548_v14, %v1516_v53 }
 0x1f8   : > { %v1817_v30 = vmul.f32 -2.7261424e-10, %v12432_v20  ;;  %v2201_v8 = vmul.f32 -1.45660715e-05, %v12432_v20  ;;  %v2634_v5 = vadd.f32 1.0, %v2602_v46  ;;  %v924_v9 = vmul.f32 %v892_v16, %v12411_v3 }
 0x1f9   : > { %v2025_v23 = vadd.f32 -0.00073499064, %v1993_v38  ;;  %v2409_v7 = vadd.f32 -0.014264739, %v2377_v51  ;;  %v620_v27 = vmul.f32 0.5, %v11934_v29  ;;  %v1612_v50 = vadd.f32 1.0, %v1580_v17 }
 0x1fa   : > { %v1849_v4 = vadd.f32 2.7706815e-08, %v1817_v30  ;;  %v2233_v40 = vadd.f32 -0.00021337405, %v2201_v8  ;;  %4104 = vst [vmem:[#allocation2 + $0x50] sm:$0xff] %v2634_v5  ;;  %v12451_v41 = vmul.f32 %v12434_v22, %v12434_v22 }
 0x1fb   : > { %v2057_v6 = vmul.f32 %v2025_v23, %v12393_v58  ;;  %11207 = vrcp.f32 %v2409_v7  ;;  %v956_v44 = vadd.f32 -5.6925062e-05, %v924_v9  ;;  %v1276_v45 = vadd.f32 -0.001682827, %v1244_v12 }
 0x1fc   : > { %v1881_v55 = vmul.f32 %v1849_v4, %v12432_v20  ;;  %v2265_v14 = vmul.f32 %v2233_v40, %v12432_v20  ;;  %v12447_v21 = vmul.f32 %v1612_v50, %v620_v27  ;;  %v11206_v18 = vpop.eup %11205  ;;  %v2170_v62 = vadd.f32 -0.016096033, %v2138_v13 }
 0x1fd   : > { %v2089_v29 = vadd.f32 -0.0029546, %v2057_v6  ;;  %v988_v53 = vmul.f32 %v956_v44, %v12411_v3  ;;  %v1308_v16 = vmul.f32 %v1276_v45, %v12411_v3  ;;  %v2490_v46 = vmul.f32 %v11206_v18, %v2426_v42 }
 0x1fe   : > { %16898 = vst [vmem:[#allocation22_spill] sm:$0xff] %v12447_v21  ;;  %v1913_v38 = vadd.f32 -2.101024e-06, %v1881_v55  ;;  %v2297_v51 = vadd.f32 -0.001682827, %v2265_v14  ;;  %v2586_v40 = vmul.f32 %v12366_v52, %v2170_v62 }
 0x1ff   : > { %v1676_v12 = vmul.f32 0.70710677, %v12447_v21  ;;  %v2121_v30 = vmul.f32 %v2089_v29, %v12393_v58  ;;  %v1020_v8 = vadd.f32 -0.00073499064, %v988_v53  ;;  %v1340_v17 = vadd.f32 -0.0073733293, %v1308_v16 }
 0x200   : > { %v779_v5 = vmul.f32 -2.7261424e-10, %v12451_v41  ;;  %v2522_v23 = vsub.f32 2.0, %v2490_v46  ;;  %v1945_v9 = vmul.f32 %v1913_v38, %v12432_v20  ;;  %v2329_v13 = vmul.f32 %v2297_v51, %v12432_v20 }
 0x201   : > { %v12460_v4 = vclamps-f32 %v1676_v12, 4.0  ;;  %v1052_v42 = vmul.f32 %v1020_v8, %v12411_v3  ;;  %v1372_v27 = vmul.f32 %v1340_v17, %v12411_v3  ;;  %v2153_v55 = vadd.f32 -0.016096033, %v2121_v30 }
 0x202   : > { %v811_v50 = vadd.f32 2.7706815e-08, %v779_v5  ;;  %v2554_v6 = vmul.f32 %v11206_v18, %v2522_v23  ;;  %v1977_v58 = vadd.f32 -5.6925062e-05, %v1945_v9  ;;  %v2361_v44 = vadd.f32 -0.0073733293, %v2329_v13 }
 0x203   : > { %v12467_v45 = vmul.f32 %v12460_v4, %v12460_v4  ;;  %v1404_v14 = vadd.f32 -0.014264739, %v1372_v27  ;;  %v1084_v38 = vadd.f32 -0.0029546, %v1052_v42  ;;  %v2569_v5 = vmul.f32 %v12388_v43, %v2153_v55 }
 0x204   : > { %v843_v29 = vmul.f32 %v811_v50, %v12451_v41  ;;  %v2618_v53 = vmul.f32 %v2586_v40, %v2554_v6  ;;  %v2009_v16 = vmul.f32 %v1977_v58, %v12432_v20  ;;  %v2393_v52 = vmul.f32 %v2361_v44, %v12432_v20 }
 0x205   : > { %v1804_v62 = vmul.f32 -2.7261424e-10, %v12467_v45  ;;  %v11208_v46 = vpop.eup %11207  ;;  %v2188_v18 = vmul.f32 -1.45660715e-05, %v12467_v45  ;;  %11209 = vrcp.f32 %v1404_v14  ;;  %v1163_v50 = vmul.f32 -1.45660715e-05, %v12451_v41 }
 0x206   : > { %v875_v51 = vadd.f32 -2.101024e-06, %v843_v29  ;;  %v2650_v12 = vadd.f32 1.0, %v2618_v53  ;;  %v2473_v8 = vmul.f32 %v11208_v46, %v2409_v7  ;;  %v2041_v17 = vadd.f32 -0.00073499064, %v2009_v16 }
 0x207   : > { %v2425_v30 = vadd.f32 -0.014264739, %v2393_v52  ;;  %v1836_v23 = vadd.f32 2.7706815e-08, %v1804_v62  ;;  %v2220_v9 = vadd.f32 -0.00021337405, %v2188_v18  ;;  %v1116_v7 = vmul.f32 %v1084_v38, %v12411_v3 }
 0x208   : > { %v907_v13 = vmul.f32 %v875_v51, %v12451_v41  ;;  %4120 = vst [vmem:[#allocation2 + $0xd0] sm:$0xff] %v2650_v12  ;;  %v2505_v40 = vsub.f32 2.0, %v2473_v8  ;;  %v2073_v27 = vmul.f32 %v2041_v17, %v12432_v20  ;;  %v1195_v55 = vadd.f32 -0.00021337405, %v1163_v50  ;;  %v12486_v18 = vpop.f32.mrb[14].mxu0 }
 0x209   : > { %11211 = vrcp.f32 %v2425_v30  ;;  %v1868_v42 = vmul.f32 %v1836_v23, %v12467_v45  ;;  %v2252_v6 = vmul.f32 %v2220_v9, %v12467_v45  ;;  %v667_v29 = vmul.f32 0.70710677, %v12105_v26 }
 0x20a   : > { %v939_v58 = vadd.f32 -5.6925062e-05, %v907_v13  ;;  %v2537_v44 = vmul.f32 %v11208_v46, %v2505_v40  ;;  %v2105_v43 = vadd.f32 -0.0029546, %v2073_v27  ;;  %v12483_v52 = vmul.f32 0.5, %v11966_v48 }
 0x20b   : > { %v1900_v53 = vadd.f32 -2.101024e-06, %v1868_v42  ;;  %v2284_v16 = vadd.f32 -0.001682827, %v2252_v6  ;;  %v1227_v3 = vmul.f32 %v1195_v55, %v12451_v41  ;;  %v12490_v38 = vclamps-f32 %v667_v29, 4.0 }
 0x20c   : > { %v971_v62 = vmul.f32 %v939_v58, %v12451_v41  ;;  %v2601_v51 = vmul.f32 %v2569_v5, %v2537_v44  ;;  %v2137_v12 = vmul.f32 %v2105_v43, %v12432_v20  ;;  %v654_v23 = vmul.f32 0.70710677, %v12147_v36 }
 0x20d   : > { %v1932_v46 = vmul.f32 %v1900_v53, %v12467_v45  ;;  %v2316_v8 = vmul.f32 %v2284_v16, %v12467_v45  ;;  %v1148_v9 = vadd.f32 -0.016096033, %v1116_v7  ;;  %v1259_v13 = vadd.f32 -0.001682827, %v1227_v3 }
 0x20e   : > { %v1003_v17 = vadd.f32 -0.00073499064, %v971_v62  ;;  %v2633_v48 = vadd.f32 1.0, %v2601_v51  ;;  %v12497_v40 = vmul.f32 %v12490_v38, %v12490_v38  ;;  %v12500_v42 = vclamps-f32 %v654_v23, 4.0 }
 0x20f   : > { %v11210_v5 = vpop.eup %11209  ;;  %v1964_v20 = vadd.f32 -5.6925062e-05, %v1932_v46  ;;  %v2348_v27 = vadd.f32 -0.0073733293, %v2316_v8  ;;  %v2169_v6 = vadd.f32 -0.016096033, %v2137_v12  ;;  %v1291_v44 = vmul.f32 %v1259_v13, %v12451_v41 }
 0x210   : > { %v1035_v50 = vmul.f32 %v1003_v17, %v12451_v41  ;;  %4103 = vst [vmem:[#allocation2 + $0x48] sm:$0xff] %v2633_v48  ;;  %v1468_v58 = vmul.f32 %v11210_v5, %v1404_v14  ;;  %v795_v43 = vmul.f32 -2.7261424e-10, %v12497_v40  ;;  %v1179_v53 = vmul.f32 -1.45660715e-05, %v12497_v40 }
 0x211   : > { %v1996_v7 = vmul.f32 %v1964_v20, %v12467_v45  ;;  %v2380_v55 = vmul.f32 %v2348_v27, %v12467_v45  ;;  %v1564_v51 = vmul.f32 %v12405_v33, %v1148_v9  ;;  %v1323_v3 = vadd.f32 -0.0073733293, %v1291_v44 }
 0x212   : > { %v1067_v29 = vadd.f32 -0.0029546, %v1035_v50  ;;  %v1500_v62 = vsub.f32 2.0, %v1468_v58  ;;  %v827_v46 = vadd.f32 2.7706815e-08, %v795_v43  ;;  %v12510_v17 = vmul.f32 %v12500_v42, %v12500_v42 }
 0x213   : > { %v11212_v16 = vpop.eup %11211  ;;  %v2028_v12 = vadd.f32 -0.00073499064, %v1996_v7  ;;  %v2412_v14 = vadd.f32 -0.014264739, %v2380_v55  ;;  %v1355_v48 = vmul.f32 %v1323_v3, %v12451_v41  ;;  %v1211_v20 = vadd.f32 -0.00021337405, %v1179_v53 }
 0x214   : > { %v2489_v8 = vmul.f32 %v11212_v16, %v2425_v30  ;;  %v1532_v23 = vmul.f32 %v11210_v5, %v1500_v62  ;;  %v859_v13 = vmul.f32 %v827_v46, %v12497_v40  ;;  %v1099_v33 = vmul.f32 %v1067_v29, %v12451_v41 }
 0x215   : > { %v2060_v50 = vmul.f32 %v2028_v12, %v12467_v45  ;;  %11213 = vrcp.f32 %v2412_v14  ;;  %v1387_v30 = vadd.f32 -0.014264739, %v1355_v48  ;;  %v1243_v44 = vmul.f32 %v1211_v20, %v12497_v40 }
 0x216   : > { %v2521_v27 = vsub.f32 2.0, %v2489_v8  ;;  %v1596_v9 = vmul.f32 %v1564_v51, %v1532_v23  ;;  %v891_v58 = vadd.f32 -2.101024e-06, %v859_v13  ;;  %v2585_v7 = vmul.f32 %v12427_v11, %v2169_v6  ;;  %v12522_v51 = vpop.f32.mrb[14].mxu1 }
 0x217   : > { %v2092_v5 = vadd.f32 -0.0029546, %v2060_v50  ;;  %v782_v55 = vmul.f32 -2.7261424e-10, %v12510_v17  ;;  %11215 = vrcp.f32 %v1387_v30  ;;  %v1275_v3 = vadd.f32 -0.001682827, %v1243_v44 }
 0x218   : > { %v2553_v43 = vmul.f32 %v11212_v16, %v2521_v27  ;;  %v1628_v62 = vadd.f32 1.0, %v1596_v9  ;;  %v923_v53 = vmul.f32 %v891_v58, %v12497_v40  ;;  %v1166_v29 = vmul.f32 -1.45660715e-05, %v12510_v17 }
 0x219   : > { %v2124_v8 = vmul.f32 %v2092_v5, %v12467_v45  ;;  %v814_v41 = vadd.f32 2.7706815e-08, %v782_v55  ;;  %v1131_v11 = vadd.f32 -0.016096033, %v1099_v33  ;;  %v1307_v12 = vmul.f32 %v1275_v3, %v12497_v40 }
 0x21a   : > { %v2617_v46 = vmul.f32 %v2585_v7, %v2553_v43  ;;  %v12525_v16 = vmul.f32 %v1628_v62, %v12483_v52  ;;  %v955_v6 = vadd.f32 -5.6925062e-05, %v923_v53  ;;  %v1198_v20 = vadd.f32 -0.00021337405, %v1166_v29 }
 0x21b   : > { %v2156_v48 = vadd.f32 -0.016096033, %v2124_v8  ;;  %v846_v13 = vmul.f32 %v814_v41, %v12510_v17  ;;  %v1339_v50 = vadd.f32 -0.0073733293, %v1307_v12  ;;  %v670_v9 = vmul.f32 0.70710677, %v12154_v32 }
 0x21c   : > { %16899 = vst [vmem:[#allocation23_spill] sm:$0xff] %v12525_v16  ;;  %v2649_v23 = vadd.f32 1.0, %v2617_v46  ;;  %v1692_v27 = vmul.f32 0.70710677, %v12525_v16  ;;  %v987_v45 = vmul.f32 %v955_v6, %v12497_v40  ;;  %v12533_v52 = vmul.f32 0.5, %v12040_v61 }
 0x21d   : > { %v12536_v33 = vmul.f32 0.5, %v12105_v26  ;;  %v878_v58 = vadd.f32 -2.101024e-06, %v846_v13  ;;  %v1230_v44 = vmul.f32 %v1198_v20, %v12510_v17  ;;  %v1371_v5 = vmul.f32 %v1339_v50, %v12497_v40 }
 0x21e   : > { %4119 = vst [vmem:[#allocation2 + $0xc8] sm:$0xff] %v2649_v23  ;;  %v12539_v43 = vclamps-f32 %v1692_v27, 4.0  ;;  %v1019_v7 = vadd.f32 -0.00073499064, %v987_v45  ;;  %v12542_v55 = vclamps-f32 %v670_v9, 4.0  ;;  %v2572_v53 = vmul.f32 %v12460_v4, %v2156_v48 }
 0x21f   : > { %v11214_v62 = vpop.eup %11213  ;;  %v1547_v3 = vmul.f32 %v12434_v22, %v1131_v11  ;;  %v910_v61 = vmul.f32 %v878_v58, %v12510_v17  ;;  %v1262_v46 = vadd.f32 -0.001682827, %v1230_v44  ;;  %v1403_v29 = vadd.f32 -0.014264739, %v1371_v5 }
 0x220   : > { %v2476_v26 = vmul.f32 %v11214_v62, %v2412_v14  ;;  %v12549_v8 = vmul.f32 %v12539_v43, %v12539_v43  ;;  %v1051_v41 = vmul.f32 %v1019_v7, %v12497_v40  ;;  %v12555_v23 = vmul.f32 %v12542_v55, %v12542_v55 }
 0x221   : > { %v942_v6 = vadd.f32 -5.6925062e-05, %v910_v61  ;;  %v1294_v12 = vmul.f32 %v1262_v46, %v12510_v17  ;;  %v653_v22 = vmul.f32 0.70710677, %v12220_v34  ;;  %v11216_v4 = vpop.eup %11215  ;;  %11217 = vrcp.f32 %v1403_v29 }
 0x222   : > { %v2508_v11 = vsub.f32 2.0, %v2476_v26  ;;  %v1820_v14 = vmul.f32 -2.7261424e-10, %v12549_v8  ;;  %v2204_v48 = vmul.f32 -1.45660715e-05, %v12549_v8  ;;  %v1451_v13 = vmul.f32 %v11216_v4, %v1387_v30 }
 0x223   : > { %v1083_v20 = vadd.f32 -0.0029546, %v1051_v41  ;;  %v974_v27 = vmul.f32 %v942_v6, %v12510_v17  ;;  %v1326_v45 = vadd.f32 -0.0073733293, %v1294_v12  ;;  %v798_v44 = vmul.f32 -2.7261424e-10, %v12555_v23 }
 0x224   : > { %v2540_v50 = vmul.f32 %v11214_v62, %v2508_v11  ;;  %v1852_v9 = vadd.f32 2.7706815e-08, %v1820_v14  ;;  %v2236_v58 = vadd.f32 -0.00021337405, %v2204_v48  ;;  %v1483_v7 = vsub.f32 2.0, %v1451_v13 }
 0x225   : > { %v1006_v5 = vadd.f32 -0.00073499064, %v974_v27  ;;  %v1358_v61 = vmul.f32 %v1326_v45, %v12510_v17  ;;  %v12563_v46 = vclamps-f32 %v653_v22, 4.0  ;;  %v830_v41 = vadd.f32 2.7706815e-08, %v798_v44  ;;  %v12573_v45 = vpop.f32.mrb[15].mxu0 }
 0x226   : > { %v2604_v26 = vmul.f32 %v2572_v53, %v2540_v50  ;;  %v1884_v35 = vmul.f32 %v1852_v9, %v12549_v8  ;;  %v2268_v30 = vmul.f32 %v2236_v58, %v12549_v8  ;;  %v1515_v16 = vmul.f32 %v11216_v4, %v1483_v7 }
 0x227   : > { %v1115_v6 = vmul.f32 %v1083_v20, %v12497_v40  ;;  %v1038_v62 = vmul.f32 %v1006_v5, %v12510_v17  ;;  %v1390_v12 = vadd.f32 -0.014264739, %v1358_v61  ;;  %v862_v13 = vmul.f32 %v830_v41, %v12555_v23 }
 0x228   : > { %v2636_v11 = vadd.f32 1.0, %v2604_v26  ;;  %v1916_v14 = vadd.f32 -2.101024e-06, %v1884_v35  ;;  %v2300_v48 = vadd.f32 -0.001682827, %v2268_v30  ;;  %v1579_v27 = vmul.f32 %v1547_v3, %v1515_v16 }
 0x229   : > { %v12571_v22 = vmul.f32 0.5, %v12147_v36  ;;  %v1070_v53 = vadd.f32 -0.0029546, %v1038_v62  ;;  %11219 = vrcp.f32 %v1390_v12  ;;  %v894_v20 = vadd.f32 -2.101024e-06, %v862_v13 }
 0x22a   : > { %4106 = vst [vmem:[#allocation2 + $0x60] sm:$0xff] %v2636_v11  ;;  %v1948_v4 = vmul.f32 %v1916_v14, %v12549_v8  ;;  %v2332_v40 = vmul.f32 %v2300_v48, %v12549_v8  ;;  %v1182_v50 = vmul.f32 -1.45660715e-05, %v12555_v23  ;;  %v1611_v35 = vadd.f32 1.0, %v1579_v27 }
 0x22b   : > { %v1147_v9 = vadd.f32 -0.016096033, %v1115_v6  ;;  %v1102_v58 = vmul.f32 %v1070_v53, %v12510_v17  ;;  %v12581_v36 = vmul.f32 %v12563_v46, %v12563_v46  ;;  %v11218_v16 = vpop.eup %11217  ;;  %v926_v7 = vmul.f32 %v894_v20, %v12555_v23 }
 0x22c   : > { %v1980_v3 = vadd.f32 -5.6925062e-05, %v1948_v4  ;;  %v2364_v44 = vadd.f32 -0.0073733293, %v2332_v40  ;;  %v1214_v5 = vadd.f32 -0.00021337405, %v1182_v50  ;;  %v12585_v61 = vmul.f32 %v1611_v35, %v12533_v52 }
 0x22d   : > { %v1467_v26 = vmul.f32 %v11218_v16, %v1403_v29  ;;  %v1134_v30 = vadd.f32 -0.016096033, %v1102_v58  ;;  %v781_v41 = vmul.f32 -2.7261424e-10, %v12581_v36  ;;  %v958_v62 = vadd.f32 -5.6925062e-05, %v926_v7 }
 0x22e   : > { %16900 = vst [vmem:[#allocation24_spill] sm:$0xff] %v12585_v61  ;;  %v2012_v6 = vmul.f32 %v1980_v3, %v12549_v8  ;;  %v2396_v17 = vmul.f32 %v2364_v44, %v12549_v8  ;;  %v1246_v11 = vmul.f32 %v1214_v5, %v12555_v23  ;;  %v1675_v14 = vmul.f32 0.70710677, %v12585_v61 }
 0x22f   : > { %v1499_v48 = vsub.f32 2.0, %v1467_v26  ;;  %v1563_v13 = vmul.f32 %v12490_v38, %v1147_v9  ;;  %v813_v27 = vadd.f32 2.7706815e-08, %v781_v41  ;;  %v990_v29 = vmul.f32 %v958_v62, %v12555_v23 }
 0x230   : > { %v2044_v53 = vadd.f32 -0.00073499064, %v2012_v6  ;;  %v2428_v52 = vadd.f32 -0.014264739, %v2396_v17  ;;  %v1278_v4 = vadd.f32 -0.001682827, %v1246_v11 }
 0x231   : > { %v12594_v40 = vclamps-f32 %v1675_v14, 4.0  ;;  %v1531_v20 = vmul.f32 %v11218_v16, %v1499_v48  ;;  %v845_v50 = vmul.f32 %v813_v27, %v12581_v36  ;;  %v1165_v35 = vmul.f32 -1.45660715e-05, %v12581_v36 }
 0x232   : > { %v2076_v58 = vmul.f32 %v2044_v53, %v12549_v8  ;;  %11221 = vrcp.f32 %v2428_v52  ;;  %v1022_v3 = vadd.f32 -0.00073499064, %v990_v29  ;;  %v1310_v44 = vmul.f32 %v1278_v4, %v12555_v23 }
 0x233   : > { %v11220_v38 = vpop.eup %11219  ;;  %v12602_v9 = vmul.f32 %v12594_v40, %v12594_v40  ;;  %v1595_v7 = vmul.f32 %v1563_v13, %v1531_v20  ;;  %v877_v5 = vadd.f32 -2.101024e-06, %v845_v50  ;;  %v1197_v26 = vadd.f32 -0.00021337405, %v1165_v35 }
 0x234   : > { %v2108_v41 = vadd.f32 -0.0029546, %v2076_v58  ;;  %v1454_v16 = vmul.f32 %v11220_v38, %v1390_v12  ;;  %v1054_v6 = vmul.f32 %v1022_v3, %v12555_v23  ;;  %v1342_v17 = vadd.f32 -0.0073733293, %v1310_v44 }
 0x235   : > { %v1803_v62 = vmul.f32 -2.7261424e-10, %v12602_v9  ;;  %v2187_v11 = vmul.f32 -1.45660715e-05, %v12602_v9  ;;  %v1627_v14 = vadd.f32 1.0, %v1595_v7  ;;  %v909_v48 = vmul.f32 %v877_v5, %v12581_v36  ;;  %v12615_v7 = vpop.f32.mrb[15].mxu1 }
 0x236   : > { %v2140_v27 = vmul.f32 %v2108_v41, %v12549_v8  ;;  %v1486_v53 = vsub.f32 2.0, %v1454_v16  ;;  %v1086_v29 = vadd.f32 -0.0029546, %v1054_v6  ;;  %v1374_v13 = vmul.f32 %v1342_v17, %v12555_v23 }
 0x237   : > { %v1835_v4 = vadd.f32 2.7706815e-08, %v1803_v62  ;;  %v2219_v20 = vadd.f32 -0.00021337405, %v2187_v11  ;;  %v12611_v12 = vmul.f32 %v1627_v14, %v12536_v33  ;;  %v941_v50 = vadd.f32 -5.6925062e-05, %v909_v48 }
 0x238   : > { %v1518_v35 = vmul.f32 %v11220_v38, %v1486_v53  ;;  %v1550_v58 = vmul.f32 %v12500_v42, %v1134_v30  ;;  %v1118_v3 = vmul.f32 %v1086_v29, %v12555_v23  ;;  %v1406_v44 = vadd.f32 -0.014264739, %v1374_v13 }
 0x239   : > { %16901 = vst [vmem:[#allocation25_spill] sm:$0xff] %v12611_v12  ;;  %v1867_v8 = vmul.f32 %v1835_v4, %v12602_v9  ;;  %v2251_v5 = vmul.f32 %v2219_v20, %v12602_v9  ;;  %v1691_v41 = vmul.f32 0.70710677, %v12611_v12  ;;  %v973_v16 = vmul.f32 %v941_v50, %v12581_v36 }
 0x23a   : > { %v2172_v6 = vadd.f32 -0.016096033, %v2140_v27  ;;  %v1582_v33 = vmul.f32 %v1550_v58, %v1518_v35  ;;  %v1150_v17 = vadd.f32 -0.016096033, %v1118_v3  ;;  %11223 = vrcp.f32 %v1406_v44 }
 0x23b   : > { %v1899_v38 = vadd.f32 -2.101024e-06, %v1867_v8  ;;  %v2283_v62 = vadd.f32 -0.001682827, %v2251_v5  ;;  %v12621_v42 = vclamps-f32 %v1691_v41, 4.0  ;;  %v1229_v23 = vmul.f32 %v1197_v26, %v12581_v36 }
 0x23c   : > { %v11222_v30 = vpop.eup %11221  ;;  %v1614_v11 = vadd.f32 1.0, %v1582_v33  ;;  %v12625_v14 = vmul.f32 0.5, %v12154_v32  ;;  %v1005_v48 = vadd.f32 -0.00073499064, %v973_v16  ;;  %v669_v53 = vmul.f32 0.70710677, %v12254_v25 }
 0x23d   : > { %v2492_v29 = vmul.f32 %v11222_v30, %v2428_v52  ;;  %v1931_v27 = vmul.f32 %v1899_v38, %v12602_v9  ;;  %v2315_v13 = vmul.f32 %v2283_v62, %v12602_v9  ;;  %v12632_v4 = vmul.f32 %v12621_v42, %v12621_v42 }
 0x23e   : > { %v2588_v20 = vmul.f32 %v12539_v43, %v2172_v6  ;;  %v12636_v26 = vmul.f32 %v1614_v11, %v12571_v22  ;;  %v1037_v32 = vmul.f32 %v1005_v48, %v12581_v36  ;;  %v1261_v50 = vadd.f32 -0.001682827, %v1229_v23 }
 0x23f   : > { %v2524_v35 = vsub.f32 2.0, %v2492_v29  ;;  %v1963_v58 = vadd.f32 -5.6925062e-05, %v1931_v27  ;;  %v2347_v3 = vadd.f32 -0.0073733293, %v2315_v13  ;;  %v1566_v52 = vmul.f32 %v12542_v55, %v1150_v17 }
 0x240   : > { %16902 = vst [vmem:[#allocation26_spill] sm:$0xff] %v12636_v26  ;;  %v1819_v8 = vmul.f32 -2.7261424e-10, %v12632_v4  ;;  %v2203_v5 = vmul.f32 -1.45660715e-05, %v12632_v4  ;;  %v1293_v16 = vmul.f32 %v1261_v50, %v12581_v36  ;;  %v12648_v11 = vclamps-f32 %v669_v53, 4.0 }
 0x241   : > { %v1678_v41 = vmul.f32 0.70710677, %v12636_v26  ;;  %v2556_v43 = vmul.f32 %v11222_v30, %v2524_v35  ;;  %v1995_v22 = vmul.f32 %v1963_v58, %v12602_v9  ;;  %v2379_v6 = vmul.f32 %v2347_v3, %v12602_v9  ;;  %v2727_v53 = vld [vmem:[%s16723_s2 + $0x20] sm:$0xff] }
 0x242   : > { %v1069_v33 = vadd.f32 -0.0029546, %v1037_v32  ;;  %v1851_v38 = vadd.f32 2.7706815e-08, %v1819_v8  ;;  %v2235_v62 = vadd.f32 -0.00021337405, %v2203_v5 }
 0x243   : > { %v12646_v23 = vclamps-f32 %v1678_v41, 4.0  ;;  %v2620_v55 = vmul.f32 %v2588_v20, %v2556_v43  ;;  %v2027_v17 = vadd.f32 -0.00073499064, %v1995_v22  ;;  %v2411_v48 = vadd.f32 -0.014264739, %v2379_v6  ;;  %v2728_v20 = vld [vmem:[%s16723_s2 + $0x28] sm:$0xff] }
 0x244   : > { %v1101_v29 = vmul.f32 %v1069_v33, %v12581_v36  ;;  %v11224_v27 = vpop.eup %11223  ;;  %v1883_v13 = vmul.f32 %v1851_v38, %v12632_v4  ;;  %v2267_v30 = vmul.f32 %v2235_v62, %v12632_v4  ;;  %v1325_v32 = vadd.f32 -0.0073733293, %v1293_v16 }
 0x245   : > { %v12655_v50 = vmul.f32 %v12646_v23, %v12646_v23  ;;  %v2652_v35 = vadd.f32 1.0, %v2620_v55  ;;  %v2059_v58 = vmul.f32 %v2027_v17, %v12602_v9  ;;  %11225 = vrcp.f32 %v2411_v48 }
 0x246   : > { %v1470_v3 = vmul.f32 %v11224_v27, %v1406_v44  ;;  %v1915_v8 = vadd.f32 -2.101024e-06, %v1883_v13  ;;  %v2299_v5 = vadd.f32 -0.001682827, %v2267_v30  ;;  %v1357_v43 = vmul.f32 %v1325_v32, %v12581_v36 }
 0x247   : > { %v1806_v41 = vmul.f32 -2.7261424e-10, %v12655_v50  ;;  %4122 = vst [vmem:[#allocation2 + $0xe0] sm:$0xff] %v2652_v35  ;;  %v2091_v16 = vadd.f32 -0.0029546, %v2059_v58  ;;  %v10527_v33 = vpack.c.bf16 %v2728_v20, %v2727_v53  ;;  %v12671_v44 = vmul.f32 %v12648_v11, %v12648_v11 }
 0x248   : > { %v2190_v22 = vmul.f32 -1.45660715e-05, %v12655_v50  ;;  %v1502_v6 = vsub.f32 2.0, %v1470_v3  ;;  %v1947_v38 = vmul.f32 %v1915_v8, %v12632_v4  ;;  %v2331_v62 = vmul.f32 %v2299_v5, %v12632_v4 }
 0x249   : > { %v1838_v55 = vadd.f32 2.7706815e-08, %v1806_v41  ;;  %v2123_v17 = vmul.f32 %v2091_v16, %v12602_v9  ;;  %v1389_v36 = vadd.f32 -0.014264739, %v1357_v43  ;;  %10528 = vmatprep.subr.bf16.mxu1 %v10527_v33  ;;  %v1133_v53 = vadd.f32 -0.016096033, %v1101_v29 }
 0x24a   : > { %v2222_v13 = vadd.f32 -0.00021337405, %v2190_v22  ;;  %v1534_v30 = vmul.f32 %v11224_v27, %v1502_v6  ;;  %v1979_v32 = vadd.f32 -5.6925062e-05, %v1947_v38  ;;  %v2363_v35 = vadd.f32 -0.0073733293, %v2331_v62  ;;  %10530 = vmatpush3.bf16.msra.mxu1 %v10527_v33 }
 0x24b   : > { %v1870_v58 = vmul.f32 %v1838_v55, %v12655_v50  ;;  %v2155_v20 = vadd.f32 -0.016096033, %v2123_v17  ;;  %11227 = vrcp.f32 %v1389_v36  ;;  %v797_v27 = vmul.f32 -2.7261424e-10, %v12671_v44 }
 0x24c   : > { %v2254_v3 = vmul.f32 %v2222_v13, %v12655_v50  ;;  %v1598_v8 = vmul.f32 %v1566_v52, %v1534_v30  ;;  %v2011_v5 = vmul.f32 %v1979_v32, %v12632_v4  ;;  %v2395_v41 = vmul.f32 %v2363_v35, %v12632_v4 }
 0x24d   : > { %v1902_v9 = vadd.f32 -2.101024e-06, %v1870_v58  ;;  %v12680_v22 = vmul.f32 0.5, %v12220_v34  ;;  %v1181_v29 = vmul.f32 -1.45660715e-05, %v12671_v44 }
 0x24e   : > { %v2286_v43 = vadd.f32 -0.001682827, %v2254_v3  ;;  %v1630_v16 = vadd.f32 1.0, %v1598_v8  ;;  %v2043_v6 = vadd.f32 -0.00073499064, %v2011_v5 }
 0x24f   : > { %v2427_v33 = vadd.f32 -0.014264739, %v2395_v41  ;;  %v1934_v38 = vmul.f32 %v1902_v9, %v12655_v50  ;;  %v829_v52 = vadd.f32 2.7706815e-08, %v797_v27  ;;  %v11226_v62 = vpop.eup %11225  ;;  %v1213_v13 = vadd.f32 -0.00021337405, %v1181_v29 }
 0x250   : > { %v2318_v55 = vmul.f32 %v2286_v43, %v12655_v50  ;;  %v12686_v17 = vmul.f32 %v1630_v16, %v12625_v14  ;;  %v656_v30 = vmul.f32 0.70710677, %v12317_v37  ;;  %v2475_v32 = vmul.f32 %v11226_v62, %v2411_v48 }
 0x251   : > { %v2075_v34 = vmul.f32 %v2043_v6, %v12632_v4  ;;  %11229 = vrcp.f32 %v2427_v33  ;;  %v1966_v35 = vadd.f32 -5.6925062e-05, %v1934_v38  ;;  %v861_v8 = vmul.f32 %v829_v52, %v12671_v44 }
 0x252   : > { %16903 = vst [vmem:[#allocation27_spill] sm:$0xff] %v12686_v17  ;;  %v2350_v58 = vadd.f32 -0.0073733293, %v2318_v55  ;;  %v1694_v3 = vmul.f32 0.70710677, %v12686_v17  ;;  %v1245_v5 = vmul.f32 %v1213_v13, %v12671_v44  ;;  %v2507_v41 = vsub.f32 2.0, %v2475_v32 }
 0x253   : > { %v2107_v9 = vadd.f32 -0.0029546, %v2075_v34  ;;  %v1998_v14 = vmul.f32 %v1966_v35, %v12655_v50  ;;  %v12694_v27 = vclamps-f32 %v656_v30, 4.0  ;;  %v893_v16 = vadd.f32 -2.101024e-06, %v861_v8 }
 0x254   : > { %v2382_v43 = vmul.f32 %v2350_v58, %v12655_v50  ;;  %v12697_v48 = vclamps-f32 %v1694_v3, 4.0  ;;  %v1277_v29 = vadd.f32 -0.001682827, %v1245_v5  ;;  %v2539_v6 = vmul.f32 %v11226_v62, %v2507_v41 }
 0x255   : > { %v2571_v38 = vmul.f32 %v12594_v40, %v2155_v20  ;;  %v2139_v55 = vmul.f32 %v2107_v9, %v12632_v4  ;;  %v2030_v52 = vadd.f32 -0.00073499064, %v1998_v14  ;;  %v11228_v17 = vpop.eup %11227  ;;  %v925_v30 = vmul.f32 %v893_v16, %v12671_v44 }
 0x256   : > { %v2414_v13 = vadd.f32 -0.014264739, %v2382_v43  ;;  %v12703_v32 = vmul.f32 %v12697_v48, %v12697_v48  ;;  %v1309_v34 = vmul.f32 %v1277_v29, %v12671_v44  ;;  %v1453_v3 = vmul.f32 %v11228_v17, %v1389_v36 }
 0x257   : > { %v2603_v35 = vmul.f32 %v2571_v38, %v2539_v6  ;;  %v2062_v58 = vmul.f32 %v2030_v52, %v12655_v50  ;;  %v12710_v40 = vmul.f32 %v12694_v27, %v12694_v27  ;;  %v957_v62 = vadd.f32 -5.6925062e-05, %v925_v30 }
 0x258   : > { %11231 = vrcp.f32 %v2414_v13  ;;  %v1822_v4 = vmul.f32 -2.7261424e-10, %v12703_v32  ;;  %v2206_v20 = vmul.f32 -1.45660715e-05, %v12703_v32  ;;  %v1485_v41 = vsub.f32 2.0, %v1453_v3 }
 0x259   : > { %v2635_v8 = vadd.f32 1.0, %v2603_v35  ;;  %v2094_v5 = vadd.f32 -0.0029546, %v2062_v58  ;;  %v1549_v9 = vmul.f32 %v12563_v46, %v1133_v53  ;;  %v989_v16 = vmul.f32 %v957_v62, %v12671_v44 }
 0x25a   : > { %v1854_v14 = vadd.f32 2.7706815e-08, %v1822_v4  ;;  %v2238_v43 = vadd.f32 -0.00021337405, %v2206_v20  ;;  %v1341_v36 = vadd.f32 -0.0073733293, %v1309_v34  ;;  %v1517_v52 = vmul.f32 %v11228_v17, %v1485_v41 }
 0x25b   : > { %v11230_v29 = vpop.eup %11229  ;;  %4105 = vst [vmem:[#allocation2 + $0x58] sm:$0xff] %v2635_v8  ;;  %v2171_v6 = vadd.f32 -0.016096033, %v2139_v55  ;;  %v2126_v38 = vmul.f32 %v2094_v5, %v12655_v50  ;;  %v784_v12 = vmul.f32 -2.7261424e-10, %v12710_v40 }
 0x25c   : > { %v2491_v60 = vmul.f32 %v11230_v29, %v2427_v33  ;;  %v1886_v30 = vmul.f32 %v1854_v14, %v12703_v32  ;;  %v2270_v35 = vmul.f32 %v2238_v43, %v12703_v32  ;;  %v1021_v58 = vadd.f32 -0.00073499064, %v989_v16 }
 0x25d   : > { %v1581_v46 = vmul.f32 %v1549_v9, %v1517_v52  ;;  %v1373_v53 = vmul.f32 %v1341_v36, %v12671_v44  ;;  %v816_v3 = vadd.f32 2.7706815e-08, %v784_v12  ;;  %v1168_v34 = vmul.f32 -1.45660715e-05, %v12710_v40 }
 0x25e   : > { %v2523_v4 = vsub.f32 2.0, %v2491_v60  ;;  %v1918_v20 = vadd.f32 -2.101024e-06, %v1886_v30  ;;  %v2302_v55 = vadd.f32 -0.001682827, %v2270_v35  ;;  %v1053_v50 = vmul.f32 %v1021_v58, %v12671_v44 }
 0x25f   : > { %v2587_v17 = vmul.f32 %v12621_v42, %v2171_v6  ;;  %v1613_v62 = vadd.f32 1.0, %v1581_v46  ;;  %v1405_v33 = vadd.f32 -0.014264739, %v1373_v53  ;;  %v848_v8 = vmul.f32 %v816_v3, %v12710_v40 }
 0x260   : > { %v2555_v5 = vmul.f32 %v11230_v29, %v2523_v4  ;;  %v1950_v41 = vmul.f32 %v1918_v20, %v12703_v32  ;;  %v2334_v9 = vmul.f32 %v2302_v55, %v12703_v32  ;;  %v1085_v14 = vadd.f32 -0.0029546, %v1053_v50 }
 0x261   : > { %v12728_v12 = vmul.f32 %v1613_v62, %v12680_v22  ;;  %11233 = vrcp.f32 %v1405_v33  ;;  %v880_v60 = vadd.f32 -2.101024e-06, %v848_v8  ;;  %v1200_v43 = vadd.f32 -0.00021337405, %v1168_v34 }
 0x262   : > { %v11232_v16 = vpop.eup %11231  ;;  %v2619_v36 = vmul.f32 %v2587_v17, %v2555_v5  ;;  %v2158_v52 = vadd.f32 -0.016096033, %v2126_v38  ;;  %v1982_v42 = vadd.f32 -5.6925062e-05, %v1950_v41  ;;  %v2366_v6 = vadd.f32 -0.0073733293, %v2334_v9 }
 0x263   : > { %16904 = vst [vmem:[#allocation28_spill] sm:$0xff] %v12728_v12  ;;  %v2478_v30 = vmul.f32 %v11232_v16, %v2414_v13  ;;  %v1677_v35 = vmul.f32 0.70710677, %v12728_v12  ;;  %v912_v29 = vmul.f32 %v880_v60, %v12710_v40  ;;  %v1232_v58 = vmul.f32 %v1200_v43, %v12710_v40 }
 0x264   : > { %v2651_v46 = vadd.f32 1.0, %v2619_v36  ;;  %v2014_v53 = vmul.f32 %v1982_v42, %v12703_v32  ;;  %v2398_v22 = vmul.f32 %v2366_v6, %v12703_v32  ;;  %v1117_v3 = vmul.f32 %v1085_v14, %v12671_v44 }
 0x265   : > { %v2510_v34 = vsub.f32 2.0, %v2478_v30  ;;  %v12736_v4 = vclamps-f32 %v1677_v35, 4.0  ;;  %v944_v38 = vadd.f32 -5.6925062e-05, %v912_v29  ;;  %v1264_v20 = vadd.f32 -0.001682827, %v1232_v58 }
 0x266   : > { %4121 = vst [vmem:[#allocation2 + $0xd8] sm:$0xff] %v2651_v46  ;;  %v2574_v13 = vmul.f32 %v12646_v23, %v2158_v52  ;;  %v2046_v55 = vadd.f32 -0.00073499064, %v2014_v53  ;;  %v2430_v50 = vadd.f32 -0.014264739, %v2398_v22 }
 0x267   : > { %v672_v17 = vmul.f32 0.70710677, %v12354_v31  ;;  %v2542_v62 = vmul.f32 %v11232_v16, %v2510_v34  ;;  %v12742_v8 = vmul.f32 %v12736_v4, %v12736_v4  ;;  %v976_v5 = vmul.f32 %v944_v38, %v12710_v40 }
 0x268   : > { %v1296_v44 = vmul.f32 %v1264_v20, %v12710_v40  ;;  %v2078_v41 = vmul.f32 %v2046_v55, %v12703_v32  ;;  %11235 = vrcp.f32 %v2430_v50  ;;  %v1149_v9 = vadd.f32 -0.016096033, %v1117_v3 }
 0x269   : > { %v12747_v14 = vclamps-f32 %v672_v17, 4.0  ;;  %v2606_v23 = vmul.f32 %v2574_v13, %v2542_v62  ;;  %v1805_v60 = vmul.f32 -2.7261424e-10, %v12742_v8  ;;  %v2189_v43 = vmul.f32 -1.45660715e-05, %v12742_v8 }
 0x26a   : > { %v1008_v16 = vadd.f32 -0.00073499064, %v976_v5  ;;  %v2110_v36 = vadd.f32 -0.0029546, %v2078_v41  ;;  %v1328_v52 = vadd.f32 -0.0073733293, %v1296_v44 }
 0x26b   : > { %v12753_v42 = vmul.f32 %v12747_v14, %v12747_v14  ;;  %v655_v6 = vmul.f32 0.70710677, %v12397_v19  ;;  %v11234_v30 = vpop.eup %11233  ;;  %v2638_v35 = vadd.f32 1.0, %v2606_v23  ;;  %v1837_v29 = vadd.f32 2.7706815e-08, %v1805_v60 }
 0x26c   : > { %v2221_v58 = vadd.f32 -0.00021337405, %v2189_v43  ;;  %v1040_v46 = vmul.f32 %v1008_v16, %v12710_v40  ;;  %v2142_v53 = vmul.f32 %v2110_v36, %v12703_v32  ;;  %v1469_v22 = vmul.f32 %v11234_v30, %v1405_v33 }
 0x26d   : > { %v1360_v3 = vmul.f32 %v1328_v52, %v12710_v40  ;;  %v800_v34 = vmul.f32 -2.7261424e-10, %v12753_v42  ;;  %4108 = vst [vmem:[#allocation2 + $0x70] sm:$0xff] %v2638_v35  ;;  %v1869_v38 = vmul.f32 %v1837_v29, %v12742_v8  ;;  %v1184_v55 = vmul.f32 -1.45660715e-05, %v12753_v42 }
 0x26e   : > { %v2253_v20 = vmul.f32 %v2221_v58, %v12742_v8  ;;  %v1072_v13 = vadd.f32 -0.0029546, %v1040_v46  ;;  %v2174_v17 = vadd.f32 -0.016096033, %v2142_v53  ;;  %v1501_v62 = vsub.f32 2.0, %v1469_v22 }
 0x26f   : > { %v1392_v5 = vadd.f32 -0.014264739, %v1360_v3  ;;  %v12763_v44 = vclamps-f32 %v655_v6, 4.0  ;;  %v1901_v41 = vadd.f32 -2.101024e-06, %v1869_v38  ;;  %v1565_v43 = vmul.f32 %v12648_v11, %v1149_v9 }
 0x270   : > { %v2285_v32 = vadd.f32 -0.001682827, %v2253_v20  ;;  %v1104_v33 = vmul.f32 %v1072_v13, %v12710_v40  ;;  %v832_v23 = vadd.f32 2.7706815e-08, %v800_v34  ;;  %v1533_v60 = vmul.f32 %v11234_v30, %v1501_v62 }
 0x271   : > { %11237 = vrcp.f32 %v1392_v5  ;;  %v1216_v16 = vadd.f32 -0.00021337405, %v1184_v55  ;;  %v1933_v36 = vmul.f32 %v1901_v41, %v12742_v8  ;;  %v637_v6 = vmul.f32 0.5, %v12254_v25 }
 0x272   : > { %v2317_v52 = vmul.f32 %v2285_v32, %v12742_v8  ;;  %v1136_v35 = vadd.f32 -0.016096033, %v1104_v33  ;;  %v864_v29 = vmul.f32 %v832_v23, %v12753_v42  ;;  %v11236_v58 = vpop.eup %11235  ;;  %v1597_v46 = vmul.f32 %v1565_v43, %v1533_v60 }
 0x273   : > { %v1248_v53 = vmul.f32 %v1216_v16, %v12753_v42  ;;  %v12774_v40 = vmul.f32 %v12763_v44, %v12763_v44  ;;  %v2494_v11 = vmul.f32 %v11236_v58, %v2430_v50  ;;  %v2590_v9 = vmul.f32 %v12697_v48, %v2174_v17  ;;  %v2729_v50 = vld [vmem:[%s16723_s2 + $0x30] sm:$0xff]  ;;  %v2730_v48 = vld [vmem:[%s16723_s2 + $0x38] sm:$0xff] }
 0x274   : > { %v1965_v30 = vadd.f32 -5.6925062e-05, %v1933_v36  ;;  %v2349_v22 = vadd.f32 -0.0073733293, %v2317_v52  ;;  %v1629_v3 = vadd.f32 1.0, %v1597_v46  ;;  %v1552_v34 = vmul.f32 %v12694_v27, %v1136_v35 }
 0x275   : > { %v896_v38 = vadd.f32 -2.101024e-06, %v864_v29  ;;  %v1280_v20 = vadd.f32 -0.001682827, %v1248_v53  ;;  %v2526_v13 = vsub.f32 2.0, %v2494_v11  ;;  %v10531_v35 = vpack.c.bf16 %v2730_v48, %v2729_v50 }
 0x276   : > { %v1997_v25 = vmul.f32 %v1965_v30, %v12742_v8  ;;  %v2381_v55 = vmul.f32 %v2349_v22, %v12742_v8  ;;  %v783_v62 = vmul.f32 -2.7261424e-10, %v12774_v40  ;;  %v12787_v17 = vmul.f32 %v1629_v3, %v637_v6 }
 0x277   : > { %v928_v27 = vmul.f32 %v896_v38, %v12753_v42  ;;  %v1312_v41 = vmul.f32 %v1280_v20, %v12753_v42  ;;  %v1167_v32 = vmul.f32 -1.45660715e-05, %v12774_v40  ;;  %v2558_v33 = vmul.f32 %v11236_v58, %v2526_v13  ;;  %10532 = vmatprep.subr.bf16.mxu1 %v10531_v35 }
 0x278   : > { %16905 = vst [vmem:[#allocation29_spill] sm:$0xff] %v12787_v17  ;;  %v2029_v23 = vadd.f32 -0.00073499064, %v1997_v25  ;;  %v2413_v60 = vadd.f32 -0.014264739, %v2381_v55  ;;  %10534 = vmatpush3.bf16.msra.mxu1 %v10531_v35 }
 0x279   : > { %v815_v43 = vadd.f32 2.7706815e-08, %v783_v62  ;;  %v1693_v16 = vmul.f32 0.70710677, %v12787_v17  ;;  %v960_v36 = vadd.f32 -5.6925062e-05, %v928_v27  ;;  %v2622_v29 = vmul.f32 %v2590_v9, %v2558_v33 }
 0x27a   : > { %v1344_v52 = vadd.f32 -0.0073733293, %v1312_v41  ;;  %v2061_v46 = vmul.f32 %v2029_v23, %v12742_v8  ;;  %11239 = vrcp.f32 %v2413_v60  ;;  %v1199_v22 = vadd.f32 -0.00021337405, %v1167_v32  ;;  %v2732_v32 = vld [vmem:[%s16723_s2 + $0x48] sm:$0xff] }
 0x27b   : > { %v847_v6 = vmul.f32 %v815_v43, %v12774_v40  ;;  %v11238_v53 = vpop.eup %11237  ;;  %v12795_v11 = vclamps-f32 %v1693_v16, 4.0  ;;  %v992_v30 = vmul.f32 %v960_v36, %v12753_v42  ;;  %v2654_v3 = vadd.f32 1.0, %v2622_v29 }
 0x27c   : > { %v1376_v58 = vmul.f32 %v1344_v52, %v12753_v42  ;;  %v2093_v38 = vadd.f32 -0.0029546, %v2061_v46  ;;  %v1456_v20 = vmul.f32 %v11238_v53, %v1392_v5  ;;  %v1231_v62 = vmul.f32 %v1199_v22, %v12774_v40  ;;  %v2731_v5 = vld [vmem:[%s16723_s2 + $0x40] sm:$0xff] }
 0x27d   : > { %v879_v13 = vadd.f32 -2.101024e-06, %v847_v6  ;;  %v12801_v9 = vmul.f32 %v12795_v11, %v12795_v11  ;;  %v1024_v25 = vadd.f32 -0.00073499064, %v992_v30  ;;  %4124 = vst [vmem:[#allocation2 + $0xf0] sm:$0xff] %v2654_v3  ;;  %v10535_v6 = vpack.c.bf16 %v2732_v32, %v2731_v5 }
 0x27e   : > { %v1408_v55 = vadd.f32 -0.014264739, %v1376_v58  ;;  %v2125_v50 = vmul.f32 %v2093_v38, %v12742_v8  ;;  %v1488_v48 = vsub.f32 2.0, %v1456_v20  ;;  %v671_v41 = vmul.f32 0.70710677, %v12423_v1 }
 0x27f   : > { %v911_v27 = vmul.f32 %v879_v13, %v12774_v40  ;;  %v1821_v33 = vmul.f32 -2.7261424e-10, %v12801_v9  ;;  %v2205_v23 = vmul.f32 -1.45660715e-05, %v12801_v9  ;;  %v1056_v43 = vmul.f32 %v1024_v25, %v12753_v42  ;;  %10536 = vmatprep.subr.bf16.mxu1 %v10535_v6  ;;  %v5865_v25 = vld [vmem:[#allocation2 + $0x18] sm:$0xff] }
 0x280   : > { %11241 = vrcp.f32 %v1408_v55  ;;  %v2157_v8 = vadd.f32 -0.016096033, %v2125_v50  ;;  %v1520_v16 = vmul.f32 %v11238_v53, %v1488_v48  ;;  %v1263_v52 = vadd.f32 -0.001682827, %v1231_v62  ;;  %10538 = vmatpush3.bf16.msra.mxu1 %v10535_v6  ;;  %10139 = vmatprep.mubr.f32.mxu0 %v5865_v25 }
 0x281   : > { %v943_v36 = vadd.f32 -5.6925062e-05, %v911_v27  ;;  %v1853_v35 = vadd.f32 2.7706815e-08, %v1821_v33  ;;  %v2237_v29 = vadd.f32 -0.00021337405, %v2205_v23 }
 0x282   : > { %v1088_v46 = vadd.f32 -0.0029546, %v1056_v43  ;;  %v624_v30 = vmul.f32 0.5, %v12317_v37  ;;  %v1584_v58 = vmul.f32 %v1552_v34, %v1520_v16  ;;  %v1295_v3 = vmul.f32 %v1263_v52, %v12774_v40 }
 0x283   : > { %v975_v22 = vmul.f32 %v943_v36, %v12774_v40  ;;  %v1885_v38 = vmul.f32 %v1853_v35, %v12801_v9  ;;  %v2269_v20 = vmul.f32 %v2237_v29, %v12801_v9  ;;  %v12822_v53 = vclamps-f32 %v671_v41, 4.0  ;;  %v2734_v41 = vld [vmem:[%s16723_s2 + $0x58] sm:$0xff] }
 0x284   : > { %v1120_v13 = vmul.f32 %v1088_v46, %v12753_v42  ;;  %v11240_v62 = vpop.eup %11239  ;;  %v1616_v50 = vadd.f32 1.0, %v1584_v58  ;;  %v12825_v48 = vmul.f32 0.5, %v12354_v31  ;;  %v1327_v34 = vadd.f32 -0.0073733293, %v1295_v3  ;;  %v2733_v42 = vld [vmem:[%s16723_s2 + $0x50] sm:$0xff] }
 0x285   : > { %v1007_v37 = vadd.f32 -0.00073499064, %v975_v22  ;;  %v2477_v27 = vmul.f32 %v11240_v62, %v2413_v60  ;;  %v2573_v5 = vmul.f32 %v12736_v4, %v2157_v8  ;;  %v1917_v32 = vadd.f32 -2.101024e-06, %v1885_v38 }
 0x286   : > { %v2301_v33 = vadd.f32 -0.001682827, %v2269_v20  ;;  %v12834_v23 = vmul.f32 %v1616_v50, %v624_v30  ;;  %v1152_v31 = vadd.f32 -0.016096033, %v1120_v13  ;;  %v1359_v16 = vmul.f32 %v1327_v34, %v12774_v40 }
 0x287   : > { %v1039_v43 = vmul.f32 %v1007_v37, %v12774_v40  ;;  %v2509_v60 = vsub.f32 2.0, %v2477_v27  ;;  %v1949_v4 = vmul.f32 %v1917_v32, %v12801_v9  ;;  %v12842_v36 = vmul.f32 %v12822_v53, %v12822_v53 }
 0x288   : > { %16906 = vst [vmem:[#allocation30_spill] sm:$0xff] %v12834_v23  ;;  %v2333_v8 = vmul.f32 %v2301_v33, %v12801_v9  ;;  %v1680_v52 = vmul.f32 0.70710677, %v12834_v23  ;;  %v1391_v29 = vadd.f32 -0.014264739, %v1359_v16  ;;  %v10539_v46 = vpack.c.bf16 %v2734_v41, %v2733_v42 }
 0x289   : > { %v1071_v35 = vadd.f32 -0.0029546, %v1039_v43  ;;  %v2541_v30 = vmul.f32 %v11240_v62, %v2509_v60  ;;  %v1981_v58 = vadd.f32 -5.6925062e-05, %v1949_v4  ;;  %v799_v3 = vmul.f32 -2.7261424e-10, %v12842_v36 }
 0x28a   : > { %v11242_v6 = vpop.eup %11241  ;;  %v2365_v22 = vadd.f32 -0.0073733293, %v2333_v8  ;;  %v12846_v38 = vclamps-f32 %v1680_v52, 4.0  ;;  %v1568_v13 = vmul.f32 %v12747_v14, %v1152_v31  ;;  %11243 = vrcp.f32 %v1391_v29  ;;  %10540 = vmatprep.subr.bf16.mxu1 %v10539_v46 }
 0x28b   : > { %v1472_v20 = vmul.f32 %v11242_v6, %v1408_v55  ;;  %v2605_v25 = vmul.f32 %v2573_v5, %v2541_v30  ;;  %v2013_v50 = vmul.f32 %v1981_v58, %v12801_v9  ;;  %v831_v34 = vadd.f32 2.7706815e-08, %v799_v3  ;;  %10542 = vmatpush3.bf16.msra.mxu1 %v10539_v46 }
 0x28c   : > { %v2397_v37 = vmul.f32 %v2365_v22, %v12801_v9  ;;  %v12853_v62 = vmul.f32 %v12846_v38, %v12846_v38  ;;  %v1103_v32 = vmul.f32 %v1071_v35, %v12774_v40  ;;  %v1183_v55 = vmul.f32 -1.45660715e-05, %v12842_v36 }
 0x28d   : > { %v1504_v27 = vsub.f32 2.0, %v1472_v20  ;;  %v2637_v33 = vadd.f32 1.0, %v2605_v25  ;;  %v2045_v14 = vadd.f32 -0.00073499064, %v2013_v50  ;;  %v863_v5 = vmul.f32 %v831_v34, %v12842_v36 }
 0x28e   : > { %v2429_v42 = vadd.f32 -0.014264739, %v2397_v37  ;;  %v1808_v41 = vmul.f32 -2.7261424e-10, %v12853_v62  ;;  %v2192_v31 = vmul.f32 -1.45660715e-05, %v12853_v62 }
 0x28f   : > { %v1536_v43 = vmul.f32 %v11242_v6, %v1504_v27  ;;  %v12861_v16 = vmul.f32 0.5, %v12397_v19  ;;  %4107 = vst [vmem:[#allocation2 + $0x68] sm:$0xff] %v2637_v33  ;;  %v2077_v60 = vmul.f32 %v2045_v14, %v12801_v9  ;;  %v895_v40 = vadd.f32 -2.101024e-06, %v863_v5 }
 0x290   : > { %11245 = vrcp.f32 %v2429_v42  ;;  %v1215_v4 = vadd.f32 -0.00021337405, %v1183_v55  ;;  %v1840_v8 = vadd.f32 2.7706815e-08, %v1808_v41  ;;  %v2224_v52 = vadd.f32 -0.00021337405, %v2192_v31 }
 0x291   : > { %v1600_v35 = vmul.f32 %v1568_v13, %v1536_v43  ;;  %v658_v46 = vmul.f32 0.70710677, %v12486_v18  ;;  %v2109_v30 = vadd.f32 -0.0029546, %v2077_v60  ;;  %v1135_v58 = vadd.f32 -0.016096033, %v1103_v32 }
 0x292   : > { %v927_v22 = vmul.f32 %v895_v40, %v12842_v36  ;;  %v1247_v6 = vmul.f32 %v1215_v4, %v12842_v36  ;;  %v1872_v19 = vmul.f32 %v1840_v8, %v12853_v62  ;;  %v2256_v3 = vmul.f32 %v2224_v52, %v12853_v62 }
 0x293   : > { %v1632_v20 = vadd.f32 1.0, %v1600_v35  ;;  %v12869_v25 = vclamps-f32 %v658_v46, 4.0  ;;  %v2141_v50 = vmul.f32 %v2109_v30, %v12801_v9  ;;  %v674_v13 = vmul.f32 0.70710677, %v12522_v51 }
 0x294   : > { %v959_v37 = vadd.f32 -5.6925062e-05, %v927_v22  ;;  %v1279_v34 = vadd.f32 -0.001682827, %v1247_v6  ;;  %v11244_v27 = vpop.eup %11243  ;;  %v1904_v55 = vadd.f32 -2.101024e-06, %v1872_v19  ;;  %v1551_v8 = vmul.f32 %v12763_v44, %v1135_v58 }
 0x295   : > { %v2288_v32 = vadd.f32 -0.001682827, %v2256_v3  ;;  %v12874_v33 = vmul.f32 %v1632_v20, %v12825_v48  ;;  %v12878_v14 = vmul.f32 %v12869_v25, %v12869_v25  ;;  %v2173_v5 = vadd.f32 -0.016096033, %v2141_v50 }
 0x296   : > { %v1455_v41 = vmul.f32 %v11244_v27, %v1391_v29  ;;  %v991_v31 = vmul.f32 %v959_v37, %v12842_v36  ;;  %v1311_v9 = vmul.f32 %v1279_v34, %v12842_v36  ;;  %v1936_v43 = vmul.f32 %v1904_v55, %v12853_v62 }
 0x297   : > { %16907 = vst [vmem:[#allocation31_spill] sm:$0xff] %v12874_v33  ;;  %v2320_v60 = vmul.f32 %v2288_v32, %v12853_v62  ;;  %v1696_v40 = vmul.f32 0.70710677, %v12874_v33  ;;  %v786_v4 = vmul.f32 -2.7261424e-10, %v12878_v14  ;;  %v12889_v22 = vclamps-f32 %v674_v13, 4.0 }
 0x298   : > { %v1487_v48 = vsub.f32 2.0, %v1455_v41  ;;  %v1023_v52 = vadd.f32 -0.00073499064, %v991_v31  ;;  %v1343_v35 = vadd.f32 -0.0073733293, %v1311_v9  ;;  %v2589_v31 = vmul.f32 %v12795_v11, %v2173_v5 }
 0x299   : > { %v1968_v46 = vadd.f32 -5.6925062e-05, %v1936_v43  ;;  %v2352_v30 = vadd.f32 -0.0073733293, %v2320_v60  ;;  %v12887_v29 = vclamps-f32 %v1696_v40, 4.0  ;;  %v12912_v11 = vmul.f32 %v12889_v22, %v12889_v22 }
 0x29a   : > { %v11246_v6 = vpop.eup %11245  ;;  %v1519_v19 = vmul.f32 %v11244_v27, %v1487_v48  ;;  %v1055_v3 = vmul.f32 %v1023_v52, %v12842_v36  ;;  %v1375_v20 = vmul.f32 %v1343_v35, %v12842_v36  ;;  %v818_v50 = vadd.f32 2.7706815e-08, %v786_v4 }
 0x29b   : > { %v2493_v37 = vmul.f32 %v11246_v6, %v2429_v42  ;;  %v2000_v34 = vmul.f32 %v1968_v46, %v12853_v62  ;;  %v2384_v44 = vmul.f32 %v2352_v30, %v12853_v62  ;;  %v12897_v58 = vmul.f32 %v12887_v29, %v12887_v29 }
 0x29c   : > { %v1583_v55 = vmul.f32 %v1551_v8, %v1519_v19  ;;  %v1087_v32 = vadd.f32 -0.0029546, %v1055_v3  ;;  %v12899_v13 = vadd.f32 -0.014264739, %v1375_v20  ;;  %v850_v27 = vmul.f32 %v818_v50, %v12878_v14 }
 0x29d   : > { %v2525_v41 = vsub.f32 2.0, %v2493_v37  ;;  %v2032_v9 = vadd.f32 -0.00073499064, %v2000_v34  ;;  %v2416_v43 = vadd.f32 -0.014264739, %v2384_v44 }
 0x29e   : > { %v1824_v42 = vmul.f32 -2.7261424e-10, %v12897_v58  ;;  %v2208_v60 = vmul.f32 -1.45660715e-05, %v12897_v58  ;;  %v1615_v40 = vadd.f32 1.0, %v1583_v55  ;;  %v1119_v4 = vmul.f32 %v1087_v32, %v12842_v36  ;;  %v2735_v55 = vld [vmem:[%s16723_s2 + $0x60] sm:$0xff] }
 0x29f   : > { %v2557_v48 = vmul.f32 %v11246_v6, %v2525_v41  ;;  %v2064_v8 = vmul.f32 %v2032_v9, %v12853_v62  ;;  %11247 = vrcp.f32 %v2416_v43  ;;  %v882_v52 = vadd.f32 -2.101024e-06, %v850_v27  ;;  %v2736_v32 = vld [vmem:[%s16723_s2 + $0x68] sm:$0xff] }
 0x2a0   : > { %v1856_v35 = vadd.f32 2.7706815e-08, %v1824_v42  ;;  %v2240_v46 = vadd.f32 -0.00021337405, %v2208_v60  ;;  %v12908_v30 = vmul.f32 %v1615_v40, %v12861_v16  ;;  %11249 = vrcp.f32 %v12899_v13 }
 0x2a1   : > { %v2621_v5 = vmul.f32 %v2589_v31, %v2557_v48  ;;  %v2096_v19 = vadd.f32 -0.0029546, %v2064_v8  ;;  %v914_v36 = vmul.f32 %v882_v52, %v12878_v14  ;;  %v1151_v50 = vadd.f32 -0.016096033, %v1119_v4 }
 0x2a2   : > { %16908 = vst [vmem:[#allocation32_spill] sm:$0xff] %v12908_v30  ;;  %v1888_v6 = vmul.f32 %v1856_v35, %v12897_v58  ;;  %v2272_v3 = vmul.f32 %v2240_v46, %v12897_v58  ;;  %v1679_v20 = vmul.f32 0.70710677, %v12908_v30  ;;  %v1170_v44 = vmul.f32 -1.45660715e-05, %v12878_v14 }
 0x2a3   : > { %v2653_v37 = vadd.f32 1.0, %v2621_v5  ;;  %v2128_v16 = vmul.f32 %v2096_v19, %v12853_v62  ;;  %v946_v34 = vadd.f32 -5.6925062e-05, %v914_v36  ;;  %v12930_v9 = vmul.f32 0.5, %v12423_v1 }
 0x2a4   : > { %v1920_v27 = vadd.f32 -2.101024e-06, %v1888_v6  ;;  %v2304_v41 = vadd.f32 -0.001682827, %v2272_v3  ;;  %v12927_v31 = vclamps-f32 %v1679_v20, 4.0  ;;  %v1567_v52 = vmul.f32 %v12822_v53, %v1151_v50 }
 0x2a5   : > { %4123 = vst [vmem:[#allocation2 + $0xe8] sm:$0xff] %v2653_v37  ;;  %v2160_v62 = vadd.f32 -0.016096033, %v2128_v16  ;;  %v978_v42 = vmul.f32 %v946_v34, %v12878_v14  ;;  %v1202_v60 = vadd.f32 -0.00021337405, %v1170_v44  ;;  %v10543_v3 = vpack.c.bf16 %v2736_v32, %v2735_v55 }
 0x2a6   : > { %v802_v40 = vmul.f32 -2.7261424e-10, %v12912_v11  ;;  %v1952_v4 = vmul.f32 %v1920_v27, %v12897_v58  ;;  %v2336_v48 = vmul.f32 %v2304_v41, %v12897_v58  ;;  %v12938_v8 = vmul.f32 %v12927_v31, %v12927_v31 }
 0x2a7   : > { %v2576_v1 = vmul.f32 %v12846_v38, %v2160_v62  ;;  %v1010_v35 = vadd.f32 -0.00073499064, %v978_v42  ;;  %v1234_v46 = vmul.f32 %v1202_v60, %v12878_v14  ;;  %10544 = vmatprep.subr.bf16.mxu1 %v10543_v3 }
 0x2a8   : > { %v834_v5 = vadd.f32 2.7706815e-08, %v802_v40  ;;  %v1984_v19 = vadd.f32 -5.6925062e-05, %v1952_v4  ;;  %v2368_v36 = vadd.f32 -0.0073733293, %v2336_v48  ;;  %10546 = vmatpush3.bf16.msra.mxu1 %v10543_v3 }
 0x2a9   : > { %v1807_v6 = vmul.f32 -2.7261424e-10, %v12938_v8  ;;  %v11248_v20 = vpop.eup %11247  ;;  %v2191_v37 = vmul.f32 -1.45660715e-05, %v12938_v8  ;;  %v1042_v16 = vmul.f32 %v1010_v35, %v12878_v14  ;;  %v1266_v34 = vadd.f32 -0.001682827, %v1234_v46 }
 0x2aa   : > { %v866_v44 = vmul.f32 %v834_v5, %v12912_v11  ;;  %v2480_v53 = vmul.f32 %v11248_v20, %v2416_v43  ;;  %v2016_v38 = vmul.f32 %v1984_v19, %v12897_v58  ;;  %v2400_v50 = vmul.f32 %v2368_v36, %v12897_v58  ;;  %v11250_v41 = vpop.eup %11249 }
 0x2ab   : > { %v1839_v27 = vadd.f32 2.7706815e-08, %v1807_v6  ;;  %v2223_v62 = vadd.f32 -0.00021337405, %v2191_v37  ;;  %v1074_v42 = vadd.f32 -0.0029546, %v1042_v16  ;;  %v1298_v55 = vmul.f32 %v1266_v34, %v12878_v14 }
 0x2ac   : > { %v898_v32 = vadd.f32 -2.101024e-06, %v866_v44  ;;  %v2512_v60 = vsub.f32 2.0, %v2480_v53  ;;  %v2048_v40 = vadd.f32 -0.00073499064, %v2016_v38  ;;  %v1471_v35 = vmul.f32 %v11250_v41, %v12899_v13 }
 0x2ad   : > { %v2432_v4 = vadd.f32 -0.014264739, %v2400_v50  ;;  %v1871_v48 = vmul.f32 %v1839_v27, %v12938_v8  ;;  %v2255_v43 = vmul.f32 %v2223_v62, %v12938_v8  ;;  %v1106_v46 = vmul.f32 %v1074_v42, %v12878_v14 }
 0x2ae   : > { %v1330_v5 = vadd.f32 -0.0073733293, %v1298_v55  ;;  %v2544_v19 = vmul.f32 %v11248_v20, %v2512_v60  ;;  %v2080_v36 = vmul.f32 %v2048_v40, %v12897_v58  ;;  %v1503_v16 = vsub.f32 2.0, %v1471_v35 }
 0x2af   : > { %11251 = vrcp.f32 %v2432_v4  ;;  %v1903_v6 = vadd.f32 -2.101024e-06, %v1871_v48  ;;  %v2287_v37 = vadd.f32 -0.001682827, %v2255_v43  ;;  %v1186_v34 = vmul.f32 -1.45660715e-05, %v12912_v11 }
 0x2b0   : > { %v1362_v3 = vmul.f32 %v1330_v5, %v12878_v14  ;;  %v2608_v44 = vmul.f32 %v2576_v1, %v2544_v19  ;;  %v2112_v53 = vadd.f32 -0.0029546, %v2080_v36  ;;  %v930_v13 = vmul.f32 %v898_v32, %v12912_v11  ;;  %v2738_v36 = vld [vmem:[%s16723_s2 + $0x78] sm:$0xff] }
 0x2b1   : > { %v1935_v38 = vmul.f32 %v1903_v6, %v12938_v8  ;;  %v2319_v50 = vmul.f32 %v2287_v37, %v12938_v8  ;;  %v1535_v27 = vmul.f32 %v11250_v41, %v1503_v16  ;;  %v12960_v20 = vadd.f32 -0.016096033, %v1106_v46 }
 0x2b2   : > { %v1394_v62 = vadd.f32 -0.014264739, %v1362_v3  ;;  %v2640_v42 = vadd.f32 1.0, %v2608_v44  ;;  %v2144_v55 = vmul.f32 %v2112_v53, %v12897_v58  ;;  %v962_v40 = vadd.f32 -5.6925062e-05, %v930_v13 }
 0x2b3   : > { %v1967_v60 = vadd.f32 -5.6925062e-05, %v1935_v38  ;;  %v2351_v14 = vadd.f32 -0.0073733293, %v2319_v50  ;;  %v1599_v48 = vmul.f32 %v1567_v52, %v1535_v27  ;;  %v1218_v1 = vadd.f32 -0.00021337405, %v1186_v34 }
 0x2b4   : > { %11253 = vrcp.f32 %v1394_v62  ;;  %4110 = vst [vmem:[#allocation2 + $0x80] sm:$0xff] %v2640_v42  ;;  %v2176_v43 = vadd.f32 -0.016096033, %v2144_v55  ;;  %v994_v32 = vmul.f32 %v962_v40, %v12912_v11  ;;  %v657_v41 = vmul.f32 0.70710677, %v12573_v45  ;;  %v2737_v52 = vld [vmem:[%s16723_s2 + $0x70] sm:$0xff] }
 0x2b5   : > { %v1999_v35 = vmul.f32 %v1967_v60, %v12938_v8  ;;  %v2383_v46 = vmul.f32 %v2351_v14, %v12938_v8  ;;  %v1631_v5 = vadd.f32 1.0, %v1599_v48  ;;  %v1250_v19 = vmul.f32 %v1218_v1, %v12912_v11 }
 0x2b6   : > { %v673_v58 = vmul.f32 0.70710677, %v12615_v7  ;;  %v12976_v37 = vmul.f32 0.5, %v12486_v18  ;;  %v1026_v16 = vadd.f32 -0.00073499064, %v994_v32  ;;  %v12978_v3 = vclamps-f32 %v657_v41, 4.0 }
 0x2b7   : > { %v2031_v6 = vadd.f32 -0.00073499064, %v1999_v35  ;;  %v12980_v34 = vadd.f32 -0.014264739, %v2383_v46  ;;  %v12983_v44 = vmul.f32 %v1631_v5, %v12930_v9  ;;  %v1282_v53 = vadd.f32 -0.001682827, %v1250_v19 }
 0x2b8   : > { %v12985_v38 = vclamps-f32 %v673_v58, 4.0  ;;  %v1058_v27 = vmul.f32 %v1026_v16, %v12912_v11  ;;  %v12991_v18 = vmul.f32 %v12978_v3, %v12978_v3  ;;  %v10547_v42 = vpack.c.bf16 %v2738_v36, %v2737_v52 }
 0x2b9   : > { %16909 = vst [vmem:[#allocation33_spill] sm:$0xff] %v12983_v44  ;;  %v11252_v13 = vpop.eup %11251  ;;  %v2063_v50 = vmul.f32 %v2031_v6, %v12938_v8  ;;  %11255 = vrcp.f32 %v12980_v34  ;;  %v1695_v60 = vmul.f32 0.70710677, %v12983_v44  ;;  %v1314_v9 = vmul.f32 %v1282_v53, %v12912_v11 }
 0x2ba   : > { %v2496_v55 = vmul.f32 %v11252_v13, %v2432_v4  ;;  %v1090_v14 = vadd.f32 -0.0029546, %v1058_v27  ;;  %v785_v48 = vmul.f32 -2.7261424e-10, %v12991_v18  ;;  %v12999_v1 = vmul.f32 %v12985_v38, %v12985_v38  ;;  %10548 = vmatprep.subr.bf16.mxu1 %v10547_v42 }
 0x2bb   : > { %v2095_v40 = vadd.f32 -0.0029546, %v2063_v50  ;;  %v13001_v32 = vclamps-f32 %v1695_v60, 4.0  ;;  %v1346_v41 = vadd.f32 -0.0073733293, %v1314_v9  ;;  %10550 = vmatpush3.bf16.msra.mxu1 %v10547_v42  ;;  %v2592_v46 = vmul.f32 %v12887_v29, %v2176_v43 }
 0x2bc   : > { %v2528_v35 = vsub.f32 2.0, %v2496_v55  ;;  %v1169_v4 = vmul.f32 -1.45660715e-05, %v12991_v18  ;;  %v1122_v19 = vmul.f32 %v1090_v14, %v12912_v11  ;;  %v817_v58 = vadd.f32 2.7706815e-08, %v785_v48  ;;  %v8959_v14 = vld [vmem:[%s16725_s4 + $0x208] sm:$0xff] }
 0x2bd   : > { %v2127_v5 = vmul.f32 %v2095_v40, %v12938_v8  ;;  %v13009_v6 = vmul.f32 %v13001_v32, %v13001_v32  ;;  %v1378_v16 = vmul.f32 %v1346_v41, %v12912_v11  ;;  %v801_v53 = vmul.f32 -2.7261424e-10, %v12999_v1  ;;  %v8958_v8 = vld [vmem:[%s16725_s4 + $0x200] sm:$0xff] }
 0x2be   : > { %v11254_v52 = vpop.eup %11253  ;;  %v2560_v36 = vmul.f32 %v11252_v13, %v2528_v35  ;;  %v849_v42 = vmul.f32 %v817_v58, %v12991_v18  ;;  %v1201_v29 = vadd.f32 -0.00021337405, %v1169_v4  ;;  %9740 = vmatmul.mubr.f32.vlgmr.msra.gmra.mrb[16].mxu1 %v11821_v56  ;;  %v1154_v9 = vadd.f32 -0.016096033, %v1122_v19 }
 0x2bf   : > { %v2159_v50 = vadd.f32 -0.016096033, %v2127_v5  ;;  %v1458_v27 = vmul.f32 %v11254_v52, %v1394_v62  ;;  %v1823_v13 = vmul.f32 -2.7261424e-10, %v13009_v6  ;;  %v2207_v55 = vmul.f32 -1.45660715e-05, %v13009_v6  ;;  %9742 = vmatprep.mubr.f32.mxu1 %v12044_v59 }
 0x2c0   : > { %v2624_v43 = vmul.f32 %v2592_v46, %v2560_v36  ;;  %v13020_v60 = vadd.f32 -0.014264739, %v1378_v16  ;;  %v1554_v62 = vmul.f32 %v12869_v25, %v12960_v20  ;;  %v881_v40 = vadd.f32 -2.101024e-06, %v849_v42  ;;  %v8908_v59 = vld [vmem:[%s16725_s4 + $0x170] sm:$0xff] }
 0x2c1   : > { %v1490_v11 = vsub.f32 2.0, %v1458_v27  ;;  %v1855_v35 = vadd.f32 2.7706815e-08, %v1823_v13  ;;  %v2239_v41 = vadd.f32 -0.00021337405, %v2207_v55  ;;  %v1233_v5 = vmul.f32 %v1201_v29, %v12991_v18 }
 0x2c2   : > { %v2656_v48 = vadd.f32 1.0, %v2624_v43  ;;  %11257 = vrcp.f32 %v13020_v60  ;;  %v913_v46 = vmul.f32 %v881_v40, %v12991_v18  ;;  %v833_v58 = vadd.f32 2.7706815e-08, %v801_v53  ;;  %9743 = vmatmul.mubr.f32.gmra.mrb[18].mxu1 %v11928_v15  ;;  %v6195_v15 = vld [vmem:[#allocation2 + $0xd9] sm:$0xff] }
 0x2c3   : > { %v1522_v4 = vmul.f32 %v11254_v52, %v1490_v11  ;;  %v11256_v25 = vpop.eup %11255  ;;  %v1887_v20 = vmul.f32 %v1855_v35, %v13009_v6  ;;  %v2271_v19 = vmul.f32 %v2239_v41, %v13009_v6  ;;  %v1185_v36 = vmul.f32 -1.45660715e-05, %v12999_v1  ;;  %9745 = vmatprep.mubr.f32.mxu1 %v12183_v63 }
 0x2c4   : > { %4126 = vst [vmem:[#allocation2 + $0x100] sm:$0xff] %v2656_v48  ;;  %v10679_v16 = vpack.c.bf16 %v8959_v14, %v8958_v8  ;;  %v2479_v52 = vmul.f32 %v11256_v25, %v12980_v34  ;;  %v945_v42 = vadd.f32 -5.6925062e-05, %v913_v46  ;;  %v1265_v43 = vadd.f32 -0.001682827, %v1233_v5 }
 0x2c5   : > { %v1586_v27 = vmul.f32 %v1554_v62, %v1522_v4  ;;  %v1919_v29 = vadd.f32 -2.101024e-06, %v1887_v20  ;;  %v2303_v53 = vadd.f32 -0.001682827, %v2271_v19  ;;  %v865_v13 = vmul.f32 %v833_v58, %v12999_v1 }
 0x2c6   : > { %v1217_v55 = vadd.f32 -0.00021337405, %v1185_v36  ;;  %10680 = vmatprep.subr.bf16.mxu0 %v10679_v16  ;;  %v2511_v11 = vsub.f32 2.0, %v2479_v52  ;;  %v977_v48 = vmul.f32 %v945_v42, %v12991_v18  ;;  %v1297_v35 = vmul.f32 %v1265_v43, %v12991_v18  ;;  %9746 = vmatmul.mubr.f32.gmra.mrb[20].mxu1 %v12122_v10  ;;  %v13829_v10 = vld [vmem:[#allocation2 + $0x67] sm:$0xff] }
 0x2c7   : > { %v1618_v40 = vadd.f32 1.0, %v1586_v27  ;;  %10682 = vmatpush3.bf16.msra.mxu0 %v10679_v16  ;;  %v1951_v34 = vmul.f32 %v1919_v29, %v13009_v6  ;;  %v2335_v8 = vmul.f32 %v2303_v53, %v13009_v6  ;;  %v897_v62 = vadd.f32 -2.101024e-06, %v865_v13  ;;  %9748 = vmatprep.mubr.f32.mxu1 %v12381_v39  ;;  %v8906_v39 = vld [vmem:[%s16725_s4 + $0x160] sm:$0xff] }
 0x2c8   : > { %v1249_v14 = vmul.f32 %v1217_v55, %v12999_v1  ;;  %v2543_v41 = vmul.f32 %v11256_v25, %v2511_v11  ;;  %v2575_v4 = vmul.f32 %v12927_v31, %v2159_v50  ;;  %v1329_v5 = vadd.f32 -0.0073733293, %v1297_v35  ;;  %v8960_v11 = vld [vmem:[%s16725_s4 + $0x210] sm:$0xff] }
 0x2c9   : > { %v13047_v46 = vmul.f32 %v1618_v40, %v12976_v37  ;;  %v1983_v58 = vadd.f32 -5.6925062e-05, %v1951_v34  ;;  %v2367_v20 = vadd.f32 -0.0073733293, %v2335_v8  ;;  %v929_v19 = vmul.f32 %v897_v62, %v12999_v1  ;;  %v8961_v40 = vld [vmem:[%s16725_s4 + $0x218] sm:$0xff] }
 0x2ca   : > { %v1281_v36 = vadd.f32 -0.001682827, %v1249_v14  ;;  %v2607_v16 = vmul.f32 %v2575_v4, %v2543_v41  ;;  %v1009_v27 = vadd.f32 -0.00073499064, %v977_v48  ;;  %v1361_v42 = vmul.f32 %v1329_v5, %v12991_v18  ;;  %9749 = vmatmul.mubr.f32.gmra.mrb[22].mxu1 %v12319_v24  ;;  %v6193_v24 = vld [vmem:[#allocation2 + $0xc9] sm:$0xff] }
 0x2cb   : > { %16910 = vst [vmem:[#allocation34_spill] sm:$0xff] %v13047_v46  ;;  %v1682_v52 = vmul.f32 0.70710677, %v13047_v46  ;;  %v2015_v31 = vmul.f32 %v1983_v58, %v13009_v6  ;;  %v2399_v37 = vmul.f32 %v2367_v20, %v13009_v6  ;;  %v961_v50 = vadd.f32 -5.6925062e-05, %v929_v19  ;;  %9751 = vmatprep.mubr.f32.mxu1 %v12585_v61  ;;  %v8962_v19 = vld [vmem:[%s16725_s4 + $0x220] sm:$0xff] }
 0x2cc   : > { %v11258_v25 = vpop.eup %11257  ;;  %v1313_v43 = vmul.f32 %v1281_v36, %v12999_v1  ;;  %v13057_v29 = vadd.f32 1.0, %v2607_v16  ;;  %v1570_v55 = vmul.f32 %v12889_v22, %v1154_v9  ;;  %v13071_v34 = vadd.f32 -0.014264739, %v1361_v42  ;;  %v8963_v36 = vld [vmem:[%s16725_s4 + $0x228] sm:$0xff]  ;;  %v8964_v42 = vld [vmem:[%s16725_s4 + $0x230] sm:$0xff] }
 0x2cd   : > { %v13059_v53 = vclamps-f32 %v1682_v52, 4.0  ;;  %v1474_v13 = vmul.f32 %v11258_v25, %v13020_v60  ;;  %v2047_v48 = vadd.f32 -0.00073499064, %v2015_v31  ;;  %v13069_v35 = vadd.f32 -0.014264739, %v2399_v37  ;;  %v8862_v31 = vld [vmem:[%s16725_s4 + $0x80] sm:$0xff] }
 0x2ce   : > { %v993_v8 = vmul.f32 %v961_v50, %v12999_v1  ;;  %4109 = vst [vmem:[#allocation2 + $0x78] sm:$0xff] %v13057_v29  ;;  %v1041_v9 = vmul.f32 %v1009_v27, %v12991_v18  ;;  %v1345_v62 = vadd.f32 -0.0073733293, %v1313_v43  ;;  %9752 = vmatmul.mubr.f32.gmra.mrb[24].mxu1 %v12447_v21  ;;  %v10683_v4 = vpack.c.bf16 %v8961_v40, %v8960_v11  ;;  %v8863_v11 = vld [vmem:[%s16725_s4 + $0x88] sm:$0xff]  ;;  %v13803_v21 = vld [vmem:[#allocation2 + $0x57] sm:$0xff] }
 0x2cf   : > { %v13077_v22 = vmul.f32 %v13059_v53, %v13059_v53  ;;  %v1506_v60 = vsub.f32 2.0, %v1474_v13  ;;  %v2079_v14 = vmul.f32 %v2047_v48, %v13009_v6  ;;  %11259 = vrcp.f32 %v13069_v35  ;;  %9754 = vmatprep.mubr.f32.mxu1 %v12728_v12  ;;  %v8904_v12 = vld [vmem:[%s16725_s4 + $0x150] sm:$0xff] }
 0x2d0   : > { %v1025_v41 = vadd.f32 -0.00073499064, %v993_v8  ;;  %11261 = vrcp.f32 %v13071_v34  ;;  %v1377_v27 = vmul.f32 %v1345_v62, %v12999_v1  ;;  %10684 = vmatprep.subr.bf16.mxu0 %v10683_v4  ;;  %v642_v43 = vmul.f32 0.5, %v12522_v51 }
 0x2d1   : > { %v1810_v5 = vmul.f32 -2.7261424e-10, %v13077_v22  ;;  %v2194_v58 = vmul.f32 -1.45660715e-05, %v13077_v22  ;;  %v1538_v20 = vmul.f32 %v11258_v25, %v1506_v60  ;;  %v2111_v16 = vadd.f32 -0.0029546, %v2079_v14  ;;  %10686 = vmatpush3.bf16.msra.mxu0 %v10683_v4 }
 0x2d2   : > { %v1057_v52 = vmul.f32 %v1025_v41, %v12999_v1  ;;  %v8965_v25 = vld [vmem:[%s16725_s4 + $0x238] sm:$0xff]  ;;  %9755 = vmatmul.mubr.f32.gmra.mrb[26].mxu1 %v12636_v26  ;;  %v1073_v40 = vadd.f32 -0.0029546, %v1041_v9  ;;  %v13109_v48 = vadd.f32 -0.014264739, %v1377_v27  ;;  %v10687_v8 = vpack.c.bf16 %v8963_v36, %v8962_v19  ;;  %v8966_v60 = vld [vmem:[%s16725_s4 + $0x240] sm:$0xff] }
 0x2d3   : > { %v1842_v37 = vadd.f32 2.7706815e-08, %v1810_v5  ;;  %v2226_v50 = vadd.f32 -0.00021337405, %v2194_v58  ;;  %v1602_v13 = vmul.f32 %v1570_v55, %v1538_v20  ;;  %9757 = vmatprep.mubr.f32.mxu1 %v12908_v30  ;;  %v10691_v14 = vpack.c.bf16 %v8965_v25, %v8964_v42  ;;  %v8967_v41 = vld [vmem:[%s16725_s4 + $0x248] sm:$0xff]  ;;  %v8864_v9 = vld [vmem:[%s16725_s4 + $0x90] sm:$0xff] }
 0x2d4   : > { %v8865_v4 = vld [vmem:[%s16725_s4 + $0x98] sm:$0xff]  ;;  %v2143_v5 = vmul.f32 %v2111_v16, %v13009_v6  ;;  %v1089_v58 = vadd.f32 -0.0029546, %v1057_v52  ;;  %11263 = vrcp.f32 %v13109_v48  ;;  %10688 = vmatprep.subr.bf16.mxu0 %v10687_v8  ;;  %v10551_v20 = vpack.c.bf16 %v8863_v11, %v8862_v31  ;;  %v8866_v42 = vld [vmem:[%s16725_s4 + $0xa0] sm:$0xff]  ;;  %v8867_v6 = vld [vmem:[%s16725_s4 + $0xa8] sm:$0xff] }
 0x2d5   : > { %v1874_v51 = vmul.f32 %v1842_v37, %v13077_v22  ;;  %v2258_v55 = vmul.f32 %v2226_v50, %v13077_v22  ;;  %v1634_v62 = vadd.f32 1.0, %v1602_v13  ;;  %10690 = vmatpush3.bf16.msra.mxu0 %v10687_v8  ;;  %v1105_v16 = vmul.f32 %v1073_v40, %v12991_v18  ;;  %v8969_v13 = vld [vmem:[%s16725_s4 + $0x258] sm:$0xff]  ;;  %v6189_v30 = vld [vmem:[#allocation2 + $0xa9] sm:$0xff] }
 0x2d6   : > { %9758 = vmatmul.mubr.f32.gmra.mrb[28].mxu1 %v12834_v23  ;;  %10692 = vmatprep.subr.bf16.mxu0 %v10691_v14  ;;  %v10695_v52 = vpack.c.bf16 %v8967_v41, %v8966_v60  ;;  %v10555_v25 = vpack.c.bf16 %v8865_v4, %v8864_v9  ;;  %v2175_v11 = vadd.f32 -0.016096033, %v2143_v5  ;;  %v1121_v40 = vmul.f32 %v1089_v58, %v12999_v1  ;;  %v8868_v60 = vld [vmem:[%s16725_s4 + $0xb0] sm:$0xff]  ;;  %v8869_v9 = vld [vmem:[%s16725_s4 + $0xb8] sm:$0xff] }
 0x2d7   : > { %v1906_v19 = vadd.f32 -2.101024e-06, %v1874_v51  ;;  %v2290_v36 = vadd.f32 -0.001682827, %v2258_v55  ;;  %v13128_v27 = vmul.f32 %v1634_v62, %v642_v43  ;;  %10552 = vmatprep.subr.bf16.mxu1 %v10551_v20  ;;  %v8968_v43 = vld [vmem:[%s16725_s4 + $0x250] sm:$0xff]  ;;  %v10559_v8 = vpack.c.bf16 %v8867_v6, %v8866_v42  ;;  %v6191_v26 = vld [vmem:[#allocation2 + $0xb9] sm:$0xff] }
 0x2d8   : > { %10554 = vmatpush3.bf16.msra.mxu1 %v10551_v20  ;;  %v1137_v5 = vadd.f32 -0.016096033, %v1105_v16  ;;  %v10699_v1 = vpack.c.bf16 %v8969_v13, %v8968_v43  ;;  %v2591_v42 = vmul.f32 %v13001_v32, %v2175_v11  ;;  %v1153_v16 = vadd.f32 -0.016096033, %v1121_v40 }
 0x2d9   : > { %16911 = vst [vmem:[#allocation35_spill] sm:$0xff] %v13128_v27  ;;  %v1938_v31 = vmul.f32 %v1906_v19, %v13077_v22  ;;  %v2322_v37 = vmul.f32 %v2290_v36, %v13077_v22  ;;  %v1698_v50 = vmul.f32 0.70710677, %v13128_v27  ;;  %v11260_v18 = vpop.eup %11259  ;;  %10556 = vmatprep.subr.bf16.mxu1 %v10555_v25  ;;  %10694 = vmatpush3.bf16.msra.mxu0 %v10691_v14  ;;  %v8970_v14 = vld [vmem:[%s16725_s4 + $0x260] sm:$0xff]  ;;  %v8971_v36 = vld [vmem:[%s16725_s4 + $0x268] sm:$0xff] }
 0x2da   : > { %v2495_v51 = vmul.f32 %v11260_v18, %v13069_v35  ;;  %v11262_v4 = vpop.eup %11261  ;;  %10696 = vmatprep.subr.bf16.mxu0 %v10695_v52  ;;  %v1553_v40 = vmul.f32 %v12978_v3, %v1137_v5 }
 0x2db   : > { %v1970_v55 = vadd.f32 -5.6925062e-05, %v1938_v31  ;;  %v2354_v62 = vadd.f32 -0.0073733293, %v2322_v37  ;;  %v13152_v41 = vclamps-f32 %v1698_v50, 4.0  ;;  %v1457_v6 = vmul.f32 %v11262_v4, %v13071_v34  ;;  %v8870_v37 = vld [vmem:[%s16725_s4 + $0xc0] sm:$0xff] }
 0x2dc   : > { %v2527_v58 = vsub.f32 2.0, %v2495_v51  ;;  %10558 = vmatpush3.bf16.msra.mxu1 %v10555_v25  ;;  %v10563_v31 = vpack.c.bf16 %v8869_v9, %v8868_v60  ;;  %v8871_v25 = vld [vmem:[%s16725_s4 + $0xc8] sm:$0xff]  ;;  %v10703_v60 = vpack.c.bf16 %v8971_v36, %v8970_v14  ;;  %v8972_v9 = vld [vmem:[%s16725_s4 + $0x270] sm:$0xff] }
 0x2dd   : > { %v2002_v20 = vmul.f32 %v1970_v55, %v13077_v22  ;;  %v2386_v19 = vmul.f32 %v2354_v62, %v13077_v22  ;;  %v13161_v35 = vmul.f32 %v13152_v41, %v13152_v41  ;;  %10560 = vmatprep.subr.bf16.mxu1 %v10559_v8  ;;  %10698 = vmatpush3.bf16.msra.mxu0 %v10695_v52  ;;  %v1489_v11 = vsub.f32 2.0, %v1457_v6  ;;  %v8973_v52 = vld [vmem:[%s16725_s4 + $0x278] sm:$0xff] }
 0x2de   : > { %v2559_v50 = vmul.f32 %v11260_v18, %v2527_v58  ;;  %v11264_v32 = vpop.eup %11263  ;;  %10700 = vmatprep.subr.bf16.mxu0 %v10699_v1  ;;  %v10567_v5 = vpack.c.bf16 %v8871_v25, %v8870_v37  ;;  %v8873_v6 = vld [vmem:[%s16725_s4 + $0xd8] sm:$0xff]  ;;  %v10707_v37 = vpack.c.bf16 %v8973_v52, %v8972_v9 }
 0x2df   : > { %v2034_v43 = vadd.f32 -0.00073499064, %v2002_v20  ;;  %v13177_v13 = vadd.f32 -0.014264739, %v2386_v19  ;;  %v1826_v51 = vmul.f32 -2.7261424e-10, %v13161_v35  ;;  %v1521_v20 = vmul.f32 %v11262_v4, %v1489_v11 }
 0x2e0   : > { %v2210_v34 = vmul.f32 -1.45660715e-05, %v13161_v35  ;;  %v2623_v55 = vmul.f32 %v2591_v42, %v2559_v50  ;;  %10562 = vmatpush3.bf16.msra.mxu1 %v10559_v8  ;;  %v1473_v3 = vmul.f32 %v11264_v32, %v13109_v48  ;;  %v1569_v8 = vmul.f32 %v12985_v38, %v1153_v16  ;;  %v8872_v42 = vld [vmem:[%s16725_s4 + $0xd0] sm:$0xff]  ;;  %v8974_v38 = vld [vmem:[%s16725_s4 + $0x280] sm:$0xff] }
 0x2e1   : > { %v2066_v62 = vmul.f32 %v2034_v43, %v13077_v22  ;;  %11265 = vrcp.f32 %v13177_v13  ;;  %v1858_v18 = vadd.f32 2.7706815e-08, %v1826_v51  ;;  %10564 = vmatprep.subr.bf16.mxu1 %v10563_v31  ;;  %10702 = vmatpush3.bf16.msra.mxu0 %v10699_v1  ;;  %v1585_v48 = vmul.f32 %v1553_v40, %v1521_v20  ;;  %v8975_v1 = vld [vmem:[%s16725_s4 + $0x288] sm:$0xff]  ;;  %v8877_v20 = vld [vmem:[%s16725_s4 + $0xf8] sm:$0xff] }
 0x2e2   : > { %v2242_v58 = vadd.f32 -0.00021337405, %v2210_v34  ;;  %v2655_v19 = vadd.f32 1.0, %v2623_v55  ;;  %v1505_v50 = vsub.f32 2.0, %v1473_v3  ;;  %10704 = vmatprep.subr.bf16.mxu0 %v10703_v60  ;;  %v625_v43 = vmul.f32 0.5, %v12573_v45  ;;  %v8874_v45 = vld [vmem:[%s16725_s4 + $0xe0] sm:$0xff] }
 0x2e3   : > { %v2098_v14 = vadd.f32 -0.0029546, %v2066_v62  ;;  %v1890_v36 = vmul.f32 %v1858_v18, %v13161_v35  ;;  %v1617_v51 = vadd.f32 1.0, %v1585_v48  ;;  %v10571_v11 = vpack.c.bf16 %v8873_v6, %v8872_v42 }
 0x2e4   : > { %v2274_v4 = vmul.f32 %v2242_v58, %v13161_v35  ;;  %4125 = vst [vmem:[#allocation2 + $0xf8] sm:$0xff] %v2655_v19  ;;  %10566 = vmatpush3.bf16.msra.mxu1 %v10563_v31  ;;  %v1537_v34 = vmul.f32 %v11264_v32, %v1505_v50  ;;  %v8875_v31 = vld [vmem:[%s16725_s4 + $0xe8] sm:$0xff]  ;;  %v10711_v9 = vpack.c.bf16 %v8975_v1, %v8974_v38  ;;  %v8876_v58 = vld [vmem:[%s16725_s4 + $0xf0] sm:$0xff] }
 0x2e5   : > { %v1922_v25 = vadd.f32 -2.101024e-06, %v1890_v36  ;;  %10568 = vmatprep.subr.bf16.mxu1 %v10567_v5  ;;  %v2130_v40 = vmul.f32 %v2098_v14, %v13077_v22  ;;  %10706 = vmatpush3.bf16.msra.mxu0 %v10703_v60  ;;  %v13216_v18 = vmul.f32 %v1617_v51, %v625_v43  ;;  %v641_v22 = vmul.f32 0.5, %v12615_v7  ;;  %v8976_v60 = vld [vmem:[%s16725_s4 + $0x290] sm:$0xff]  ;;  %v13242_v43 = vld [vmem:[#allocation2 + $0x20] sm:$0xff]  ;;  %v13244_v38 = vld [vmem:[#allocation2 + $0x28] sm:$0xff] }
 0x2e6   : > { %v2306_v16 = vadd.f32 -0.001682827, %v2274_v4  ;;  %v1601_v32 = vmul.f32 %v1569_v8, %v1537_v34  ;;  %10708 = vmatprep.subr.bf16.mxu0 %v10707_v37  ;;  %v10575_v7 = vpack.c.bf16 %v8875_v31, %v8874_v45  ;;  %v4674_v31 = vld [vmem:[%s16725_s4] sm:$0xff] }
 0x2e7   : > { %v1954_v55 = vmul.f32 %v1922_v25, %v13161_v35  ;;  %v1681_v19 = vmul.f32 0.70710677, %v13216_v18  ;;  %9760 = vmatprep.mubr.f32.mxu1 %v13216_v18  ;;  %v2162_v8 = vadd.f32 -0.016096033, %v2130_v40 }
 0x2e8   : > { %v2338_v62 = vmul.f32 %v2306_v16, %v13161_v35  ;;  %10570 = vmatpush3.bf16.msra.mxu1 %v10567_v5  ;;  %v1633_v14 = vadd.f32 1.0, %v1601_v32  ;;  %v8977_v5 = vld [vmem:[%s16725_s4 + $0x298] sm:$0xff]  ;;  %v10579_v16 = vpack.c.bf16 %v8877_v20, %v8876_v58 }
 0x2e9   : > { %v1986_v52 = vadd.f32 -5.6925062e-05, %v1954_v55  ;;  %10572 = vmatprep.subr.bf16.mxu1 %v10571_v11  ;;  %9761 = vmatmul.mubr.f32.gmra.mrb[30].mxu1 %v13047_v46  ;;  %v13237_v48 = vclamps-f32 %v1681_v19, 4.0  ;;  %v10715_v1 = vpack.c.bf16 %v8977_v5, %v8976_v60  ;;  %v2578_v55 = vmul.f32 %v13059_v53, %v2162_v8  ;;  %v13278_v60 = vld [vmem:[#allocation2 + $0x30] sm:$0xff]  ;;  %v8981_v5 = vld [vmem:[%s16725_s4 + $0x2b8] sm:$0xff]  ;;  %v8926_v46 = vld [vmem:[%s16725_s4 + $0x180] sm:$0xff] }
 0x2ea   : > { %v2370_v3 = vadd.f32 -0.0073733293, %v2338_v62  ;;  %10710 = vmatpush3.bf16.msra.mxu0 %v10707_v37  ;;  %v13239_v50 = vmul.f32 %v1633_v14, %v641_v22  ;;  %9763 = vmatprep.mubr.f32.mxu1 %v11852_v57  ;;  %v4675_v62 = vld [vmem:[%s16725_s4 + $0x8] sm:$0xff]  ;;  %v8980_v14 = vld [vmem:[%s16725_s4 + $0x2b0] sm:$0xff] }
 0x2eb   : > { %v11266_v36 = vpop.eup %11265  ;;  %v2018_v42 = vmul.f32 %v1986_v52, %v13161_v35  ;;  %10712 = vmatprep.subr.bf16.mxu0 %v10711_v9  ;;  %v13253_v34 = vmul.f32 %v13237_v48, %v13237_v48 }
 0x2ec   : > { %v2482_v6 = vmul.f32 %v11266_v36, %v13177_v13  ;;  %v2402_v4 = vmul.f32 %v2370_v3, %v13161_v35  ;;  %10574 = vmatpush3.bf16.msra.mxu1 %v10571_v11  ;;  %v8978_v13 = vld [vmem:[%s16725_s4 + $0x2a0] sm:$0xff]  ;;  %v1697_v40 = vmul.f32 0.70710677, %v13239_v50  ;;  %v8979_v11 = vld [vmem:[%s16725_s4 + $0x2a8] sm:$0xff] }
 0x2ed   : > { %v2050_v25 = vadd.f32 -0.00073499064, %v2018_v42  ;;  %10140 = vmatmul.mubr.f32.vlgmr.msra.gmra.mrb[16].mxu0 %v13242_v43  ;;  %10576 = vmatprep.subr.bf16.mxu1 %v10575_v7  ;;  %v1809_v52 = vmul.f32 -2.7261424e-10, %v13253_v34  ;;  %v2193_v53 = vmul.f32 -1.45660715e-05, %v13253_v34  ;;  %v10719_v58 = vpack.c.bf16 %v8979_v11, %v8978_v13 }
 0x2ee   : > { %v2514_v37 = vsub.f32 2.0, %v2482_v6  ;;  %v13249_v51 = vadd.f32 -0.014264739, %v2402_v4  ;;  %9764 = vmatmul.mubr.f32.gmra.mrb[32].mxu1 %v11825_v49  ;;  %10714 = vmatpush3.bf16.msra.mxu0 %v10711_v9  ;;  %v13274_v9 = vld [vmem:[#allocation2 + $0x38] sm:$0xff]  ;;  %v13276_v22 = vclamps-f32 %v1697_v40, 4.0  ;;  %v13304_v40 = vld [vmem:[#allocation2 + $0x40] sm:$0xff]  ;;  %v10723_v11 = vpack.c.bf16 %v8981_v5, %v8980_v14 }
 0x2ef   : > { %v2082_v45 = vmul.f32 %v2050_v25, %v13161_v35  ;;  %9766 = vmatprep.mubr.f32.mxu1 %v12103_v2  ;;  %10142 = vmatprep.mubr.f32.mxu0 %v13244_v38  ;;  %v1841_v3 = vadd.f32 2.7706815e-08, %v1809_v52  ;;  %v2225_v19 = vadd.f32 -0.00021337405, %v2193_v53  ;;  %v13300_v25 = vld [vmem:[#allocation2 + $0x48] sm:$0xff]  ;;  %v13772_v49 = vld [vmem:[#allocation2 + $0x3f] sm:$0xff] }
 0x2f0   : > { %v2546_v32 = vmul.f32 %v11266_v36, %v2514_v37  ;;  %11267 = vrcp.f32 %v13249_v51  ;;  %10578 = vmatpush3.bf16.msra.mxu1 %v10575_v7  ;;  %10716 = vmatprep.subr.bf16.mxu0 %v10715_v1  ;;  %v13287_v36 = vpack.c.bf16 %v4675_v62, %v4674_v31  ;;  %v13291_v7 = vmul.f32 %v13276_v22, %v13276_v22  ;;  %v8983_v31 = vld [vmem:[%s16725_s4 + $0x2c8] sm:$0xff] }
 0x2f1   : > { %10143 = vmatmul.mubr.f32.gmra.mrb[18].mxu0 %v13278_v60  ;;  %10580 = vmatprep.subr.bf16.mxu1 %v10579_v16  ;;  %v2114_v8 = vadd.f32 -0.0029546, %v2082_v45  ;;  %v1873_v6 = vmul.f32 %v1841_v3, %v13253_v34  ;;  %v2257_v4 = vmul.f32 %v2225_v19, %v13253_v34  ;;  %v13741_v2 = vld [vmem:[#allocation2 + $0x2f] sm:$0xff] }
 0x2f2   : > { %v2610_v20 = vmul.f32 %v2578_v55, %v2546_v32  ;;  %9767 = vmatmul.mubr.f32.gmra.mrb[34].mxu1 %v11956_v28  ;;  %10145 = vmatprep.mubr.f32.mxu0 %v13274_v9  ;;  %v1825_v13 = vmul.f32 -2.7261424e-10, %v13291_v7  ;;  %v2209_v37 = vmul.f32 -1.45660715e-05, %v13291_v7  ;;  %v8902_v28 = vld [vmem:[%s16725_s4 + $0x140] sm:$0xff] }
 0x2f3   : > { %9769 = vmatprep.mubr.f32.mxu1 %v12263_v54  ;;  %10718 = vmatpush3.bf16.msra.mxu0 %v10715_v1  ;;  %v1905_v55 = vadd.f32 -2.101024e-06, %v1873_v6  ;;  %v2289_v45 = vadd.f32 -0.001682827, %v2257_v4  ;;  %v8982_v1 = vld [vmem:[%s16725_s4 + $0x2c0] sm:$0xff]  ;;  %v8984_v4 = vld [vmem:[%s16725_s4 + $0x2d0] sm:$0xff] }
 0x2f4   : > { %v13295_v42 = vadd.f32 1.0, %v2610_v20  ;;  %10582 = vmatpush3.bf16.msra.mxu1 %v10579_v16  ;;  %10720 = vmatprep.subr.bf16.mxu0 %v10719_v58  ;;  %v2146_v16 = vmul.f32 %v2114_v8, %v13161_v35  ;;  %v1857_v62 = vadd.f32 2.7706815e-08, %v1825_v13  ;;  %v2241_v32 = vadd.f32 -0.00021337405, %v2209_v37  ;;  %v13321_v20 = vld [vmem:[#allocation2 + $0x58] sm:$0xff] }
 0x2f5   : > { %10146 = vmatmul.mubr.f32.gmra.mrb[20].mxu0 %v13304_v40  ;;  %10584 = vmatprep.subr.bf16.mxu1 %v13287_v36  ;;  %v1937_v52 = vmul.f32 %v1905_v55, %v13253_v34  ;;  %v2321_v53 = vmul.f32 %v2289_v45, %v13253_v34  ;;  %v13325_v35 = vld [vmem:[#allocation2 + $0x50] sm:$0xff]  ;;  %v10727_v14 = vpack.c.bf16 %v8983_v31, %v8982_v1 }
 0x2f6   : > { %4112 = vst [vmem:[#allocation2 + $0x90] sm:$0xff] %v13295_v42  ;;  %9770 = vmatmul.mubr.f32.gmra.mrb[36].mxu1 %v12159_v0  ;;  %10148 = vmatprep.mubr.f32.mxu0 %v13300_v25  ;;  %v1889_v3 = vmul.f32 %v1857_v62, %v13291_v7  ;;  %v2273_v19 = vmul.f32 %v2241_v32, %v13291_v7  ;;  %v2178_v13 = vadd.f32 -0.016096033, %v2146_v16  ;;  %v16912_v62 = vld [vmem:[#allocation19_spill] sm:$0xff]  ;;  %v16913_v32 = vld [vmem:[#allocation25_spill] sm:$0xff] }
 0x2f7   : > { %9772 = vmatprep.mubr.f32.mxu1 %v12417_v47  ;;  %10722 = vmatpush3.bf16.msra.mxu0 %v10719_v58  ;;  %v1969_v8 = vadd.f32 -5.6925062e-05, %v1937_v52  ;;  %v2353_v6 = vadd.f32 -0.0073733293, %v2321_v53  ;;  %v8985_v58 = vld [vmem:[%s16725_s4 + $0x2d8] sm:$0xff]  ;;  %v13340_v52 = vld [vmem:[#allocation2 + $0x68] sm:$0xff] }
 0x2f8   : > { %10724 = vmatprep.subr.bf16.mxu0 %v10723_v11  ;;  %v1921_v55 = vadd.f32 -2.101024e-06, %v1889_v3  ;;  %v2305_v45 = vadd.f32 -0.001682827, %v2273_v19  ;;  %v13344_v3 = vld [vmem:[#allocation2 + $0x60] sm:$0xff]  ;;  %v10731_v19 = vpack.c.bf16 %v8985_v58, %v8984_v4 }
 0x2f9   : > { %10149 = vmatmul.mubr.f32.gmra.mrb[22].mxu0 %v13325_v35  ;;  %v2001_v1 = vmul.f32 %v1969_v8, %v13253_v34  ;;  %v2385_v31 = vmul.f32 %v2353_v6, %v13253_v34  ;;  %v8986_v8 = vld [vmem:[%s16725_s4 + $0x2e0] sm:$0xff] }
 0x2fa   : > { %v11268_v5 = vpop.eup %11267  ;;  %9773 = vmatmul.mubr.f32.gmra.mrb[38].mxu1 %v16912_v62  ;;  %10151 = vmatprep.mubr.f32.mxu0 %v13321_v20  ;;  %v1953_v16 = vmul.f32 %v1921_v55, %v13291_v7 }
 0x2fb   : > { %v2498_v37 = vmul.f32 %v11268_v5, %v13249_v51  ;;  %9775 = vmatprep.mubr.f32.mxu1 %v16913_v32  ;;  %10726 = vmatpush3.bf16.msra.mxu0 %v10723_v11  ;;  %v2337_v51 = vmul.f32 %v2305_v45, %v13291_v7  ;;  %v2033_v47 = vadd.f32 -0.00073499064, %v2001_v1  ;;  %v2417_v62 = vadd.f32 -0.014264739, %v2385_v31  ;;  %v8987_v11 = vld [vmem:[%s16725_s4 + $0x2e8] sm:$0xff]  ;;  %v16914_v32 = vld [vmem:[#allocation23_spill] sm:$0xff] }
 0x2fc   : > { %10728 = vmatprep.subr.bf16.mxu0 %v10727_v14  ;;  %v1985_v55 = vadd.f32 -5.6925062e-05, %v1953_v16 }
 0x2fd   : > { %v2530_v53 = vsub.f32 2.0, %v2498_v37  ;;  %10152 = vmatmul.mubr.f32.gmra.mrb[24].mxu0 %v13344_v3  ;;  %v2594_v37 = vmul.f32 %v13152_v41, %v2178_v13  ;;  %v2369_v45 = vadd.f32 -0.0073733293, %v2337_v51  ;;  %v2065_v4 = vmul.f32 %v2033_v47, %v13253_v34  ;;  %v8988_v47 = vld [vmem:[%s16725_s4 + $0x2f0] sm:$0xff] }
 0x2fe   : > { %9776 = vmatmul.mubr.f32.gmra.mrb[40].mxu1 %v16914_v32  ;;  %10154 = vmatprep.mubr.f32.mxu0 %v13340_v52  ;;  %11269 = vrcp.f32 %v2417_v62  ;;  %v2017_v1 = vmul.f32 %v1985_v55, %v13291_v7  ;;  %v10735_v41 = vpack.c.bf16 %v8987_v11, %v8986_v8  ;;  %v13376_v11 = vld [vmem:[#allocation2 + $0x80] sm:$0xff]  ;;  %v8901_v32 = vld [vmem:[%s16725_s4 + $0x138] sm:$0xff] }
 0x2ff   : > { %v2562_v6 = vmul.f32 %v11268_v5, %v2530_v53  ;;  %9778 = vmatprep.mubr.f32.mxu1 %v12787_v17  ;;  %10730 = vmatpush3.bf16.msra.mxu0 %v10727_v14  ;;  %v2401_v31 = vmul.f32 %v2369_v45, %v13291_v7  ;;  %v13360_v5 = vld [vmem:[#allocation2 + $0x70] sm:$0xff]  ;;  %v2097_v13 = vadd.f32 -0.0029546, %v2065_v4  ;;  %v8989_v14 = vld [vmem:[%s16725_s4 + $0x2f8] sm:$0xff]  ;;  %v9006_v55 = vld [vmem:[%s16725_s4 + $0x300] sm:$0xff] }
 0x300   : > { %10732 = vmatprep.subr.bf16.mxu0 %v10731_v19  ;;  %v2049_v16 = vadd.f32 -0.00073499064, %v2017_v1  ;;  %v4676_v1 = vld [vmem:[%s16725_s4 + $0x10] sm:$0xff] }
 0x301   : > { %v2626_v58 = vmul.f32 %v2594_v37, %v2562_v6  ;;  %10155 = vmatmul.mubr.f32.gmra.mrb[26].mxu0 %v13360_v5  ;;  %v2433_v51 = vadd.f32 -0.014264739, %v2401_v31  ;;  %v16915_v6 = vld [vmem:[#allocation27_spill] sm:$0xff]  ;;  %v10739_v37 = vpack.c.bf16 %v8989_v14, %v8988_v47  ;;  %v11401_v14 = vld [vmem:[#allocation2] sm:$0xff] }
 0x302   : > { %9779 = vmatmul.mubr.f32.gmra.mrb[42].mxu1 %v16915_v6  ;;  %10157 = vmatprep.mubr.f32.mxu0 %v13057_v29  ;;  %v2081_v8 = vmul.f32 %v2049_v16, %v13291_v7  ;;  %v9007_v29 = vld [vmem:[%s16725_s4 + $0x308] sm:$0xff]  ;;  %v4677_v31 = vld [vmem:[%s16725_s4 + $0x18] sm:$0xff] }
 0x303   : > { %v13369_v53 = vadd.f32 1.0, %v2626_v58  ;;  %9781 = vmatprep.mubr.f32.mxu1 %v12983_v44  ;;  %10734 = vmatpush3.bf16.msra.mxu0 %v10731_v19  ;;  %11271 = vrcp.f32 %v2433_v51  ;;  %v2129_v19 = vmul.f32 %v2097_v13, %v13253_v34  ;;  %v13388_v4 = vpack.c.bf16 %v9007_v29, %v9006_v55  ;;  %v4679_v55 = vld [vmem:[%s16725_s4 + $0x28] sm:$0xff] }
 0x304   : > { %10736 = vmatprep.subr.bf16.mxu0 %v10735_v41  ;;  %v2113_v45 = vadd.f32 -0.0029546, %v2081_v8  ;;  %v10587_v16 = vpack.c.bf16 %v4677_v31, %v4676_v1  ;;  %v4678_v8 = vld [vmem:[%s16725_s4 + $0x20] sm:$0xff] }
 0x305   : > { %4128 = vst [vmem:[#allocation2 + $0x110] sm:$0xff] %v13369_v53  ;;  %10158 = vmatmul.mubr.f32.gmra.mrb[28].mxu0 %v13376_v11  ;;  %v2161_v47 = vadd.f32 -0.016096033, %v2129_v19  ;;  %v10591_v31 = vpack.c.bf16 %v4679_v55, %v4678_v8  ;;  %v4685_v8 = vld [vmem:[%s16725_s4 + $0x58] sm:$0xff] }
 0x306   : > { %9782 = vmatmul.mubr.f32.gmra.mrb[44].mxu1 %v12874_v33  ;;  %v2145_v13 = vmul.f32 %v2113_v45, %v13291_v7 }
 0x307   : > { %9784 = vmatprep.mubr.f32.mxu1 %v13239_v50  ;;  %10738 = vmatpush3.bf16.msra.mxu0 %v10735_v41  ;;  %v2577_v19 = vmul.f32 %v13237_v48, %v2161_v47 }
 0x308   : > { %10740 = vmatprep.subr.bf16.mxu0 %v10739_v37  ;;  %v11270_v58 = vpop.eup %11269  ;;  %v2177_v7 = vadd.f32 -0.016096033, %v2145_v13 }
 0x309   : > { %v2481_v34 = vmul.f32 %v11270_v58, %v2417_v62 }
 0x30a   : > { %9785 = vmatmul.mubr.f32.gmra.mrb[46].mxu1 %v13128_v27  ;;  %v4680_v27 = vld [vmem:[%s16725_s4 + $0x30] sm:$0xff]  ;;  %v2593_v47 = vmul.f32 %v13276_v22, %v2177_v7  ;;  %v13466_v7 = vld [vmem:[#allocation2 + $0xc8] sm:$0xff] }
 0x30b   : > { %9819 = vmatprep.mubr.f32.mxu1 %v11401_v14  ;;  %10742 = vmatpush3.bf16.msra.mxu0 %v10739_v37  ;;  %v2513_v41 = vsub.f32 2.0, %v2481_v34  ;;  %v11402_v37 = vld [vmem:[#allocation2 + $0x18] sm:$0xff] }
 0x30c   : > { %10744 = vmatprep.subr.bf16.mxu0 %v13388_v4 }
 0x30d   : > { %v11272_v62 = vpop.eup %11271  ;;  %v2545_v29 = vmul.f32 %v11270_v58, %v2513_v41  ;;  %v4681_v58 = vld [vmem:[%s16725_s4 + $0x38] sm:$0xff] }
 0x30e   : > { %9820 = vmatmul.mubr.f32.vlgmr.msra.gmra.mrb[48].mxu1 %v11401_v14  ;;  %v2497_v45 = vmul.f32 %v11272_v62, %v2433_v51  ;;  %v13421_v14 = vld [vmem:[#allocation2 + $0x98] sm:$0xff] }
 0x30f   : > { %9822 = vmatprep.mubr.f32.mxu1 %v11402_v37  ;;  %10586 = vmatpush3.bf16.msra.mxu1 %v13287_v36  ;;  %v2609_v1 = vmul.f32 %v2577_v19, %v2545_v29  ;;  %v10595_v36 = vpack.c.bf16 %v4681_v58, %v4680_v27  ;;  %v13434_v27 = vld [vmem:[#allocation2 + $0xa0] sm:$0xff]  ;;  %v13478_v37 = vld [vmem:[#allocation2 + $0xd0] sm:$0xff]  ;;  %v4129_v58 = vlaneseq }
 0x310   : > { %10588 = vmatprep.subr.bf16.mxu1 %v10587_v16  ;;  %v2529_v34 = vsub.f32 2.0, %v2497_v45  ;;  %v4686_v29 = vld [vmem:[%s16725_s4 + $0x60] sm:$0xff]  ;;  %v4688_v45 = vld [vmem:[%s16725_s4 + $0x70] sm:$0xff] }
 0x311   : > { %v13413_v48 = vadd.f32 1.0, %v2609_v1 }
 0x312   : > { %9823 = vmatmul.mubr.f32.gmra.mrb[50].mxu1 %v13242_v43  ;;  %v2561_v51 = vmul.f32 %v11272_v62, %v2529_v34  ;;  %v4682_v43 = vld [vmem:[%s16725_s4 + $0x40] sm:$0xff]  ;;  %v13452_v62 = vld [vmem:[#allocation2 + $0xb8] sm:$0xff] }
 0x313   : > { %9825 = vmatprep.mubr.f32.mxu1 %v13244_v38  ;;  %10590 = vmatpush3.bf16.msra.mxu1 %v10587_v16  ;;  %4111 = vst [vmem:[#allocation2 + $0x88] sm:$0xff] %v13413_v48  ;;  %v4683_v38 = vld [vmem:[%s16725_s4 + $0x48] sm:$0xff]  ;;  %v13484_v34 = vld [vmem:[#allocation2 + $0xd8] sm:$0xff] }
 0x314   : > { %10160 = vmatprep.mubr.f32.mxu0 %v13413_v48  ;;  %10592 = vmatprep.subr.bf16.mxu1 %v10591_v31  ;;  %v2625_v13 = vmul.f32 %v2593_v47, %v2561_v51  ;;  %v10599_v41 = vpack.c.bf16 %v4683_v38, %v4682_v43  ;;  %v13438_v16 = vld [vmem:[#allocation2 + $0xa8] sm:$0xff]  ;;  %v13494_v51 = vld [vmem:[#allocation2 + $0xe0] sm:$0xff]  ;;  %v13507_v43 = vld [vmem:[#allocation2 + $0xf0] sm:$0xff] }
 0x315   : > { %10161 = vmatmul.mubr.f32.gmra.mrb[30].mxu0 %v13295_v42 }
 0x316   : > { %9826 = vmatmul.mubr.f32.gmra.mrb[52].mxu1 %v13278_v60  ;;  %10163 = vmatprep.mubr.f32.mxu0 %v13421_v14  ;;  %v13431_v22 = vadd.f32 1.0, %v2625_v13  ;;  %v4684_v60 = vld [vmem:[%s16725_s4 + $0x50] sm:$0xff]  ;;  %v2689_v13 = vmul.f32 0.5, %v13239_v50 }
 0x317   : > { %9828 = vmatprep.mubr.f32.mxu1 %v13274_v9  ;;  %10594 = vmatpush3.bf16.msra.mxu1 %v10591_v31  ;;  %v13449_v9 = vld [vmem:[#allocation2 + $0xb0] sm:$0xff]  ;;  %v10603_v55 = vpack.c.bf16 %v4685_v8, %v4684_v60  ;;  %v9009_v8 = vld [vmem:[%s16725_s4 + $0x318] sm:$0xff] }
 0x318   : > { %10596 = vmatprep.subr.bf16.mxu1 %v10595_v36  ;;  %4127 = vst [vmem:[#allocation2 + $0x108] sm:$0xff] %v13431_v22  ;;  %v13511_v38 = vmul.f32 %v2689_v13, %v13431_v22  ;;  %v9014_v13 = vld [vmem:[%s16725_s4 + $0x340] sm:$0xff] }
 0x319   : > { %10164 = vmatmul.mubr.f32.gmra.mrb[32].mxu0 %v13434_v27 }
 0x31a   : > { %9829 = vmatmul.mubr.f32.gmra.mrb[54].mxu1 %v13304_v40  ;;  %10166 = vmatprep.mubr.f32.mxu0 %v13438_v16  ;;  %v4687_v40 = vld [vmem:[%s16725_s4 + $0x68] sm:$0xff]  ;;  %16917 = vst [vmem:[#allocation37_spill] sm:$0xff] %v13511_v38  ;;  %v13674_v38 = vld [vmem:[#allocation2 + $0x79] sm:$0xff] }
 0x31b   : > { %9831 = vmatprep.mubr.f32.mxu1 %v13300_v25  ;;  %10598 = vmatpush3.bf16.msra.mxu1 %v10595_v36  ;;  %v13463_v25 = vld [vmem:[#allocation2 + $0xc0] sm:$0xff]  ;;  %v10607_v19 = vpack.c.bf16 %v4687_v40, %v4686_v29  ;;  %v13499_v36 = vld [vmem:[#allocation2 + $0xe8] sm:$0xff]  ;;  %v16921_v40 = vmov 0 }
 0x31c   : > { %10600 = vmatprep.subr.bf16.mxu1 %v10599_v41  ;;  %v9011_v29 = vld [vmem:[%s16725_s4 + $0x328] sm:$0xff] }
 0x31d   : > { %10167 = vmatmul.mubr.f32.gmra.mrb[34].mxu0 %v13449_v9  ;;  %v13700_v33 = vld [vmem:[#allocation2 + $0x81] sm:$0xff] }
 0x31e   : > { %9832 = vmatmul.mubr.f32.gmra.mrb[56].mxu1 %v13325_v35  ;;  %10169 = vmatprep.mubr.f32.mxu0 %v13452_v62  ;;  %v4689_v35 = vld [vmem:[%s16725_s4 + $0x78] sm:$0xff]  ;;  %16946 = vst [vmem:[#allocation46_spill] sm:$0xff] %v13700_v33 }
 0x31f   : > { %9834 = vmatprep.mubr.f32.mxu1 %v13321_v20  ;;  %10602 = vmatpush3.bf16.msra.mxu1 %v10599_v41  ;;  %v2673_v20 = vmul.f32 0.5, %v13216_v18  ;;  %v10611_v1 = vpack.c.bf16 %v4689_v35, %v4688_v45  ;;  %v8895_v18 = vld [vmem:[%s16725_s4 + $0x108] sm:$0xff]  ;;  %v13514_v41 = vld [vmem:[#allocation2 + $0xf8] sm:$0xff] }
 0x320   : > { %10604 = vmatprep.subr.bf16.mxu1 %v10603_v55  ;;  %v13566_v35 = vld [vmem:[#allocation2 + $0x31] sm:$0xff] }
 0x321   : > { %10170 = vmatmul.mubr.f32.gmra.mrb[36].mxu0 %v13463_v25  ;;  %v13481_v31 = vmul.f32 %v2673_v20, %v13413_v48 }
 0x322   : > { %9835 = vmatmul.mubr.f32.gmra.mrb[58].mxu1 %v13344_v3  ;;  %10172 = vmatprep.mubr.f32.mxu0 %v13466_v7  ;;  %v8894_v3 = vld [vmem:[%s16725_s4 + $0x100] sm:$0xff] }
 0x323   : > { %9837 = vmatprep.mubr.f32.mxu1 %v13340_v52  ;;  %10606 = vmatpush3.bf16.msra.mxu1 %v10603_v55  ;;  %16916 = vst [vmem:[#allocation36_spill] sm:$0xff] %v13481_v31  ;;  %v4704_v52 = vld [vmem:[#allocation2 + $0x78] sm:$0xff]  ;;  %v13496_v47 = vpack.c.bf16 %v8895_v18, %v8894_v3 }
 0x324   : > { %10608 = vmatprep.subr.bf16.mxu1 %v10607_v19  ;;  %v13855_v31 = vld [vmem:[#allocation2 + $0x77] sm:$0xff] }
 0x325   : > { %10173 = vmatmul.mubr.f32.gmra.mrb[38].mxu0 %v13478_v37 }
 0x326   : > { %9838 = vmatmul.mubr.f32.gmra.mrb[60].mxu1 %v13360_v5  ;;  %10175 = vmatprep.mubr.f32.mxu0 %v13484_v34  ;;  %v13503_v5 = vshrl.u32 %v4129_v58, 7 }
 0x327   : > { %9840 = vmatprep.mubr.f32.mxu1 %v4704_v52  ;;  %10610 = vmatpush3.bf16.msra.mxu1 %v10607_v19  ;;  %v13587_v52 = vld [vmem:[#allocation2 + $0x41] sm:$0xff] }
 0x328   : > { %10612 = vmatprep.subr.bf16.mxu1 %v10611_v1  ;;  %v4131_v50 = vadd.s32 8, %v13503_v5  ;;  %v4133_v60 = vadd.s32 24, %v13503_v5  ;;  %v4137_v45 = vadd.s32 56, %v13503_v5  ;;  %v4139_v18 = vadd.s32 72, %v13503_v5 }
 0x329   : > { %10176 = vmatmul.mubr.f32.gmra.mrb[40].mxu0 %v13494_v51  ;;  %v4147_v44 = vadd.s32 136, %v13503_v5  ;;  %v4138_v17 = vadd.s32 64, %v13503_v5  ;;  %v4140_v54 = vadd.s32 80, %v13503_v5  ;;  %v4142_v57 = vadd.s32 96, %v13503_v5 }
 0x32a   : > { %9841 = vmatmul.mubr.f32.gmra.mrb[62].mxu1 %v13376_v11  ;;  %10178 = vmatprep.mubr.f32.mxu0 %v13499_v36  ;;  %v13520_v11 = vld [vmem:[#allocation2 + $0x100] sm:$0xff]  ;;  %v4215_v3 = vand.u32 15, %v4137_v45  ;;  %v16933_v45 = vmov 0 }
 0x32b   : > { %9843 = vmatprep.mubr.f32.mxu1 %v13413_v48  ;;  %10614 = vmatpush3.bf16.msra.mxu1 %v10611_v1  ;;  %v4173_v48 = vand.u32 15, %v4131_v50  ;;  %v16924_v1 = vmov 0  ;;  %v9015_v50 = vld [vmem:[%s16725_s4 + $0x348] sm:$0xff] }
 0x32c   : > { %10616 = vmatprep.subr.bf16.mxu1 %v13496_v47  ;;  %vm13602_vm4 = vcmp.ne.s32.totalorder %v4215_v3, 15 }
 0x32d   : > { %10179 = vmatmul.mubr.f32.gmra.mrb[42].mxu0 %v13507_v43  ;;  %vm13538_vm1 = vcmp.ne.s32.totalorder %v4173_v48, 15  ;;  %v4229_v48 = vand.u32 15, %v4139_v18  ;;  %v13641_v18 = vld [vmem:[#allocation2 + $0x69] sm:$0xff] }
 0x32e   : > { %9844 = vmatmul.mubr.f32.gmra.mrb[64].mxu1 %v13295_v42  ;;  %10181 = vmatprep.mubr.f32.mxu0 %v13514_v41  ;;  %v13528_v42 = vld [vmem:[#allocation2 + $0x19] sm:$0xff] }
 0x32f   : > { %9846 = vmatprep.mubr.f32.mxu1 %v13421_v14  ;;  %v9008_v14 = vld [vmem:[%s16725_s4 + $0x310] sm:$0xff]  ;;  %vm13625_vm5 = vcmp.ne.s32.totalorder %v4229_v48, 15  ;;  %v4145_v48 = vadd.s32 120, %v13503_v5 }
 0x330   : > { %v10747_v55 = vpack.c.bf16 %v9009_v8, %v9008_v14  ;;  %v4166_v14 = vand.u32 15, %v13503_v5  ;;  %v13609_v8 = vld [vmem:[#allocation2 + $0x51] sm:$0xff] }
 0x331   : > { %10182 = vmatmul.mubr.f32.gmra.mrb[44].mxu0 %v13520_v11 }
 0x332   : > { %9847 = vmatmul.mubr.f32.gmra.mrb[66].mxu1 %v13434_v27  ;;  %10184 = vmatprep.mubr.f32.mxu0 %v13431_v22  ;;  %v16918_v22 = vmov 0  ;;  %v4187_v27 = vand.u32 15, %v4133_v60  ;;  %v4141_v60 = vadd.s32 88, %v13503_v5  ;;  %vm13631_vm6 = vcmp.ne.s32.totalorder %v4166_v14, 0  ;;  %v8897_v14 = vld [vmem:[%s16725_s4 + $0x118] sm:$0xff] }
 0x333   : > { %9849 = vmatprep.mubr.f32.mxu1 %v13438_v16  ;;  %v16919_v22 = vsel %vm13538_vm1, 4294967295, %v16918_v22  ;;  %v13544_v16 = vld [vmem:[#allocation2 + $0x21] sm:$0xff]  ;;  %v16934_v45 = vsel %vm13631_vm6, 4294967295, %v16933_v45 }
 0x334   : > { %16920 = vst [vmem:[#allocation38_spill] sm:$0xff] %v16919_v22  ;;  %vm13559_vm2 = vcmp.ne.s32.totalorder %v4187_v27, 15  ;;  %v4132_v27 = vadd.s32 16, %v13503_v5  ;;  %16935 = vst [vmem:[#allocation43_spill] sm:$0xff] %v16934_v45  ;;  %v9043_v45 = vld [vmem:[%s16725_s4 + $0x3a8] sm:$0xff]  ;;  %v11420_v22 = vld [vmem:[#allocation2 + $0x98] sm:$0xff] }
 0x335   : > { %10185 = vmatmul.mubr.f32.gmra.mrb[46].mxu0 %v13369_v53  ;;  %v4135_v53 = vadd.s32 40, %v13503_v5  ;;  %v16922_v40 = vsel %vm13559_vm2, 4294967295, %v16921_v40 }
 0x336   : > { %9850 = vmatmul.mubr.f32.gmra.mrb[68].mxu1 %v13449_v9  ;;  %10219 = vmatprep.mubr.f32.mxu0 %v13528_v42  ;;  %v9010_v9 = vld [vmem:[%s16725_s4 + $0x320] sm:$0xff]  ;;  %16923 = vst [vmem:[#allocation39_spill] sm:$0xff] %v16922_v40  ;;  %v17079_v40 = vld [vmem:[#allocation13_spill] sm:$0xff] }
 0x337   : > { %9852 = vmatprep.mubr.f32.mxu1 %v13452_v62  ;;  %v13557_v62 = vld [vmem:[#allocation2 + $0x29] sm:$0xff]  ;;  %v4201_v19 = vand.u32 15, %v4135_v53  ;;  %v10751_v20 = vpack.c.bf16 %v9011_v29, %v9010_v9  ;;  %v13615_v53 = vld [vmem:[#allocation2 + $0x59] sm:$0xff]  ;;  %v16930_v9 = vmov 0  ;;  %v4243_v29 = vand.u32 15, %v4141_v60 }
 0x338   : > { %v16931_v9 = vsel %vm13625_vm5, 4294967295, %v16930_v9  ;;  %v8896_v60 = vld [vmem:[%s16725_s4 + $0x110] sm:$0xff] }
 0x339   : > { %10220 = vmatmul.mubr.msk.f32.vlgmr.msra.gmra.mrb[16].mxu0 %vm13538_vm1, %v13544_v16  ;;  %vm13581_vm3 = vcmp.ne.s32.totalorder %v4201_v19, 15  ;;  %16932 = vst [vmem:[#allocation42_spill] sm:$0xff] %v16931_v9  ;;  %v4143_v19 = vadd.s32 104, %v13503_v5  ;;  %vm13651_vm7 = vcmp.ne.s32.totalorder %v4243_v29, 15  ;;  %v4136_v29 = vadd.s32 48, %v13503_v5 }
 0x33a   : > { %9853 = vmatmul.mubr.f32.gmra.mrb[70].mxu1 %v13463_v25  ;;  %10746 = vmatpush3.bf16.msra.mxu0 %v13388_v4  ;;  %v13571_v4 = vld [vmem:[#allocation2 + $0x39] sm:$0xff]  ;;  %v9012_v25 = vld [vmem:[%s16725_s4 + $0x330] sm:$0xff]  ;;  %v16925_v1 = vsel %vm13581_vm3, 4294967295, %v16924_v1 }
 0x33b   : > { %9855 = vmatprep.mubr.f32.mxu1 %v13466_v7  ;;  %10222 = vmatprep.mubr.f32.mxu0 %v13557_v62  ;;  %v9013_v7 = vld [vmem:[%s16725_s4 + $0x338] sm:$0xff]  ;;  %16926 = vst [vmem:[#allocation40_spill] sm:$0xff] %v16925_v1 }
 0x33c   : > { %10748 = vmatprep.subr.bf16.mxu0 %v10747_v55  ;;  %v10755_v58 = vpack.c.bf16 %v9013_v7, %v9012_v25  ;;  %v4180_v25 = vand.u32 15, %v4132_v27  ;;  %v13635_v7 = vld [vmem:[#allocation2 + $0x61] sm:$0xff]  ;;  %v16939_v27 = vmov 0 }
 0x33d   : > { %10223 = vmatmul.mubr.msk.f32.gmra.mrb[18].mxu0 %vm13559_vm2, %v13566_v35 }
 0x33e   : > { %9856 = vmatmul.mubr.f32.gmra.mrb[72].mxu1 %v13478_v37  ;;  %10225 = vmatprep.mubr.f32.mxu0 %v13571_v4  ;;  %v13592_v37 = vld [vmem:[#allocation2 + $0x49] sm:$0xff]  ;;  %vm13664_vm8 = vcmp.ne.s32.totalorder %v4180_v25, 0  ;;  %v9021_v25 = vld [vmem:[%s16725_s4 + $0x378] sm:$0xff] }
 0x33f   : > { %9858 = vmatprep.mubr.f32.mxu1 %v13484_v34  ;;  %10750 = vmatpush3.bf16.msra.mxu0 %v10747_v55  ;;  %v16927_v34 = vmov 0  ;;  %v9016_v55 = vld [vmem:[%s16725_s4 + $0x350] sm:$0xff]  ;;  %v16940_v27 = vsel %vm13664_vm8, 4294967295, %v16939_v27 }
 0x340   : > { %10752 = vmatprep.subr.bf16.mxu0 %v10751_v20  ;;  %v16928_v34 = vsel %vm13602_vm4, 4294967295, %v16927_v34 }
 0x341   : > { %10226 = vmatmul.mubr.msk.f32.gmra.mrb[20].mxu0 %vm13581_vm3, %v13587_v52  ;;  %16929 = vst [vmem:[#allocation41_spill] sm:$0xff] %v16928_v34 }
 0x342   : > { %9859 = vmatmul.mubr.f32.gmra.mrb[74].mxu1 %v13494_v51  ;;  %10228 = vmatprep.mubr.f32.mxu0 %v13592_v37  ;;  %v10759_v51 = vpack.c.bf16 %v9015_v50, %v9014_v13  ;;  %v16936_v13 = vmov 0  ;;  %v4257_v50 = vand.u32 15, %v4143_v19 }
 0x343   : > { %9861 = vmatprep.mubr.f32.mxu1 %v13499_v36  ;;  %10754 = vmatpush3.bf16.msra.mxu0 %v10751_v20  ;;  %v9017_v36 = vld [vmem:[%s16725_s4 + $0x358] sm:$0xff]  ;;  %v4610_v20 = vld [vmem:[#allocation2 + $0x7] sm:$0xff]  ;;  %v16937_v13 = vsel %vm13651_vm7, 4294967295, %v16936_v13 }
 0x344   : > { %10756 = vmatprep.subr.bf16.mxu0 %v10755_v58  ;;  %v10763_v3 = vpack.c.bf16 %v9017_v36, %v9016_v55  ;;  %16938 = vst [vmem:[#allocation44_spill] sm:$0xff] %v16937_v13  ;;  %v13668_v36 = vld [vmem:[#allocation2 + $0x71] sm:$0xff]  ;;  %vm13683_vm9 = vcmp.ne.s32.totalorder %v4257_v50, 15  ;;  %v16944_v50 = vmov 0 }
 0x345   : > { %10229 = vmatmul.mubr.msk.f32.gmra.mrb[22].mxu0 %vm13602_vm4, %v13609_v8 }
 0x346   : > { %9862 = vmatmul.mubr.f32.gmra.mrb[76].mxu1 %v13507_v43  ;;  %10231 = vmatprep.mubr.f32.mxu0 %v13615_v53  ;;  %v4134_v43 = vadd.s32 32, %v13503_v5 }
 0x347   : > { %9864 = vmatprep.mubr.f32.mxu1 %v13514_v41  ;;  %10758 = vmatpush3.bf16.msra.mxu0 %v10755_v58  ;;  %v9018_v41 = vld [vmem:[%s16725_s4 + $0x360] sm:$0xff]  ;;  %v9019_v58 = vld [vmem:[%s16725_s4 + $0x368] sm:$0xff] }
 0x348   : > { %10760 = vmatprep.subr.bf16.mxu0 %v10759_v51  ;;  %v4194_v55 = vand.u32 15, %v4134_v43  ;;  %v10767_v19 = vpack.c.bf16 %v9019_v58, %v9018_v41  ;;  %v4612_v43 = vld [vmem:[#allocation2 + $0x17] sm:$0xff]  ;;  %v16941_v41 = vmov 0  ;;  %v4271_v58 = vand.u32 15, %v4145_v48 }
 0x349   : > { %10232 = vmatmul.mubr.msk.f32.gmra.mrb[24].mxu0 %vm13625_vm5, %v13635_v7  ;;  %v16942_v41 = vsel %vm13683_vm9, 4294967295, %v16941_v41  ;;  %v4208_v48 = vand.u32 15, %v4136_v29  ;;  %v9039_v29 = vld [vmem:[%s16725_s4 + $0x388] sm:$0xff] }
 0x34a   : > { %9865 = vmatmul.mubr.f32.gmra.mrb[78].mxu1 %v13520_v11  ;;  %10234 = vmatprep.mubr.f32.mxu0 %v13641_v18  ;;  %v4611_v11 = vld [vmem:[#allocation2 + $0xf] sm:$0xff]  ;;  %16943 = vst [vmem:[#allocation45_spill] sm:$0xff] %v16942_v41  ;;  %vm13696_vm10 = vcmp.ne.s32.totalorder %v4194_v55, 0  ;;  %v9038_v55 = vld [vmem:[%s16725_s4 + $0x380] sm:$0xff]  ;;  %vm13718_vm11 = vcmp.ne.s32.totalorder %v4271_v58, 15 }
 0x34b   : > { %9899 = vmatprep.mubr.msk.f32.mxu1 %vm13631_vm6, %v4610_v20  ;;  %10762 = vmatpush3.bf16.msra.mxu0 %v10759_v51  ;;  %v10619_v20 = vpack.c.bf16 %v8897_v14, %v8896_v60  ;;  %v9020_v51 = vld [vmem:[%s16725_s4 + $0x370] sm:$0xff]  ;;  %v8898_v60 = vld [vmem:[%s16725_s4 + $0x120] sm:$0xff]  ;;  %v8899_v14 = vld [vmem:[%s16725_s4 + $0x128] sm:$0xff]  ;;  %v16945_v50 = vsel %vm13696_vm10, 4294967295, %v16944_v50  ;;  %vm13732_vm12 = vcmp.ne.s32.totalorder %v4208_v48, 0  ;;  %v13739_v0 = vpack.c.bf16 %v9039_v29, %v9038_v55 }
 0x34c   : > { %10764 = vmatprep.subr.bf16.mxu0 %v10763_v3  ;;  %v10771_v6 = vpack.c.bf16 %v9021_v25, %v9020_v51  ;;  %v16948_v51 = vmov 0  ;;  %v4285_v25 = vand.u32 15, %v4147_v44  ;;  %v4222_v44 = vand.u32 15, %v4138_v17  ;;  %v13749_v17 = vld [vmem:[#allocation2 + $0x37] sm:$0xff]  ;;  %v6867_v58 = vld [vmem:[#allocation2 + $0xc8] sm:$0xff] }
 0x34d   : > { %10235 = vmatmul.mubr.msk.f32.gmra.mrb[26].mxu0 %vm13651_vm7, %v13668_v36  ;;  %v16949_v51 = vsel %vm13718_vm11, 4294967295, %v16948_v51  ;;  %v4151_v29 = vadd.s32 168, %v13503_v5 }
 0x34e   : > { %9900 = vmatmul.mubr.f32.vlgmr.msra.gmra.mrb[48].mxu1 %v4611_v11  ;;  %10237 = vmatprep.mubr.f32.mxu0 %v13674_v38  ;;  %v4613_v11 = vld [vmem:[#allocation2 + $0x1f] sm:$0xff]  ;;  %16950 = vst [vmem:[#allocation48_spill] sm:$0xff] %v16949_v51  ;;  %vm13752_vm13 = vcmp.ne.s32.totalorder %v4285_v25, 15  ;;  %vm13766_vm14 = vcmp.ne.s32.totalorder %v4222_v44, 0  ;;  %v4153_v44 = vadd.s32 184, %v13503_v5 }
 0x34f   : > { %9902 = vmatprep.mubr.msk.f32.mxu1 %vm13664_vm8, %v4612_v43  ;;  %10766 = vmatpush3.bf16.msra.mxu0 %v10763_v3  ;;  %v13707_v43 = vld [vmem:[#allocation2 + $0x89] sm:$0xff]  ;;  %v10623_v3 = vpack.c.bf16 %v8899_v14, %v8898_v60  ;;  %v4149_v60 = vadd.s32 152, %v13503_v5  ;;  %v13961_v51 = vld [vmem:[#allocation2 + $0xbf] sm:$0xff] }
 0x350   : > { %10618 = vmatpush3.bf16.msra.mxu1 %v13496_v47  ;;  %10768 = vmatprep.subr.bf16.mxu0 %v10767_v19  ;;  %16947 = vst [vmem:[#allocation47_spill] sm:$0xff] %v13707_v43  ;;  %v13715_v47 = vld [vmem:[#allocation2 + $0x27] sm:$0xff]  ;;  %v8900_v14 = vld [vmem:[%s16725_s4 + $0x130] sm:$0xff] }
 0x351   : > { %10238 = vmatmul.mubr.msk.f32.gmra.mrb[28].mxu0 %vm13683_vm9, %v13700_v33  ;;  %10620 = vmatprep.subr.bf16.mxu1 %v10619_v20  ;;  %v10627_v48 = vpack.c.bf16 %v8901_v32, %v8900_v14  ;;  %v4299_v55 = vand.u32 15, %v4149_v60  ;;  %v8903_v32 = vld [vmem:[%s16725_s4 + $0x148] sm:$0xff]  ;;  %v4236_v60 = vand.u32 15, %v4140_v54  ;;  %v16960_v54 = vmov 0 }
 0x352   : > { %9903 = vmatmul.mubr.f32.gmra.mrb[50].mxu1 %v4613_v11  ;;  %10240 = vmatprep.mubr.f32.mxu0 %v13707_v43  ;;  %v13736_v11 = vld [vmem:[#allocation2 + $0x91] sm:$0xff]  ;;  %v6188_v14 = vld [vmem:[#allocation2 + $0xa1] sm:$0xff]  ;;  %v10631_v23 = vpack.c.bf16 %v8903_v32, %v8902_v28  ;;  %v4144_v32 = vadd.s32 112, %v13503_v5 }
 0x353   : > { %9905 = vmatprep.mubr.msk.f32.mxu1 %vm13696_vm10, %v13715_v47  ;;  %10770 = vmatpush3.bf16.msra.mxu0 %v10767_v19  ;;  %16953 = vst [vmem:[#allocation49_spill] sm:$0xff] %v13736_v11  ;;  %v13746_v19 = vld [vmem:[#allocation2 + $0x99] sm:$0xff]  ;;  %vm13779_vm15 = vcmp.ne.s32.totalorder %v4299_v55, 15  ;;  %vm13793_vm0 = vcmp.ne.s32.totalorder %v4236_v60, 0  ;;  %v4250_v55 = vand.u32 15, %v4142_v57  ;;  %v16966_v60 = vmov 0 }
 0x354   : > { %10622 = vmatpush3.bf16.msra.mxu1 %v10619_v20  ;;  %10772 = vmatprep.subr.bf16.mxu0 %v10771_v6  ;;  %16954 = vst [vmem:[#allocation50_spill] sm:$0xff] %v13746_v19  ;;  %v16955_v20 = vmov 0  ;;  %v16961_v54 = vsel %vm13779_vm15, 4294967295, %v16960_v54  ;;  %v8905_v28 = vld [vmem:[%s16725_s4 + $0x158] sm:$0xff]  ;;  %v4327_v57 = vand.u32 15, %v4153_v44  ;;  %v6192_v44 = vld [vmem:[#allocation2 + $0xc1] sm:$0xff] }
 0x355   : > { %10241 = vmatmul.mubr.msk.f32.gmra.mrb[30].mxu0 %vm13718_vm11, %v13736_v11  ;;  %10624 = vmatprep.subr.bf16.mxu1 %v10623_v3  ;;  %v16956_v20 = vsel %vm13752_vm13, 4294967295, %v16955_v20  ;;  %16962 = vst [vmem:[#allocation52_spill] sm:$0xff] %v16961_v54  ;;  %v10635_v61 = vpack.c.bf16 %v8905_v28, %v8904_v12  ;;  %v8907_v12 = vld [vmem:[%s16725_s4 + $0x168] sm:$0xff]  ;;  %v4146_v28 = vadd.s32 128, %v13503_v5 }
 0x356   : > { %9906 = vmatmul.mubr.f32.gmra.mrb[52].mxu1 %v13741_v2  ;;  %10243 = vmatprep.mubr.f32.mxu0 %v13746_v19  ;;  %16957 = vst [vmem:[#allocation51_spill] sm:$0xff] %v16956_v20  ;;  %v10639_v63 = vpack.c.bf16 %v8907_v12, %v8906_v39  ;;  %vm13831_vm11 = vcmp.ne.s32.totalorder %v4327_v57, 15  ;;  %v8909_v39 = vld [vmem:[%s16725_s4 + $0x178] sm:$0xff]  ;;  %v4148_v12 = vadd.s32 144, %v13503_v5  ;;  %v4154_v19 = vadd.s32 192, %v13503_v5  ;;  %v13937_v11 = vld [vmem:[#allocation2 + $0xaf] sm:$0xff] }
 0x357   : > { %9908 = vmatprep.mubr.msk.f32.mxu1 %vm13732_vm12, %v13749_v17  ;;  %10774 = vmatpush3.bf16.msra.mxu0 %v10771_v6  ;;  %v13777_v6 = vld [vmem:[#allocation2 + $0x47] sm:$0xff]  ;;  %v4278_v57 = vand.u32 15, %v4146_v28  ;;  %v10643_v56 = vpack.c.bf16 %v8909_v39, %v8908_v59  ;;  %v4150_v39 = vadd.s32 160, %v13503_v5  ;;  %v13918_v20 = vld [vmem:[#allocation2 + $0x9f] sm:$0xff]  ;;  %v13985_v33 = vld [vmem:[#allocation2 + $0xcf] sm:$0xff] }
 0x358   : > { %10626 = vmatpush3.bf16.msra.mxu1 %v10623_v3  ;;  %10776 = vmatprep.subr.bf16.mxu0 %v13739_v0  ;;  %v4313_v3 = vand.u32 15, %v4151_v29  ;;  %v6190_v29 = vld [vmem:[#allocation2 + $0xb1] sm:$0xff]  ;;  %v8927_v59 = vld [vmem:[%s16725_s4 + $0x188] sm:$0xff] }
 0x359   : > { %10244 = vmatmul.mubr.msk.f32.gmra.mrb[32].mxu0 %vm13752_vm13, %v6188_v14  ;;  %10628 = vmatprep.subr.bf16.mxu1 %v10627_v48  ;;  %v13798_v14 = vld [vmem:[#allocation2 + $0x4f] sm:$0xff] }
 0x35a   : > { %9909 = vmatmul.mubr.f32.gmra.mrb[54].mxu1 %v13772_v49  ;;  %10246 = vmatprep.mubr.f32.mxu0 %v6189_v30  ;;  %v16963_v30 = vmov 0  ;;  %vm13805_vm13 = vcmp.ne.s32.totalorder %v4313_v3, 15  ;;  %v4264_v3 = vand.u32 15, %v4144_v32 }
 0x35b   : > { %9911 = vmatprep.mubr.msk.f32.mxu1 %vm13766_vm14, %v13777_v6  ;;  %v16964_v30 = vsel %vm13793_vm0, 4294967295, %v16963_v30  ;;  %v16967_v60 = vsel %vm13805_vm13, 4294967295, %v16966_v60 }
 0x35c   : > { %16965 = vst [vmem:[#allocation53_spill] sm:$0xff] %v16964_v30  ;;  %10630 = vmatpush3.bf16.msra.mxu1 %v10627_v48  ;;  %16968 = vst [vmem:[#allocation54_spill] sm:$0xff] %v16967_v60  ;;  %v4155_v48 = vadd.s32 200, %v13503_v5  ;;  %v13880_v60 = vpack.c.bf16 %v8927_v59, %v8926_v46  ;;  %v4306_v46 = vand.u32 15, %v4150_v39  ;;  %v6198_v59 = vld [vmem:[#allocation2 + $0xf1] sm:$0xff] }
 0x35d   : > { %10247 = vmatmul.mubr.msk.f32.gmra.mrb[34].mxu0 %vm13779_vm15, %v6190_v29  ;;  %10632 = vmatprep.subr.bf16.mxu1 %v10631_v23  ;;  %vm13819_vm15 = vcmp.ne.s32.totalorder %v4250_v55, 0  ;;  %v13824_v29 = vld [vmem:[#allocation2 + $0x5f] sm:$0xff]  ;;  %v16971_v55 = vmov 0 }
 0x35e   : > { %9912 = vmatmul.mubr.f32.gmra.mrb[56].mxu1 %v13798_v14  ;;  %10249 = vmatprep.mubr.f32.mxu0 %v6191_v26  ;;  %v16972_v55 = vsel %vm13831_vm11, 4294967295, %v16971_v55  ;;  %v4341_v32 = vand.u32 15, %v4155_v48  ;;  %v6194_v48 = vld [vmem:[#allocation2 + $0xd1] sm:$0xff]  ;;  %vm13913_vm4 = vcmp.ne.s32.totalorder %v4306_v46, 0  ;;  %v16991_v46 = vmov 0  ;;  %v17055_v26 = vld [vmem:[#allocation12_spill] sm:$0xff] }
 0x35f   : > { %9914 = vmatprep.mubr.msk.f32.mxu1 %vm13793_vm0, %v13803_v21  ;;  %16973 = vst [vmem:[#allocation55_spill] sm:$0xff] %v16972_v55  ;;  %v6197_v55 = vld [vmem:[#allocation2 + $0xe9] sm:$0xff]  ;;  %v9053_v30 = vld [vmem:[%s16725_s4 + $0x3f8] sm:$0xff] }
 0x360   : > { %10634 = vmatpush3.bf16.msra.mxu1 %v10631_v23  ;;  %v4157_v23 = vadd.s32 216, %v13503_v5  ;;  %vm13857_vm9 = vcmp.ne.s32.totalorder %v4341_v32, 15  ;;  %v4292_v32 = vand.u32 15, %v4148_v12  ;;  %v16981_v12 = vmov 0 }
 0x361   : > { %10250 = vmatmul.mubr.msk.f32.gmra.mrb[36].mxu0 %vm13805_vm13, %v6192_v44  ;;  %10636 = vmatprep.subr.bf16.mxu1 %v10635_v61  ;;  %vm13845_vm13 = vcmp.ne.s32.totalorder %v4264_v3, 0  ;;  %v13850_v44 = vld [vmem:[#allocation2 + $0x6f] sm:$0xff]  ;;  %v16976_v3 = vmov 0 }
 0x362   : > { %9915 = vmatmul.mubr.f32.gmra.mrb[58].mxu1 %v13824_v29  ;;  %10252 = vmatprep.mubr.f32.mxu0 %v6193_v24  ;;  %v16977_v3 = vsel %vm13857_vm9, 4294967295, %v16976_v3  ;;  %v4355_v28 = vand.u32 15, %v4157_v23  ;;  %v6196_v23 = vld [vmem:[#allocation2 + $0xe1] sm:$0xff] }
 0x363   : > { %9917 = vmatprep.mubr.msk.f32.mxu1 %vm13819_vm15, %v13829_v10  ;;  %16978 = vst [vmem:[#allocation56_spill] sm:$0xff] %v16977_v3  ;;  %v4152_v3 = vadd.s32 176, %v13503_v5 }
 0x364   : > { %10638 = vmatpush3.bf16.msra.mxu1 %v10635_v61  ;;  %v4159_v61 = vadd.s32 232, %v13503_v5  ;;  %vm13885_vm7 = vcmp.ne.s32.totalorder %v4355_v28, 15  ;;  %v6199_v28 = vld [vmem:[#allocation2 + $0xf9] sm:$0xff] }
 0x365   : > { %10253 = vmatmul.mubr.msk.f32.gmra.mrb[38].mxu0 %vm13831_vm11, %v6194_v48  ;;  %10640 = vmatprep.subr.bf16.mxu1 %v10639_v63  ;;  %vm13871_vm11 = vcmp.ne.s32.totalorder %v4278_v57, 0  ;;  %v13876_v48 = vld [vmem:[#allocation2 + $0x7f] sm:$0xff]  ;;  %v13883_v57 = vld [vmem:[#allocation2 + $0x87] sm:$0xff]  ;;  %v16982_v12 = vsel %vm13885_vm7, 4294967295, %v16981_v12 }
 0x366   : > { %9918 = vmatmul.mubr.f32.gmra.mrb[60].mxu1 %v13850_v44  ;;  %10255 = vmatprep.mubr.f32.mxu0 %v6195_v15  ;;  %16983 = vst [vmem:[#allocation57_spill] sm:$0xff] %v16982_v12  ;;  %v4369_v54 = vand.u32 15, %v4159_v61  ;;  %v13904_v61 = vld [vmem:[#allocation2 + $0x97] sm:$0xff]  ;;  %v6200_v12 = vld [vmem:[#allocation2 + $0x101] sm:$0xff] }
 0x367   : > { %9920 = vmatprep.mubr.msk.f32.mxu1 %vm13845_vm13, %v13855_v31 }
 0x368   : > { %10642 = vmatpush3.bf16.msra.mxu1 %v10639_v63  ;;  %v4161_v63 = vadd.s32 248, %v13503_v5  ;;  %vm13906_vm5 = vcmp.ne.s32.totalorder %v4369_v54, 15  ;;  %v6201_v54 = vld [vmem:[#allocation2 + $0x109] sm:$0xff] }
 0x369   : > { %10256 = vmatmul.mubr.msk.f32.gmra.mrb[40].mxu0 %vm13857_vm9, %v6196_v23  ;;  %10644 = vmatprep.subr.bf16.mxu1 %v10643_v56  ;;  %vm13893_vm9 = vcmp.ne.s32.totalorder %v4292_v32, 0  ;;  %v16984_v23 = vmov 0  ;;  %v16986_v32 = vmov 0 }
 0x36a   : > { %9921 = vmatmul.mubr.f32.gmra.mrb[62].mxu1 %v13876_v48  ;;  %10258 = vmatprep.mubr.f32.mxu0 %v6197_v55  ;;  %v16985_v23 = vsel %vm13893_vm9, 4294967295, %v16984_v23  ;;  %v13898_v55 = vld [vmem:[#allocation2 + $0x8f] sm:$0xff]  ;;  %v16987_v32 = vsel %vm13906_vm5, 4294967295, %v16986_v32  ;;  %v4383_v39 = vand.u32 15, %v4161_v63  ;;  %v13923_v63 = vld [vmem:[#allocation2 + $0xa7] sm:$0xff] }
 0x36b   : > { %9923 = vmatprep.mubr.msk.f32.mxu1 %vm13871_vm11, %v13883_v57  ;;  %16988 = vst [vmem:[#allocation58_spill] sm:$0xff] %v16987_v32  ;;  %v4156_v32 = vadd.s32 208, %v13503_v5 }
 0x36c   : > { %10646 = vmatpush3.bf16.msra.mxu1 %v10643_v56 }
 0x36d   : > { %10259 = vmatmul.mubr.msk.f32.gmra.mrb[42].mxu0 %vm13885_vm7, %v6198_v59  ;;  %10648 = vmatprep.subr.bf16.mxu1 %v13880_v60  ;;  %v4320_v59 = vand.u32 15, %v4152_v3  ;;  %vm13925_vm7 = vcmp.ne.s32.totalorder %v4383_v39, 15  ;;  %v9040_v39 = vld [vmem:[%s16725_s4 + $0x390] sm:$0xff] }
 0x36e   : > { %9924 = vmatmul.mubr.f32.gmra.mrb[64].mxu1 %v13898_v55  ;;  %10261 = vmatprep.mubr.f32.mxu0 %v6199_v28  ;;  %v16992_v46 = vsel %vm13925_vm7, 4294967295, %v16991_v46  ;;  %v4334_v28 = vand.u32 15, %v4154_v19  ;;  %v5550_v3 = vld [vmem:[#allocation2 + $0xcf] sm:$0xff] }
 0x36f   : > { %9926 = vmatprep.mubr.msk.f32.mxu1 %vm13893_vm9, %v13904_v61  ;;  %16993 = vst [vmem:[#allocation59_spill] sm:$0xff] %v16992_v46  ;;  %vm13932_vm9 = vcmp.ne.s32.totalorder %v4320_v59, 0  ;;  %v9041_v59 = vld [vmem:[%s16725_s4 + $0x398] sm:$0xff]  ;;  %v4158_v46 = vadd.s32 224, %v13503_v5  ;;  %v11421_v19 = vld [vmem:[#allocation2 + $0xb0] sm:$0xff] }
 0x370   : > { %v10779_v43 = vpack.c.bf16 %v9041_v59, %v9040_v39  ;;  %v4160_v39 = vadd.s32 240, %v13503_v5 }
 0x371   : > { %10262 = vmatmul.mubr.msk.f32.gmra.mrb[44].mxu0 %vm13906_vm5, %v6200_v12  ;;  %v6202_v12 = vld [vmem:[#allocation2 + $0x111] sm:$0xff] }
 0x372   : > { %9927 = vmatmul.mubr.f32.gmra.mrb[66].mxu1 %v13918_v20  ;;  %10264 = vmatprep.mubr.f32.mxu0 %v6201_v54  ;;  %v13948_v54 = vld [vmem:[#allocation2 + $0xb7] sm:$0xff]  ;;  %v4376_v5 = vand.u32 15, %v4160_v39  ;;  %v14029_v39 = vld [vmem:[#allocation2 + $0xef] sm:$0xff] }
 0x373   : > { %9929 = vmatprep.mubr.msk.f32.mxu1 %vm13913_vm4, %v13923_v63 }
 0x375   : > { %10265 = vmatmul.mubr.msk.f32.gmra.mrb[46].mxu0 %vm13925_vm7, %v6202_v12  ;;  %vm13956_vm7 = vcmp.ne.s32.totalorder %v4334_v28, 0  ;;  %v4348_v12 = vand.u32 15, %v4156_v32  ;;  %v13971_v28 = vld [vmem:[#allocation2 + $0xc7] sm:$0xff]  ;;  %v4362_v32 = vand.u32 15, %v4158_v46  ;;  %v14007_v46 = vld [vmem:[#allocation2 + $0xdf] sm:$0xff] }
 0x376   : > { %9930 = vmatmul.mubr.f32.gmra.mrb[68].mxu1 %v13937_v11  ;;  %10299 = vmatprep.mubr.msk.f32.mxu0 %vm13631_vm6, %v13715_v47  ;;  %v9042_v47 = vld [vmem:[%s16725_s4 + $0x3a0] sm:$0xff] }
 0x377   : > { %9932 = vmatprep.mubr.msk.f32.mxu1 %vm13932_vm9, %v13948_v54  ;;  %vm13980_vm6 = vcmp.ne.s32.totalorder %v4348_v12, 0  ;;  %v10783_v59 = vpack.c.bf16 %v9043_v45, %v9042_v47  ;;  %v13995_v12 = vld [vmem:[#allocation2 + $0xd7] sm:$0xff]  ;;  %v9047_v47 = vld [vmem:[%s16725_s4 + $0x3c8] sm:$0xff] }
 0x379   : > { %10300 = vmatmul.mubr.f32.vlgmr.msra.gmra.mrb[16].mxu0 %v13741_v2 }
 0x37a   : > { %9933 = vmatmul.mubr.f32.gmra.mrb[70].mxu1 %v13961_v51  ;;  %10778 = vmatpush3.bf16.msra.mxu0 %v13739_v0  ;;  %v9044_v0 = vld [vmem:[%s16725_s4 + $0x3b0] sm:$0xff] }
 0x37b   : > { %9935 = vmatprep.mubr.msk.f32.mxu1 %vm13956_vm7, %v13971_v28  ;;  %10302 = vmatprep.mubr.msk.f32.mxu0 %vm13664_vm8, %v13749_v17  ;;  %v9045_v17 = vld [vmem:[%s16725_s4 + $0x3b8] sm:$0xff]  ;;  %vm14003_vm8 = vcmp.ne.s32.totalorder %v4362_v32, 0 }
 0x37c   : > { %10780 = vmatprep.subr.bf16.mxu0 %v10779_v43  ;;  %v10787_v45 = vpack.c.bf16 %v9045_v17, %v9044_v0  ;;  %v9048_v0 = vld [vmem:[%s16725_s4 + $0x3d0] sm:$0xff] }
 0x37d   : > { %10303 = vmatmul.mubr.f32.gmra.mrb[18].mxu0 %v13772_v49  ;;  %v11426_v49 = vld [vmem:[#allocation2 + $0xc8] sm:$0xff] }
 0x37e   : > { %9936 = vmatmul.mubr.f32.gmra.mrb[72].mxu1 %v13985_v33  ;;  %10305 = vmatprep.mubr.msk.f32.mxu0 %vm13696_vm10, %v13777_v6  ;;  %v9046_v6 = vld [vmem:[%s16725_s4 + $0x3c0] sm:$0xff]  ;;  %vm14025_vm10 = vcmp.ne.s32.totalorder %v4376_v5, 0 }
 0x37f   : > { %9938 = vmatprep.mubr.msk.f32.mxu1 %vm13980_vm6, %v13995_v12  ;;  %10782 = vmatpush3.bf16.msra.mxu0 %v10779_v43  ;;  %v14017_v43 = vld [vmem:[#allocation2 + $0xe7] sm:$0xff]  ;;  %v10791_v32 = vpack.c.bf16 %v9047_v47, %v9046_v6  ;;  %v14047_v5 = vld [vmem:[#allocation2 + $0xff] sm:$0xff] }
 0x380   : > { %10784 = vmatprep.subr.bf16.mxu0 %v10783_v59  ;;  %v9050_v6 = vld [vmem:[%s16725_s4 + $0x3e0] sm:$0xff] }
 0x381   : > { %10306 = vmatmul.mubr.f32.gmra.mrb[20].mxu0 %v13798_v14 }
 0x382   : > { %9939 = vmatmul.mubr.f32.gmra.mrb[74].mxu1 %v14007_v46  ;;  %10308 = vmatprep.mubr.msk.f32.mxu0 %vm13732_vm12, %v13803_v21  ;;  %v9049_v21 = vld [vmem:[%s16725_s4 + $0x3d8] sm:$0xff] }
 0x383   : > { %9941 = vmatprep.mubr.msk.f32.mxu1 %vm14003_vm8, %v14017_v43  ;;  %10786 = vmatpush3.bf16.msra.mxu0 %v10783_v59  ;;  %v14039_v59 = vld [vmem:[#allocation2 + $0xf7] sm:$0xff]  ;;  %v10795_v17 = vpack.c.bf16 %v9049_v21, %v9048_v0 }
 0x384   : > { %10788 = vmatprep.subr.bf16.mxu0 %v10787_v45  ;;  %v5190_v0 = vld [vmem:[#allocation2 + $0x11] sm:$0xff] }
 0x385   : > { %10309 = vmatmul.mubr.f32.gmra.mrb[22].mxu0 %v13824_v29  ;;  %v5189_v29 = vld [vmem:[#allocation2 + $0x9] sm:$0xff] }
 0x386   : > { %9942 = vmatmul.mubr.f32.gmra.mrb[76].mxu1 %v14029_v39  ;;  %10311 = vmatprep.mubr.msk.f32.mxu0 %vm13766_vm14, %v13829_v10  ;;  %v9051_v10 = vld [vmem:[%s16725_s4 + $0x3e8] sm:$0xff] }
 0x387   : > { %9944 = vmatprep.mubr.msk.f32.mxu1 %vm14025_vm10, %v14039_v59  ;;  %10790 = vmatpush3.bf16.msra.mxu0 %v10787_v45  ;;  %v8928_v45 = vld [vmem:[%s16725_s4 + $0x190] sm:$0xff]  ;;  %v10799_v47 = vpack.c.bf16 %v9051_v10, %v9050_v6  ;;  %v9054_v10 = vld [vmem:[%s16725_s4 + $0x400] sm:$0xff] }
 0x388   : > { %10792 = vmatprep.subr.bf16.mxu0 %v10791_v32 }
 0x389   : > { %10312 = vmatmul.mubr.f32.gmra.mrb[24].mxu0 %v13850_v44  ;;  %v8929_v44 = vld [vmem:[%s16725_s4 + $0x198] sm:$0xff] }
 0x38a   : > { %9945 = vmatmul.mubr.f32.gmra.mrb[78].mxu1 %v14047_v5  ;;  %10314 = vmatprep.mubr.msk.f32.mxu0 %vm13793_vm0, %v13855_v31  ;;  %v10651_v21 = vpack.c.bf16 %v8929_v44, %v8928_v45  ;;  %v9052_v31 = vld [vmem:[%s16725_s4 + $0x3f0] sm:$0xff]  ;;  %v9055_v45 = vld [vmem:[%s16725_s4 + $0x408] sm:$0xff] }
 0x38b   : > { %9979 = vmatprep.mubr.f32.mxu1 %v5189_v29  ;;  %10794 = vmatpush3.bf16.msra.mxu0 %v10791_v32  ;;  %v8931_v32 = vld [vmem:[%s16725_s4 + $0x1a8] sm:$0xff]  ;;  %v10803_v29 = vpack.c.bf16 %v9053_v30, %v9052_v31  ;;  %v8932_v30 = vld [vmem:[%s16725_s4 + $0x1b0] sm:$0xff]  ;;  %v17010_v31 = vld [vmem:[#allocation48_spill] sm:$0xff] }
 0x38c   : > { %10796 = vmatprep.subr.bf16.mxu0 %v10795_v17 }
 0x38d   : > { %10315 = vmatmul.mubr.f32.gmra.mrb[26].mxu0 %v13876_v48  ;;  %v8930_v48 = vld [vmem:[%s16725_s4 + $0x1a0] sm:$0xff] }
 0x38e   : > { %9980 = vmatmul.mubr.msk.f32.vlgmr.msra.gmra.mrb[48].mxu1 %vm13538_vm1, %v5190_v0  ;;  %10317 = vmatprep.mubr.msk.f32.mxu0 %vm13819_vm15, %v13883_v57  ;;  %v10655_v57 = vpack.c.bf16 %v8931_v32, %v8930_v48  ;;  %vm17011_vm1 = vnez %v17010_v31  ;;  %v17014_v48 = vld [vmem:[#allocation51_spill] sm:$0xff]  ;;  %v17016_v32 = vld [vmem:[#allocation50_spill] sm:$0xff]  ;;  %v17066_v31 = vld [vmem:[#allocation28_spill] sm:$0xff] }
 0x38f   : > { %9982 = vmatprep.mubr.f32.mxu1 %v13528_v42  ;;  %10798 = vmatpush3.bf16.msra.mxu0 %v10795_v17  ;;  %v8934_v17 = vld [vmem:[%s16725_s4 + $0x1c0] sm:$0xff] }
 0x390   : > { %10650 = vmatpush3.bf16.msra.mxu1 %v13880_v60  ;;  %10800 = vmatprep.subr.bf16.mxu0 %v10799_v47  ;;  %v8933_v60 = vld [vmem:[%s16725_s4 + $0x1b8] sm:$0xff] }
 0x391   : > { %10318 = vmatmul.mubr.f32.gmra.mrb[28].mxu0 %v13898_v55  ;;  %v14087_v6 = vpop.f32.mrb[16].mxu1  ;;  %10652 = vmatprep.subr.bf16.mxu1 %v10651_v21 }
 0x392   : > { %9983 = vmatmul.mubr.msk.f32.gmra.mrb[50].mxu1 %vm13559_vm2, %v13544_v16  ;;  %10320 = vmatprep.mubr.msk.f32.mxu0 %vm13845_vm13, %v13904_v61  ;;  %v14101_v42 = vpop.f32.mrb[17].mxu1  ;;  %v14110_v16 = vpack.c.bf16 %v9055_v45, %v9054_v10  ;;  %v10659_v61 = vpack.c.bf16 %v8933_v60, %v8932_v30  ;;  %vm17005_vm2 = vnez %v16985_v23  ;;  %v17017_v10 = vld [vmem:[#allocation52_spill] sm:$0xff]  ;;  %v5209_v45 = vld [vmem:[#allocation2 + $0xa9] sm:$0xff]  ;;  %v5210_v60 = vld [vmem:[#allocation2 + $0xb1] sm:$0xff] }
 0x393   : > { %9985 = vmatprep.mubr.f32.mxu1 %v13557_v62  ;;  %10802 = vmatpush3.bf16.msra.mxu0 %v10799_v47  ;;  %v6847_v30 = vld [vmem:[#allocation2 + $0x28] sm:$0xff] }
 0x394   : > { %10654 = vmatpush3.bf16.msra.mxu1 %v10651_v21  ;;  %10804 = vmatprep.subr.bf16.mxu0 %v10803_v29 }
 0x395   : > { %10321 = vmatmul.mubr.f32.gmra.mrb[30].mxu0 %v13918_v20  ;;  %v14113_v55 = vpop.f32.mrb[18].mxu1  ;;  %10656 = vmatprep.subr.bf16.mxu1 %v10655_v57  ;;  %v8935_v20 = vld [vmem:[%s16725_s4 + $0x1c8] sm:$0xff] }
 0x396   : > { %9986 = vmatmul.mubr.msk.f32.gmra.mrb[52].mxu1 %vm13581_vm3, %v13566_v35  ;;  %10323 = vmatprep.mubr.msk.f32.mxu0 %vm13871_vm11, %v13923_v63  ;;  %v14121_v62 = vpop.f32.mrb[19].mxu1  ;;  %v10663_v63 = vpack.c.bf16 %v8935_v20, %v8934_v17  ;;  %vm17004_vm3 = vnez %v16928_v34  ;;  %v9057_v17 = vld [vmem:[%s16725_s4 + $0x418] sm:$0xff]  ;;  %v17019_v20 = vld [vmem:[#allocation54_spill] sm:$0xff] }
 0x397   : > { %9988 = vmatprep.mubr.f32.mxu1 %v13571_v4  ;;  %10806 = vmatpush3.bf16.msra.mxu0 %v10803_v29  ;;  %v8936_v4 = vld [vmem:[%s16725_s4 + $0x1d0] sm:$0xff] }
 0x398   : > { %10658 = vmatpush3.bf16.msra.mxu1 %v10655_v57  ;;  %10808 = vmatprep.subr.bf16.mxu0 %v14110_v16  ;;  %v6538_v29 = vld [vmem:[#allocation2 + $0x10f] sm:$0xff]  ;;  %v5208_v57 = vld [vmem:[#allocation2 + $0xa1] sm:$0xff] }
 0x399   : > { %10324 = vmatmul.mubr.f32.gmra.mrb[32].mxu0 %v13937_v11  ;;  %v14132_v35 = vpop.f32.mrb[20].mxu1  ;;  %10660 = vmatprep.subr.bf16.mxu1 %v10659_v61  ;;  %v8937_v11 = vld [vmem:[%s16725_s4 + $0x1d8] sm:$0xff] }
 0x39a   : > { %9989 = vmatmul.mubr.msk.f32.gmra.mrb[54].mxu1 %vm17004_vm3, %v13587_v52  ;;  %10326 = vmatprep.mubr.msk.f32.mxu0 %vm17005_vm2, %v13948_v54  ;;  %v14140_v44 = vpop.f32.mrb[21].mxu1  ;;  %v10667_v47 = vpack.c.bf16 %v8937_v11, %v8936_v4  ;;  %vm17006_vm3 = vnez %v16931_v9  ;;  %v6848_v4 = vld [vmem:[#allocation2 + $0x30] sm:$0xff]  ;;  %v11416_v9 = vld [vmem:[#allocation2 + $0x68] sm:$0xff] }
 0x39b   : > { %9991 = vmatprep.mubr.f32.mxu1 %v13592_v37  ;;  %v8938_v37 = vld [vmem:[%s16725_s4 + $0x1e0] sm:$0xff] }
 0x39c   : > { %10662 = vmatpush3.bf16.msra.mxu1 %v10659_v61  ;;  %v9056_v61 = vld [vmem:[%s16725_s4 + $0x410] sm:$0xff] }
 0x39d   : > { %10327 = vmatmul.mubr.f32.gmra.mrb[34].mxu0 %v13961_v51  ;;  %v14150_v52 = vpop.f32.mrb[22].mxu1  ;;  %10664 = vmatprep.subr.bf16.mxu1 %v10663_v63  ;;  %v8939_v51 = vld [vmem:[%s16725_s4 + $0x1e8] sm:$0xff]  ;;  %v10811_v11 = vpack.c.bf16 %v9057_v17, %v9056_v61  ;;  %v6854_v17 = vld [vmem:[#allocation2 + $0x60] sm:$0xff] }
 0x39e   : > { %9992 = vmatmul.mubr.msk.f32.gmra.mrb[56].mxu1 %vm17006_vm3, %v13609_v8  ;;  %10329 = vmatprep.mubr.msk.f32.mxu0 %vm13913_vm4, %v13971_v28  ;;  %v14158_v54 = vpop.f32.mrb[23].mxu1  ;;  %v10671_v0 = vpack.c.bf16 %v8939_v51, %v8938_v37  ;;  %vm17007_vm3 = vnez %v16937_v13  ;;  %v9058_v37 = vld [vmem:[%s16725_s4 + $0x420] sm:$0xff]  ;;  %v9059_v51 = vld [vmem:[%s16725_s4 + $0x428] sm:$0xff] }
 0x39f   : > { %9994 = vmatprep.mubr.f32.mxu1 %v13615_v53  ;;  %v8940_v53 = vld [vmem:[%s16725_s4 + $0x1f0] sm:$0xff]  ;;  %v5549_v13 = vld [vmem:[#allocation2 + $0xc7] sm:$0xff] }
 0x3a0   : > { %10666 = vmatpush3.bf16.msra.mxu1 %v10663_v63  ;;  %v5211_v63 = vld [vmem:[#allocation2 + $0xb9] sm:$0xff]  ;;  %v5217_v61 = vld [vmem:[#allocation2 + $0xe9] sm:$0xff] }
 0x3a1   : > { %10330 = vmatmul.mubr.f32.gmra.mrb[36].mxu0 %v13985_v33  ;;  %v14168_v8 = vpop.f32.mrb[24].mxu1  ;;  %10668 = vmatprep.subr.bf16.mxu1 %v10667_v47  ;;  %v8941_v33 = vld [vmem:[%s16725_s4 + $0x1f8] sm:$0xff] }
 0x3a2   : > { %9995 = vmatmul.mubr.msk.f32.gmra.mrb[58].mxu1 %vm17007_vm3, %v13635_v7  ;;  %10332 = vmatprep.mubr.msk.f32.mxu0 %vm13932_vm9, %v13995_v12  ;;  %v14176_v28 = vpop.f32.mrb[25].mxu1  ;;  %v10675_v21 = vpack.c.bf16 %v8941_v33, %v8940_v53  ;;  %vm17008_vm3 = vnez %v16942_v41  ;;  %v5213_v53 = vld [vmem:[#allocation2 + $0xc9] sm:$0xff]  ;;  %v6849_v33 = vld [vmem:[#allocation2 + $0x38] sm:$0xff] }
 0x3a3   : > { %9997 = vmatprep.mubr.f32.mxu1 %v13641_v18  ;;  %v7153_v41 = vld [vmem:[#allocation2 + $0x29] sm:$0xff] }
 0x3a4   : > { %10670 = vmatpush3.bf16.msra.mxu1 %v10667_v47  ;;  %v5212_v47 = vld [vmem:[#allocation2 + $0xc1] sm:$0xff] }
 0x3a5   : > { %10333 = vmatmul.mubr.f32.gmra.mrb[38].mxu0 %v14007_v46  ;;  %v14186_v7 = vpop.f32.mrb[26].mxu1  ;;  %10672 = vmatprep.subr.bf16.mxu1 %v10671_v0  ;;  %v17009_v46 = vld [vmem:[#allocation46_spill] sm:$0xff] }
 0x3a6   : > { %9998 = vmatmul.mubr.msk.f32.gmra.mrb[60].mxu1 %vm17008_vm3, %v13668_v36  ;;  %10335 = vmatprep.mubr.msk.f32.mxu0 %vm13956_vm7, %v14017_v43  ;;  %v14195_v12 = vpop.f32.mrb[27].mxu1  ;;  %v17012_v36 = vld [vmem:[#allocation47_spill] sm:$0xff]  ;;  %vm17015_vm3 = vnez %v17014_v48 }
 0x3a7   : > { %10000 = vmatprep.mubr.f32.mxu1 %v13674_v38  ;;  %v6537_v38 = vld [vmem:[#allocation2 + $0x107] sm:$0xff] }
 0x3a8   : > { %10674 = vmatpush3.bf16.msra.mxu1 %v10671_v0  ;;  %v17021_v0 = vld [vmem:[#allocation55_spill] sm:$0xff] }
 0x3a9   : > { %10336 = vmatmul.mubr.f32.gmra.mrb[40].mxu0 %v14029_v39  ;;  %v14198_v18 = vpop.f32.mrb[28].mxu1  ;;  %10676 = vmatprep.subr.bf16.mxu1 %v10675_v21  ;;  %v17013_v39 = vld [vmem:[#allocation49_spill] sm:$0xff] }
 0x3aa   : > { %10001 = vmatmul.mubr.msk.f32.gmra.mrb[62].mxu1 %vm17011_vm1, %v17009_v46  ;;  %10338 = vmatprep.mubr.msk.f32.mxu0 %vm13980_vm6, %v14039_v59  ;;  %v14207_v43 = vpop.f32.mrb[29].mxu1  ;;  %v6539_v59 = vld [vmem:[#allocation2 + $0x117] sm:$0xff]  ;;  %vm17018_vm1 = vnez %v17017_v10  ;;  %v10815_v46 = vpack.c.bf16 %v9059_v51, %v9058_v37 }
 0x3ab   : > { %10003 = vmatprep.mubr.f32.mxu1 %v17012_v36  ;;  %v17054_v10 = vld [vmem:[#allocation10_spill] sm:$0xff] }
 0x3ac   : > { %10678 = vmatpush3.bf16.msra.mxu1 %v10675_v21  ;;  %v6850_v21 = vld [vmem:[#allocation2 + $0x40] sm:$0xff] }
 0x3ad   : > { %10339 = vmatmul.mubr.f32.gmra.mrb[42].mxu0 %v14047_v5  ;;  %v6540_v5 = vld [vmem:[#allocation2 + $0x11f] sm:$0xff] }
 0x3ae   : > { %10004 = vmatmul.mubr.msk.f32.gmra.mrb[64].mxu1 %vm17015_vm3, %v17013_v39  ;;  %10341 = vmatprep.mubr.msk.f32.mxu0 %vm14003_vm8, %v6537_v38  ;;  %vm17020_vm3 = vnez %v17019_v20  ;;  %v5214_v38 = vld [vmem:[#allocation2 + $0xd1] sm:$0xff]  ;;  %v6851_v39 = vld [vmem:[#allocation2 + $0x48] sm:$0xff]  ;;  %v6870_v20 = vld [vmem:[#allocation2 + $0xe0] sm:$0xff] }
 0x3af   : > { %10006 = vmatprep.mubr.f32.mxu1 %v17016_v32 }
 0x3b1   : > { %10342 = vmatmul.mubr.f32.gmra.mrb[44].mxu0 %v6538_v29  ;;  %v17023_v29 = vld [vmem:[#allocation56_spill] sm:$0xff] }
 0x3b2   : > { %10007 = vmatmul.mubr.msk.f32.gmra.mrb[66].mxu1 %vm17018_vm1, %v5208_v57  ;;  %10344 = vmatprep.mubr.msk.f32.mxu0 %vm14025_vm10, %v6539_v59  ;;  %vm17022_vm1 = vnez %v17021_v0  ;;  %v5215_v57 = vld [vmem:[#allocation2 + $0xd9] sm:$0xff]  ;;  %v6852_v59 = vld [vmem:[#allocation2 + $0x50] sm:$0xff] }
 0x3b3   : > { %10009 = vmatprep.mubr.f32.mxu1 %v5209_v45  ;;  %v5216_v45 = vld [vmem:[#allocation2 + $0xe1] sm:$0xff] }
 0x3b5   : > { %10345 = vmatmul.mubr.f32.gmra.mrb[46].mxu0 %v6540_v5  ;;  %v6853_v5 = vld [vmem:[#allocation2 + $0x58] sm:$0xff] }
 0x3b6   : > { %10010 = vmatmul.mubr.msk.f32.gmra.mrb[68].mxu1 %vm17020_vm3, %v5210_v60  ;;  %10379 = vmatprep.mubr.f32.mxu0 %v6847_v30  ;;  %vm17024_vm3 = vnez %v17023_v29  ;;  %v17027_v60 = vld [vmem:[#allocation57_spill] sm:$0xff]  ;;  %v6869_v29 = vld [vmem:[#allocation2 + $0xd8] sm:$0xff] }
 0x3b7   : > { %10012 = vmatprep.mubr.f32.mxu1 %v5211_v63 }
 0x3b9   : > { %10380 = vmatmul.mubr.f32.vlgmr.msra.gmra.mrb[16].mxu0 %v6848_v4  ;;  %v5218_v4 = vld [vmem:[#allocation2 + $0xf1] sm:$0xff] }
 0x3ba   : > { %10013 = vmatmul.mubr.msk.f32.gmra.mrb[70].mxu1 %vm17022_vm1, %v5212_v47  ;;  %10810 = vmatpush3.bf16.msra.mxu0 %v14110_v16  ;;  %vm17028_vm1 = vnez %v17027_v60  ;;  %v17030_v47 = vld [vmem:[#allocation34_spill] sm:$0xff] }
 0x3bb   : > { %10015 = vmatprep.mubr.f32.mxu1 %v5213_v53  ;;  %10382 = vmatprep.mubr.f32.mxu0 %v6849_v33  ;;  %v2674_v37 = vmul.f32 0.5, %v17030_v47  ;;  %v5219_v33 = vld [vmem:[#allocation2 + $0xf9] sm:$0xff] }
 0x3bc   : > { %10812 = vmatprep.subr.bf16.mxu0 %v10811_v11  ;;  %v9762_v36 = vpop.f32.mrb[30].mxu1  ;;  %v17037_v47 = vld [vmem:[#allocation43_spill] sm:$0xff] }
 0x3bd   : > { %10383 = vmatmul.mubr.f32.gmra.mrb[18].mxu0 %v6850_v21  ;;  %v2882_v32 = vpop.f32.mrb[31].mxu1  ;;  %v14255_v21 = vld [vmem:[%s16724_s3] ss:$0 sm:$0xff]  ;;  %v5535_v60 = vld [vmem:[#allocation2 + $0x57] sm:$0xff] }
 0x3be   : > { %10016 = vmatmul.mubr.msk.f32.gmra.mrb[72].mxu1 %vm17024_vm3, %v5214_v38  ;;  %10385 = vmatprep.mubr.f32.mxu0 %v6851_v39  ;;  %v2888_v39 = vadd.f32 %v9762_v36, %v14255_v21  ;;  %v2818_v25 = vadd.f32 %v14087_v6, %v14255_v21  ;;  %v2813_v0 = vadd.f32 %v14255_v21, %v14101_v42  ;;  %v2662_v42 = vmul.f32 0.5, %v17054_v10  ;;  %v11406_v10 = vld [vmem:[#allocation2 + $0x30] sm:$0xff] }
 0x3bf   : > { %10018 = vmatprep.mubr.f32.mxu1 %v5215_v57  ;;  %10814 = vmatpush3.bf16.msra.mxu0 %v10811_v11  ;;  %v6855_v11 = vld [vmem:[#allocation2 + $0x68] sm:$0xff]  ;;  %v6856_v57 = vld [vmem:[#allocation2 + $0x70] sm:$0xff]  ;;  %v2833_v24 = vadd.f32 %v14255_v21, %v14140_v44 }
 0x3c0   : > { %10816 = vmatprep.subr.bf16.mxu0 %v10815_v46  ;;  %v11410_v44 = vld [vmem:[#allocation2 + $0x50] sm:$0xff] }
 0x3c1   : > { %v14239_v16 = vpop.f32.mrb[32].mxu1  ;;  %10386 = vmatmul.mubr.f32.gmra.mrb[20].mxu0 %v6852_v59 }
 0x3c2   : > { %17025 = vst [vmem:[#allocation46_spill] sm:$0xff] %v14239_v16  ;;  %v14241_v30 = vpop.f32.mrb[33].mxu1  ;;  %10019 = vmatmul.mubr.msk.f32.gmra.mrb[74].mxu1 %vm17028_vm1, %v5216_v45  ;;  %10388 = vmatprep.mubr.f32.mxu0 %v6853_v5  ;;  %v5220_v45 = vld [vmem:[#allocation2 + $0x101] sm:$0xff]  ;;  %v6857_v5 = vld [vmem:[#allocation2 + $0x78] sm:$0xff]  ;;  %vm17038_vm1 = vnez %v17037_v47 }
 0x3c3   : > { %17026 = vst [vmem:[#allocation47_spill] sm:$0xff] %v14241_v30  ;;  %10021 = vmatprep.mubr.f32.mxu1 %v5217_v61  ;;  %10818 = vmatpush3.bf16.msra.mxu0 %v10815_v46  ;;  %v11403_v46 = vld [vmem:[#allocation2 + $0x90] sm:$0xff]  ;;  %v5552_v30 = vld [vmem:[#allocation2 + $0xdf] sm:$0xff] }
 0x3c4   : > { %v2706_v38 = vmul.f32 %v11403_v46, %v2674_v37  ;;  %v6858_v37 = vld [vmem:[#allocation2 + $0x80] sm:$0xff]  ;;  %v6859_v46 = vld [vmem:[#allocation2 + $0x88] sm:$0xff] }
 0x3c5   : > { %v14245_v63 = vpop.f32.mrb[34].mxu1  ;;  %10389 = vmatmul.mubr.f32.gmra.mrb[22].mxu0 %v6854_v17 }
 0x3c6   : > { %17029 = vst [vmem:[#allocation49_spill] sm:$0xff] %v14245_v63  ;;  %v14248_v51 = vpop.f32.mrb[35].mxu1  ;;  %10022 = vmatmul.mubr.msk.f32.gmra.mrb[76].mxu1 %vm13906_vm5, %v5218_v4  ;;  %10391 = vmatprep.mubr.f32.mxu0 %v6855_v11  ;;  %v14260_v61 = vmul.f32 %v2888_v39, %v2706_v38  ;;  %v17035_v4 = vld [vmem:[#allocation59_spill] sm:$0xff]  ;;  %v2883_v38 = vadd.f32 %v14255_v21, %v2882_v32  ;;  %v6862_v32 = vld [vmem:[#allocation2 + $0xa0] sm:$0xff] }
 0x3c7   : > { %17031 = vst [vmem:[#allocation50_spill] sm:$0xff] %v14248_v51  ;;  %10024 = vmatprep.mubr.f32.mxu1 %v5219_v33  ;;  %vm17036_vm5 = vnez %v17035_v4  ;;  %v5527_v11 = vld [vmem:[#allocation2 + $0x17] sm:$0xff]  ;;  %v5528_v33 = vld [vmem:[#allocation2 + $0x1f] sm:$0xff]  ;;  %v5530_v4 = vld [vmem:[#allocation2 + $0x2f] sm:$0xff]  ;;  %v2677_v51 = vmul.f32 0.5, %v17079_v40 }
 0x3c8   : > { %v5553_v40 = vld [vmem:[#allocation2 + $0xe7] sm:$0xff] }
 0x3c9   : > { %v14258_v59 = vpop.f32.mrb[36].mxu1  ;;  %10392 = vmatmul.mubr.f32.gmra.mrb[24].mxu0 %v6856_v57  ;;  %v5529_v57 = vld [vmem:[#allocation2 + $0x27] sm:$0xff] }
 0x3ca   : > { %17033 = vst [vmem:[#allocation34_spill] sm:$0xff] %v14258_v59  ;;  %v14262_v17 = vpop.f32.mrb[37].mxu1  ;;  %10025 = vmatmul.mubr.msk.f32.gmra.mrb[78].mxu1 %vm17036_vm5, %v5220_v45  ;;  %10394 = vmatprep.mubr.f32.mxu0 %v6857_v5  ;;  %vm17041_vm5 = vnez %v16940_v27  ;;  %v6860_v45 = vld [vmem:[#allocation2 + $0x90] sm:$0xff]  ;;  %v17042_v5 = vld [vmem:[#allocation36_spill] sm:$0xff] }
 0x3cb   : > { %17034 = vst [vmem:[#allocation60_spill] sm:$0xff] %v14262_v17  ;;  %10059 = vmatprep.mubr.msk.f32.mxu1 %vm17038_vm1, %v5527_v11  ;;  %v14276_v47 = vmul.f32 %v2883_v38, %v17042_v5  ;;  %vm17046_vm1 = vnez %v16945_v50  ;;  %v5533_v5 = vld [vmem:[#allocation2 + $0x47] sm:$0xff]  ;;  %v6865_v50 = vld [vmem:[#allocation2 + $0xb8] sm:$0xff] }
 0x3cc   : > { %v17073_v17 = vld [vmem:[#allocation32_spill] sm:$0xff] }
 0x3cd   : > { %v14268_v36 = vpop.f32.mrb[38].mxu1  ;;  %10395 = vmatmul.mubr.f32.gmra.mrb[26].mxu0 %v6858_v37  ;;  %17043 = vst [vmem:[#allocation36_spill] sm:$0xff] %v14276_v47  ;;  %v6861_v37 = vld [vmem:[#allocation2 + $0x98] sm:$0xff]  ;;  %v11419_v47 = vld [vmem:[#allocation2 + $0xa0] sm:$0xff] }
 0x3ce   : > { %17039 = vst [vmem:[#allocation43_spill] sm:$0xff] %v14268_v36  ;;  %10060 = vmatmul.mubr.f32.vlgmr.msra.gmra.mrb[48].mxu1 %v5528_v33  ;;  %10397 = vmatprep.mubr.f32.mxu0 %v6859_v46  ;;  %v14271_v39 = vpop.f32.mrb[39].mxu1  ;;  %v5531_v33 = vld [vmem:[#allocation2 + $0x37] sm:$0xff]  ;;  %v5532_v46 = vld [vmem:[#allocation2 + $0x3f] sm:$0xff] }
 0x3cf   : > { %17040 = vst [vmem:[#allocation61_spill] sm:$0xff] %v14271_v39  ;;  %10062 = vmatprep.mubr.msk.f32.mxu1 %vm17041_vm5, %v5529_v57  ;;  %v6863_v57 = vld [vmem:[#allocation2 + $0xa8] sm:$0xff] }
 0x3d1   : > { %v14278_v11 = vpop.f32.mrb[40].mxu1  ;;  %10398 = vmatmul.mubr.f32.gmra.mrb[28].mxu0 %v6860_v45 }
 0x3d2   : > { %17044 = vst [vmem:[#allocation62_spill] sm:$0xff] %v14278_v11  ;;  %v14280_v53 = vpop.f32.mrb[41].mxu1  ;;  %10063 = vmatmul.mubr.f32.gmra.mrb[50].mxu1 %v5530_v4  ;;  %10400 = vmatprep.mubr.f32.mxu0 %v6861_v37  ;;  %v6864_v4 = vld [vmem:[#allocation2 + $0xb0] sm:$0xff]  ;;  %v2669_v11 = vmul.f32 0.5, %v17066_v31 }
 0x3d3   : > { %17045 = vst [vmem:[#allocation63_spill] sm:$0xff] %v14280_v53  ;;  %10065 = vmatprep.mubr.msk.f32.mxu1 %vm17046_vm1, %v5531_v33  ;;  %v5534_v37 = vld [vmem:[#allocation2 + $0x4f] sm:$0xff] }
 0x3d4   : > { %v17065_v53 = vld [vmem:[#allocation26_spill] sm:$0xff]  ;;  %v14407_v34 = vmul.f32 %v11416_v9, %v2669_v11 }
 0x3d5   : > { %v14284_v27 = vpop.f32.mrb[42].mxu1  ;;  %10401 = vmatmul.mubr.f32.gmra.mrb[30].mxu0 %v6862_v32  ;;  %v6866_v32 = vld [vmem:[#allocation2 + $0xc0] sm:$0xff]  ;;  %v5551_v9 = vld [vmem:[#allocation2 + $0xd7] sm:$0xff] }
 0x3d6   : > { %17047 = vst [vmem:[#allocation64_spill] sm:$0xff] %v14284_v27  ;;  %v14286_v38 = vpop.f32.mrb[43].mxu1  ;;  %10066 = vmatmul.mubr.f32.gmra.mrb[52].mxu1 %v5532_v46  ;;  %10403 = vmatprep.mubr.f32.mxu0 %v6863_v57  ;;  %v5536_v57 = vld [vmem:[#allocation2 + $0x5f] sm:$0xff]  ;;  %v6871_v27 = vld [vmem:[#allocation2 + $0xe8] sm:$0xff] }
 0x3d7   : > { %17048 = vst [vmem:[#allocation65_spill] sm:$0xff] %v14286_v38  ;;  %10068 = vmatprep.mubr.msk.f32.mxu1 %vm13732_vm12, %v5533_v5  ;;  %v17053_v38 = vld [vmem:[#allocation8_spill] sm:$0xff] }
 0x3d9   : > { %v14290_v45 = vpop.f32.mrb[44].mxu1  ;;  %10404 = vmatmul.mubr.f32.gmra.mrb[32].mxu0 %v6864_v4 }
 0x3da   : > { %17049 = vst [vmem:[#allocation66_spill] sm:$0xff] %v14290_v45  ;;  %v14292_v33 = vpop.f32.mrb[45].mxu1  ;;  %10069 = vmatmul.mubr.f32.gmra.mrb[54].mxu1 %v5534_v37  ;;  %10406 = vmatprep.mubr.f32.mxu0 %v6865_v50  ;;  %v5537_v45 = vld [vmem:[#allocation2 + $0x67] sm:$0xff]  ;;  %v6868_v37 = vld [vmem:[#allocation2 + $0xd0] sm:$0xff] }
 0x3db   : > { %17050 = vst [vmem:[#allocation67_spill] sm:$0xff] %v14292_v33  ;;  %10071 = vmatprep.mubr.msk.f32.mxu1 %vm13766_vm14, %v5535_v60  ;;  %v17052_v33 = vld [vmem:[#allocation6_spill] sm:$0xff] }
 0x3dc   : > { %v2660_v50 = vmul.f32 0.5, %v17052_v33  ;;  %v5538_v60 = vld [vmem:[#allocation2 + $0x6f] sm:$0xff] }
 0x3dd   : > { %v14296_v46 = vpop.f32.mrb[46].mxu1  ;;  %10407 = vmatmul.mubr.f32.gmra.mrb[34].mxu0 %v6866_v32  ;;  %v2659_v32 = vmul.f32 0.5, %v17053_v38 }
 0x3de   : > { %v14298_v5 = vpop.f32.mrb[47].mxu1  ;;  %10072 = vmatmul.mubr.f32.gmra.mrb[56].mxu1 %v5536_v57  ;;  %10409 = vmatprep.mubr.f32.mxu0 %v6867_v58  ;;  %v5539_v57 = vld [vmem:[#allocation2 + $0x77] sm:$0xff]  ;;  %v11404_v58 = vld [vmem:[#allocation2 + $0x20] sm:$0xff] }
 0x3df   : > { %10074 = vmatprep.mubr.msk.f32.mxu1 %vm13793_vm0, %v5537_v45  ;;  %v2692_v4 = vmul.f32 %v11404_v58, %v2660_v50  ;;  %v11405_v45 = vld [vmem:[#allocation2 + $0x18] sm:$0xff]  ;;  %v5541_v50 = vld [vmem:[#allocation2 + $0x87] sm:$0xff]  ;;  %v6872_v58 = vld [vmem:[#allocation2 + $0xf0] sm:$0xff] }
 0x3e0   : > { %v2691_v33 = vmul.f32 %v11405_v45, %v2659_v32  ;;  %v2823_v32 = vadd.f32 %v14255_v21, %v14121_v62  ;;  %v11408_v45 = vld [vmem:[#allocation2 + $0x40] sm:$0xff]  ;;  %v6873_v62 = vld [vmem:[#allocation2 + $0xf8] sm:$0xff] }
 0x3e1   : > { %10410 = vmatmul.mubr.f32.gmra.mrb[36].mxu0 %v6868_v37  ;;  %v14310_v6 = vmul.f32 %v2818_v25, %v2692_v4  ;;  %v5540_v37 = vld [vmem:[#allocation2 + $0x7f] sm:$0xff]  ;;  %v17056_v25 = vld [vmem:[#allocation14_spill] sm:$0xff]  ;;  %v11407_v4 = vld [vmem:[#allocation2 + $0x28] sm:$0xff] }
 0x3e2   : > { %10075 = vmatmul.mubr.f32.gmra.mrb[58].mxu1 %v5538_v60  ;;  %10412 = vmatprep.mubr.f32.mxu0 %v6869_v29  ;;  %v14312_v38 = vmul.f32 %v2813_v0, %v2691_v33  ;;  %v2828_v29 = vadd.f32 %v14113_v55, %v14255_v21  ;;  %v2661_v60 = vmul.f32 0.5, %v17055_v26  ;;  %v2694_v0 = vmul.f32 %v11406_v10, %v2662_v42  ;;  %v5543_v42 = vld [vmem:[#allocation2 + $0x97] sm:$0xff] }
 0x3e3   : > { %10077 = vmatprep.mubr.msk.f32.mxu1 %vm13819_vm15, %v5539_v57  ;;  %v2664_v57 = vmul.f32 0.5, %v17056_v25  ;;  %v3036_v55 = vmul.f32 0.70710677, %v14310_v6 }
 0x3e4   : > { %v3035_v26 = vmul.f32 0.70710677, %v14312_v38  ;;  %v14327_v25 = vmul.f32 %v2828_v29, %v2694_v0  ;;  %v11409_v29 = vld [vmem:[#allocation2 + $0x38] sm:$0xff] }
 0x3e5   : > { %10413 = vmatmul.mubr.f32.gmra.mrb[38].mxu0 %v6870_v20  ;;  %v2838_v20 = vadd.f32 %v14132_v35, %v14255_v21  ;;  %v2696_v33 = vmul.f32 %v11408_v45, %v2664_v57  ;;  %v17057_v35 = vld [vmem:[#allocation16_spill] sm:$0xff]  ;;  %v17058_v57 = vld [vmem:[#allocation18_spill] sm:$0xff]  ;;  %v14341_v45 = vclamps-f32 %v3036_v55, 4.0 }
 0x3e6   : > { %10078 = vmatmul.mubr.f32.gmra.mrb[60].mxu1 %v5540_v37  ;;  %10415 = vmatprep.mubr.f32.mxu0 %v6871_v27  ;;  %v2693_v27 = vmul.f32 %v11407_v4, %v2661_v60  ;;  %v5542_v37 = vld [vmem:[#allocation2 + $0x8f] sm:$0xff]  ;;  %v2663_v48 = vmul.f32 0.5, %v17057_v35  ;;  %v2666_v10 = vmul.f32 0.5, %v17058_v57  ;;  %v6874_v4 = vld [vmem:[#allocation2 + $0x100] sm:$0xff] }
 0x3e7   : > { %10080 = vmatprep.mubr.msk.f32.mxu1 %vm13845_vm13, %v5541_v50  ;;  %v14334_v60 = vmul.f32 %v2838_v20, %v2696_v33  ;;  %v14343_v20 = vclamps-f32 %v3035_v26, 4.0  ;;  %v6876_v35 = vld [vmem:[#allocation2 + $0x110] sm:$0xff]  ;;  %v14356_v26 = vmul.f32 %v14341_v45, %v14341_v45 }
 0x3e8   : > { %v14332_v50 = vmul.f32 %v2823_v32, %v2693_v27  ;;  %v2695_v0 = vmul.f32 %v11409_v29, %v2663_v48  ;;  %v6875_v32 = vld [vmem:[#allocation2 + $0x108] sm:$0xff]  ;;  %v3038_v27 = vmul.f32 0.70710677, %v14327_v25  ;;  %v11411_v29 = vld [vmem:[#allocation2] sm:$0xff] }
 0x3e9   : > { %10416 = vmatmul.mubr.f32.gmra.mrb[40].mxu0 %v6872_v58  ;;  %v2848_v58 = vadd.f32 %v14150_v52, %v14255_v21  ;;  %v5545_v52 = vld [vmem:[#allocation2 + $0xa7] sm:$0xff]  ;;  %v3040_v48 = vmul.f32 0.70710677, %v14334_v60  ;;  %17059 = vst [vmem:[#allocation53_spill] sm:$0xff] %v14356_v26 }
 0x3ea   : > { %10081 = vmatmul.mubr.f32.gmra.mrb[62].mxu1 %v5542_v37  ;;  %10418 = vmatprep.mubr.f32.mxu0 %v6873_v62  ;;  %v2698_v37 = vmul.f32 %v11410_v44, %v2666_v10  ;;  %v5544_v62 = vld [vmem:[#allocation2 + $0x9f] sm:$0xff]  ;;  %v14346_v33 = vmul.f32 %v2833_v24, %v2695_v0  ;;  %v3037_v15 = vmul.f32 0.70710677, %v14332_v50  ;;  %v14360_v24 = vmul.f32 %v14343_v20, %v14343_v20 }
 0x3eb   : > { %10083 = vmatprep.mubr.msk.f32.mxu1 %vm13871_vm11, %v5543_v42  ;;  %v5546_v42 = vld [vmem:[#allocation2 + $0xaf] sm:$0xff]  ;;  %v14362_v57 = vclamps-f32 %v3038_v27, 4.0  ;;  %v14367_v0 = vclamps-f32 %v3040_v48, 4.0  ;;  %v17062_v44 = vld [vmem:[#allocation20_spill] sm:$0xff]  ;;  %v2670_v48 = vmul.f32 0.5, %v17065_v53 }
 0x3ec   : > { %v14350_v55 = vmul.f32 %v2848_v58, %v2698_v37  ;;  %17060 = vst [vmem:[#allocation6_spill] sm:$0xff] %v14360_v24  ;;  %v3039_v10 = vmul.f32 0.70710677, %v14346_v33  ;;  %v5547_v58 = vld [vmem:[#allocation2 + $0xb7] sm:$0xff]  ;;  %v14365_v23 = vclamps-f32 %v3037_v15, 4.0  ;;  %v2665_v37 = vmul.f32 0.5, %v17062_v44 }
 0x3ed   : > { %10419 = vmatmul.mubr.f32.gmra.mrb[42].mxu0 %v6874_v4  ;;  %17061 = vst [vmem:[#allocation8_spill] sm:$0xff] %v14367_v0  ;;  %v3163_v56 = vmul.f32 -2.7261424e-10, %v14360_v24  ;;  %v11412_v44 = vld [vmem:[#allocation2 + $0x48] sm:$0xff]  ;;  %v14393_v31 = vmul.f32 %v14367_v0, %v14367_v0 }
 0x3ee   : > { %10084 = vmatmul.mubr.f32.gmra.mrb[64].mxu1 %v5544_v62  ;;  %10421 = vmatprep.mubr.f32.mxu0 %v6875_v32  ;;  %v3042_v4 = vmul.f32 0.70710677, %v14350_v55  ;;  %v2843_v62 = vadd.f32 %v14255_v21, %v14158_v54  ;;  %v17063_v32 = vld [vmem:[#allocation22_spill] sm:$0xff]  ;;  %v14385_v54 = vclamps-f32 %v3039_v10, 4.0  ;;  %v14389_v53 = vmul.f32 %v14365_v23, %v14365_v23 }
 0x3ef   : > { %10086 = vmatprep.mubr.msk.f32.mxu1 %vm17005_vm2, %v5545_v52  ;;  %v2668_v27 = vmul.f32 0.5, %v17063_v32  ;;  %v5548_v52 = vld [vmem:[#allocation2 + $0xbf] sm:$0xff]  ;;  %v2697_v32 = vmul.f32 %v11412_v44, %v2665_v37  ;;  %17070 = vst [vmem:[#allocation16_spill] sm:$0xff] %v14393_v31 }
 0x3f0   : > { %17068 = vst [vmem:[#allocation12_spill] sm:$0xff] %v14385_v54  ;;  %17069 = vst [vmem:[#allocation14_spill] sm:$0xff] %v14389_v53  ;;  %v11414_v37 = vld [vmem:[#allocation2 + $0x58] sm:$0xff]  ;;  %v3165_v11 = vmul.f32 -2.7261424e-10, %v14389_v53 }
 0x3f1   : > { %10422 = vmatmul.mubr.f32.gmra.mrb[44].mxu0 %v6876_v35  ;;  %v3164_v35 = vmul.f32 -2.7261424e-10, %v14356_v26  ;;  %v14401_v10 = vmul.f32 %v2843_v62, %v2697_v32 }
 0x3f2   : > { %10087 = vmatmul.mubr.f32.gmra.mrb[66].mxu1 %v5546_v42  ;;  %10424 = vmatprep.mubr.f32.mxu0 %v11411_v29  ;;  %v17064_v42 = vld [vmem:[#allocation24_spill] sm:$0xff] }
 0x3f3   : > { %10089 = vmatprep.mubr.msk.f32.mxu1 %vm13913_vm4, %v5547_v58  ;;  %v2667_v15 = vmul.f32 0.5, %v17064_v42  ;;  %v14383_v58 = vmul.f32 %v14362_v57, %v14362_v57  ;;  %v11413_v42 = vld [vmem:[#allocation2 + $0x60] sm:$0xff]  ;;  %v3196_v36 = vadd.f32 2.7706815e-08, %v3164_v35  ;;  %v3168_v35 = vmul.f32 -2.7261424e-10, %v14393_v31 }
 0x3f4   : > { %v14397_v39 = vmul.f32 %v11413_v42, %v2668_v27  ;;  %v2671_v27 = vmul.f32 0.5, %v17073_v17  ;;  %v17074_v42 = vld [vmem:[#allocation7_spill] sm:$0xff] }
 0x3f5   : > { %10425 = vmatmul.mubr.f32.gmra.mrb[46].mxu0 %v11411_v29  ;;  %17067 = vst [vmem:[#allocation10_spill] sm:$0xff] %v14383_v58  ;;  %v14395_v29 = vclamps-f32 %v3042_v4, 4.0  ;;  %v17072_v4 = vld [vmem:[#allocation30_spill] sm:$0xff]  ;;  %v2676_v59 = vmul.f32 0.5, %v17074_v42  ;;  %v3166_v62 = vmul.f32 -2.7261424e-10, %v14383_v58  ;;  %v3228_v63 = vmul.f32 %v3196_v36, %v14356_v26 }
 0x3f6   : > { %10090 = vmatmul.mubr.f32.gmra.mrb[68].mxu1 %v5548_v52  ;;  %10459 = vmatprep.mubr.f32.mxu0 %v7153_v41  ;;  %v14403_v41 = vmul.f32 %v11414_v37, %v2667_v15  ;;  %v11415_v52 = vld [vmem:[#allocation2 + $0x70] sm:$0xff]  ;;  %v2672_v1 = vmul.f32 0.5, %v17072_v4  ;;  %v14415_v15 = vmul.f32 %v14385_v54, %v14385_v54  ;;  %v17078_v37 = vld [vmem:[#allocation11_spill] sm:$0xff]  ;;  %v11417_v4 = vld [vmem:[#allocation2 + $0x80] sm:$0xff]  ;;  %v3197_v36 = vadd.f32 2.7706815e-08, %v3165_v11 }
 0x3f7   : > { %17071 = vst [vmem:[#allocation18_spill] sm:$0xff] %v14395_v29  ;;  %10092 = vmatprep.mubr.msk.f32.mxu1 %vm13932_vm9, %v5549_v13  ;;  %v14405_v44 = vmul.f32 %v11415_v52, %v2670_v48  ;;  %v3195_v13 = vadd.f32 2.7706815e-08, %v3163_v56  ;;  %v17076_v48 = vld [vmem:[#allocation9_spill] sm:$0xff]  ;;  %v14422_v17 = vmul.f32 %v14395_v29, %v14395_v29  ;;  %v2678_v56 = vmul.f32 0.5, %v17078_v37 }
 0x3f8   : > { %17075 = vst [vmem:[#allocation20_spill] sm:$0xff] %v14415_v15  ;;  %v2675_v32 = vmul.f32 0.5, %v17076_v48  ;;  %v3041_v52 = vmul.f32 0.70710677, %v14401_v10  ;;  %v14428_v42 = vmul.f32 %v11417_v4, %v2672_v1  ;;  %v14434_v29 = vmul.f32 %v11419_v47, %v2676_v59  ;;  %v11422_v47 = vld [vmem:[#allocation2 + $0xa8] sm:$0xff] }
 0x3f9   : > { %17077 = vst [vmem:[#allocation22_spill] sm:$0xff] %v14422_v17  ;;  %v3227_v1 = vmul.f32 %v3195_v13, %v14360_v24  ;;  %v3198_v4 = vadd.f32 2.7706815e-08, %v3166_v62  ;;  %v3200_v54 = vadd.f32 2.7706815e-08, %v3168_v35  ;;  %v17086_v13 = vld [vmem:[#allocation17_spill] sm:$0xff]  ;;  %v2858_v11 = vadd.f32 %v14168_v8, %v14255_v21 }
 0x3fa   : > { %10093 = vmatmul.mubr.f32.gmra.mrb[70].mxu1 %v5550_v3  ;;  %v11418_v3 = vld [vmem:[#allocation2 + $0x78] sm:$0xff]  ;;  %17080 = vst [vmem:[#allocation24_spill] sm:$0xff] %v14434_v29  ;;  %v14436_v37 = vmul.f32 %v11420_v22, %v2675_v32  ;;  %v3170_v59 = vmul.f32 -2.7261424e-10, %v14422_v17  ;;  %v14444_v22 = vmul.f32 %v11422_v47, %v2677_v51  ;;  %v14448_v32 = vclamps-f32 %v3041_v52, 4.0  ;;  %v17090_v29 = vld [vmem:[#allocation25_spill] sm:$0xff] }
 0x3fb   : > { %10095 = vmatprep.mubr.msk.f32.mxu1 %vm13956_vm7, %v5551_v9  ;;  %v14430_v48 = vmul.f32 %v11418_v3, %v2671_v27  ;;  %v14438_v9 = vmul.f32 %v11421_v19, %v2678_v56  ;;  %v3167_v27 = vmul.f32 -2.7261424e-10, %v14415_v15  ;;  %v17083_v3 = vld [vmem:[#allocation15_spill] sm:$0xff]  ;;  %v2679_v62 = vmul.f32 0.5, %v17086_v13  ;;  %v5554_v47 = vld [vmem:[#allocation2 + $0xef] sm:$0xff] }
 0x3fc   : > { %17081 = vst [vmem:[#allocation26_spill] sm:$0xff] %v14436_v37  ;;  %v2680_v16 = vmul.f32 0.5, %v17083_v3  ;;  %17084 = vst [vmem:[#allocation30_spill] sm:$0xff] %v14444_v22  ;;  %v17087_v56 = vld [vmem:[#allocation19_spill] sm:$0xff]  ;;  %v2683_v51 = vmul.f32 0.5, %v17090_v29  ;;  %v3230_v2 = vmul.f32 %v3198_v4, %v14383_v58  ;;  %v2853_v8 = vadd.f32 %v14255_v21, %v14176_v28  ;;  %v11425_v28 = vld [vmem:[#allocation2 + $0xd0] sm:$0xff] }
 0x3fd   : > { %17082 = vst [vmem:[#allocation28_spill] sm:$0xff] %v14438_v9  ;;  %17085 = vst [vmem:[#allocation32_spill] sm:$0xff] %v14448_v32  ;;  %v2682_v19 = vmul.f32 0.5, %v17087_v56  ;;  %v17088_v9 = vld [vmem:[#allocation21_spill] sm:$0xff]  ;;  %v17089_v35 = vld [vmem:[#allocation23_spill] sm:$0xff]  ;;  %v14468_v29 = vmul.f32 %v14448_v32, %v14448_v32 }
 0x3fe   : > { %10096 = vmatmul.mubr.f32.gmra.mrb[72].mxu1 %v5552_v30  ;;  %v2681_v3 = vmul.f32 0.5, %v17088_v9  ;;  %v3260_v30 = vadd.f32 -2.101024e-06, %v3228_v63  ;;  %v2684_v37 = vmul.f32 0.5, %v17089_v35  ;;  %v3259_v22 = vadd.f32 -2.101024e-06, %v3227_v1 }
 0x3ff   : > { %10098 = vmatprep.mubr.msk.f32.mxu1 %vm13980_vm6, %v5553_v40  ;;  %v3199_v52 = vadd.f32 2.7706815e-08, %v3167_v27  ;;  %v11423_v40 = vld [vmem:[#allocation2 + $0xc0] sm:$0xff]  ;;  %v5555_v13 = vld [vmem:[#allocation2 + $0xf7] sm:$0xff]  ;;  %v3229_v9 = vmul.f32 %v3197_v36, %v14389_v53  ;;  %v3232_v63 = vmul.f32 %v3200_v54, %v14393_v31  ;;  %v3202_v56 = vadd.f32 2.7706815e-08, %v3170_v59 }
 0x400   : > { %v14458_v0 = vmul.f32 %v11423_v40, %v2680_v16  ;;  %17091 = vst [vmem:[#allocation7_spill] sm:$0xff] %v14468_v29  ;;  %v11424_v1 = vld [vmem:[#allocation2 + $0xb8] sm:$0xff]  ;;  %v17094_v35 = vld [vmem:[#allocation29_spill] sm:$0xff]  ;;  %v3292_v54 = vmul.f32 %v3260_v30, %v14356_v26  ;;  %v14476_v59 = vmul.f32 %v2858_v11, %v14397_v39  ;;  %v14480_v40 = vmul.f32 %v11426_v49, %v2681_v3  ;;  %v9060_v3 = vld [vmem:[%s16725_s4 + $0x430] sm:$0xff] }
 0x401   : > { %v14470_v16 = vmul.f32 %v11424_v1, %v2679_v62  ;;  %v17093_v4 = vld [vmem:[#allocation27_spill] sm:$0xff]  ;;  %v2685_v36 = vmul.f32 0.5, %v17094_v35  ;;  %v3291_v32 = vmul.f32 %v3259_v22, %v14360_v24  ;;  %v3262_v62 = vadd.f32 -2.101024e-06, %v3230_v2  ;;  %v5557_v30 = vld [vmem:[#allocation2 + $0x107] sm:$0xff] }
 0x402   : > { %10099 = vmatmul.mubr.f32.gmra.mrb[74].mxu1 %v5554_v47  ;;  %v2686_v27 = vmul.f32 0.5, %v17093_v4  ;;  %v14478_v47 = vmul.f32 %v11425_v28, %v2682_v19  ;;  %17096 = vst [vmem:[#allocation13_spill] sm:$0xff] %v14480_v40  ;;  %v3231_v1 = vmul.f32 %v3199_v52, %v14415_v15  ;;  %v11427_v4 = vld [vmem:[#allocation2 + $0xe0] sm:$0xff]  ;;  %v3261_v35 = vadd.f32 -2.101024e-06, %v3229_v9  ;;  %v9061_v22 = vld [vmem:[%s16725_s4 + $0x438] sm:$0xff] }
 0x403   : > { %10101 = vmatprep.mubr.msk.f32.mxu1 %vm14003_vm8, %v5555_v13  ;;  %17092 = vst [vmem:[#allocation9_spill] sm:$0xff] %v14470_v16  ;;  %v5556_v13 = vld [vmem:[#allocation2 + $0xff] sm:$0xff]  ;;  %v14484_v16 = vmul.f32 %v11427_v4, %v2684_v37  ;;  %v3264_v39 = vadd.f32 -2.101024e-06, %v3232_v63  ;;  %v3234_v11 = vmul.f32 %v3202_v56, %v14422_v17  ;;  %v14488_v19 = vmul.f32 %v2853_v8, %v14403_v41  ;;  %v11429_v41 = vld [vmem:[#allocation2 + $0xf0] sm:$0xff]  ;;  %v17100_v4 = vld [vmem:[#allocation33_spill] sm:$0xff] }
 0x404   : > { %17095 = vst [vmem:[#allocation11_spill] sm:$0xff] %v14478_v47  ;;  %v3169_v37 = vmul.f32 -2.7261424e-10, %v14468_v29  ;;  %v2868_v2 = vadd.f32 %v14186_v7, %v14255_v21  ;;  %v11428_v52 = vld [vmem:[#allocation2 + $0xd8] sm:$0xff]  ;;  %v14503_v63 = vmul.f32 %v11429_v41, %v2686_v27  ;;  %v5558_v56 = vld [vmem:[#allocation2 + $0x10f] sm:$0xff]  ;;  %v2687_v14 = vmul.f32 0.5, %v17100_v4 }
 0x405   : > { %17097 = vst [vmem:[#allocation15_spill] sm:$0xff] %v14484_v16  ;;  %v14501_v9 = vmul.f32 %v11428_v52, %v2683_v51  ;;  %v3324_v8 = vadd.f32 -5.6925062e-05, %v3292_v54  ;;  %v3044_v28 = vmul.f32 0.70710677, %v14476_v59  ;;  %v17099_v49 = vld [vmem:[#allocation31_spill] sm:$0xff]  ;;  %v3294_v16 = vmul.f32 %v3262_v62, %v14383_v58 }
 0x406   : > { %10102 = vmatmul.mubr.f32.gmra.mrb[76].mxu1 %v5556_v13  ;;  %17098 = vst [vmem:[#allocation17_spill] sm:$0xff] %v14503_v63  ;;  %v2688_v13 = vmul.f32 0.5, %v17099_v49  ;;  %v3263_v40 = vadd.f32 -2.101024e-06, %v3231_v1  ;;  %v10819_v47 = vpack.c.bf16 %v9061_v22, %v9060_v3  ;;  %v3293_v7 = vmul.f32 %v3261_v35, %v14389_v53  ;;  %v11430_v49 = vld [vmem:[#allocation2 + $0xe8] sm:$0xff]  ;;  %v11431_v3 = vld [vmem:[#allocation2 + $0x100] sm:$0xff] }
 0x407   : > { %10104 = vmatprep.mubr.msk.f32.mxu1 %vm14025_vm10, %v5557_v30  ;;  %v3323_v30 = vadd.f32 -5.6925062e-05, %v3291_v32  ;;  %v3296_v51 = vmul.f32 %v3264_v39, %v14393_v31  ;;  %v3266_v27 = vadd.f32 -2.101024e-06, %v3234_v11  ;;  %v3043_v52 = vmul.f32 0.70710677, %v14488_v19 }
 0x408   : > { %v3201_v54 = vadd.f32 2.7706815e-08, %v3169_v37  ;;  %v14513_v41 = vmul.f32 %v2868_v2, %v14405_v44  ;;  %v14515_v63 = vmul.f32 %v11430_v49, %v2685_v36  ;;  %10820 = vmatprep.subr.bf16.mxu0 %v10819_v47  ;;  %v17101_v32 = vld [vmem:[#allocation35_spill] sm:$0xff]  ;;  %v14518_v1 = vclamps-f32 %v3044_v28, 4.0 }
 0x409   : > { %v2690_v62 = vmul.f32 0.5, %v17101_v32  ;;  %v2863_v35 = vadd.f32 %v14255_v21, %v14195_v12  ;;  %v14522_v39 = vmul.f32 %v11431_v3, %v2688_v13  ;;  %10822 = vmatpush3.bf16.msra.mxu0 %v10819_v47  ;;  %v11432_v11 = vld [vmem:[#allocation2 + $0xf8] sm:$0xff]  ;;  %v3356_v44 = vmul.f32 %v3324_v8, %v14356_v26 }
 0x40a   : > { %10105 = vmatmul.mubr.f32.gmra.mrb[78].mxu1 %v5558_v56  ;;  %v14524_v22 = vmul.f32 %v11432_v11, %v2687_v14  ;;  %v3355_v36 = vmul.f32 %v3323_v30, %v14360_v24  ;;  %v3326_v37 = vadd.f32 -5.6925062e-05, %v3294_v16  ;;  %v3295_v2 = vmul.f32 %v3263_v40, %v14415_v15  ;;  %v11433_v14 = vld [vmem:[#allocation2 + $0x110] sm:$0xff] }
 0x40b   : > { %v3325_v56 = vadd.f32 -5.6925062e-05, %v3293_v7  ;;  %v3328_v28 = vadd.f32 -5.6925062e-05, %v3296_v51  ;;  %v3298_v4 = vmul.f32 %v3266_v27, %v14422_v17  ;;  %v14530_v49 = vclamps-f32 %v3043_v52, 4.0 }
 0x40c   : > { %v14533_v12 = vmul.f32 0.5, %v14310_v6  ;;  %v3233_v47 = vmul.f32 %v3201_v54, %v14468_v29  ;;  %v3046_v13 = vmul.f32 0.70710677, %v14513_v41  ;;  %v2722_v8 = vmul.f32 %v11433_v14, %v2690_v62 }
 0x40d   : > { %v14538_v30 = vmul.f32 0.5, %v14312_v38  ;;  %v14542_v16 = vmul.f32 %v14518_v1, %v14518_v1  ;;  %v14545_v40 = vmul.f32 %v2863_v35, %v14407_v34  ;;  %v2968_v6 = vadd.f32 %v14296_v46, %v14255_v21 }
 0x40e   : > { %17102 = vst [vmem:[#allocation19_spill] sm:$0xff] %v14533_v12  ;;  %v3388_v7 = vadd.f32 -0.00073499064, %v3356_v44  ;;  %v3387_v51 = vadd.f32 -0.00073499064, %v3355_v36  ;;  %v3358_v27 = vmul.f32 %v3326_v37, %v14383_v58  ;;  %v3357_v54 = vmul.f32 %v3325_v56, %v14389_v53 }
 0x40f   : > { %17103 = vst [vmem:[#allocation21_spill] sm:$0xff] %v14538_v30  ;;  %17104 = vst [vmem:[#allocation23_spill] sm:$0xff] %v14542_v16  ;;  %v3327_v52 = vadd.f32 -5.6925062e-05, %v3295_v2  ;;  %v3360_v38 = vmul.f32 %v3328_v28, %v14393_v31  ;;  %v3330_v32 = vadd.f32 -5.6925062e-05, %v3298_v4  ;;  %v14554_v62 = vmul.f32 %v14530_v49, %v14530_v49 }
 0x410   : > { %v3265_v3 = vadd.f32 -2.101024e-06, %v3233_v47  ;;  %v14556_v34 = vclamps-f32 %v3046_v13, 4.0  ;;  %v2878_v46 = vadd.f32 %v14198_v18, %v14255_v21  ;;  %v14560_v35 = vmul.f32 %v2968_v6, %v2722_v8  ;;  %v9062_v18 = vld [vmem:[%s16725_s4 + $0x440] sm:$0xff] }
 0x411   : > { %17105 = vst [vmem:[#allocation25_spill] sm:$0xff] %v14554_v62  ;;  %v14563_v11 = vmul.f32 0.5, %v14327_v25  ;;  %v14566_v44 = vmul.f32 0.5, %v14332_v50  ;;  %v3172_v36 = vmul.f32 -2.7261424e-10, %v14542_v16  ;;  %v3420_v2 = vmul.f32 %v3388_v7, %v14356_v26  ;;  %v9063_v25 = vld [vmem:[%s16725_s4 + $0x448] sm:$0xff] }
 0x412   : > { %v3045_v37 = vmul.f32 0.70710677, %v14545_v40  ;;  %v3390_v56 = vadd.f32 -0.00073499064, %v3358_v27  ;;  %v3359_v28 = vmul.f32 %v3327_v52, %v14415_v15  ;;  %v14579_v50 = vmul.f32 -1.45660715e-05, %v14356_v26 }
 0x413   : > { %17106 = vst [vmem:[#allocation27_spill] sm:$0xff] %v14563_v11  ;;  %17107 = vst [vmem:[#allocation29_spill] sm:$0xff] %v14566_v44  ;;  %v3419_v4 = vmul.f32 %v3387_v51, %v14360_v24  ;;  %v3389_v47 = vadd.f32 -0.00073499064, %v3357_v54  ;;  %v3392_v13 = vadd.f32 -0.00073499064, %v3360_v38  ;;  %v3362_v8 = vmul.f32 %v3330_v32, %v14422_v17 }
 0x414   : > { %17108 = vst [vmem:[#allocation31_spill] sm:$0xff] %v14579_v50  ;;  %v3171_v14 = vmul.f32 -2.7261424e-10, %v14554_v62  ;;  %v3297_v6 = vmul.f32 %v3265_v3, %v14468_v29  ;;  %v14587_v7 = vmul.f32 %v14556_v34, %v14556_v34  ;;  %v14590_v27 = vmul.f32 %v2878_v46, %v14428_v42 }
 0x415   : > { %v3204_v52 = vadd.f32 2.7706815e-08, %v3172_v36  ;;  %v14592_v44 = vclamps-f32 %v3045_v37, 4.0  ;;  %v2963_v51 = vadd.f32 %v14255_v21, %v14298_v5  ;;  %v10823_v54 = vpack.c.bf16 %v9063_v25, %v9062_v18  ;;  %v17112_v18 = vld [vmem:[#allocation37_spill] sm:$0xff] }
 0x416   : > { %17109 = vst [vmem:[#allocation33_spill] sm:$0xff] %v14587_v7  ;;  %v3452_v38 = vadd.f32 -0.0029546, %v3420_v2  ;;  %v3422_v11 = vmul.f32 %v3390_v56, %v14383_v58  ;;  %v14598_v32 = vmul.f32 0.5, %v14334_v60  ;;  %v3391_v3 = vadd.f32 -0.00073499064, %v3359_v28 }
 0x417   : > { %v3451_v30 = vadd.f32 -0.0029546, %v3419_v4  ;;  %v3421_v12 = vmul.f32 %v3389_v47, %v14389_v53  ;;  %v3424_v42 = vmul.f32 %v3392_v13, %v14393_v31  ;;  %v3203_v46 = vadd.f32 2.7706815e-08, %v3171_v14  ;;  %10824 = vmatprep.subr.bf16.mxu0 %v10823_v54  ;;  %v9064_v4 = vld [vmem:[%s16725_s4 + $0x450] sm:$0xff]  ;;  %v9065_v47 = vld [vmem:[%s16725_s4 + $0x458] sm:$0xff] }
 0x418   : > { %17110 = vst [vmem:[#allocation35_spill] sm:$0xff] %v14598_v32  ;;  %v3394_v36 = vadd.f32 -0.00073499064, %v3362_v8  ;;  %v3174_v37 = vmul.f32 -2.7261424e-10, %v14587_v7  ;;  %v2873_v2 = vadd.f32 %v14255_v21, %v14207_v43  ;;  %10826 = vmatpush3.bf16.msra.mxu0 %v10823_v54  ;;  %v3236_v60 = vmul.f32 %v3204_v52, %v14542_v16 }
 0x419   : > { %v3048_v5 = vmul.f32 0.70710677, %v14590_v27  ;;  %v3329_v56 = vadd.f32 -5.6925062e-05, %v3297_v6  ;;  %v14609_v28 = vmul.f32 %v14592_v44, %v14592_v44  ;;  %v14612_v25 = vmul.f32 %v2963_v51, %v17112_v18  ;;  %v9066_v18 = vld [vmem:[%s16725_s4 + $0x460] sm:$0xff] }
 0x41a   : > { %v3484_v43 = vmul.f32 %v3452_v38, %v14356_v26  ;;  %v3454_v13 = vadd.f32 -0.0029546, %v3422_v11  ;;  %v14622_v14 = vmul.f32 0.5, %v14346_v33  ;;  %v3423_v8 = vmul.f32 %v3391_v3, %v14415_v15  ;;  %v9067_v38 = vld [vmem:[%s16725_s4 + $0x468] sm:$0xff] }
 0x41b   : > { %17111 = vst [vmem:[#allocation68_spill] sm:$0xff] %v14609_v28  ;;  %17113 = vst [vmem:[#allocation37_spill] sm:$0xff] %v14612_v25  ;;  %v3483_v6 = vmul.f32 %v3451_v30, %v14360_v24  ;;  %v3453_v52 = vadd.f32 -0.0029546, %v3421_v12  ;;  %v3456_v51 = vadd.f32 -0.0029546, %v3424_v42  ;;  %v3235_v54 = vmul.f32 %v3203_v46, %v14554_v62 }
 0x41c   : > { %17114 = vst [vmem:[#allocation69_spill] sm:$0xff] %v14622_v14  ;;  %v3206_v11 = vadd.f32 2.7706815e-08, %v3174_v37  ;;  %v14633_v32 = vclamps-f32 %v3048_v5, 4.0  ;;  %v14636_v33 = vmul.f32 %v2873_v2, %v14430_v48  ;;  %v10827_v3 = vpack.c.bf16 %v9065_v47, %v9064_v4  ;;  %v9068_v14 = vld [vmem:[%s16725_s4 + $0x470] sm:$0xff]  ;;  %v9069_v37 = vld [vmem:[%s16725_s4 + $0x478] sm:$0xff] }
 0x41d   : > { %v3426_v12 = vmul.f32 %v3394_v36, %v14422_v17  ;;  %v3361_v30 = vmul.f32 %v3329_v56, %v14468_v29  ;;  %v3268_v42 = vadd.f32 -2.101024e-06, %v3236_v60  ;;  %v3173_v46 = vmul.f32 -2.7261424e-10, %v14609_v28  ;;  %v7167_v24 = vld [vmem:[#allocation2 + $0x99] sm:$0xff] }
 0x41e   : > { %v3516_v5 = vadd.f32 -0.016096033, %v3484_v43  ;;  %v3486_v48 = vmul.f32 %v3454_v13, %v14383_v58  ;;  %v3455_v2 = vadd.f32 -0.0029546, %v3423_v8  ;;  %10828 = vmatprep.subr.bf16.mxu0 %v10827_v3  ;;  %v10831_v4 = vpack.c.bf16 %v9067_v38, %v9066_v18  ;;  %v17182_v25 = vld [vmem:[#allocation15_spill] sm:$0xff] }
 0x41f   : > { %v3515_v36 = vadd.f32 -0.016096033, %v3483_v6  ;;  %v3485_v56 = vmul.f32 %v3453_v52, %v14389_v53  ;;  %v3488_v60 = vmul.f32 %v3456_v51, %v14393_v31  ;;  %v3267_v47 = vadd.f32 -2.101024e-06, %v3235_v54  ;;  %10830 = vmatpush3.bf16.msra.mxu0 %v10827_v3  ;;  %v7166_v53 = vld [vmem:[#allocation2 + $0x91] sm:$0xff] }
 0x420   : > { %v3238_v26 = vmul.f32 %v3206_v11, %v14587_v7  ;;  %v14653_v50 = vmul.f32 %v14633_v32, %v14633_v32  ;;  %v3047_v43 = vmul.f32 0.70710677, %v14636_v33  ;;  %10832 = vmatprep.subr.bf16.mxu0 %v10831_v4  ;;  %v10835_v13 = vpack.c.bf16 %v9069_v37, %v9068_v14 }
 0x421   : > { %v3458_v8 = vadd.f32 -0.0029546, %v3426_v12  ;;  %v3393_v58 = vadd.f32 -0.00073499064, %v3361_v30  ;;  %v3300_v6 = vmul.f32 %v3268_v42, %v14542_v16  ;;  %v3205_v18 = vadd.f32 2.7706815e-08, %v3173_v46 }
 0x422   : > { %v3518_v52 = vadd.f32 -0.016096033, %v3486_v48  ;;  %v3487_v51 = vmul.f32 %v3455_v2, %v14415_v15  ;;  %v14659_v54 = vmul.f32 0.5, %v14350_v55  ;;  %v14662_v38 = vmul.f32 0.5, %v14401_v10 }
 0x423   : > { %v14665_v11 = vmul.f32 %v14341_v45, %v3516_v5  ;;  %v14668_v3 = vmul.f32 %v14343_v20, %v3515_v36  ;;  %v3517_v14 = vadd.f32 -0.016096033, %v3485_v56  ;;  %v3520_v12 = vadd.f32 -0.016096033, %v3488_v60  ;;  %10834 = vmatpush3.bf16.msra.mxu0 %v10831_v4  ;;  %v17122_v36 = vld [vmem:[#allocation8_spill] sm:$0xff] }
 0x424   : > { %17115 = vst [vmem:[#allocation70_spill] sm:$0xff] %v14659_v54  ;;  %17116 = vst [vmem:[#allocation71_spill] sm:$0xff] %v14662_v38  ;;  %v3299_v30 = vmul.f32 %v3267_v47, %v14554_v62  ;;  %v3270_v42 = vadd.f32 -2.101024e-06, %v3238_v26  ;;  %v3176_v46 = vmul.f32 -2.7261424e-10, %v14653_v50  ;;  %10836 = vmatprep.subr.bf16.mxu0 %v10835_v13  ;;  %v3490_v55 = vmul.f32 %v3458_v8, %v14422_v17 }
 0x425   : > { %17117 = vst [vmem:[#allocation72_spill] sm:$0xff] %v14665_v11  ;;  %17118 = vst [vmem:[#allocation73_spill] sm:$0xff] %v14668_v3  ;;  %v14672_v37 = vclamps-f32 %v3047_v43, 4.0  ;;  %v3425_v10 = vmul.f32 %v3393_v58, %v14468_v29  ;;  %v3332_v45 = vadd.f32 -5.6925062e-05, %v3300_v6  ;;  %v3237_v5 = vmul.f32 %v3205_v18, %v14609_v28 }
 0x426   : > { %v14678_v20 = vmul.f32 %v14362_v57, %v3518_v52  ;;  %v3519_v48 = vadd.f32 -0.016096033, %v3487_v51  ;;  %v14681_v2 = vmul.f32 0.5, %v14476_v59  ;;  %v3050_v26 = vmul.f32 0.70710677, %v14260_v61 }
 0x427   : > { %v14685_v4 = vmul.f32 %v14365_v23, %v3517_v14  ;;  %v14688_v56 = vmul.f32 %v17122_v36, %v3520_v12  ;;  %v14691_v58 = vmul.f32 0.5, %v14488_v19  ;;  %v14694_v60 = vmul.f32 0.5, %v14513_v41  ;;  %10838 = vmatpush3.bf16.msra.mxu0 %v10835_v13  ;;  %v7154_v23 = vld [vmem:[#allocation2 + $0x31] sm:$0xff]  ;;  %v17126_v19 = vld [vmem:[#allocation12_spill] sm:$0xff] }
 0x428   : > { %17119 = vst [vmem:[#allocation74_spill] sm:$0xff] %v14678_v20  ;;  %17120 = vst [vmem:[#allocation75_spill] sm:$0xff] %v14681_v2  ;;  %v3331_v57 = vadd.f32 -5.6925062e-05, %v3299_v30  ;;  %v3302_v47 = vmul.f32 %v3270_v42, %v14587_v7  ;;  %v3208_v59 = vadd.f32 2.7706815e-08, %v3176_v46  ;;  %v14699_v43 = vmul.f32 %v14672_v37, %v14672_v37 }
 0x429   : > { %17121 = vst [vmem:[#allocation76_spill] sm:$0xff] %v14685_v4  ;;  %17123 = vst [vmem:[#allocation8_spill] sm:$0xff] %v14688_v56  ;;  %v3522_v8 = vadd.f32 -0.016096033, %v3490_v55  ;;  %v3457_v6 = vadd.f32 -0.0029546, %v3425_v10  ;;  %v3364_v18 = vmul.f32 %v3332_v45, %v14542_v16  ;;  %v14703_v51 = vmul.f32 %v17126_v19, %v3519_v48 }
 0x42a   : > { %17124 = vst [vmem:[#allocation77_spill] sm:$0xff] %v14691_v58  ;;  %17125 = vst [vmem:[#allocation78_spill] sm:$0xff] %v14694_v60  ;;  %v3269_v52 = vadd.f32 -2.101024e-06, %v3237_v5  ;;  %v14705_v41 = vclamps-f32 %v3050_v26, 4.0  ;;  %v17128_v13 = vld [vmem:[#allocation46_spill] sm:$0xff]  ;;  %v3363_v36 = vmul.f32 %v3331_v57, %v14554_v62 }
 0x42b   : > { %17127 = vst [vmem:[#allocation12_spill] sm:$0xff] %v14703_v51  ;;  %v2898_v14 = vadd.f32 %v17128_v13, %v14255_v21  ;;  %v17129_v12 = vld [vmem:[#allocation47_spill] sm:$0xff]  ;;  %v17130_v42 = vld [vmem:[#allocation38_spill] sm:$0xff]  ;;  %v14714_v55 = vmul.f32 0.5, %v14545_v40  ;;  %v14717_v10 = vmul.f32 0.5, %v14590_v27  ;;  %v17134_v45 = vld [vmem:[#allocation36_spill] sm:$0xff]  ;;  %v3240_v13 = vmul.f32 %v3208_v59, %v14653_v50 }
 0x42c   : > { %v2893_v30 = vadd.f32 %v14255_v21, %v17129_v12  ;;  %vm17131_vm2 = vnez %v17130_v42  ;;  %v7155_v46 = vld [vmem:[#allocation2 + $0x39] sm:$0xff]  ;;  %v3049_v5 = vmul.f32 0.70710677, %v17134_v45  ;;  %v17135_v48 = vld [vmem:[#allocation49_spill] sm:$0xff]  ;;  %v3334_v19 = vadd.f32 -5.6925062e-05, %v3302_v47 }
 0x42d   : > { %10460 = vmatmul.mubr.msk.f32.vlgmr.msra.gmra.mrb[16].mxu0 %vm17131_vm2, %v7154_v23  ;;  %17132 = vst [vmem:[#allocation46_spill] sm:$0xff] %v14714_v55  ;;  %17133 = vst [vmem:[#allocation47_spill] sm:$0xff] %v14717_v10  ;;  %v2908_v26 = vadd.f32 %v17135_v48, %v14255_v21  ;;  %v3175_v23 = vmul.f32 -2.7261424e-10, %v14699_v43  ;;  %v17136_v12 = vld [vmem:[#allocation18_spill] sm:$0xff]  ;;  %v3489_v40 = vmul.f32 %v3457_v6, %v14468_v29  ;;  %v7156_v55 = vld [vmem:[#allocation2 + $0x41] sm:$0xff] }
 0x42e   : > { %10462 = vmatprep.mubr.f32.mxu0 %v7155_v46  ;;  %v14726_v42 = vmul.f32 %v17136_v12, %v3522_v8  ;;  %v3396_v27 = vadd.f32 -0.00073499064, %v3364_v18  ;;  %v3301_v10 = vmul.f32 %v3269_v52, %v14609_v28  ;;  %v14732_v48 = vmul.f32 %v14705_v41, %v14705_v41  ;;  %v17138_v46 = vld [vmem:[#allocation24_spill] sm:$0xff]  ;;  %v17139_v47 = vld [vmem:[#allocation26_spill] sm:$0xff]  ;;  %v17141_v12 = vld [vmem:[#allocation39_spill] sm:$0xff] }
 0x42f   : > { %v14735_v57 = vmul.f32 %v2898_v14, %v17138_v46  ;;  %v14738_v59 = vmul.f32 %v2893_v30, %v17139_v47  ;;  %v17140_v60 = vld [vmem:[#allocation50_spill] sm:$0xff]  ;;  %vm17142_vm4 = vnez %v17141_v12  ;;  %v14745_v18 = vmul.f32 0.5, %v14636_v33  ;;  %v17144_v58 = vld [vmem:[#allocation28_spill] sm:$0xff]  ;;  %v17152_v51 = vld [vmem:[#allocation43_spill] sm:$0xff] }
 0x430   : > { %17137 = vst [vmem:[#allocation38_spill] sm:$0xff] %v14726_v42  ;;  %v2903_v8 = vadd.f32 %v14255_v21, %v17140_v60  ;;  %v7157_v6 = vld [vmem:[#allocation2 + $0x49] sm:$0xff]  ;;  %v14747_v52 = vclamps-f32 %v3049_v5, 4.0  ;;  %v14750_v2 = vmul.f32 %v2908_v26, %v17144_v58  ;;  %v3395_v30 = vadd.f32 -0.00073499064, %v3363_v36  ;;  %v17146_v33 = vld [vmem:[#allocation60_spill] sm:$0xff] }
 0x431   : > { %10463 = vmatmul.mubr.msk.f32.gmra.mrb[18].mxu0 %vm17142_vm4, %v7156_v55  ;;  %17143 = vst [vmem:[#allocation36_spill] sm:$0xff] %v14745_v18  ;;  %v17145_v14 = vld [vmem:[#allocation34_spill] sm:$0xff]  ;;  %v3366_v47 = vmul.f32 %v3334_v19, %v14587_v7  ;;  %v3272_v60 = vadd.f32 -2.101024e-06, %v3240_v13  ;;  %v3207_v38 = vadd.f32 2.7706815e-08, %v3175_v23  ;;  %v3428_v55 = vmul.f32 %v3396_v27, %v14542_v16 }
 0x432   : > { %v2918_v46 = vadd.f32 %v17145_v14, %v14255_v21  ;;  %10465 = vmatprep.mubr.f32.mxu0 %v7157_v6  ;;  %v3521_v12 = vadd.f32 -0.016096033, %v3489_v40  ;;  %v3333_v54 = vadd.f32 -5.6925062e-05, %v3301_v10  ;;  %v2913_v5 = vadd.f32 %v14255_v21, %v17146_v33  ;;  %v7158_v18 = vld [vmem:[#allocation2 + $0x51] sm:$0xff]  ;;  %v7159_v42 = vld [vmem:[#allocation2 + $0x59] sm:$0xff] }
 0x433   : > { %v3178_v58 = vmul.f32 -2.7261424e-10, %v14732_v48  ;;  %v3052_v26 = vmul.f32 0.70710677, %v14735_v57  ;;  %v3051_v6 = vmul.f32 0.70710677, %v14738_v59  ;;  %v14771_v10 = vmul.f32 %v14747_v52, %v14747_v52 }
 0x434   : > { %v17147_v36 = vld [vmem:[#allocation30_spill] sm:$0xff]  ;;  %v17148_v19 = vld [vmem:[#allocation40_spill] sm:$0xff]  ;;  %v14767_v13 = vmul.f32 0.5, %v14260_v61  ;;  %v3054_v23 = vmul.f32 0.70710677, %v14750_v2  ;;  %v14775_v40 = vmul.f32 %v2918_v46, %v14458_v0  ;;  %v3427_v27 = vmul.f32 %v3395_v30, %v14554_v62 }
 0x435   : > { %v14762_v14 = vmul.f32 %v2903_v8, %v17147_v36  ;;  %vm17149_vm5 = vnez %v17148_v19  ;;  %v3398_v8 = vadd.f32 -0.00073499064, %v3366_v47  ;;  %v3304_v33 = vmul.f32 %v3272_v60, %v14653_v50  ;;  %v17151_v19 = vld [vmem:[#allocation9_spill] sm:$0xff] }
 0x436   : > { %10466 = vmatmul.mubr.msk.f32.gmra.mrb[20].mxu0 %vm17149_vm5, %v7158_v18  ;;  %17150 = vst [vmem:[#allocation49_spill] sm:$0xff] %v14767_v13  ;;  %v3239_v18 = vmul.f32 %v3207_v38, %v14699_v43  ;;  %v3460_v36 = vadd.f32 -0.0029546, %v3428_v55  ;;  %v3365_v61 = vmul.f32 %v3333_v54, %v14609_v28  ;;  %v14782_v13 = vmul.f32 %v2913_v5, %v17151_v19  ;;  %v7160_v4 = vld [vmem:[#allocation2 + $0x61] sm:$0xff]  ;;  %v7161_v0 = vld [vmem:[#allocation2 + $0x69] sm:$0xff] }
 0x437   : > { %10468 = vmatprep.mubr.f32.mxu0 %v7159_v42  ;;  %v2928_v56 = vadd.f32 %v17152_v51, %v14255_v21  ;;  %v3210_v46 = vadd.f32 2.7706815e-08, %v3178_v58  ;;  %v14786_v42 = vclamps-f32 %v3052_v26, 4.0  ;;  %v14788_v30 = vclamps-f32 %v3051_v6, 4.0  ;;  %v17153_v60 = vld [vmem:[#allocation41_spill] sm:$0xff]  ;;  %v17155_v38 = vld [vmem:[#allocation32_spill] sm:$0xff] }
 0x438   : > { %v3053_v47 = vmul.f32 0.70710677, %v14762_v14  ;;  %vm17154_vm6 = vnez %v17153_v60  ;;  %v14794_v54 = vmul.f32 %v17155_v38, %v3521_v12  ;;  %v3177_v55 = vmul.f32 -2.7261424e-10, %v14771_v10  ;;  %v17157_v60 = vld [vmem:[#allocation11_spill] sm:$0xff] }
 0x439   : > { %v14797_v5 = vclamps-f32 %v3054_v23, 4.0  ;;  %v3056_v21 = vmul.f32 0.70710677, %v14775_v40  ;;  %v3459_v51 = vadd.f32 -0.0029546, %v3427_v27  ;;  %v3430_v58 = vmul.f32 %v3398_v8, %v14587_v7  ;;  %v7162_v38 = vld [vmem:[#allocation2 + $0x71] sm:$0xff] }
 0x43a   : > { %10469 = vmatmul.mubr.msk.f32.gmra.mrb[22].mxu0 %vm17154_vm6, %v7160_v4  ;;  %17156 = vst [vmem:[#allocation18_spill] sm:$0xff] %v14794_v54  ;;  %v3336_v26 = vadd.f32 -5.6925062e-05, %v3304_v33  ;;  %v3271_v6 = vadd.f32 -2.101024e-06, %v3239_v18  ;;  %v3492_v19 = vmul.f32 %v3460_v36, %v14542_v16  ;;  %v14804_v12 = vmul.f32 %v2928_v56, %v17157_v60  ;;  %v17161_v33 = vld [vmem:[#allocation42_spill] sm:$0xff] }
 0x43b   : > { %10471 = vmatprep.mubr.f32.mxu0 %v7161_v0  ;;  %v3397_v20 = vadd.f32 -0.00073499064, %v3365_v61  ;;  %v3055_v4 = vmul.f32 0.70710677, %v14782_v13  ;;  %v14807_v23 = vmul.f32 0.5, %v17134_v45  ;;  %v14811_v0 = vmul.f32 %v14786_v42, %v14786_v42  ;;  %v7163_v18 = vld [vmem:[#allocation2 + $0x79] sm:$0xff] }
 0x43c   : > { %v14815_v27 = vmul.f32 %v14788_v30, %v14788_v30  ;;  %v14817_v8 = vclamps-f32 %v3053_v47, 4.0  ;;  %vm17162_vm7 = vnez %v17161_v33  ;;  %v3242_v56 = vmul.f32 %v3210_v46, %v14732_v48 }
 0x43d   : > { %17158 = vst [vmem:[#allocation24_spill] sm:$0xff] %v14807_v23  ;;  %17159 = vst [vmem:[#allocation26_spill] sm:$0xff] %v14811_v0  ;;  %v3209_v36 = vadd.f32 2.7706815e-08, %v3177_v55  ;;  %v14824_v45 = vmul.f32 %v14797_v5, %v14797_v5  ;;  %v14826_v61 = vclamps-f32 %v3056_v21, 4.0  ;;  %v3491_v60 = vmul.f32 %v3459_v51, %v14554_v62  ;;  %v17166_v21 = vld [vmem:[#allocation61_spill] sm:$0xff] }
 0x43e   : > { %17160 = vst [vmem:[#allocation50_spill] sm:$0xff] %v14815_v27  ;;  %10472 = vmatmul.mubr.msk.f32.gmra.mrb[24].mxu0 %vm17162_vm7, %v7162_v38  ;;  %v3462_v23 = vadd.f32 -0.0029546, %v3430_v58  ;;  %v3368_v47 = vmul.f32 %v3336_v26, %v14653_v50  ;;  %v3303_v54 = vmul.f32 %v3271_v6, %v14699_v43  ;;  %v3429_v38 = vmul.f32 %v3397_v20, %v14609_v28  ;;  %v14838_v55 = vld [vmem:[%s16724_s3] ss:$0 sm:$0xff]  ;;  %v7164_v51 = vld [vmem:[#allocation2 + $0x81] sm:$0xff] }
 0x43f   : > { %17163 = vst [vmem:[#allocation39_spill] sm:$0xff] %v14824_v45  ;;  %17164 = vst [vmem:[#allocation28_spill] sm:$0xff] %v14826_v61  ;;  %10474 = vmatprep.mubr.f32.mxu0 %v7163_v18  ;;  %v14832_v33 = vclamps-f32 %v3055_v4, 4.0  ;;  %v3058_v46 = vmul.f32 0.70710677, %v14804_v12  ;;  %v2923_v18 = vadd.f32 %v14838_v55, %v17166_v21  ;;  %v7165_v58 = vld [vmem:[#allocation2 + $0x89] sm:$0xff]  ;;  %v14846_v20 = vmul.f32 %v14817_v8, %v14817_v8 }
 0x440   : > { %v3524_v3 = vadd.f32 -0.016096033, %v3492_v19  ;;  %v3180_v26 = vmul.f32 -2.7261424e-10, %v14811_v0  ;;  %v3179_v6 = vmul.f32 -2.7261424e-10, %v14815_v27  ;;  %v3241_v62 = vmul.f32 %v3209_v36, %v14771_v10 }
 0x441   : > { %17165 = vst [vmem:[#allocation34_spill] sm:$0xff] %v14832_v33  ;;  %17167 = vst [vmem:[#allocation60_spill] sm:$0xff] %v14846_v20  ;;  %v17168_v4 = vld [vmem:[#allocation44_spill] sm:$0xff]  ;;  %v3274_v11 = vadd.f32 -2.101024e-06, %v3242_v56  ;;  %v14854_v21 = vmul.f32 %v14826_v61, %v14826_v61  ;;  %v3494_v29 = vmul.f32 %v3462_v23, %v14587_v7  ;;  %v14861_v56 = vclamps-f32 %v3058_v46, 4.0 }
 0x442   : > { %vm17169_vm8 = vnez %v17168_v4  ;;  %v3182_v16 = vmul.f32 -2.7261424e-10, %v14824_v45  ;;  %v3523_v19 = vadd.f32 -0.016096033, %v3491_v60  ;;  %v3400_v17 = vadd.f32 -0.00073499064, %v3368_v47 }
 0x443   : > { %10475 = vmatmul.mubr.msk.f32.gmra.mrb[26].mxu0 %vm17169_vm8, %v7164_v51  ;;  %17170 = vst [vmem:[#allocation30_spill] sm:$0xff] %v14854_v21  ;;  %v3335_v15 = vadd.f32 -5.6925062e-05, %v3303_v54  ;;  %v3461_v31 = vadd.f32 -0.0029546, %v3429_v38  ;;  %v14859_v4 = vmul.f32 %v14832_v33, %v14832_v33  ;;  %17172 = vst [vmem:[#allocation9_spill] sm:$0xff] %v14861_v56  ;;  %v14867_v61 = vmul.f32 %v14518_v1, %v3524_v3 }
 0x444   : > { %10477 = vmatprep.mubr.f32.mxu0 %v7165_v58  ;;  %v17173_v36 = vld [vmem:[#allocation13_spill] sm:$0xff]  ;;  %v3212_v60 = vadd.f32 2.7706815e-08, %v3180_v26  ;;  %v3211_v58 = vadd.f32 2.7706815e-08, %v3179_v6  ;;  %v3306_v47 = vmul.f32 %v3274_v11, %v14732_v48  ;;  %v3432_v1 = vmul.f32 %v3400_v17, %v14653_v50  ;;  %v17178_v26 = vld [vmem:[#allocation62_spill] sm:$0xff] }
 0x445   : > { %17171 = vst [vmem:[#allocation40_spill] sm:$0xff] %v14859_v4  ;;  %v14864_v51 = vmul.f32 %v2923_v18, %v17173_v36  ;;  %17174 = vst [vmem:[#allocation43_spill] sm:$0xff] %v14867_v61  ;;  %v3181_v23 = vmul.f32 -2.7261424e-10, %v14846_v20  ;;  %v17175_v54 = vld [vmem:[#allocation45_spill] sm:$0xff]  ;;  %v14875_v18 = vmul.f32 %v14530_v49, %v3523_v19  ;;  %v3367_v3 = vmul.f32 %v3335_v15, %v14699_v43  ;;  %v17180_v11 = vld [vmem:[#allocation48_spill] sm:$0xff] }
 0x446   : > { %vm17176_vm9 = vnez %v17175_v54  ;;  %v3273_v38 = vadd.f32 -2.101024e-06, %v3241_v62  ;;  %v3214_v46 = vadd.f32 2.7706815e-08, %v3182_v16  ;;  %v3184_v7 = vmul.f32 -2.7261424e-10, %v14854_v21 }
 0x447   : > { %10478 = vmatmul.mubr.msk.f32.gmra.mrb[28].mxu0 %vm17176_vm9, %v7166_v53  ;;  %17177 = vst [vmem:[#allocation41_spill] sm:$0xff] %v14875_v18  ;;  %v2938_v6 = vadd.f32 %v14838_v55, %v17178_v26  ;;  %v7168_v36 = vld [vmem:[#allocation2 + $0xa1] sm:$0xff]  ;;  %v3526_v54 = vadd.f32 -0.016096033, %v3494_v29  ;;  %v3183_v53 = vmul.f32 -2.7261424e-10, %v14859_v4  ;;  %v14884_v16 = vmul.f32 %v14861_v56, %v14861_v56 }
 0x448   : > { %10480 = vmatprep.mubr.f32.mxu0 %v7167_v24  ;;  %v3057_v24 = vmul.f32 0.70710677, %v14864_v51  ;;  %v3493_v49 = vmul.f32 %v3461_v31, %v14609_v28  ;;  %v3244_v62 = vmul.f32 %v3212_v60, %v14811_v0  ;;  %v3243_v17 = vmul.f32 %v3211_v58, %v14815_v27  ;;  %v7169_v19 = vld [vmem:[#allocation2 + $0xa9] sm:$0xff]  ;;  %v17183_v60 = vld [vmem:[#allocation63_spill] sm:$0xff] }
 0x449   : > { %17179 = vst [vmem:[#allocation32_spill] sm:$0xff] %v14884_v16  ;;  %v3213_v15 = vadd.f32 2.7706815e-08, %v3181_v23  ;;  %vm17181_vm10 = vnez %v17180_v11  ;;  %v3338_v29 = vadd.f32 -5.6925062e-05, %v3306_v47  ;;  %v3305_v26 = vmul.f32 %v3273_v38, %v14771_v10  ;;  %v7170_v23 = vld [vmem:[#allocation2 + $0xb1] sm:$0xff] }
 0x44a   : > { %v3246_v18 = vmul.f32 %v3214_v46, %v14824_v45  ;;  %v3216_v61 = vadd.f32 2.7706815e-08, %v3184_v7  ;;  %v3464_v56 = vadd.f32 -0.0029546, %v3432_v1  ;;  %v3399_v33 = vadd.f32 -0.00073499064, %v3367_v3 }
 0x44b   : > { %10481 = vmatmul.mubr.msk.f32.gmra.mrb[30].mxu0 %vm17181_vm10, %v7168_v36  ;;  %v14895_v31 = vmul.f32 %v2938_v6, %v17182_v25  ;;  %v2933_v58 = vadd.f32 %v14838_v55, %v17183_v60  ;;  %v14900_v11 = vmul.f32 %v14556_v34, %v3526_v54  ;;  %v3215_v36 = vadd.f32 2.7706815e-08, %v3183_v53  ;;  %v7171_v46 = vld [vmem:[#allocation2 + $0xb9] sm:$0xff] }
 0x44c   : > { %10483 = vmatprep.mubr.f32.mxu0 %v7169_v19  ;;  %v3186_v47 = vmul.f32 -2.7261424e-10, %v14884_v16  ;;  %v14903_v38 = vclamps-f32 %v3057_v24, 4.0  ;;  %v3525_v7 = vadd.f32 -0.016096033, %v3493_v49  ;;  %v3245_v3 = vmul.f32 %v3213_v15, %v14846_v20  ;;  %v17185_v25 = vld [vmem:[#allocation51_spill] sm:$0xff] }
 0x44d   : > { %17184 = vst [vmem:[#allocation11_spill] sm:$0xff] %v14900_v11  ;;  %v3276_v19 = vadd.f32 -2.101024e-06, %v3244_v62  ;;  %v3275_v1 = vadd.f32 -2.101024e-06, %v3243_v17  ;;  %vm17186_vm11 = vnez %v17185_v25  ;;  %v3370_v6 = vmul.f32 %v3338_v29, %v14732_v48 }
 0x44e   : > { %v3337_v60 = vadd.f32 -5.6925062e-05, %v3305_v26  ;;  %v3278_v28 = vadd.f32 -2.101024e-06, %v3246_v18  ;;  %v3248_v34 = vmul.f32 %v3216_v61, %v14854_v21  ;;  %v3431_v54 = vmul.f32 %v3399_v33, %v14699_v43  ;;  %v7172_v61 = vld [vmem:[#allocation2 + $0xc1] sm:$0xff] }
 0x44f   : > { %10484 = vmatmul.mubr.msk.f32.gmra.mrb[32].mxu0 %vm17186_vm11, %v7170_v23  ;;  %v14912_v53 = vmul.f32 0.5, %v14735_v57  ;;  %v3060_v24 = vmul.f32 0.70710677, %v14895_v31  ;;  %v14916_v49 = vmul.f32 %v2933_v58, %v14501_v9  ;;  %v3496_v62 = vmul.f32 %v3464_v56, %v14653_v50  ;;  %v17190_v9 = vld [vmem:[#allocation52_spill] sm:$0xff]  ;;  %v7173_v56 = vld [vmem:[#allocation2 + $0xc9] sm:$0xff] }
 0x450   : > { %10486 = vmatprep.mubr.f32.mxu0 %v7171_v46  ;;  %v3247_v17 = vmul.f32 %v3215_v36, %v14859_v4  ;;  %v3218_v15 = vadd.f32 2.7706815e-08, %v3186_v47  ;;  %v14922_v18 = vmul.f32 %v14903_v38, %v14903_v38  ;;  %v14925_v33 = vmul.f32 %v14592_v44, %v3525_v7  ;;  %v17192_v7 = vld [vmem:[#allocation64_spill] sm:$0xff] }
 0x451   : > { %17187 = vst [vmem:[#allocation42_spill] sm:$0xff] %v14912_v53  ;;  %v3308_v57 = vmul.f32 %v3276_v19, %v14811_v0  ;;  %v3307_v29 = vmul.f32 %v3275_v1, %v14815_v27  ;;  %v3277_v26 = vadd.f32 -2.101024e-06, %v3245_v3  ;;  %vm17191_vm12 = vnez %v17190_v9  ;;  %v7174_v1 = vld [vmem:[#allocation2 + $0xd1] sm:$0xff] }
 0x452   : > { %17188 = vst [vmem:[#allocation61_spill] sm:$0xff] %v14922_v18  ;;  %17189 = vst [vmem:[#allocation44_spill] sm:$0xff] %v14925_v33  ;;  %v3402_v58 = vadd.f32 -0.00073499064, %v3370_v6  ;;  %v3369_v23 = vmul.f32 %v3337_v60, %v14771_v10  ;;  %v3310_v36 = vmul.f32 %v3278_v28, %v14824_v45  ;;  %v3280_v47 = vadd.f32 -2.101024e-06, %v3248_v34 }
 0x453   : > { %10487 = vmatmul.mubr.msk.f32.gmra.mrb[34].mxu0 %vm17191_vm12, %v7172_v61  ;;  %v3463_v46 = vadd.f32 -0.0029546, %v3431_v54  ;;  %v14933_v25 = vclamps-f32 %v3060_v24, 4.0  ;;  %v3059_v44 = vmul.f32 0.70710677, %v14916_v49  ;;  %v2948_v19 = vadd.f32 %v14838_v55, %v17192_v7  ;;  %v17194_v24 = vld [vmem:[#allocation54_spill] sm:$0xff] }
 0x454   : > { %10489 = vmatprep.mubr.f32.mxu0 %v7173_v56  ;;  %v3528_v3 = vadd.f32 -0.016096033, %v3496_v62  ;;  %v3279_v9 = vadd.f32 -2.101024e-06, %v3247_v17  ;;  %v3250_v61 = vmul.f32 %v3218_v15, %v14884_v16  ;;  %v3185_v6 = vmul.f32 -2.7261424e-10, %v14922_v18 }
 0x455   : > { %v3340_v60 = vadd.f32 -5.6925062e-05, %v3308_v57  ;;  %v14941_v28 = vmul.f32 0.5, %v14738_v59  ;;  %v3339_v34 = vadd.f32 -5.6925062e-05, %v3307_v29  ;;  %v3309_v54 = vmul.f32 %v3277_v26, %v14846_v20  ;;  %v7175_v56 = vld [vmem:[#allocation2 + $0xd9] sm:$0xff] }
 0x456   : > { %vm17195_vm13 = vnez %v17194_v24  ;;  %v3434_v7 = vmul.f32 %v3402_v58, %v14732_v48  ;;  %v3401_v53 = vadd.f32 -0.00073499064, %v3369_v23  ;;  %v3342_v62 = vadd.f32 -5.6925062e-05, %v3310_v36  ;;  %v17197_v29 = vld [vmem:[#allocation17_spill] sm:$0xff]  ;;  %v11436_v33 = vld [vmem:[#allocation2 + $0xf9] sm:$0xff] }
 0x457   : > { %17193 = vst [vmem:[#allocation13_spill] sm:$0xff] %v14941_v28  ;;  %10490 = vmatmul.mubr.msk.f32.gmra.mrb[36].mxu0 %vm17195_vm13, %v7174_v1  ;;  %v3312_v17 = vmul.f32 %v3280_v47, %v14854_v21  ;;  %v3495_v15 = vmul.f32 %v3463_v46, %v14699_v43  ;;  %v14951_v59 = vmul.f32 %v14933_v25, %v14933_v25  ;;  %v14953_v57 = vclamps-f32 %v3059_v44, 4.0  ;;  %v7176_v47 = vld [vmem:[#allocation2 + $0xe1] sm:$0xff]  ;;  %v17200_v28 = vld [vmem:[#allocation55_spill] sm:$0xff] }
 0x458   : > { %10492 = vmatprep.mubr.f32.mxu0 %v7175_v56  ;;  %v14956_v26 = vmul.f32 %v2948_v19, %v17197_v29  ;;  %v14959_v1 = vmul.f32 %v14633_v32, %v3528_v3  ;;  %v3311_v58 = vmul.f32 %v3279_v9, %v14859_v4  ;;  %v3282_v23 = vadd.f32 -2.101024e-06, %v3250_v61  ;;  %v7177_v19 = vld [vmem:[#allocation2 + $0xe9] sm:$0xff] }
 0x459   : > { %17196 = vst [vmem:[#allocation45_spill] sm:$0xff] %v14951_v59  ;;  %v3217_v36 = vadd.f32 2.7706815e-08, %v3185_v6  ;;  %v3372_v24 = vmul.f32 %v3340_v60, %v14811_v0  ;;  %v3371_v46 = vmul.f32 %v3339_v34, %v14815_v27  ;;  %v14965_v56 = vmul.f32 0.5, %v14750_v2 }
 0x45a   : > { %17198 = vst [vmem:[#allocation62_spill] sm:$0xff] %v14959_v1  ;;  %v3341_v44 = vadd.f32 -5.6925062e-05, %v3309_v54  ;;  %vm17201_vm14 = vnez %v17200_v28  ;;  %v3466_v29 = vadd.f32 -0.0029546, %v3434_v7  ;;  %v3433_v32 = vmul.f32 %v3401_v53, %v14771_v10  ;;  %v17203_v7 = vld [vmem:[#allocation65_spill] sm:$0xff] }
 0x45b   : > { %17199 = vst [vmem:[#allocation48_spill] sm:$0xff] %v14965_v56  ;;  %10493 = vmatmul.mubr.msk.f32.gmra.mrb[38].mxu0 %vm17201_vm14, %v7176_v47  ;;  %v3374_v3 = vmul.f32 %v3342_v62, %v14824_v45  ;;  %v3344_v9 = vadd.f32 -5.6925062e-05, %v3312_v17  ;;  %v3527_v61 = vadd.f32 -0.016096033, %v3495_v15  ;;  %v14974_v60 = vmul.f32 %v14953_v57, %v14953_v57 }
 0x45c   : > { %10495 = vmatprep.mubr.f32.mxu0 %v7177_v19  ;;  %v3188_v6 = vmul.f32 -2.7261424e-10, %v14951_v59  ;;  %v3062_v2 = vmul.f32 0.70710677, %v14956_v26  ;;  %v3343_v34 = vadd.f32 -5.6925062e-05, %v3311_v58  ;;  %v3314_v28 = vmul.f32 %v3282_v23, %v14884_v16 }
 0x45d   : > { %17202 = vst [vmem:[#allocation15_spill] sm:$0xff] %v14974_v60  ;;  %v3249_v54 = vmul.f32 %v3217_v36, %v14922_v18  ;;  %v2943_v53 = vadd.f32 %v14838_v55, %v17203_v7  ;;  %v3404_v62 = vadd.f32 -0.00073499064, %v3372_v24  ;;  %v3403_v17 = vadd.f32 -0.00073499064, %v3371_v46  ;;  %v11435_v19 = vld [vmem:[#allocation2 + $0xf1] sm:$0xff] }
 0x45e   : > { %v14982_v15 = vmul.f32 0.5, %v14762_v14  ;;  %v3373_v47 = vmul.f32 %v3341_v44, %v14846_v20  ;;  %v3498_v58 = vmul.f32 %v3466_v29, %v14732_v48  ;;  %v3465_v1 = vadd.f32 -0.0029546, %v3433_v32 }
 0x45f   : > { %10496 = vmatmul.mubr.msk.f32.gmra.mrb[40].mxu0 %vm17024_vm3, %v11435_v19  ;;  %v3406_v23 = vadd.f32 -0.00073499064, %v3374_v3  ;;  %v3376_v36 = vmul.f32 %v3344_v9, %v14854_v21  ;;  %v14990_v24 = vmul.f32 %v14672_v37, %v3527_v61  ;;  %v3220_v46 = vadd.f32 2.7706815e-08, %v3188_v6  ;;  %v11437_v9 = vld [vmem:[#allocation2 + $0x101] sm:$0xff]  ;;  %v7181_v6 = vld [vmem:[#allocation2 + $0x109] sm:$0xff] }
 0x460   : > { %17204 = vst [vmem:[#allocation63_spill] sm:$0xff] %v14982_v15  ;;  %10498 = vmatprep.mubr.f32.mxu0 %v11436_v33  ;;  %v3187_v14 = vmul.f32 -2.7261424e-10, %v14974_v60  ;;  %v14993_v7 = vclamps-f32 %v3062_v2, 4.0  ;;  %v3375_v44 = vmul.f32 %v3343_v34, %v14859_v4  ;;  %v3346_v56 = vadd.f32 -5.6925062e-05, %v3314_v28 }
 0x461   : > { %17206 = vst [vmem:[#allocation51_spill] sm:$0xff] %v14990_v24  ;;  %v3281_v19 = vadd.f32 -2.101024e-06, %v3249_v54  ;;  %v14997_v29 = vmul.f32 %v2943_v53, %v14515_v63  ;;  %v3436_v32 = vmul.f32 %v3404_v62, %v14811_v0  ;;  %v3435_v3 = vmul.f32 %v3403_v17, %v14815_v27  ;;  %v17208_v61 = vld [vmem:[#allocation57_spill] sm:$0xff]  ;;  %v17212_v15 = vld [vmem:[#allocation58_spill] sm:$0xff] }
 0x462   : > { %v3405_v33 = vadd.f32 -0.00073499064, %v3373_v47  ;;  %v15002_v37 = vmul.f32 0.5, %v14775_v40  ;;  %vm17209_vm3 = vnez %v17208_v61  ;;  %v3530_v2 = vadd.f32 -0.016096033, %v3498_v58  ;;  %v17210_v40 = vld [vmem:[#allocation66_spill] sm:$0xff] }
 0x463   : > { %10499 = vmatmul.mubr.msk.f32.gmra.mrb[42].mxu0 %vm17209_vm3, %v11437_v9  ;;  %v3497_v34 = vmul.f32 %v3465_v1, %v14771_v10  ;;  %v3438_v28 = vmul.f32 %v3406_v23, %v14824_v45  ;;  %v3408_v63 = vadd.f32 -0.00073499064, %v3376_v36  ;;  %v3252_v54 = vmul.f32 %v3220_v46, %v14951_v59  ;;  %v7183_v47 = vld [vmem:[#allocation2 + $0x119] sm:$0xff]  ;;  %v7182_v36 = vld [vmem:[#allocation2 + $0x111] sm:$0xff]  ;;  %v7184_v24 = vld [vmem:[#allocation2 + $0x121] sm:$0xff] }
 0x464   : > { %17207 = vst [vmem:[#allocation52_spill] sm:$0xff] %v15002_v37  ;;  %10501 = vmatprep.mubr.f32.mxu0 %v7181_v6  ;;  %v3219_v53 = vadd.f32 2.7706815e-08, %v3187_v14  ;;  %v15011_v62 = vmul.f32 %v14993_v7, %v14993_v7  ;;  %v2958_v17 = vadd.f32 %v14838_v55, %v17210_v40  ;;  %v3407_v9 = vadd.f32 -0.00073499064, %v3375_v44  ;;  %v17211_v14 = vld [vmem:[#allocation67_spill] sm:$0xff] }
 0x465   : > { %v3378_v58 = vmul.f32 %v3346_v56, %v14884_v16  ;;  %v3313_v1 = vmul.f32 %v3281_v19, %v14922_v18  ;;  %v3061_v23 = vmul.f32 0.70710677, %v14997_v29  ;;  %v3468_v61 = vadd.f32 -0.0029546, %v3436_v32 }
 0x466   : > { %v3467_v6 = vadd.f32 -0.0029546, %v3435_v3  ;;  %v3437_v46 = vmul.f32 %v3405_v33, %v14846_v20  ;;  %v2953_v37 = vadd.f32 %v14838_v55, %v17211_v14  ;;  %vm17213_vm15 = vnez %v17212_v15 }
 0x467   : > { %10502 = vmatmul.mubr.msk.f32.gmra.mrb[44].mxu0 %vm17213_vm15, %v7182_v36  ;;  %v15024_v40 = vmul.f32 %v14705_v41, %v3530_v2  ;;  %v3529_v44 = vadd.f32 -0.016096033, %v3497_v34  ;;  %v3470_v56 = vadd.f32 -0.0029546, %v3438_v28  ;;  %v3440_v19 = vmul.f32 %v3408_v63, %v14854_v21 }
 0x468   : > { %10504 = vmatprep.mubr.f32.mxu0 %v7183_v47  ;;  %v3284_v11 = vadd.f32 -2.101024e-06, %v3252_v54  ;;  %v3251_v32 = vmul.f32 %v3219_v53, %v14974_v60  ;;  %v3190_v3 = vmul.f32 -2.7261424e-10, %v15011_v62  ;;  %v15030_v33 = vmul.f32 %v2958_v17, %v14522_v39  ;;  %v17215_v54 = vld [vmem:[#allocation59_spill] sm:$0xff] }
 0x469   : > { %17214 = vst [vmem:[#allocation64_spill] sm:$0xff] %v15024_v40  ;;  %v3439_v55 = vmul.f32 %v3407_v9, %v14859_v4  ;;  %v3410_v15 = vadd.f32 -0.00073499064, %v3378_v58  ;;  %v3345_v36 = vadd.f32 -5.6925062e-05, %v3313_v1  ;;  %v15033_v41 = vclamps-f32 %v3061_v23, 4.0 }
 0x46a   : > { %v3500_v2 = vmul.f32 %v3468_v61, %v14811_v0  ;;  %v3499_v34 = vmul.f32 %v3467_v6, %v14815_v27  ;;  %v3469_v28 = vadd.f32 -0.0029546, %v3437_v46  ;;  %v15038_v63 = vmul.f32 %v2953_v37, %v14524_v22 }
 0x46b   : > { %vm17216_vm0 = vnez %v17215_v54  ;;  %v15043_v39 = vmul.f32 %v14747_v52, %v3529_v44  ;;  %v3502_v53 = vmul.f32 %v3470_v56, %v14824_v45  ;;  %v3472_v17 = vadd.f32 -0.0029546, %v3440_v19 }
 0x46c   : > { %10505 = vmatmul.mubr.msk.f32.gmra.mrb[46].mxu0 %vm17216_vm0, %v7184_v24  ;;  %v15047_v47 = vmul.f32 0.5, %v14782_v13  ;;  %v3316_v9 = vmul.f32 %v3284_v11, %v14951_v59  ;;  %v3283_v58 = vadd.f32 -2.101024e-06, %v3251_v32  ;;  %v3222_v1 = vadd.f32 2.7706815e-08, %v3190_v3 }
 0x46d   : > { %17217 = vst [vmem:[#allocation54_spill] sm:$0xff] %v15043_v39  ;;  %v3064_v23 = vmul.f32 0.70710677, %v15030_v33  ;;  %v3471_v22 = vadd.f32 -0.0029546, %v3439_v55  ;;  %v3442_v37 = vmul.f32 %v3410_v15, %v14884_v16  ;;  %v3377_v24 = vmul.f32 %v3345_v36, %v14922_v18 }
 0x46e   : > { %17218 = vst [vmem:[#allocation17_spill] sm:$0xff] %v15047_v47  ;;  %v15055_v52 = vmul.f32 %v15033_v41, %v15033_v41  ;;  %v3532_v61 = vadd.f32 -0.016096033, %v3500_v2  ;;  %v3531_v6 = vadd.f32 -0.016096033, %v3499_v34  ;;  %v3501_v13 = vmul.f32 %v3469_v28, %v14846_v20 }
 0x46f   : > { %v3063_v46 = vmul.f32 0.70710677, %v15038_v63  ;;  %v3534_v11 = vadd.f32 -0.016096033, %v3502_v53  ;;  %v3504_v14 = vmul.f32 %v3472_v17, %v14854_v21  ;;  %v15061_v44 = vmul.f32 0.5, %v14804_v12 }
 0x470   : > { %v15064_v56 = vmul.f32 0.5, %v14864_v51  ;;  %v3348_v19 = vadd.f32 -5.6925062e-05, %v3316_v9  ;;  %v3315_v32 = vmul.f32 %v3283_v58, %v14974_v60  ;;  %v3254_v3 = vmul.f32 %v3222_v1, %v15011_v62 }
 0x471   : > { %17219 = vst [vmem:[#allocation55_spill] sm:$0xff] %v15061_v44  ;;  %v15068_v55 = vclamps-f32 %v3064_v23, 4.0  ;;  %v3503_v15 = vmul.f32 %v3471_v22, %v14859_v4  ;;  %v3474_v36 = vadd.f32 -0.0029546, %v3442_v37  ;;  %v3409_v2 = vadd.f32 -0.00073499064, %v3377_v24 }
 0x472   : > { %17220 = vst [vmem:[#allocation65_spill] sm:$0xff] %v15064_v56  ;;  %v3189_v34 = vmul.f32 -2.7261424e-10, %v15055_v52  ;;  %v15073_v28 = vmul.f32 %v14786_v42, %v3532_v61  ;;  %v15076_v12 = vmul.f32 %v14788_v30, %v3531_v6  ;;  %v3533_v51 = vadd.f32 -0.016096033, %v3501_v13  ;;  %v17227_v13 = vld [vmem:[#allocation37_spill] sm:$0xff] }
 0x473   : > { %v15078_v54 = vclamps-f32 %v3063_v46, 4.0  ;;  %v15081_v53 = vmul.f32 %v14797_v5, %v3534_v11  ;;  %v3536_v17 = vadd.f32 -0.016096033, %v3504_v14  ;;  %v15084_v9 = vmul.f32 0.5, %v14895_v31  ;;  %v17228_v11 = vld [vmem:[#allocation28_spill] sm:$0xff] }
 0x474   : > { %17221 = vst [vmem:[#allocation56_spill] sm:$0xff] %v15073_v28  ;;  %17222 = vst [vmem:[#allocation57_spill] sm:$0xff] %v15076_v12  ;;  %v3066_v58 = vmul.f32 0.70710677, %v14560_v35  ;;  %v3380_v1 = vmul.f32 %v3348_v19, %v14951_v59  ;;  %v3347_v23 = vadd.f32 -5.6925062e-05, %v3315_v32  ;;  %v15090_v30 = vmul.f32 %v15068_v55, %v15068_v55 }
 0x475   : > { %17223 = vst [vmem:[#allocation66_spill] sm:$0xff] %v15081_v53  ;;  %17224 = vst [vmem:[#allocation67_spill] sm:$0xff] %v15084_v9  ;;  %v3286_v42 = vadd.f32 -2.101024e-06, %v3254_v3  ;;  %v3535_v22 = vadd.f32 -0.016096033, %v3503_v15  ;;  %v3506_v37 = vmul.f32 %v3474_v36, %v14884_v16  ;;  %v3441_v5 = vmul.f32 %v3409_v2, %v14922_v18 }
 0x476   : > { %v3221_v24 = vadd.f32 2.7706815e-08, %v3189_v34  ;;  %v15095_v61 = vmul.f32 %v14817_v8, %v3533_v51  ;;  %v15098_v31 = vmul.f32 0.5, %v14916_v49  ;;  %v15102_v6 = vmul.f32 %v15078_v54, %v15078_v54  ;;  %v17232_v2 = vld [vmem:[#allocation34_spill] sm:$0xff]  ;;  %v17240_v9 = vld [vmem:[#allocation31_spill] sm:$0xff]  ;;  %v17243_v53 = vld [vmem:[#allocation9_spill] sm:$0xff] }
 0x477   : > { %v3065_v46 = vmul.f32 0.70710677, %v17227_v13  ;;  %v15106_v14 = vmul.f32 %v17228_v11, %v3536_v17  ;;  %v15109_v19 = vmul.f32 0.5, %v14956_v26  ;;  %v15112_v32 = vmul.f32 0.5, %v14997_v29  ;;  %v17246_v28 = vld [vmem:[#allocation53_spill] sm:$0xff]  ;;  %v17248_v16 = vld [vmem:[#allocation7_spill] sm:$0xff] }
 0x478   : > { %17225 = vst [vmem:[#allocation58_spill] sm:$0xff] %v15095_v61  ;;  %17226 = vst [vmem:[#allocation59_spill] sm:$0xff] %v15098_v31  ;;  %v15114_v8 = vclamps-f32 %v3066_v58, 4.0  ;;  %v3412_v3 = vadd.f32 -0.00073499064, %v3380_v1  ;;  %v3379_v49 = vmul.f32 %v3347_v23, %v14974_v60  ;;  %v3318_v15 = vmul.f32 %v3286_v42, %v15011_v62  ;;  %v17236_v1 = vld [vmem:[#allocation6_spill] sm:$0xff] }
 0x479   : > { %17229 = vst [vmem:[#allocation37_spill] sm:$0xff] %v15106_v14  ;;  %17230 = vst [vmem:[#allocation28_spill] sm:$0xff] %v15109_v19  ;;  %v3192_v36 = vmul.f32 -2.7261424e-10, %v15090_v30  ;;  %v15120_v34 = vmul.f32 %v17232_v2, %v3535_v22  ;;  %v3538_v51 = vadd.f32 -0.016096033, %v3506_v37  ;;  %v3253_v26 = vmul.f32 %v3221_v24, %v15055_v52 }
 0x47a   : > { %17231 = vst [vmem:[#allocation79_spill] sm:$0xff] %v15112_v32  ;;  %v3473_v17 = vadd.f32 -0.0029546, %v3441_v5  ;;  %v15124_v11 = vmul.f32 0.5, %v15030_v33  ;;  %v3191_v29 = vmul.f32 -2.7261424e-10, %v15102_v6  ;;  %v15135_v22 = vmul.f32 %v15114_v8, %v15114_v8 }
 0x47b   : > { %17233 = vst [vmem:[#allocation34_spill] sm:$0xff] %v15120_v34  ;;  %v15127_v58 = vclamps-f32 %v3065_v46, 4.0  ;;  %v3547_v23 = vmul.f32 -1.45660715e-05, %v17236_v1  ;;  %v15131_v42 = vmul.f32 0.5, %v15038_v63  ;;  %v17238_v37 = vld [vmem:[#allocation10_spill] sm:$0xff]  ;;  %v3444_v33 = vmul.f32 %v3412_v3, %v14951_v59 }
 0x47c   : > { %17234 = vst [vmem:[#allocation80_spill] sm:$0xff] %v15124_v11  ;;  %v3550_v5 = vmul.f32 -1.45660715e-05, %v17238_v37  ;;  %v17239_v2 = vld [vmem:[#allocation14_spill] sm:$0xff]  ;;  %v3411_v11 = vadd.f32 -0.00073499064, %v3379_v49  ;;  %v3505_v46 = vmul.f32 %v3473_v17, %v14922_v18  ;;  %v15149_v3 = vmul.f32 %v17243_v53, %v3538_v51 }
 0x47d   : > { %17235 = vst [vmem:[#allocation81_spill] sm:$0xff] %v15127_v58  ;;  %17237 = vst [vmem:[#allocation6_spill] sm:$0xff] %v15131_v42  ;;  %v3549_v24 = vmul.f32 -1.45660715e-05, %v17239_v2  ;;  %v3350_v32 = vadd.f32 -5.6925062e-05, %v3318_v15  ;;  %v15145_v47 = vmul.f32 %v15127_v58, %v15127_v58 }
 0x47e   : > { %v3224_v19 = vadd.f32 2.7706815e-08, %v3192_v36  ;;  %v3285_v31 = vadd.f32 -2.101024e-06, %v3253_v26  ;;  %v3580_v56 = vadd.f32 -0.00021337405, %v17240_v9  ;;  %v3443_v9 = vmul.f32 %v3411_v11, %v14974_v60 }
 0x47f   : > { %v17241_v63 = vld [vmem:[#allocation16_spill] sm:$0xff]  ;;  %v3223_v44 = vadd.f32 2.7706815e-08, %v3191_v29  ;;  %v3579_v34 = vadd.f32 -0.00021337405, %v3547_v23  ;;  %17244 = vst [vmem:[#allocation10_spill] sm:$0xff] %v15149_v3  ;;  %v3382_v23 = vmul.f32 %v3350_v32, %v15011_v62 }
 0x480   : > { %v3552_v42 = vmul.f32 -1.45660715e-05, %v17241_v63  ;;  %v17242_v14 = vld [vmem:[#allocation20_spill] sm:$0xff]  ;;  %v3194_v49 = vmul.f32 -2.7261424e-10, %v15135_v22  ;;  %v3256_v26 = vmul.f32 %v3224_v19, %v15090_v30  ;;  %v15155_v29 = vmul.f32 0.5, %v14560_v35 }
 0x481   : > { %v3551_v61 = vmul.f32 -1.45660715e-05, %v17242_v14  ;;  %v3582_v15 = vadd.f32 -0.00021337405, %v3550_v5  ;;  %v3581_v36 = vadd.f32 -0.00021337405, %v3549_v24  ;;  %v3612_v39 = vmul.f32 %v3580_v56, %v17246_v28 }
 0x482   : > { %v3476_v17 = vadd.f32 -0.0029546, %v3444_v33  ;;  %17245 = vst [vmem:[#allocation14_spill] sm:$0xff] %v15155_v29  ;;  %v15157_v12 = vadd.f32 -0.016096033, %v3505_v46  ;;  %v3317_v51 = vmul.f32 %v3285_v31, %v15055_v52  ;;  %v3611_v24 = vmul.f32 %v3579_v34, %v17236_v1  ;;  %v17247_v56 = vld [vmem:[#allocation22_spill] sm:$0xff] }
 0x483   : > { %v3584_v53 = vadd.f32 -0.00021337405, %v3552_v42  ;;  %v3193_v5 = vmul.f32 -2.7261424e-10, %v15145_v47  ;;  %v3583_v33 = vadd.f32 -0.00021337405, %v3551_v61  ;;  %v3255_v11 = vmul.f32 %v3223_v44, %v15102_v6 }
 0x484   : > { %v3226_v19 = vadd.f32 2.7706815e-08, %v3194_v49  ;;  %v3614_v35 = vmul.f32 %v3582_v15, %v17238_v37  ;;  %v3613_v46 = vmul.f32 %v3581_v36, %v17239_v2  ;;  %v3508_v29 = vmul.f32 %v3476_v17, %v14951_v59 }
 0x485   : > { %v3475_v32 = vadd.f32 -0.0029546, %v3443_v9  ;;  %v3288_v3 = vadd.f32 -2.101024e-06, %v3256_v26  ;;  %v3554_v42 = vmul.f32 -1.45660715e-05, %v17247_v56  ;;  %v3616_v18 = vmul.f32 %v3584_v53, %v17241_v63 }
 0x486   : > { %v3414_v40 = vadd.f32 -0.00073499064, %v3382_v23  ;;  %v3644_v31 = vadd.f32 -0.001682827, %v3612_v39  ;;  %v3553_v34 = vmul.f32 -1.45660715e-05, %v17248_v16  ;;  %v3615_v49 = vmul.f32 %v3583_v33, %v17242_v14 }
 0x487   : > { %v3349_v61 = vadd.f32 -5.6925062e-05, %v3317_v51  ;;  %v3225_v4 = vadd.f32 2.7706815e-08, %v3193_v5  ;;  %v3643_v44 = vadd.f32 -0.001682827, %v3611_v24  ;;  %v3258_v36 = vmul.f32 %v3226_v19, %v15135_v22 }
 0x488   : > { %v3287_v15 = vadd.f32 -2.101024e-06, %v3255_v11  ;;  %v3646_v21 = vadd.f32 -0.001682827, %v3614_v35  ;;  %v3645_v17 = vadd.f32 -0.001682827, %v3613_v46  ;;  %v15176_v26 = vmul.f32 %v3475_v32, %v14974_v60 }
 0x489   : > { %v15173_v9 = vadd.f32 -0.016096033, %v3508_v29  ;;  %v3320_v39 = vmul.f32 %v3288_v3, %v15090_v30  ;;  %v3586_v23 = vadd.f32 -0.00021337405, %v3554_v42  ;;  %v3676_v53 = vmul.f32 %v3644_v31, %v17246_v28  ;;  %v17249_v24 = vld [vmem:[#allocation23_spill] sm:$0xff]  ;;  %v17250_v35 = vld [vmem:[#allocation25_spill] sm:$0xff] }
 0x48a   : > { %v3648_v51 = vadd.f32 -0.001682827, %v3616_v18  ;;  %v3585_v5 = vadd.f32 -0.00021337405, %v3553_v34  ;;  %v3556_v59 = vmul.f32 -1.45660715e-05, %v17249_v24  ;;  %v3257_v33 = vmul.f32 %v3225_v4, %v15145_v47 }
 0x48b   : > { %v3675_v11 = vmul.f32 %v3643_v44, %v17236_v1  ;;  %v3647_v19 = vadd.f32 -0.001682827, %v3615_v49  ;;  %v3555_v29 = vmul.f32 -1.45660715e-05, %v17250_v35  ;;  %v3319_v46 = vmul.f32 %v3287_v15, %v15102_v6 }
 0x48c   : > { %v3290_v32 = vadd.f32 -2.101024e-06, %v3258_v36  ;;  %v3678_v60 = vmul.f32 %v3646_v21, %v17238_v37  ;;  %v3677_v3 = vmul.f32 %v3645_v17, %v17239_v2  ;;  %v3446_v42 = vmul.f32 %v3414_v40, %v15011_v62 }
 0x48d   : > { %v3381_v18 = vmul.f32 %v3349_v61, %v15055_v52  ;;  %v3352_v31 = vadd.f32 -5.6925062e-05, %v3320_v39  ;;  %v3618_v34 = vmul.f32 %v3586_v23, %v17247_v56  ;;  %v3708_v4 = vadd.f32 -0.0073733293, %v3676_v53 }
 0x48e   : > { %v3680_v44 = vmul.f32 %v3648_v51, %v17241_v63  ;;  %v3617_v49 = vmul.f32 %v3585_v5, %v17248_v16  ;;  %v3588_v20 = vadd.f32 -0.00021337405, %v3556_v59  ;;  %v3289_v45 = vadd.f32 -2.101024e-06, %v3257_v33 }
 0x48f   : > { %v3707_v15 = vadd.f32 -0.0073733293, %v3675_v11  ;;  %v3679_v36 = vmul.f32 %v3647_v19, %v17242_v14  ;;  %v3587_v21 = vadd.f32 -0.00021337405, %v3555_v29  ;;  %v3351_v27 = vadd.f32 -5.6925062e-05, %v3319_v46 }
 0x490   : > { %v3322_v17 = vmul.f32 %v3290_v32, %v15135_v22  ;;  %v3710_v40 = vadd.f32 -0.0073733293, %v3678_v60  ;;  %v3709_v0 = vadd.f32 -0.0073733293, %v3677_v3  ;;  %v3478_v61 = vadd.f32 -0.0029546, %v3446_v42 }
 0x491   : > { %v3413_v39 = vadd.f32 -0.00073499064, %v3381_v18  ;;  %v3384_v23 = vmul.f32 %v3352_v31, %v15090_v30  ;;  %v3650_v53 = vadd.f32 -0.001682827, %v3618_v34  ;;  %v3740_v51 = vmul.f32 %v3708_v4, %v17246_v28 }
 0x492   : > { %v3712_v58 = vadd.f32 -0.0073733293, %v3680_v44  ;;  %v3649_v5 = vadd.f32 -0.001682827, %v3617_v49  ;;  %v3620_v59 = vmul.f32 %v3588_v20, %v17249_v24  ;;  %v3321_v33 = vmul.f32 %v3289_v45, %v15145_v47  ;;  %v17251_v20 = vld [vmem:[#allocation33_spill] sm:$0xff] }
 0x493   : > { %v3739_v11 = vmul.f32 %v3707_v15, %v17236_v1  ;;  %v3711_v19 = vadd.f32 -0.0073733293, %v3679_v36  ;;  %v3619_v29 = vmul.f32 %v3587_v21, %v17250_v35  ;;  %v3383_v60 = vmul.f32 %v3351_v27, %v15102_v6 }
 0x494   : > { %v3354_v46 = vadd.f32 -5.6925062e-05, %v3322_v17  ;;  %v3742_v32 = vmul.f32 %v3710_v40, %v17238_v37  ;;  %v3741_v3 = vmul.f32 %v3709_v0, %v17239_v2  ;;  %v3445_v28 = vmul.f32 %v3413_v39, %v15055_v52 }
 0x495   : > { %v3416_v42 = vadd.f32 -0.00073499064, %v3384_v23  ;;  %v3682_v18 = vmul.f32 %v3650_v53, %v17247_v56  ;;  %v3558_v31 = vmul.f32 -1.45660715e-05, %v17251_v20  ;;  %v15206_v45 = vadd.f32 -0.014264739, %v3740_v51 }
 0x496   : > { %v3744_v1 = vmul.f32 %v3712_v58, %v17241_v63  ;;  %v3681_v34 = vmul.f32 %v3649_v5, %v17248_v16  ;;  %v3652_v4 = vadd.f32 -0.001682827, %v3620_v59  ;;  %v3353_v27 = vadd.f32 -5.6925062e-05, %v3321_v33  ;;  %v17252_v63 = vld [vmem:[#allocation68_spill] sm:$0xff] }
 0x497   : > { %v15210_v44 = vadd.f32 -0.014264739, %v3739_v11  ;;  %v3743_v37 = vmul.f32 %v3711_v19, %v17242_v14  ;;  %v3651_v0 = vadd.f32 -0.001682827, %v3619_v29  ;;  %v3415_v2 = vadd.f32 -0.00073499064, %v3383_v60 }
 0x498   : > { %v3386_v49 = vmul.f32 %v3354_v46, %v15135_v22  ;;  %v15214_v15 = vadd.f32 -0.014264739, %v3742_v32  ;;  %v15216_v36 = vadd.f32 -0.014264739, %v3741_v3  ;;  %v3510_v21 = vmul.f32 %v3478_v61, %v15011_v62 }
 0x499   : > { %v3714_v17 = vadd.f32 -0.0073733293, %v3682_v18  ;;  %v3590_v58 = vadd.f32 -0.00021337405, %v3558_v31  ;;  %v3557_v40 = vmul.f32 -1.45660715e-05, %v17252_v63  ;;  %11273 = vrcp.f32 %v15206_v45 }
 0x49a   : > { %v15221_v39 = vadd.f32 -0.014264739, %v3744_v1  ;;  %v3713_v23 = vadd.f32 -0.0073733293, %v3681_v34  ;;  %v3684_v14 = vmul.f32 %v3652_v4, %v17249_v24  ;;  %v3385_v53 = vmul.f32 %v3353_v27, %v15145_v47 }
 0x49b   : > { %11275 = vrcp.f32 %v15210_v44  ;;  %v15226_v51 = vadd.f32 -0.014264739, %v3743_v37  ;;  %v3683_v5 = vmul.f32 %v3651_v0, %v17250_v35  ;;  %v3477_v61 = vadd.f32 -0.0029546, %v3445_v28 }
 0x49c   : > { %v3448_v59 = vmul.f32 %v3416_v42, %v15090_v30  ;;  %v3418_v33 = vadd.f32 -0.00073499064, %v3386_v49  ;;  %11277 = vrcp.f32 %v15214_v15  ;;  %v3746_v11 = vmul.f32 %v3714_v17, %v17247_v56 }
 0x49d   : > { %11279 = vrcp.f32 %v15216_v36  ;;  %v3622_v19 = vmul.f32 %v3590_v58, %v17251_v20  ;;  %v3589_v29 = vadd.f32 -0.00021337405, %v3557_v40  ;;  %v3447_v60 = vmul.f32 %v3415_v2, %v15102_v6 }
 0x49e   : > { %11281 = vrcp.f32 %v15221_v39  ;;  %v3745_v46 = vmul.f32 %v3713_v23, %v17248_v16  ;;  %v3716_v32 = vadd.f32 -0.0073733293, %v3684_v14  ;;  %v3417_v3 = vadd.f32 -0.00073499064, %v3385_v53 }
 0x49f   : > { %11283 = vrcp.f32 %v15226_v51  ;;  %v3715_v28 = vadd.f32 -0.0073733293, %v3683_v5  ;;  %v3560_v42 = vmul.f32 -1.45660715e-05, %v14653_v50  ;;  %v15241_v18 = vmul.f32 %v14903_v38, %v15157_v12 }
 0x4a0   : > { %v3539_v56 = vadd.f32 -0.016096033, %v15176_v26  ;;  %v3509_v31 = vmul.f32 %v3477_v61, %v15055_v52  ;;  %v3480_v1 = vadd.f32 -0.0029546, %v3448_v59  ;;  %v3450_v34 = vmul.f32 %v3418_v33, %v15135_v22 }
 0x4a1   : > { %v15246_v4 = vadd.f32 -0.014264739, %v3746_v11  ;;  %v3654_v16 = vadd.f32 -0.001682827, %v3622_v19  ;;  %v3621_v27 = vmul.f32 %v3589_v29, %v17252_v63  ;;  %v15251_v37 = vmul.f32 %v14933_v25, %v15173_v9  ;;  %v15253_v2 = vpop.f32.mrb[48].mxu1 }
 0x4a2   : > { %v3542_v0 = vadd.f32 -0.016096033, %v3510_v21  ;;  %v15255_v38 = vadd.f32 -0.014264739, %v3745_v46  ;;  %v3748_v12 = vmul.f32 %v3716_v32, %v17249_v24  ;;  %v3479_v26 = vadd.f32 -0.0029546, %v3447_v60 }
 0x4a3   : > { %v3449_v49 = vmul.f32 %v3417_v3, %v15145_v47  ;;  %v15259_v17 = vpop.f32.mrb[49].mxu1  ;;  %v3747_v58 = vmul.f32 %v3715_v28, %v17250_v35  ;;  %v3592_v40 = vadd.f32 -0.00021337405, %v3560_v42  ;;  %v11274_v23 = vpop.eup %11273  ;;  %v15263_v14 = vmul.f32 %v14953_v57, %v3539_v56 }
 0x4a4   : > { %17253 = vst [vmem:[#allocation31_spill] sm:$0xff] %v15259_v17  ;;  %v3541_v25 = vadd.f32 -0.016096033, %v3509_v31  ;;  %v3512_v9 = vmul.f32 %v3480_v1, %v15090_v30  ;;  %v15267_v21 = vmul.f32 0.5, %v17227_v13  ;;  %v3482_v24 = vadd.f32 -0.0029546, %v3450_v34 }
 0x4a5   : > { %v11276_v53 = vpop.eup %11275  ;;  %11285 = vrcp.f32 %v15246_v4  ;;  %v3686_v5 = vmul.f32 %v3654_v16, %v17251_v20  ;;  %v3653_v61 = vadd.f32 -0.001682827, %v3621_v27  ;;  %v15272_v35 = vmul.f32 %v14993_v7, %v3542_v0  ;;  %v15274_v33 = vpop.f32.mrb[50].mxu1 }
 0x4a6   : > { %17254 = vst [vmem:[#allocation16_spill] sm:$0xff] %v15267_v21  ;;  %v11278_v59 = vpop.eup %11277  ;;  %17255 = vst [vmem:[#allocation20_spill] sm:$0xff] %v15274_v33  ;;  %11287 = vrcp.f32 %v15255_v38  ;;  %v15277_v57 = vadd.f32 -0.014264739, %v3748_v12  ;;  %v3559_v13 = vmul.f32 -1.45660715e-05, %v14699_v43  ;;  %v3511_v19 = vmul.f32 %v3479_v26, %v15102_v6 }
 0x4a7   : > { %v11280_v11 = vpop.eup %11279  ;;  %v3481_v29 = vadd.f32 -0.0029546, %v3449_v49  ;;  %v15281_v60 = vpop.f32.mrb[51].mxu1  ;;  %v15283_v46 = vadd.f32 -0.014264739, %v3747_v58  ;;  %v3624_v32 = vmul.f32 %v3592_v40, %v14653_v50  ;;  %v15287_v3 = vmul.f32 %v15033_v41, %v3541_v25 }
 0x4a8   : > { %17256 = vst [vmem:[#allocation9_spill] sm:$0xff] %v15281_v60  ;;  %v11282_v7 = vpop.eup %11281  ;;  %v3544_v28 = vadd.f32 -0.016096033, %v3512_v9  ;;  %v3836_v42 = vmul.f32 %v11274_v23, %v15206_v45  ;;  %v3835_v56 = vmul.f32 %v11276_v53, %v15210_v44  ;;  %v3514_v1 = vmul.f32 %v3482_v24, %v15135_v22 }
 0x4a9   : > { %v11284_v31 = vpop.eup %11283  ;;  %v3718_v34 = vadd.f32 -0.0073733293, %v3686_v5  ;;  %v3685_v16 = vmul.f32 %v3653_v61, %v17252_v63  ;;  %v3562_v27 = vmul.f32 -1.45660715e-05, %v14732_v48  ;;  %v15294_v0 = vpop.f32.mrb[52].mxu1  ;;  %v3838_v12 = vmul.f32 %v11278_v59, %v15214_v15 }
 0x4aa   : > { %17257 = vst [vmem:[#allocation53_spill] sm:$0xff] %v15294_v0  ;;  %v3837_v41 = vmul.f32 %v11280_v11, %v15216_v36  ;;  %11289 = vrcp.f32 %v15277_v57  ;;  %v3591_v26 = vadd.f32 -0.00021337405, %v3559_v13  ;;  %v3543_v45 = vadd.f32 -0.016096033, %v3511_v19  ;;  %v15300_v49 = vpop.f32.mrb[53].mxu1 }
 0x4ab   : > { %v3513_v44 = vmul.f32 %v3481_v29, %v15145_v47  ;;  %17258 = vst [vmem:[#allocation22_spill] sm:$0xff] %v15300_v49  ;;  %11291 = vrcp.f32 %v15283_v46  ;;  %v3656_v58 = vadd.f32 -0.001682827, %v3624_v32  ;;  %v3868_v40 = vsub.f32 2.0, %v3836_v42 }
 0x4ac   : > { %v3867_v25 = vsub.f32 2.0, %v3835_v56  ;;  %v3840_v9 = vmul.f32 %v11282_v7, %v15221_v39  ;;  %v3839_v24 = vmul.f32 %v11284_v31, %v15226_v51  ;;  %v3546_v15 = vadd.f32 -0.016096033, %v3514_v1 }
 0x4ad   : > { %v3750_v36 = vmul.f32 %v3718_v34, %v17251_v20  ;;  %v3717_v5 = vadd.f32 -0.0073733293, %v3685_v16  ;;  %v3594_v61 = vadd.f32 -0.00021337405, %v3562_v27  ;;  %v15307_v13 = vmul.f32 %v15068_v55, %v3544_v28  ;;  %v15309_v19 = vpop.f32.mrb[54].mxu1 }
 0x4ae   : > { %17260 = vst [vmem:[#allocation23_spill] sm:$0xff] %v15309_v19  ;;  %v3870_v29 = vsub.f32 2.0, %v3838_v12  ;;  %v3869_v21 = vsub.f32 2.0, %v3837_v41  ;;  %v3623_v32 = vmul.f32 %v3591_v26, %v14699_v43  ;;  %v15313_v56 = vmul.f32 %v15078_v54, %v3543_v45  ;;  %v15315_v51 = vpop.f32.mrb[55].mxu1 }
 0x4af   : > { %17259 = vst [vmem:[#allocation7_spill] sm:$0xff] %v15307_v13  ;;  %v11286_v42 = vpop.eup %11285  ;;  %v3545_v39 = vadd.f32 -0.016096033, %v3513_v44  ;;  %17262 = vst [vmem:[#allocation33_spill] sm:$0xff] %v15315_v51  ;;  %v3688_v20 = vmul.f32 %v3656_v58, %v14653_v50  ;;  %v3561_v1 = vmul.f32 -1.45660715e-05, %v14771_v10  ;;  %v3900_v55 = vmul.f32 %v11274_v23, %v3868_v40 }
 0x4b0   : > { %17261 = vst [vmem:[#allocation25_spill] sm:$0xff] %v15313_v56  ;;  %v11288_v34 = vpop.eup %11287  ;;  %v3899_v28 = vmul.f32 %v11276_v53, %v3867_v25  ;;  %v3872_v16 = vsub.f32 2.0, %v3840_v9  ;;  %v3871_v27 = vsub.f32 2.0, %v3839_v24  ;;  %v15320_v12 = vmul.f32 %v15114_v8, %v3546_v15  ;;  %v17265_v23 = vld [vmem:[#allocation81_spill] sm:$0xff] }
 0x4b1   : > { %v15322_v41 = vadd.f32 -0.014264739, %v3750_v36  ;;  %v3749_v54 = vmul.f32 %v3717_v5, %v17252_v63  ;;  %v3626_v26 = vmul.f32 %v3594_v61, %v14732_v48  ;;  %v15326_v45 = vpop.f32.mrb[56].mxu1  ;;  %v3902_v44 = vmul.f32 %v11278_v59, %v3870_v29  ;;  %v17268_v63 = vld [vmem:[#allocation72_spill] sm:$0xff]  ;;  %v17269_v36 = vld [vmem:[#allocation73_spill] sm:$0xff]  ;;  %v17270_v29 = vld [vmem:[#allocation26_spill] sm:$0xff] }
 0x4b2   : > { %17263 = vst [vmem:[#allocation68_spill] sm:$0xff] %v15320_v12  ;;  %17264 = vst [vmem:[#allocation82_spill] sm:$0xff] %v15326_v45  ;;  %v3901_v58 = vmul.f32 %v11280_v11, %v3869_v21  ;;  %v3842_v51 = vmul.f32 %v11286_v42, %v15246_v4  ;;  %v3655_v19 = vadd.f32 -0.001682827, %v3623_v32  ;;  %v15330_v53 = vmul.f32 %v17265_v23, %v3545_v39  ;;  %v15332_v40 = vpop.f32.mrb[57].mxu1 }
 0x4b3   : > { %17267 = vst [vmem:[#allocation83_spill] sm:$0xff] %v15332_v40  ;;  %v3841_v8 = vmul.f32 %v11288_v34, %v15255_v38  ;;  %v3720_v25 = vadd.f32 -0.0073733293, %v3688_v20  ;;  %v3593_v9 = vadd.f32 -0.00021337405, %v3561_v1  ;;  %v3964_v15 = vmul.f32 %v17268_v63, %v3900_v55  ;;  %v17272_v38 = vld [vmem:[#allocation74_spill] sm:$0xff] }
 0x4b4   : > { %17266 = vst [vmem:[#allocation81_spill] sm:$0xff] %v15330_v53  ;;  %v11290_v24 = vpop.eup %11289  ;;  %v3963_v5 = vmul.f32 %v17269_v36, %v3899_v28  ;;  %v3904_v61 = vmul.f32 %v11282_v7, %v3872_v16  ;;  %v3903_v59 = vmul.f32 %v11284_v31, %v3871_v27  ;;  %11293 = vrcp.f32 %v15322_v41  ;;  %v17273_v1 = vld [vmem:[#allocation76_spill] sm:$0xff] }
 0x4b5   : > { %v11292_v21 = vpop.eup %11291  ;;  %v15338_v4 = vadd.f32 -0.014264739, %v3749_v54  ;;  %v3658_v11 = vadd.f32 -0.001682827, %v3626_v26  ;;  %v3564_v32 = vmul.f32 -1.45660715e-05, %v17270_v29  ;;  %v3966_v20 = vmul.f32 %v17272_v38, %v3902_v44 }
 0x4b6   : > { %v15341_v39 = vpop.f32.mrb[58].mxu1  ;;  %v3965_v23 = vmul.f32 %v17273_v1, %v3901_v58  ;;  %v3874_v40 = vsub.f32 2.0, %v3842_v51  ;;  %v3687_v55 = vmul.f32 %v3655_v19, %v14699_v43  ;;  %v3873_v7 = vsub.f32 2.0, %v3841_v8  ;;  %v17275_v63 = vld [vmem:[#allocation8_spill] sm:$0xff] }
 0x4b7   : > { %17271 = vst [vmem:[#allocation72_spill] sm:$0xff] %v15341_v39  ;;  %v15346_v28 = vpop.f32.mrb[59].mxu1  ;;  %v3844_v31 = vmul.f32 %v11290_v24, %v15277_v57  ;;  %v3752_v16 = vmul.f32 %v3720_v25, %v14653_v50  ;;  %v3625_v27 = vmul.f32 %v3593_v9, %v14771_v10  ;;  %v3996_v54 = vadd.f32 1.0, %v3964_v15  ;;  %v17276_v38 = vld [vmem:[#allocation12_spill] sm:$0xff]  ;;  %v17282_v39 = vld [vmem:[#allocation21_spill] sm:$0xff] }
 0x4b8   : > { %17274 = vst [vmem:[#allocation73_spill] sm:$0xff] %v15346_v28  ;;  %v3995_v26 = vadd.f32 1.0, %v3963_v5  ;;  %v3968_v36 = vmul.f32 %v17275_v63, %v3904_v61  ;;  %v3843_v44 = vmul.f32 %v11292_v21, %v15283_v46  ;;  %v3967_v58 = vmul.f32 %v17276_v38, %v3903_v59  ;;  %v17279_v63 = vld [vmem:[#allocation19_spill] sm:$0xff] }
 0x4b9   : > { %11295 = vrcp.f32 %v15338_v4  ;;  %v3690_v19 = vmul.f32 %v3658_v11, %v14732_v48  ;;  %v3596_v51 = vadd.f32 -0.00021337405, %v3564_v32  ;;  %v15356_v8 = vpop.f32.mrb[60].mxu1  ;;  %v3998_v57 = vadd.f32 1.0, %v3966_v20  ;;  %v17281_v11 = vld [vmem:[#allocation50_spill] sm:$0xff] }
 0x4ba   : > { %17277 = vst [vmem:[#allocation26_spill] sm:$0xff] %v15356_v8  ;;  %v3997_v1 = vadd.f32 1.0, %v3965_v23  ;;  %v3906_v50 = vmul.f32 %v11286_v42, %v3874_v40  ;;  %v3719_v25 = vadd.f32 -0.0073733293, %v3687_v55  ;;  %v15358_v9 = vpop.f32.mrb[61].mxu1  ;;  %v3905_v15 = vmul.f32 %v11288_v34, %v3873_v7  ;;  %v17285_v34 = vld [vmem:[#allocation27_spill] sm:$0xff] }
 0x4bb   : > { %17278 = vst [vmem:[#allocation74_spill] sm:$0xff] %v15358_v9  ;;  %v3876_v5 = vsub.f32 2.0, %v3844_v31  ;;  %v15360_v61 = vadd.f32 -0.014264739, %v3752_v16  ;;  %v3657_v46 = vadd.f32 -0.001682827, %v3625_v27  ;;  %v15363_v59 = vmul.f32 %v3996_v54, %v17279_v63 }
 0x4bc   : > { %v4000_v38 = vadd.f32 1.0, %v3968_v36  ;;  %v3875_v28 = vsub.f32 2.0, %v3843_v44  ;;  %v3563_v32 = vmul.f32 -1.45660715e-05, %v17281_v11  ;;  %v15367_v8 = vmul.f32 %v3995_v26, %v17282_v39  ;;  %v17287_v7 = vld [vmem:[#allocation29_spill] sm:$0xff]  ;;  %v17289_v16 = vld [vmem:[#allocation38_spill] sm:$0xff] }
 0x4bd   : > { %17280 = vst [vmem:[#allocation76_spill] sm:$0xff] %v15363_v59  ;;  %v3999_v20 = vadd.f32 1.0, %v3967_v58  ;;  %v3722_v42 = vadd.f32 -0.0073733293, %v3690_v19  ;;  %v3628_v40 = vmul.f32 %v3596_v51, %v17270_v29  ;;  %v15370_v23 = vpop.f32.mrb[62].mxu1  ;;  %v15373_v55 = vmul.f32 %v3998_v57, %v17285_v34  ;;  %v17291_v39 = vld [vmem:[#allocation18_spill] sm:$0xff] }
 0x4be   : > { %17283 = vst [vmem:[#allocation8_spill] sm:$0xff] %v15367_v8  ;;  %17284 = vst [vmem:[#allocation12_spill] sm:$0xff] %v15370_v23  ;;  %v15376_v31 = vmul.f32 %v3997_v1, %v17287_v7  ;;  %v3970_v27 = vmul.f32 %v17289_v16, %v3906_v50  ;;  %v3751_v54 = vmul.f32 %v3719_v25, %v14699_v43  ;;  %v11294_v36 = vpop.eup %11293  ;;  %v15380_v44 = vpop.f32.mrb[63].mxu1  ;;  %11297 = vrcp.f32 %v15360_v61  ;;  %v17292_v51 = vld [vmem:[#allocation35_spill] sm:$0xff]  ;;  %v17295_v50 = vld [vmem:[#allocation69_spill] sm:$0xff] }
 0x4bf   : > { %17286 = vst [vmem:[#allocation19_spill] sm:$0xff] %v15373_v55  ;;  %17290 = vst [vmem:[#allocation21_spill] sm:$0xff] %v15380_v44  ;;  %v3969_v26 = vmul.f32 %v17291_v39, %v3905_v15  ;;  %v3908_v58 = vmul.f32 %v11290_v24, %v3876_v5  ;;  %v3689_v19 = vmul.f32 %v3657_v46, %v14771_v10  ;;  %v3595_v1 = vadd.f32 -0.00021337405, %v3563_v32  ;;  %v17294_v34 = vld [vmem:[#allocation39_spill] sm:$0xff]  ;;  %v17297_v44 = vld [vmem:[#allocation60_spill] sm:$0xff] }
 0x4c0   : > { %17288 = vst [vmem:[#allocation50_spill] sm:$0xff] %v15376_v31  ;;  %v15386_v57 = vmul.f32 %v4000_v38, %v17292_v51  ;;  %v3907_v63 = vmul.f32 %v11292_v21, %v3875_v28  ;;  %v3566_v7 = vmul.f32 -1.45660715e-05, %v17294_v34  ;;  %v15390_v16 = vmul.f32 %v3999_v20, %v17295_v50  ;;  %v17299_v21 = vld [vmem:[#allocation30_spill] sm:$0xff]  ;;  %v17302_v51 = vld [vmem:[#allocation40_spill] sm:$0xff] }
 0x4c1   : > { %v3754_v43 = vmul.f32 %v3722_v42, %v14732_v48  ;;  %v3660_v25 = vadd.f32 -0.001682827, %v3628_v40  ;;  %v3565_v15 = vmul.f32 -1.45660715e-05, %v17297_v44  ;;  %v15394_v24 = vpop.f32.mrb[64].mxu1  ;;  %v15396_v5 = vadd.f32 1.0, %v3970_v27 }
 0x4c2   : > { %17293 = vst [vmem:[#allocation27_spill] sm:$0xff] %v15386_v57  ;;  %17296 = vst [vmem:[#allocation29_spill] sm:$0xff] %v15390_v16  ;;  %v3846_v46 = vmul.f32 %v11294_v36, %v15322_v41  ;;  %v15399_v38 = vadd.f32 -0.014264739, %v3751_v54  ;;  %v3568_v28 = vmul.f32 -1.45660715e-05, %v17299_v21  ;;  %v3627_v41 = vmul.f32 %v3595_v1, %v17281_v11 }
 0x4c3   : > { %17298 = vst [vmem:[#allocation38_spill] sm:$0xff] %v15394_v24  ;;  %v15402_v32 = vpop.eup %11295  ;;  %v15404_v39 = vpop.f32.mrb[65].mxu1  ;;  %v15406_v20 = vadd.f32 1.0, %v3969_v26  ;;  %v17301_v48 = vld [vmem:[#allocation43_spill] sm:$0xff]  ;;  %v3721_v40 = vadd.f32 -0.0073733293, %v3689_v19 }
 0x4c4   : > { %17300 = vst [vmem:[#allocation18_spill] sm:$0xff] %v15404_v39  ;;  %v15409_v42 = vmul.f32 %v17301_v48, %v3908_v58  ;;  %v3567_v50 = vmul.f32 -1.45660715e-05, %v17302_v51  ;;  %v17303_v27 = vld [vmem:[#allocation41_spill] sm:$0xff]  ;;  %v3598_v54 = vadd.f32 -0.00021337405, %v3566_v7  ;;  %v3692_v39 = vmul.f32 %v3660_v25, %v17270_v29 }
 0x4c5   : > { %v15413_v24 = vmul.f32 %v17303_v27, %v3907_v63  ;;  %v17304_v23 = vld [vmem:[#allocation32_spill] sm:$0xff]  ;;  %v15417_v45 = vadd.f32 -0.014264739, %v3754_v43  ;;  %v3597_v26 = vadd.f32 -0.00021337405, %v3565_v15  ;;  %v17305_v16 = vld [vmem:[#allocation61_spill] sm:$0xff]  ;;  %v15425_v48 = vmul.f32 %v15402_v32, %v15338_v4 }
 0x4c6   : > { %v3570_v9 = vmul.f32 -1.45660715e-05, %v17304_v23  ;;  %v3569_v57 = vmul.f32 -1.45660715e-05, %v17305_v16  ;;  %v15421_v58 = vpop.f32.mrb[66].mxu1  ;;  %v3878_v19 = vsub.f32 2.0, %v3846_v46  ;;  %11299 = vrcp.f32 %v15399_v38 }
 0x4c7   : > { %17306 = vst [vmem:[#allocation35_spill] sm:$0xff] %v15421_v58  ;;  %v3600_v63 = vadd.f32 -0.00021337405, %v3568_v28  ;;  %v17307_v27 = vld [vmem:[#allocation45_spill] sm:$0xff]  ;;  %v15428_v7 = vpop.f32.mrb[67].mxu1  ;;  %v3753_v43 = vmul.f32 %v3721_v40, %v14771_v10  ;;  %v17309_v15 = vld [vmem:[#allocation15_spill] sm:$0xff]  ;;  %v3630_v58 = vmul.f32 %v3598_v54, %v17294_v34  ;;  %v3629_v55 = vmul.f32 %v3597_v26, %v17297_v44 }
 0x4c8   : > { %v3572_v1 = vmul.f32 -1.45660715e-05, %v17307_v27  ;;  %17308 = vst [vmem:[#allocation39_spill] sm:$0xff] %v15428_v7  ;;  %v3599_v25 = vadd.f32 -0.00021337405, %v3567_v50  ;;  %v15435_v4 = vpop.eup %11297  ;;  %v15441_v10 = vmul.f32 %v11294_v36, %v3878_v19  ;;  %11301 = vrcp.f32 %v15417_v45 }
 0x4c9   : > { %v3571_v49 = vmul.f32 -1.45660715e-05, %v17309_v15  ;;  %v3659_v31 = vadd.f32 -0.001682827, %v3627_v41  ;;  %v3602_v46 = vadd.f32 -0.00021337405, %v3570_v9  ;;  %v3632_v40 = vmul.f32 %v3600_v63, %v17299_v21 }
 0x4ca   : > { %v3574_v0 = vmul.f32 -1.45660715e-05, %v15011_v62  ;;  %v3724_v28 = vadd.f32 -0.0073733293, %v3692_v39  ;;  %v3601_v53 = vadd.f32 -0.00021337405, %v3569_v57  ;;  %v3631_v39 = vmul.f32 %v3599_v25, %v17302_v51 }
 0x4cb   : > { %v3573_v7 = vmul.f32 -1.45660715e-05, %v15055_v52  ;;  %v15439_v12 = vpop.f32.mrb[68].mxu1  ;;  %v3604_v50 = vadd.f32 -0.00021337405, %v3572_v1  ;;  %v15452_v26 = vmul.f32 %v15435_v4, %v15360_v61  ;;  %v3634_v19 = vmul.f32 %v3602_v46, %v17304_v23 }
 0x4cc   : > { %17310 = vst [vmem:[#allocation69_spill] sm:$0xff] %v15439_v12  ;;  %v3576_v41 = vmul.f32 -1.45660715e-05, %v15090_v30  ;;  %v15445_v9 = vpop.f32.mrb[69].mxu1  ;;  %v3603_v54 = vadd.f32 -0.00021337405, %v3571_v49  ;;  %v3691_v49 = vmul.f32 %v3659_v31, %v17281_v11 }
 0x4cd   : > { %17311 = vst [vmem:[#allocation60_spill] sm:$0xff] %v15445_v9  ;;  %v3575_v57 = vmul.f32 -1.45660715e-05, %v15102_v6  ;;  %v3662_v36 = vadd.f32 -0.001682827, %v3630_v58  ;;  %v3633_v9 = vmul.f32 %v3601_v53, %v17305_v16  ;;  %v15458_v8 = vpop.f32.mrb[70].mxu1  ;;  %v3636_v33 = vmul.f32 %v3604_v50, %v17307_v27 }
 0x4ce   : > { %v3606_v63 = vadd.f32 -0.00021337405, %v3574_v0  ;;  %v15455_v1 = vadd.f32 -0.014264739, %v3753_v43  ;;  %v3661_v12 = vadd.f32 -0.001682827, %v3629_v55  ;;  %v3756_v58 = vmul.f32 %v3724_v28, %v17270_v29 }
 0x4cf   : > { %v3605_v60 = vadd.f32 -0.00021337405, %v3573_v7  ;;  %17312 = vst [vmem:[#allocation30_spill] sm:$0xff] %v15458_v8  ;;  %v3664_v25 = vadd.f32 -0.001682827, %v3632_v40  ;;  %v15462_v61 = vpop.f32.mrb[71].mxu1  ;;  %v3635_v0 = vmul.f32 %v3603_v54, %v17309_v15  ;;  %v3694_v55 = vmul.f32 %v3662_v36, %v17294_v34 }
 0x4d0   : > { %v3608_v59 = vadd.f32 -0.00021337405, %v3576_v41  ;;  %17313 = vst [vmem:[#allocation43_spill] sm:$0xff] %v15462_v61  ;;  %v3663_v46 = vadd.f32 -0.001682827, %v3631_v39  ;;  %v3638_v7 = vmul.f32 %v3606_v63, %v15011_v62  ;;  %v15469_v31 = vpop.eup %11299  ;;  %v3693_v40 = vmul.f32 %v3661_v12, %v17297_v44 }
 0x4d1   : > { %v3607_v43 = vadd.f32 -0.00021337405, %v3575_v57  ;;  %v3666_v53 = vadd.f32 -0.001682827, %v3634_v19  ;;  %v3578_v8 = vmul.f32 -1.45660715e-05, %v15135_v22  ;;  %v3637_v41 = vmul.f32 %v3605_v60, %v15055_v52 }
 0x4d2   : > { %v3665_v50 = vadd.f32 -0.001682827, %v3633_v9  ;;  %v3577_v29 = vmul.f32 -1.45660715e-05, %v15145_v47  ;;  %v15474_v28 = vpop.f32.mrb[72].mxu1  ;;  %v3696_v54 = vmul.f32 %v3664_v25, %v17299_v21  ;;  %v3640_v36 = vmul.f32 %v3608_v59, %v15090_v30 }
 0x4d3   : > { %17314 = vst [vmem:[#allocation40_spill] sm:$0xff] %v15474_v28  ;;  %v3723_v39 = vadd.f32 -0.0073733293, %v3691_v49  ;;  %v3668_v57 = vadd.f32 -0.001682827, %v3636_v33  ;;  %v15478_v19 = vpop.f32.mrb[73].mxu1  ;;  %v3695_v61 = vmul.f32 %v3663_v46, %v17302_v51  ;;  %v3639_v9 = vmul.f32 %v3607_v43, %v15102_v6  ;;  %v15485_v49 = vpop.eup %11301 }
 0x4d4   : > { %17315 = vst [vmem:[#allocation41_spill] sm:$0xff] %v15478_v19  ;;  %v15480_v63 = vadd.f32 -0.014264739, %v3756_v58  ;;  %v3667_v12 = vadd.f32 -0.001682827, %v3635_v0  ;;  %v3698_v56 = vmul.f32 %v3666_v53, %v17304_v23  ;;  %v3697_v33 = vmul.f32 %v3665_v50, %v17305_v16 }
 0x4d5   : > { %v3726_v60 = vadd.f32 -0.0073733293, %v3694_v55  ;;  %v3670_v17 = vadd.f32 -0.001682827, %v3638_v7  ;;  %v3610_v28 = vadd.f32 -0.00021337405, %v3578_v8  ;;  %11303 = vrcp.f32 %v15455_v1 }
 0x4d6   : > { %v3725_v25 = vadd.f32 -0.0073733293, %v3693_v40  ;;  %v3669_v59 = vadd.f32 -0.001682827, %v3637_v41  ;;  %v3609_v13 = vadd.f32 -0.00021337405, %v3577_v29  ;;  %v3700_v46 = vmul.f32 %v3668_v57, %v17307_v27 }
 0x4d7   : > { %v15488_v19 = vpop.f32.mrb[74].mxu1  ;;  %v3728_v58 = vadd.f32 -0.0073733293, %v3696_v54  ;;  %v3672_v0 = vadd.f32 -0.001682827, %v3640_v36  ;;  %v3755_v55 = vmul.f32 %v3723_v39, %v17281_v11  ;;  %v3699_v53 = vmul.f32 %v3667_v12, %v17309_v15 }
 0x4d8   : > { %17316 = vst [vmem:[#allocation32_spill] sm:$0xff] %v15488_v19  ;;  %v15492_v43 = vpop.f32.mrb[75].mxu1  ;;  %v3727_v8 = vadd.f32 -0.0073733293, %v3695_v61  ;;  %v3671_v7 = vadd.f32 -0.001682827, %v3639_v9  ;;  %v3758_v40 = vmul.f32 %v3726_v60, %v17294_v34  ;;  %v3702_v41 = vmul.f32 %v3670_v17, %v15011_v62 }
 0x4d9   : > { %17317 = vst [vmem:[#allocation61_spill] sm:$0xff] %v15492_v43  ;;  %v3730_v50 = vadd.f32 -0.0073733293, %v3698_v56  ;;  %v3642_v29 = vmul.f32 %v3610_v28, %v15135_v22  ;;  %v3757_v54 = vmul.f32 %v3725_v25, %v17297_v44  ;;  %v3729_v19 = vadd.f32 -0.0073733293, %v3697_v33  ;;  %v15502_v43 = vpop.f32.mrb[76].mxu1 }
 0x4da   : > { %v3701_v57 = vmul.f32 %v3669_v59, %v15055_v52  ;;  %v3641_v36 = vmul.f32 %v3609_v13, %v15145_v47  ;;  %17318 = vst [vmem:[#allocation45_spill] sm:$0xff] %v15502_v43  ;;  %11305 = vrcp.f32 %v15480_v63  ;;  %v3760_v11 = vmul.f32 %v3728_v58, %v17299_v21  ;;  %v15507_v34 = vpop.f32.mrb[77].mxu1 }
 0x4db   : > { %v3732_v61 = vadd.f32 -0.0073733293, %v3700_v46  ;;  %v3704_v56 = vmul.f32 %v3672_v0, %v15090_v30  ;;  %17319 = vst [vmem:[#allocation15_spill] sm:$0xff] %v15507_v34  ;;  %v15509_v17 = vadd.f32 -0.014264739, %v3755_v55  ;;  %v3759_v44 = vmul.f32 %v3727_v8, %v17302_v51 }
 0x4dc   : > { %v3731_v28 = vadd.f32 -0.0073733293, %v3699_v53  ;;  %v3703_v39 = vmul.f32 %v3671_v7, %v15102_v6  ;;  %v15513_v12 = vadd.f32 -0.014264739, %v3758_v40  ;;  %v3762_v13 = vmul.f32 %v3730_v50, %v17304_v23 }
 0x4dd   : > { %v3734_v9 = vadd.f32 -0.0073733293, %v3702_v41  ;;  %v3674_v60 = vadd.f32 -0.001682827, %v3642_v29  ;;  %v15516_v25 = vadd.f32 -0.014264739, %v3757_v54  ;;  %v3761_v21 = vmul.f32 %v3729_v19, %v17305_v16 }
 0x4de   : > { %v3733_v33 = vadd.f32 -0.0073733293, %v3701_v57  ;;  %v3673_v59 = vadd.f32 -0.001682827, %v3641_v36  ;;  %v15519_v58 = vpop.f32.mrb[78].mxu1  ;;  %v3847_v51 = vmul.f32 %v15469_v31, %v15399_v38  ;;  %v3764_v0 = vmul.f32 %v3732_v61, %v17307_v27 }
 0x4df   : > { %17320 = vst [vmem:[#allocation84_spill] sm:$0xff] %v15519_v58  ;;  %v15523_v46 = vadd.f32 -0.014264739, %v3760_v11  ;;  %v3736_v55 = vadd.f32 -0.0073733293, %v3704_v56  ;;  %v15526_v8 = vpop.f32.mrb[79].mxu1  ;;  %11307 = vrcp.f32 %v15509_v17  ;;  %v3763_v16 = vmul.f32 %v3731_v28, %v17309_v15  ;;  %v15532_v53 = vpop.eup %11303 }
 0x4e0   : > { %17321 = vst [vmem:[#allocation85_spill] sm:$0xff] %v15526_v8  ;;  %v15529_v23 = vadd.f32 -0.014264739, %v3759_v44  ;;  %v3735_v19 = vadd.f32 -0.0073733293, %v3703_v39  ;;  %11309 = vrcp.f32 %v15513_v12  ;;  %v3766_v38 = vmul.f32 %v3734_v9, %v15011_v62  ;;  %v17322_v39 = vld [vmem:[#allocation11_spill] sm:$0xff] }
 0x4e1   : > { %v15535_v7 = vadd.f32 -0.014264739, %v3762_v13  ;;  %v3706_v27 = vmul.f32 %v3674_v60, %v15135_v22  ;;  %11311 = vrcp.f32 %v15516_v25  ;;  %v15540_v40 = vadd.f32 -0.014264739, %v3761_v21  ;;  %v17323_v60 = vld [vmem:[#allocation70_spill] sm:$0xff] }
 0x4e2   : > { %v3765_v50 = vmul.f32 %v3733_v33, %v15055_v52  ;;  %v3705_v41 = vmul.f32 %v3673_v59, %v15145_v47  ;;  %v3877_v15 = vsub.f32 2.0, %v15425_v48  ;;  %11313 = vrcp.f32 %v15523_v46 }
 0x4e3   : > { %v15546_v29 = vadd.f32 -0.014264739, %v3764_v0  ;;  %v3768_v54 = vmul.f32 %v3736_v55, %v15090_v30  ;;  %v3880_v62 = vsub.f32 2.0, %v15452_v26  ;;  %11315 = vrcp.f32 %v15529_v23  ;;  %v17324_v55 = vld [vmem:[#allocation44_spill] sm:$0xff] }
 0x4e4   : > { %v15551_v57 = vadd.f32 -0.014264739, %v3763_v16  ;;  %v3767_v36 = vmul.f32 %v3735_v19, %v15102_v6  ;;  %v15554_v11 = vpop.eup %11305  ;;  %v3879_v52 = vsub.f32 2.0, %v3847_v51  ;;  %11317 = vrcp.f32 %v15535_v7 }
 0x4e5   : > { %v15557_v48 = vadd.f32 -0.014264739, %v3766_v38  ;;  %v3738_v61 = vadd.f32 -0.0073733293, %v3706_v27  ;;  %v3850_v56 = vmul.f32 %v15485_v49, %v15417_v45  ;;  %11319 = vrcp.f32 %v15540_v40  ;;  %v17325_v38 = vld [vmem:[#allocation62_spill] sm:$0xff] }
 0x4e6   : > { %v15562_v30 = vadd.f32 -0.014264739, %v3765_v50  ;;  %v3737_v26 = vadd.f32 -0.0073733293, %v3705_v41  ;;  %v3909_v44 = vmul.f32 %v15402_v32, %v3877_v15  ;;  %v3849_v6 = vmul.f32 %v15532_v53, %v15455_v1  ;;  %v17326_v50 = vld [vmem:[#allocation71_spill] sm:$0xff] }
 0x4e7   : > { %11321 = vrcp.f32 %v15546_v29  ;;  %v15568_v28 = vadd.f32 -0.014264739, %v3768_v54  ;;  %v3974_v13 = vmul.f32 %v17322_v39, %v15441_v10  ;;  %v3912_v9 = vmul.f32 %v15435_v4, %v3880_v62 }
 0x4e8   : > { %11323 = vrcp.f32 %v15551_v57  ;;  %v15574_v45 = vadd.f32 -0.014264739, %v3767_v36  ;;  %v15578_v21 = vmul.f32 %v15396_v5, %v17323_v60  ;;  %v3911_v32 = vmul.f32 %v15469_v31, %v3879_v52  ;;  %v17328_v36 = vld [vmem:[#allocation75_spill] sm:$0xff] }
 0x4e9   : > { %11325 = vrcp.f32 %v15557_v48  ;;  %v3770_v1 = vmul.f32 %v3738_v61, %v15135_v22  ;;  %v11308_v33 = vpop.eup %11307  ;;  %v4004_v59 = vadd.f32 1.0, %v15409_v42  ;;  %v3882_v10 = vsub.f32 2.0, %v3850_v56 }
 0x4ea   : > { %11327 = vrcp.f32 %v15562_v30  ;;  %v3769_v4 = vmul.f32 %v3737_v26, %v15145_v47  ;;  %v11310_v51 = vpop.eup %11309  ;;  %v4003_v0 = vadd.f32 1.0, %v15413_v24  ;;  %v3973_v5 = vmul.f32 %v17324_v55, %v3909_v44  ;;  %v17327_v24 = vld [vmem:[#allocation51_spill] sm:$0xff]  ;;  %v17329_v44 = vld [vmem:[#allocation77_spill] sm:$0xff]  ;;  %v17331_v55 = vld [vmem:[#allocation64_spill] sm:$0xff] }
 0x4eb   : > { %v3881_v16 = vsub.f32 2.0, %v3849_v6  ;;  %11329 = vrcp.f32 %v15568_v28  ;;  %v11312_v31 = vpop.eup %11311  ;;  %v4006_v19 = vadd.f32 1.0, %v3974_v13  ;;  %v3976_v22 = vmul.f32 %v17325_v38, %v3912_v9  ;;  %v17330_v9 = vld [vmem:[#allocation78_spill] sm:$0xff] }
 0x4ec   : > { %v3852_v42 = vmul.f32 %v15554_v11, %v15480_v63  ;;  %11331 = vrcp.f32 %v15574_v45  ;;  %v11314_v27 = vpop.eup %11313  ;;  %v15595_v47 = vmul.f32 %v15406_v20, %v17326_v50  ;;  %v3975_v41 = vmul.f32 %v17327_v24, %v3911_v32  ;;  %v17334_v24 = vld [vmem:[#allocation47_spill] sm:$0xff] }
 0x4ed   : > { %v3851_v15 = vmul.f32 %v11308_v33, %v15509_v17  ;;  %v15599_v54 = vadd.f32 -0.014264739, %v3770_v1  ;;  %v11316_v62 = vpop.eup %11315  ;;  %v15602_v52 = vmul.f32 %v4004_v59, %v17328_v36  ;;  %v3914_v61 = vmul.f32 %v15485_v49, %v3882_v10 }
 0x4ee   : > { %v3854_v63 = vmul.f32 %v11310_v51, %v15513_v12  ;;  %v15606_v56 = vadd.f32 -0.014264739, %v3769_v4  ;;  %v11318_v26 = vpop.eup %11317  ;;  %v15609_v20 = vmul.f32 %v4003_v0, %v17329_v44  ;;  %v4005_v6 = vadd.f32 1.0, %v3973_v5 }
 0x4ef   : > { %v3913_v39 = vmul.f32 %v15532_v53, %v3881_v16  ;;  %v3853_v17 = vmul.f32 %v11312_v31, %v15516_v25  ;;  %v11320_v13 = vpop.eup %11319  ;;  %v15614_v60 = vmul.f32 %v4006_v19, %v17330_v9  ;;  %v4008_v32 = vadd.f32 1.0, %v3976_v22  ;;  %v17332_v19 = vld [vmem:[#allocation46_spill] sm:$0xff] }
 0x4f0   : > { %v3884_v1 = vsub.f32 2.0, %v3852_v42  ;;  %v3856_v49 = vmul.f32 %v11314_v27, %v15523_v46  ;;  %v4007_v59 = vadd.f32 1.0, %v3975_v41  ;;  %v3883_v10 = vsub.f32 2.0, %v3851_v15  ;;  %v17333_v46 = vld [vmem:[#allocation54_spill] sm:$0xff] }
 0x4f1   : > { %v11322_v12 = vpop.eup %11321  ;;  %v3855_v4 = vmul.f32 %v11316_v62, %v15529_v23  ;;  %11333 = vrcp.f32 %v15599_v54  ;;  %v3978_v53 = vmul.f32 %v17331_v55, %v3914_v61  ;;  %v3886_v5 = vsub.f32 2.0, %v3854_v63  ;;  %v17335_v63 = vld [vmem:[#allocation36_spill] sm:$0xff] }
 0x4f2   : > { %v11324_v0 = vpop.eup %11323  ;;  %v3858_v25 = vmul.f32 %v11318_v26, %v15535_v7  ;;  %11335 = vrcp.f32 %v15606_v56  ;;  %v15623_v38 = vmul.f32 %v4005_v6, %v17332_v19  ;;  %v3977_v22 = vmul.f32 %v17333_v46, %v3913_v39 }
 0x4f3   : > { %v11326_v16 = vpop.eup %11325  ;;  %v3885_v42 = vsub.f32 2.0, %v3853_v17  ;;  %v3857_v50 = vmul.f32 %v11320_v13, %v15540_v40  ;;  %v15628_v41 = vmul.f32 %v4008_v32, %v17334_v24  ;;  %v3916_v15 = vmul.f32 %v15554_v11, %v3884_v1 }
 0x4f4   : > { %v11328_v23 = vpop.eup %11327  ;;  %v3888_v36 = vsub.f32 2.0, %v3856_v49  ;;  %v3860_v7 = vmul.f32 %v11322_v12, %v15546_v29  ;;  %v15633_v44 = vmul.f32 %v4007_v59, %v17335_v63  ;;  %v3915_v6 = vmul.f32 %v11308_v33, %v3883_v10  ;;  %v17336_v29 = vld [vmem:[#allocation56_spill] sm:$0xff]  ;;  %v17337_v10 = vld [vmem:[#allocation57_spill] sm:$0xff] }
 0x4f5   : > { %v11330_v61 = vpop.eup %11329  ;;  %v3887_v9 = vsub.f32 2.0, %v3855_v4  ;;  %v3859_v39 = vmul.f32 %v11324_v0, %v15551_v57  ;;  %v4010_v55 = vadd.f32 1.0, %v3978_v53  ;;  %v3918_v40 = vmul.f32 %v11310_v51, %v3886_v5  ;;  %v17338_v53 = vld [vmem:[#allocation49_spill] sm:$0xff] }
 0x4f6   : > { %v11332_v17 = vpop.eup %11331  ;;  %v3890_v19 = vsub.f32 2.0, %v3858_v25  ;;  %v3862_v32 = vmul.f32 %v11326_v16, %v15557_v48  ;;  %v4009_v46 = vadd.f32 1.0, %v3977_v22  ;;  %v3917_v24 = vmul.f32 %v11312_v31, %v3885_v42  ;;  %v17339_v48 = vld [vmem:[#allocation66_spill] sm:$0xff]  ;;  %v17340_v42 = vld [vmem:[#allocation24_spill] sm:$0xff] }
 0x4f7   : > { %v3889_v11 = vsub.f32 2.0, %v3857_v50  ;;  %v3861_v1 = vmul.f32 %v11328_v23, %v15562_v30  ;;  %v3980_v49 = vmul.f32 %v17336_v29, %v3916_v15  ;;  %v3920_v8 = vmul.f32 %v11314_v27, %v3888_v36  ;;  %v17341_v27 = vld [vmem:[#allocation58_spill] sm:$0xff] }
 0x4f8   : > { %v3892_v59 = vsub.f32 2.0, %v3860_v7  ;;  %v3864_v33 = vmul.f32 %v11330_v61, %v15568_v28  ;;  %v3979_v4 = vmul.f32 %v17337_v10, %v3915_v6  ;;  %v3919_v57 = vmul.f32 %v11316_v62, %v3887_v9  ;;  %v17342_v6 = vld [vmem:[#allocation37_spill] sm:$0xff]  ;;  %v17343_v29 = vld [vmem:[#allocation34_spill] sm:$0xff] }
 0x4f9   : > { %v3891_v63 = vsub.f32 2.0, %v3859_v39  ;;  %v3863_v51 = vmul.f32 %v11332_v17, %v15574_v45  ;;  %v15643_v5 = vmul.f32 %v4010_v55, %v17338_v53  ;;  %v3982_v31 = vmul.f32 %v17339_v48, %v3918_v40 }
 0x4fa   : > { %v3922_v25 = vmul.f32 %v11318_v26, %v3890_v19  ;;  %v3894_v22 = vsub.f32 2.0, %v3862_v32  ;;  %v15647_v50 = vmul.f32 %v4009_v46, %v17340_v42  ;;  %v3981_v15 = vmul.f32 %v17341_v27, %v3917_v24  ;;  %v17344_v32 = vld [vmem:[#allocation10_spill] sm:$0xff] }
 0x4fb   : > { %v11334_v30 = vpop.eup %11333  ;;  %v3921_v28 = vmul.f32 %v11320_v13, %v3889_v11  ;;  %v3893_v36 = vsub.f32 2.0, %v3861_v1  ;;  %v4012_v62 = vadd.f32 1.0, %v3980_v49  ;;  %v3984_v9 = vmul.f32 %v17342_v6, %v3920_v8  ;;  %v17345_v8 = vld [vmem:[#allocation42_spill] sm:$0xff]  ;;  %v17354_v6 = vld [vmem:[#allocation31_spill] sm:$0xff] }
 0x4fc   : > { %v11336_v7 = vpop.eup %11335  ;;  %v3924_v45 = vmul.f32 %v11322_v12, %v3892_v59  ;;  %v3896_v39 = vsub.f32 2.0, %v3864_v33  ;;  %v4011_v55 = vadd.f32 1.0, %v3979_v4  ;;  %v3983_v10 = vmul.f32 %v17343_v29, %v3919_v57  ;;  %v17346_v33 = vld [vmem:[#allocation13_spill] sm:$0xff] }
 0x4fd   : > { %v3923_v40 = vmul.f32 %v11324_v0, %v3891_v63  ;;  %v3895_v26 = vsub.f32 2.0, %v3863_v51  ;;  %v4014_v19 = vadd.f32 1.0, %v3982_v31  ;;  %v3986_v53 = vmul.f32 %v17344_v32, %v3922_v25  ;;  %v17347_v63 = vld [vmem:[#allocation48_spill] sm:$0xff]  ;;  %v17357_v29 = vld [vmem:[#allocation25_spill] sm:$0xff] }
 0x4fe   : > { %v3926_v46 = vmul.f32 %v11326_v16, %v3894_v22  ;;  %v3866_v48 = vmul.f32 %v11334_v30, %v15599_v54  ;;  %v4013_v24 = vadd.f32 1.0, %v3981_v15  ;;  %v3985_v13 = vmul.f32 %v15241_v18, %v3921_v28  ;;  %v17351_v15 = vld [vmem:[#allocation52_spill] sm:$0xff] }
 0x4ff   : > { %v3925_v11 = vmul.f32 %v11328_v23, %v3893_v36  ;;  %v3865_v1 = vmul.f32 %v11336_v7, %v15606_v56  ;;  %v15657_v12 = vmul.f32 %v4012_v62, %v17345_v8  ;;  %v4016_v49 = vadd.f32 1.0, %v3984_v9  ;;  %v17353_v36 = vld [vmem:[#allocation7_spill] sm:$0xff]  ;;  %v17363_v8 = vld [vmem:[#allocation20_spill] sm:$0xff] }
 0x500   : > { %v3988_v59 = vmul.f32 %v15251_v37, %v3924_v45  ;;  %v3928_v0 = vmul.f32 %v11330_v61, %v3896_v39  ;;  %v15661_v4 = vmul.f32 %v4011_v55, %v17346_v33  ;;  %v4015_v57 = vadd.f32 1.0, %v3983_v10  ;;  %v10461_v31 = vpop.f32.mrb[16].mxu0  ;;  %v15671_v37 = vld [vmem:[%s16726_s5] ss:$0 sm:$0xff]  ;;  %v17349_v61 = vld [vmem:[#allocation63_spill] sm:$0xff]  ;;  %v17355_v45 = vld [vmem:[#allocation17_spill] sm:$0xff] }
 0x501   : > { %v3987_v16 = vmul.f32 %v15263_v14, %v3923_v40  ;;  %v3927_v54 = vmul.f32 %v11332_v17, %v3895_v26  ;;  %v15665_v51 = vmul.f32 %v4014_v19, %v17347_v63  ;;  %v4018_v18 = vadd.f32 1.0, %v3986_v53  ;;  %v7300_v27 = vpop.f32.mrb[17].mxu0  ;;  %v17358_v40 = vld [vmem:[#allocation55_spill] sm:$0xff] }
 0x502   : > { %v3990_v56 = vmul.f32 %v15272_v35, %v3926_v46  ;;  %v3898_v23 = vsub.f32 2.0, %v3866_v48  ;;  %v15674_v25 = vmul.f32 %v4013_v24, %v17349_v61  ;;  %v4017_v22 = vadd.f32 1.0, %v3985_v13  ;;  %v17360_v46 = vld [vmem:[#allocation65_spill] sm:$0xff]  ;;  %v17370_v61 = vld [vmem:[#allocation28_spill] sm:$0xff] }
 0x503   : > { %17348 = vst [vmem:[#allocation11_spill] sm:$0xff] %v15665_v51  ;;  %v3989_v14 = vmul.f32 %v15287_v3, %v3925_v11  ;;  %v3897_v17 = vsub.f32 2.0, %v3865_v1  ;;  %v10847_v42 = vadd.f32 %v10461_v31, %v15253_v2  ;;  %v15679_v28 = vmul.f32 %v4016_v49, %v17351_v15  ;;  %v17362_v11 = vld [vmem:[#allocation76_spill] sm:$0xff] }
 0x504   : > { %17350 = vst [vmem:[#allocation70_spill] sm:$0xff] %v15674_v25  ;;  %v4020_v35 = vadd.f32 1.0, %v3988_v59  ;;  %v3992_v62 = vmul.f32 %v17353_v36, %v3928_v0  ;;  %v10848_v9 = vadd.f32 %v7300_v27, %v17354_v6  ;;  %v15684_v39 = vmul.f32 %v4015_v57, %v17355_v45  ;;  %v10464_v53 = vpop.f32.mrb[18].mxu0  ;;  %v17364_v0 = vld [vmem:[#allocation67_spill] sm:$0xff] }
 0x505   : > { %17352 = vst [vmem:[#allocation44_spill] sm:$0xff] %v15679_v28  ;;  %v4019_v55 = vadd.f32 1.0, %v3987_v16  ;;  %v3991_v10 = vmul.f32 %v17357_v29, %v3927_v54  ;;  %v7499_v3 = vadd.f32 %v10847_v42, %v15671_v37  ;;  %v15689_v26 = vmul.f32 %v4018_v18, %v17358_v40  ;;  %v7310_v59 = vpop.f32.mrb[19].mxu0  ;;  %v17366_v16 = vld [vmem:[#allocation8_spill] sm:$0xff]  ;;  %v17368_v18 = vld [vmem:[#allocation59_spill] sm:$0xff]  ;;  %v17377_v29 = vld [vmem:[#allocation53_spill] sm:$0xff] }
 0x506   : > { %17356 = vst [vmem:[#allocation62_spill] sm:$0xff] %v15684_v39  ;;  %v4022_v2 = vadd.f32 1.0, %v3990_v56  ;;  %v3930_v19 = vmul.f32 %v11334_v30, %v3898_v23  ;;  %v7498_v32 = vadd.f32 %v10848_v9, %v15671_v37  ;;  %v15693_v48 = vmul.f32 %v4017_v22, %v17360_v46  ;;  %v17367_v30 = vld [vmem:[#allocation9_spill] sm:$0xff]  ;;  %v17376_v45 = vld [vmem:[#allocation19_spill] sm:$0xff]  ;;  %v17378_v40 = vld [vmem:[#allocation80_spill] sm:$0xff] }
 0x507   : > { %17359 = vst [vmem:[#allocation71_spill] sm:$0xff] %v15689_v26  ;;  %v4021_v24 = vadd.f32 1.0, %v3989_v14  ;;  %v3929_v13 = vmul.f32 %v11336_v7, %v3897_v17  ;;  %v7531_v1 = vmul.f32 %v7499_v3, %v17362_v11  ;;  %v10849_v49 = vadd.f32 %v10464_v53, %v17363_v8  ;;  %v17372_v14 = vld [vmem:[#allocation68_spill] sm:$0xff]  ;;  %v17381_v46 = vld [vmem:[#allocation22_spill] sm:$0xff] }
 0x508   : > { %17361 = vst [vmem:[#allocation51_spill] sm:$0xff] %v15693_v48  ;;  %v15698_v33 = vmul.f32 %v4020_v35, %v17364_v0  ;;  %v4024_v57 = vadd.f32 1.0, %v3992_v62  ;;  %v15701_v54 = vmul.f32 %v7498_v32, %v17366_v16  ;;  %v10850_v63 = vadd.f32 %v7310_v59, %v17367_v30  ;;  %v17373_v35 = vld [vmem:[#allocation79_spill] sm:$0xff]  ;;  %v17375_v62 = vld [vmem:[#allocation81_spill] sm:$0xff]  ;;  %v17380_v32 = vld [vmem:[#allocation50_spill] sm:$0xff] }
 0x509   : > { %v15705_v56 = vmul.f32 %v4019_v55, %v17368_v18  ;;  %v4023_v23 = vadd.f32 1.0, %v3991_v10  ;;  %v7595_v31 = vmul.f32 0.70710677, %v7531_v1  ;;  %v7501_v7 = vadd.f32 %v10849_v49, %v15671_v37  ;;  %v10467_v15 = vpop.f32.mrb[20].mxu0  ;;  %v17382_v11 = vld [vmem:[#allocation6_spill] sm:$0xff] }
 0x50a   : > { %17365 = vst [vmem:[#allocation75_spill] sm:$0xff] %v15698_v33  ;;  %v15709_v22 = vmul.f32 %v4022_v2, %v17370_v61  ;;  %v3994_v17 = vmul.f32 %v17372_v14, %v3930_v19  ;;  %v7594_v42 = vmul.f32 0.70710677, %v15701_v54  ;;  %v7500_v27 = vadd.f32 %v10850_v63, %v15671_v37  ;;  %v7320_v3 = vpop.f32.mrb[21].mxu0  ;;  %v17386_v61 = vld [vmem:[#allocation27_spill] sm:$0xff] }
 0x50b   : > { %17369 = vst [vmem:[#allocation77_spill] sm:$0xff] %v15705_v56  ;;  %v15715_v36 = vmul.f32 %v4021_v24, %v17373_v35  ;;  %v3993_v6 = vmul.f32 %v17375_v62, %v3929_v13  ;;  %v15718_v9 = vclamps-f32 %v7595_v31, 4.0  ;;  %v15721_v55 = vmul.f32 %v7501_v7, %v17376_v45  ;;  %v17387_v35 = vld [vmem:[#allocation29_spill] sm:$0xff] }
 0x50c   : > { %17371 = vst [vmem:[#allocation78_spill] sm:$0xff] %v15709_v22  ;;  %v10851_v10 = vadd.f32 %v10467_v15, %v17377_v29  ;;  %v15725_v2 = vmul.f32 %v4024_v57, %v17378_v40  ;;  %v15727_v19 = vclamps-f32 %v7594_v42, 4.0  ;;  %v15730_v53 = vmul.f32 %v7500_v27, %v17380_v32 }
 0x50d   : > { %17374 = vst [vmem:[#allocation64_spill] sm:$0xff] %v15715_v36  ;;  %v10852_v24 = vadd.f32 %v7320_v3, %v17381_v46  ;;  %v15734_v13 = vmul.f32 %v4023_v23, %v17382_v11  ;;  %v15738_v8 = vmul.f32 %v15718_v9, %v15718_v9  ;;  %v7597_v49 = vmul.f32 0.70710677, %v15721_v55  ;;  %v10470_v63 = vpop.f32.mrb[22].mxu0 }
 0x50e   : > { %17379 = vst [vmem:[#allocation46_spill] sm:$0xff] %v15725_v2  ;;  %v7503_v59 = vadd.f32 %v10851_v10, %v15671_v37  ;;  %v15742_v0 = vadd.f32 1.0, %v3994_v17  ;;  %v15746_v57 = vmul.f32 %v15727_v19, %v15727_v19  ;;  %v7596_v16 = vmul.f32 0.70710677, %v15730_v53  ;;  %v7330_v17 = vpop.f32.mrb[23].mxu0  ;;  %v17389_v2 = vld [vmem:[#allocation33_spill] sm:$0xff] }
 0x50f   : > { %17383 = vst [vmem:[#allocation54_spill] sm:$0xff] %v15734_v13  ;;  %v7502_v30 = vadd.f32 %v10852_v24, %v15671_v37  ;;  %v15750_v18 = vadd.f32 1.0, %v3993_v6  ;;  %v7723_v23 = vmul.f32 -2.7261424e-10, %v15738_v8  ;;  %v8107_v31 = vmul.f32 -1.45660715e-05, %v15738_v8 }
 0x510   : > { %17384 = vst [vmem:[#allocation47_spill] sm:$0xff] %v15742_v0  ;;  %v15754_v7 = vclamps-f32 %v7597_v49, 4.0  ;;  %v15757_v14 = vmul.f32 %v7503_v59, %v17386_v61  ;;  %v7722_v42 = vmul.f32 -2.7261424e-10, %v15746_v57  ;;  %v8106_v27 = vmul.f32 -1.45660715e-05, %v15746_v57 }
 0x511   : > { %17385 = vst [vmem:[#allocation36_spill] sm:$0xff] %v15750_v18  ;;  %v15761_v15 = vclamps-f32 %v7596_v16, 4.0  ;;  %v15764_v62 = vmul.f32 %v7502_v30, %v17387_v35  ;;  %v15766_v6 = vmul.f32 0.5, %v7531_v1  ;;  %v7755_v45 = vadd.f32 2.7706815e-08, %v7723_v23  ;;  %v15783_v59 = vpop.f32.mrb[24].mxu0 }
 0x512   : > { %v8139_v29 = vadd.f32 -0.00021337405, %v8107_v31  ;;  %v15770_v10 = vmul.f32 %v15754_v7, %v15754_v7  ;;  %v7754_v3 = vadd.f32 2.7706815e-08, %v7722_v42  ;;  %v8138_v40 = vadd.f32 -0.00021337405, %v8106_v27 }
 0x513   : > { %v15774_v32 = vmul.f32 %v15761_v15, %v15761_v15  ;;  %v15777_v46 = vmul.f32 0.70710677, %v15757_v14  ;;  %v7787_v24 = vmul.f32 %v7755_v45, %v15738_v8  ;;  %v15789_v61 = vpop.f32.mrb[25].mxu0  ;;  %v17388_v45 = vld [vmem:[#allocation23_spill] sm:$0xff]  ;;  %v15795_v34 = vadd.f32 %v7330_v17, %v17389_v2 }
 0x514   : > { %v8171_v1 = vmul.f32 %v8139_v29, %v15738_v8  ;;  %v7725_v11 = vmul.f32 -2.7261424e-10, %v15770_v10  ;;  %v8109_v49 = vmul.f32 -1.45660715e-05, %v15770_v10  ;;  %v7786_v16 = vmul.f32 %v7754_v3, %v15746_v57 }
 0x515   : > { %v8170_v30 = vmul.f32 %v8138_v40, %v15746_v57  ;;  %v7724_v23 = vmul.f32 -2.7261424e-10, %v15774_v32  ;;  %v8108_v31 = vmul.f32 -1.45660715e-05, %v15774_v32  ;;  %v7819_v42 = vadd.f32 -2.101024e-06, %v7787_v24 }
 0x516   : > { %v8203_v27 = vadd.f32 -0.001682827, %v8171_v1  ;;  %v7757_v35 = vadd.f32 2.7706815e-08, %v7725_v11  ;;  %v15792_v29 = vadd.f32 %v10470_v63, %v17388_v45  ;;  %v7818_v58 = vadd.f32 -2.101024e-06, %v7786_v16 }
 0x517   : > { %v8202_v18 = vadd.f32 -0.001682827, %v8170_v30  ;;  %v8141_v13 = vadd.f32 -0.00021337405, %v8109_v49  ;;  %v7851_v3 = vmul.f32 %v7819_v42, %v15738_v8  ;;  %v7756_v43 = vadd.f32 2.7706815e-08, %v7724_v23 }
 0x518   : > { %v8235_v40 = vmul.f32 %v8203_v27, %v15738_v8  ;;  %v7789_v0 = vmul.f32 %v7757_v35, %v15770_v10  ;;  %v15800_v36 = vpop.f32.mrb[26].mxu0  ;;  %v7850_v24 = vmul.f32 %v7818_v58, %v15746_v57  ;;  %v8140_v11 = vadd.f32 -0.00021337405, %v8108_v31 }
 0x519   : > { %v8234_v63 = vmul.f32 %v8202_v18, %v15746_v57  ;;  %v8173_v1 = vmul.f32 %v8141_v13, %v15770_v10  ;;  %v15805_v49 = vpop.f32.mrb[27].mxu0  ;;  %v7883_v2 = vadd.f32 -5.6925062e-05, %v7851_v3  ;;  %v7788_v30 = vmul.f32 %v7756_v43, %v15774_v32 }
 0x51a   : > { %v8267_v17 = vadd.f32 -0.0073733293, %v8235_v40  ;;  %v7821_v16 = vadd.f32 -2.101024e-06, %v7789_v0  ;;  %v7882_v42 = vadd.f32 -5.6925062e-05, %v7850_v24  ;;  %v8172_v23 = vmul.f32 %v8140_v11, %v15774_v32 }
 0x51b   : > { %v8266_v27 = vadd.f32 -0.0073733293, %v8234_v63  ;;  %v8205_v35 = vadd.f32 -0.001682827, %v8173_v1  ;;  %v7915_v45 = vmul.f32 %v7883_v2, %v15738_v8  ;;  %v7820_v13 = vadd.f32 -2.101024e-06, %v7788_v30 }
 0x51c   : > { %v8299_v58 = vmul.f32 %v8267_v17, %v15738_v8  ;;  %v7853_v18 = vmul.f32 %v7821_v16, %v15770_v10  ;;  %v15812_v31 = vpop.f32.mrb[28].mxu0  ;;  %v7914_v3 = vmul.f32 %v7882_v42, %v15746_v57  ;;  %v8204_v40 = vadd.f32 -0.001682827, %v8172_v23 }
 0x51d   : > { %v8298_v0 = vmul.f32 %v8266_v27, %v15746_v57  ;;  %v8237_v43 = vmul.f32 %v8205_v35, %v15770_v10  ;;  %v15817_v24 = vpop.f32.mrb[29].mxu0  ;;  %v7947_v63 = vadd.f32 -0.00073499064, %v7915_v45  ;;  %v7852_v2 = vmul.f32 %v7820_v13, %v15774_v32 }
 0x51e   : > { %v8331_v1 = vadd.f32 -0.014264739, %v8299_v58  ;;  %v7885_v11 = vadd.f32 -5.6925062e-05, %v7853_v18  ;;  %v7946_v17 = vadd.f32 -0.00073499064, %v7914_v3  ;;  %v8236_v30 = vmul.f32 %v8204_v40, %v15774_v32 }
 0x51f   : > { %v8330_v22 = vadd.f32 -0.014264739, %v8298_v0  ;;  %v8269_v16 = vadd.f32 -0.0073733293, %v8237_v43  ;;  %v7979_v56 = vmul.f32 %v7947_v63, %v15738_v8  ;;  %v7884_v27 = vadd.f32 -5.6925062e-05, %v7852_v2 }
 0x520   : > { %11337 = vrcp.f32 %v8331_v1  ;;  %v7917_v42 = vmul.f32 %v7885_v11, %v15770_v10  ;;  %v15823_v35 = vpop.f32.mrb[30].mxu0  ;;  %v7978_v23 = vmul.f32 %v7946_v17, %v15746_v57  ;;  %v8268_v58 = vadd.f32 -0.0073733293, %v8236_v30 }
 0x521   : > { %11339 = vrcp.f32 %v8330_v22  ;;  %v8301_v45 = vmul.f32 %v8269_v16, %v15770_v10  ;;  %v15827_v18 = vpop.f32.mrb[31].mxu0  ;;  %v8011_v13 = vadd.f32 -0.0029546, %v7979_v56  ;;  %v7916_v0 = vmul.f32 %v7884_v27, %v15774_v32 }
 0x522   : > { %v7949_v3 = vadd.f32 -0.00073499064, %v7917_v42  ;;  %v15831_v43 = vclamps-f32 %v15777_v46, 4.0  ;;  %v15834_v40 = vmul.f32 0.5, %v15701_v54  ;;  %v8010_v63 = vadd.f32 -0.0029546, %v7978_v23 }
 0x523   : > { %v8333_v11 = vadd.f32 -0.014264739, %v8301_v45  ;;  %v8300_v2 = vmul.f32 %v8268_v58, %v15774_v32  ;;  %v15837_v17 = vpop.f32.mrb[32].mxu0  ;;  %v8043_v16 = vmul.f32 %v8011_v13, %v15738_v8  ;;  %v7948_v56 = vadd.f32 -0.00073499064, %v7916_v0 }
 0x524   : > { %v7981_v30 = vmul.f32 %v7949_v3, %v15770_v10  ;;  %v15843_v42 = vmul.f32 %v15831_v43, %v15831_v43  ;;  %v15845_v46 = vpop.f32.mrb[33].mxu0  ;;  %v8042_v54 = vmul.f32 %v8010_v63, %v15746_v57  ;;  %v7598_v23 = vmul.f32 0.70710677, %v15764_v62 }
 0x525   : > { %11341 = vrcp.f32 %v8333_v11  ;;  %v15848_v27 = vadd.f32 -0.014264739, %v8300_v2  ;;  %v8075_v45 = vadd.f32 -0.016096033, %v8043_v16  ;;  %v7980_v8 = vmul.f32 %v7948_v56, %v15774_v32 }
 0x526   : > { %v8013_v58 = vadd.f32 -0.0029546, %v7981_v30  ;;  %v7727_v13 = vmul.f32 -2.7261424e-10, %v15843_v42  ;;  %v8074_v3 = vadd.f32 -0.016096033, %v8042_v54 }
 0x527   : > { %11343 = vrcp.f32 %v15848_v27  ;;  %v8111_v0 = vmul.f32 -1.45660715e-05, %v15843_v42  ;;  %v15855_v33 = vclamps-f32 %v7598_v23, 4.0  ;;  %v15857_v48 = vpop.f32.mrb[34].mxu0  ;;  %v15860_v57 = vmul.f32 0.5, %v15721_v55 }
 0x528   : > { %17390 = vst [vmem:[#allocation56_spill] sm:$0xff] %v15857_v48  ;;  %v8045_v63 = vmul.f32 %v8013_v58, %v15770_v10  ;;  %v8012_v2 = vadd.f32 -0.0029546, %v7980_v8  ;;  %v7759_v16 = vadd.f32 2.7706815e-08, %v7727_v13  ;;  %v15863_v30 = vpop.f32.mrb[35].mxu0  ;;  %v8491_v56 = vmul.f32 %v15718_v9, %v8075_v45 }
 0x529   : > { %17391 = vst [vmem:[#allocation57_spill] sm:$0xff] %v15863_v30  ;;  %v8143_v54 = vadd.f32 -0.00021337405, %v8111_v0  ;;  %v15868_v26 = vmul.f32 %v15855_v33, %v15855_v33  ;;  %v7505_v23 = vadd.f32 %v15792_v29, %v15671_v37  ;;  %v8490_v55 = vmul.f32 %v15727_v19, %v8074_v3 }
 0x52a   : > { %v11338_v39 = vpop.eup %11337  ;;  %v8077_v28 = vadd.f32 -0.016096033, %v8045_v63  ;;  %v8044_v10 = vmul.f32 %v8012_v2, %v15774_v32  ;;  %v7791_v58 = vmul.f32 %v7759_v16, %v15843_v42  ;;  %v15878_v25 = vpop.f32.mrb[36].mxu0  ;;  %v7504_v19 = vadd.f32 %v15795_v34, %v15671_v37 }
 0x52b   : > { %v11340_v8 = vpop.eup %11339  ;;  %v8395_v13 = vmul.f32 %v11338_v39, %v8331_v1  ;;  %v8175_v9 = vmul.f32 %v8143_v54, %v15843_v42  ;;  %v7726_v45 = vmul.f32 -2.7261424e-10, %v15868_v26  ;;  %v8110_v0 = vmul.f32 -1.45660715e-05, %v15868_v26  ;;  %17392 = vst [vmem:[#allocation49_spill] sm:$0xff] %v15878_v25  ;;  %v15882_v32 = vpop.f32.mrb[37].mxu0 }
 0x52c   : > { %v8394_v29 = vmul.f32 %v11340_v8, %v8330_v22  ;;  %v8076_v30 = vadd.f32 -0.016096033, %v8044_v10  ;;  %v7823_v51 = vadd.f32 -2.101024e-06, %v7791_v58  ;;  %17393 = vst [vmem:[#allocation66_spill] sm:$0xff] %v15882_v32  ;;  %v15886_v2 = vmul.f32 %v7505_v23, %v15578_v21 }
 0x52d   : > { %v8427_v3 = vsub.f32 2.0, %v8395_v13  ;;  %v8207_v1 = vadd.f32 -0.001682827, %v8175_v9  ;;  %v7758_v63 = vadd.f32 2.7706815e-08, %v7726_v45  ;;  %v8493_v54 = vmul.f32 %v15754_v7, %v8077_v28 }
 0x52e   : > { %v8426_v16 = vsub.f32 2.0, %v8394_v29  ;;  %v7855_v22 = vmul.f32 %v7823_v51, %v15843_v42  ;;  %v8142_v10 = vadd.f32 -0.00021337405, %v8110_v0  ;;  %v8492_v34 = vmul.f32 %v15761_v15, %v8076_v30  ;;  %v15898_v28 = vpop.f32.mrb[38].mxu0 }
 0x52f   : > { %v11342_v58 = vpop.eup %11341  ;;  %v8459_v25 = vmul.f32 %v11338_v39, %v8427_v3  ;;  %v8239_v48 = vmul.f32 %v8207_v1, %v15843_v42  ;;  %v7790_v32 = vmul.f32 %v7758_v63, %v15868_v26  ;;  %v7601_v15 = vmul.f32 0.70710677, %v15886_v2 }
 0x530   : > { %v8458_v13 = vmul.f32 %v11340_v8, %v8426_v16  ;;  %v8397_v21 = vmul.f32 %v11342_v58, %v8333_v11  ;;  %v7887_v23 = vadd.f32 -5.6925062e-05, %v7855_v22  ;;  %v8174_v9 = vmul.f32 %v8142_v10, %v15868_v26 }
 0x531   : > { %v11344_v51 = vpop.eup %11343  ;;  %v8523_v7 = vmul.f32 %v8491_v56, %v8459_v25  ;;  %v8271_v45 = vadd.f32 -0.0073733293, %v8239_v48  ;;  %v7822_v39 = vadd.f32 -2.101024e-06, %v7790_v32 }
 0x532   : > { %v8522_v30 = vmul.f32 %v8490_v55, %v8458_v13  ;;  %v8429_v0 = vsub.f32 2.0, %v8397_v21  ;;  %v8396_v29 = vmul.f32 %v11344_v51, %v15848_v27  ;;  %v7919_v3 = vmul.f32 %v7887_v23, %v15843_v42 }
 0x533   : > { %v8555_v1 = vadd.f32 1.0, %v8523_v7  ;;  %v8303_v11 = vmul.f32 %v8271_v45, %v15843_v42  ;;  %v7854_v8 = vmul.f32 %v7822_v39, %v15868_v26  ;;  %v8206_v63 = vadd.f32 -0.001682827, %v8174_v9 }
 0x534   : > { %v8554_v16 = vadd.f32 1.0, %v8522_v30  ;;  %v8461_v22 = vmul.f32 %v11342_v58, %v8429_v0  ;;  %v8428_v25 = vsub.f32 2.0, %v8396_v29  ;;  %v7951_v48 = vadd.f32 -0.00073499064, %v7919_v3  ;;  %v17394_v0 = vld [vmem:[#allocation82_spill] sm:$0xff] }
 0x535   : > { %v8587_v56 = vmul.f32 %v8555_v1, %v15766_v6  ;;  %v8335_v32 = vadd.f32 -0.014264739, %v8303_v11  ;;  %v7886_v55 = vadd.f32 -5.6925062e-05, %v7854_v8  ;;  %v8238_v10 = vmul.f32 %v8206_v63, %v15868_v26 }
 0x536   : > { %v8586_v27 = vmul.f32 %v8554_v16, %v15834_v40  ;;  %v8525_v13 = vmul.f32 %v8493_v54, %v8461_v22  ;;  %v8460_v21 = vmul.f32 %v11344_v51, %v8428_v25  ;;  %v7983_v23 = vmul.f32 %v7951_v48, %v15843_v42 }
 0x537   : > { %8619 = vst [vmem:[%s15910_s11 + $0x8] sm:$0xff] %v8587_v56  ;;  %11345 = vrcp.f32 %v8335_v32  ;;  %v7918_v58 = vmul.f32 %v7886_v55, %v15868_v26  ;;  %v8270_v9 = vadd.f32 -0.0073733293, %v8238_v10  ;;  %v15914_v6 = vclamps-f32 %v7601_v15, 4.0  ;;  %v15927_v15 = vpop.f32.mrb[39].mxu0  ;;  %v17395_v10 = vld [vmem:[#allocation83_spill] sm:$0xff] }
 0x538   : > { %8618 = vst [vmem:[%s15910_s11] sm:$0xff] %v8586_v27  ;;  %v8557_v7 = vadd.f32 1.0, %v8525_v13  ;;  %v8524_v45 = vmul.f32 %v8492_v34, %v8460_v21  ;;  %v8015_v40 = vadd.f32 -0.0029546, %v7983_v23  ;;  %v15918_v54 = vmul.f32 %v7504_v19, %v15595_v47  ;;  %v17396_v23 = vld [vmem:[#allocation72_spill] sm:$0xff] }
 0x539   : > { %v7950_v51 = vadd.f32 -0.00073499064, %v7918_v58  ;;  %v8302_v39 = vmul.f32 %v8270_v9, %v15868_v26  ;;  %v15923_v30 = vmul.f32 %v15914_v6, %v15914_v6  ;;  %v10855_v29 = vadd.f32 %v15783_v59, %v17394_v0 }
 0x53a   : > { %v8589_v3 = vmul.f32 %v8557_v7, %v15860_v57  ;;  %v7564_v34 = vmul.f32 0.5, %v15730_v53  ;;  %v8556_v1 = vadd.f32 1.0, %v8524_v45  ;;  %v8047_v47 = vmul.f32 %v8015_v40, %v15843_v42 }
 0x53b   : > { %v7982_v19 = vmul.f32 %v7950_v51, %v15868_v26  ;;  %v8334_v11 = vadd.f32 -0.014264739, %v8302_v39  ;;  %v7729_v8 = vmul.f32 -2.7261424e-10, %v15923_v30  ;;  %v8113_v63 = vmul.f32 -1.45660715e-05, %v15923_v30 }
 0x53c   : > { %8621 = vst [vmem:[%s15910_s11 + $0x18] sm:$0xff] %v8589_v3  ;;  %v8588_v16 = vmul.f32 %v8556_v1, %v7564_v34  ;;  %v15937_v59 = vmul.f32 0.5, %v15757_v14  ;;  %v7600_v57 = vmul.f32 0.70710677, %v15918_v54  ;;  %v7507_v53 = vadd.f32 %v10855_v29, %v15671_v37 }
 0x53d   : > { %v8014_v22 = vadd.f32 -0.0029546, %v7982_v19  ;;  %11347 = vrcp.f32 %v8334_v11  ;;  %v7761_v25 = vadd.f32 2.7706815e-08, %v7729_v8  ;;  %v8145_v42 = vadd.f32 -0.00021337405, %v8113_v63 }
 0x53e   : > { %8620 = vst [vmem:[%s15910_s11 + $0x10] sm:$0xff] %v8588_v16  ;;  %v8079_v48 = vadd.f32 -0.016096033, %v8047_v47  ;;  %v15942_v56 = vclamps-f32 %v7600_v57, 4.0  ;;  %v15945_v55 = vmul.f32 %v7507_v53, %v15602_v52  ;;  %v10856_v27 = vadd.f32 %v15789_v61, %v17395_v10  ;;  %v15978_v16 = vpop.f32.mrb[40].mxu0 }
 0x53f   : > { %v8046_v14 = vmul.f32 %v8014_v22, %v15868_v26  ;;  %v7793_v13 = vmul.f32 %v7761_v25, %v15923_v30  ;;  %v8177_v21 = vmul.f32 %v8145_v42, %v15923_v30  ;;  %v10857_v58 = vadd.f32 %v15800_v36, %v17396_v23  ;;  %v15987_v10 = vpop.f32.mrb[41].mxu0 }
 0x540   : > { %v15955_v9 = vmul.f32 0.5, %v15764_v62  ;;  %v15959_v7 = vmul.f32 %v15942_v56, %v15942_v56  ;;  %v7603_v52 = vmul.f32 0.70710677, %v15945_v55  ;;  %v7506_v61 = vadd.f32 %v10856_v27, %v15671_v37 }
 0x541   : > { %v11346_v45 = vpop.eup %11345  ;;  %v8078_v26 = vadd.f32 -0.016096033, %v8046_v14  ;;  %v7825_v40 = vadd.f32 -2.101024e-06, %v7793_v13  ;;  %v8209_v51 = vadd.f32 -0.001682827, %v8177_v21  ;;  %v7509_v39 = vadd.f32 %v10857_v58, %v15671_v37 }
 0x542   : > { %v8399_v0 = vmul.f32 %v11346_v45, %v8335_v32  ;;  %v7728_v36 = vmul.f32 -2.7261424e-10, %v15959_v7  ;;  %v8112_v62 = vmul.f32 -1.45660715e-05, %v15959_v7  ;;  %v15966_v29 = vclamps-f32 %v7603_v52, 4.0 }
 0x543   : > { %v8495_v3 = vmul.f32 %v15831_v43, %v8079_v48  ;;  %v7857_v34 = vmul.f32 %v7825_v40, %v15923_v30  ;;  %v8241_v1 = vmul.f32 %v8209_v51, %v15923_v30  ;;  %v15972_v47 = vmul.f32 %v7506_v61, %v15609_v20  ;;  %v17397_v40 = vld [vmem:[#allocation73_spill] sm:$0xff] }
 0x544   : > { %v8431_v19 = vsub.f32 2.0, %v8399_v0  ;;  %v7760_v8 = vadd.f32 2.7706815e-08, %v7728_v36  ;;  %v8144_v63 = vadd.f32 -0.00021337405, %v8112_v62  ;;  %v15976_v32 = vmul.f32 %v15966_v29, %v15966_v29 }
 0x545   : > { %v8494_v57 = vmul.f32 %v15855_v33, %v8078_v26  ;;  %v7889_v53 = vadd.f32 -5.6925062e-05, %v7857_v34  ;;  %v8273_v43 = vadd.f32 -0.0073733293, %v8241_v1  ;;  %v15982_v22 = vmul.f32 %v7509_v39, %v15614_v60 }
 0x546   : > { %v8463_v25 = vmul.f32 %v11346_v45, %v8431_v19  ;;  %v7792_v20 = vmul.f32 %v7760_v8, %v15959_v7  ;;  %v8176_v42 = vmul.f32 %v8144_v63, %v15959_v7  ;;  %v7731_v48 = vmul.f32 -2.7261424e-10, %v15976_v32 }
 0x547   : > { %v11348_v27 = vpop.eup %11347  ;;  %v7921_v14 = vmul.f32 %v7889_v53, %v15923_v30  ;;  %v8305_v13 = vmul.f32 %v8273_v43, %v15923_v30  ;;  %v8115_v33 = vmul.f32 -1.45660715e-05, %v15976_v32  ;;  %v7602_v21 = vmul.f32 0.70710677, %v15972_v47 }
 0x548   : > { %v8527_v60 = vmul.f32 %v8495_v3, %v8463_v25  ;;  %v8398_v23 = vmul.f32 %v11348_v27, %v8334_v11  ;;  %v7824_v58 = vadd.f32 -2.101024e-06, %v7792_v20  ;;  %v8208_v52 = vadd.f32 -0.001682827, %v8176_v42 }
 0x549   : > { %v7953_v61 = vadd.f32 -0.00073499064, %v7921_v14  ;;  %v8337_v45 = vadd.f32 -0.014264739, %v8305_v13  ;;  %v7763_v26 = vadd.f32 2.7706815e-08, %v7731_v48  ;;  %v10858_v51 = vadd.f32 %v15805_v49, %v17397_v40 }
 0x54a   : > { %v8559_v39 = vadd.f32 1.0, %v8527_v60  ;;  %v8430_v0 = vsub.f32 2.0, %v8398_v23  ;;  %v7856_v36 = vmul.f32 %v7824_v58, %v15959_v7  ;;  %v8240_v62 = vmul.f32 %v8208_v52, %v15959_v7 }
 0x54b   : > { %v7985_v34 = vmul.f32 %v7953_v61, %v15923_v30  ;;  %11349 = vrcp.f32 %v8337_v45  ;;  %v7795_v11 = vmul.f32 %v7763_v26, %v15976_v32  ;;  %v8147_v3 = vadd.f32 -0.00021337405, %v8115_v33 }
 0x54c   : > { %v8591_v1 = vmul.f32 %v8559_v39, %v15937_v59  ;;  %v8462_v19 = vmul.f32 %v11348_v27, %v8430_v0  ;;  %v7888_v8 = vadd.f32 -5.6925062e-05, %v7856_v36  ;;  %v8272_v63 = vadd.f32 -0.0073733293, %v8240_v62 }
 0x54d   : > { %v8017_v53 = vadd.f32 -0.0029546, %v7985_v34  ;;  %v7827_v49 = vadd.f32 -2.101024e-06, %v7795_v11  ;;  %v8179_v43 = vmul.f32 %v8147_v3, %v15976_v32  ;;  %v16001_v25 = vclamps-f32 %v7602_v21, 4.0 }
 0x54e   : > { %8623 = vst [vmem:[%s15910_s11 + $0x28] sm:$0xff] %v8591_v1  ;;  %v8526_v20 = vmul.f32 %v8494_v57, %v8462_v19  ;;  %v16005_v42 = vmul.f32 0.5, %v15886_v2  ;;  %v7920_v48 = vmul.f32 %v7888_v8, %v15959_v7  ;;  %v8304_v14 = vmul.f32 %v8272_v63, %v15959_v7  ;;  %v17398_v8 = vld [vmem:[#allocation26_spill] sm:$0xff] }
 0x54f   : > { %v8049_v59 = vmul.f32 %v8017_v53, %v15923_v30  ;;  %v7859_v27 = vmul.f32 %v7827_v49, %v15976_v32  ;;  %v8211_v13 = vadd.f32 -0.001682827, %v8179_v43  ;;  %v16013_v33 = vmul.f32 %v16001_v25, %v16001_v25  ;;  %v16034_v53 = vpop.f32.mrb[42].mxu0 }
 0x550   : > { %v8558_v21 = vadd.f32 1.0, %v8526_v20  ;;  %v7952_v60 = vadd.f32 -0.00073499064, %v7920_v48  ;;  %v8336_v57 = vadd.f32 -0.014264739, %v8304_v14  ;;  %v7508_v2 = vadd.f32 %v10858_v51, %v15671_v37 }
 0x551   : > { %v16017_v23 = vmul.f32 0.5, %v15918_v54  ;;  %v7891_v58 = vadd.f32 -5.6925062e-05, %v7859_v27  ;;  %v8243_v52 = vmul.f32 %v8211_v13, %v15976_v32  ;;  %v7730_v30 = vmul.f32 -2.7261424e-10, %v16013_v33 }
 0x552   : > { %v8590_v61 = vmul.f32 %v8558_v21, %v15955_v9  ;;  %v7984_v26 = vmul.f32 %v7952_v60, %v15959_v7  ;;  %11351 = vrcp.f32 %v8336_v57  ;;  %v8114_v40 = vmul.f32 -1.45660715e-05, %v16013_v33 }
 0x553   : > { %v8081_v39 = vadd.f32 -0.016096033, %v8049_v59  ;;  %v7923_v0 = vmul.f32 %v7891_v58, %v15976_v32  ;;  %v8275_v36 = vadd.f32 -0.0073733293, %v8243_v52  ;;  %v7762_v51 = vadd.f32 2.7706815e-08, %v7730_v30 }
 0x554   : > { %8622 = vst [vmem:[%s15910_s11 + $0x20] sm:$0xff] %v8590_v61  ;;  %v8016_v54 = vadd.f32 -0.0029546, %v7984_v26  ;;  %v8146_v62 = vadd.f32 -0.00021337405, %v8114_v40  ;;  %v16028_v11 = vmul.f32 %v7508_v2, %v15623_v38  ;;  %v10859_v63 = vadd.f32 %v15812_v31, %v17398_v8 }
 0x555   : > { %v7605_v34 = vmul.f32 0.70710677, %v15982_v22  ;;  %v11350_v3 = vpop.eup %11349  ;;  %v7955_v9 = vadd.f32 -0.00073499064, %v7923_v0  ;;  %v8307_v1 = vmul.f32 %v8275_v36, %v15976_v32  ;;  %v7794_v19 = vmul.f32 %v7762_v51, %v16013_v33 }
 0x556   : > { %v8401_v49 = vmul.f32 %v11350_v3, %v8337_v45  ;;  %v8048_v43 = vmul.f32 %v8016_v54, %v15959_v7  ;;  %v8178_v20 = vmul.f32 %v8146_v62, %v16013_v33  ;;  %v16041_v38 = vmul.f32 0.5, %v15945_v55 }
 0x557   : > { %v16038_v48 = vclamps-f32 %v7605_v34, 4.0  ;;  %v7987_v14 = vmul.f32 %v7955_v9, %v15976_v32  ;;  %v8339_v59 = vadd.f32 -0.014264739, %v8307_v1  ;;  %v7826_v27 = vadd.f32 -2.101024e-06, %v7794_v19 }
 0x558   : > { %v8433_v13 = vsub.f32 2.0, %v8401_v49  ;;  %v8080_v21 = vadd.f32 -0.016096033, %v8048_v43  ;;  %v8210_v60 = vadd.f32 -0.001682827, %v8178_v20  ;;  %v8497_v55 = vmul.f32 %v15914_v6, %v8081_v39 }
 0x559   : > { %v16046_v31 = vmul.f32 %v16038_v48, %v16038_v48  ;;  %v8019_v45 = vadd.f32 -0.0029546, %v7987_v14  ;;  %11353 = vrcp.f32 %v8339_v59  ;;  %v7858_v7 = vmul.f32 %v7826_v27, %v16013_v33 }
 0x55a   : > { %v7604_v2 = vmul.f32 0.70710677, %v16028_v11  ;;  %v8465_v58 = vmul.f32 %v11350_v3, %v8433_v13  ;;  %v8242_v52 = vmul.f32 %v8210_v60, %v16013_v33  ;;  %v8496_v54 = vmul.f32 %v15942_v56, %v8080_v21  ;;  %v16058_v3 = vpop.f32.mrb[43].mxu0 }
 0x55b   : > { %v7733_v30 = vmul.f32 -2.7261424e-10, %v16046_v31  ;;  %v8051_v61 = vmul.f32 %v8019_v45, %v15976_v32  ;;  %v7890_v26 = vadd.f32 -5.6925062e-05, %v7858_v7  ;;  %v8117_v40 = vmul.f32 -1.45660715e-05, %v16046_v31 }
 0x55c   : > { %v16055_v0 = vclamps-f32 %v7604_v2, 4.0  ;;  %v11352_v36 = vpop.eup %11351  ;;  %v8529_v51 = vmul.f32 %v8497_v55, %v8465_v58  ;;  %v8274_v62 = vadd.f32 -0.0073733293, %v8242_v52  ;;  %v7511_v1 = vadd.f32 %v10859_v63, %v15671_v37 }
 0x55d   : > { %v7765_v34 = vadd.f32 2.7706815e-08, %v7733_v30  ;;  %v8400_v6 = vmul.f32 %v11352_v36, %v8336_v57  ;;  %v7922_v39 = vmul.f32 %v7890_v26, %v16013_v33  ;;  %v8149_v9 = vadd.f32 -0.00021337405, %v8117_v40 }
 0x55e   : > { %v8561_v32 = vadd.f32 1.0, %v8529_v51  ;;  %v8306_v19 = vmul.f32 %v8274_v62, %v16013_v33  ;;  %v16066_v49 = vmul.f32 %v16055_v0, %v16055_v0  ;;  %v8083_v43 = vadd.f32 -0.016096033, %v8051_v61 }
 0x55f   : > { %v7797_v8 = vmul.f32 %v7765_v34, %v16046_v31  ;;  %v8432_v56 = vsub.f32 2.0, %v8400_v6  ;;  %v7954_v20 = vadd.f32 -0.00073499064, %v7922_v39  ;;  %v8181_v57 = vmul.f32 %v8149_v9, %v16046_v31  ;;  %v16085_v9 = vpop.f32.mrb[44].mxu0 }
 0x560   : > { %v8593_v14 = vmul.f32 %v8561_v32, %v16005_v42  ;;  %v8338_v27 = vadd.f32 -0.014264739, %v8306_v19  ;;  %v7732_v63 = vmul.f32 -2.7261424e-10, %v16066_v49  ;;  %v8116_v7 = vmul.f32 -1.45660715e-05, %v16066_v49 }
 0x561   : > { %v7829_v13 = vadd.f32 -2.101024e-06, %v7797_v8  ;;  %v8464_v21 = vmul.f32 %v11352_v36, %v8432_v56  ;;  %v7986_v60 = vmul.f32 %v7954_v20, %v16013_v33  ;;  %v8213_v45 = vadd.f32 -0.001682827, %v8181_v57 }
 0x562   : > { %8625 = vst [vmem:[%s15910_s11 + $0x38] sm:$0xff] %v8593_v14  ;;  %11355 = vrcp.f32 %v8338_v27  ;;  %v7764_v58 = vadd.f32 2.7706815e-08, %v7732_v63  ;;  %v16076_v55 = vmul.f32 %v7511_v1, %v15628_v41  ;;  %v8148_v26 = vadd.f32 -0.00021337405, %v8116_v7 }
 0x563   : > { %v7861_v2 = vmul.f32 %v7829_v13, %v16046_v31  ;;  %v11354_v52 = vpop.eup %11353  ;;  %v8528_v42 = vmul.f32 %v8496_v54, %v8464_v21  ;;  %v8018_v30 = vadd.f32 -0.0029546, %v7986_v60  ;;  %v8245_v61 = vmul.f32 %v8213_v45, %v16046_v31  ;;  %v17399_v60 = vld [vmem:[#allocation74_spill] sm:$0xff] }
 0x564   : > { %v8403_v40 = vmul.f32 %v11354_v52, %v8339_v59  ;;  %v16080_v36 = vmul.f32 0.5, %v15972_v47  ;;  %v7796_v62 = vmul.f32 %v7764_v58, %v16066_v49  ;;  %v8180_v41 = vmul.f32 %v8148_v26, %v16066_v49 }
 0x565   : > { %v7893_v51 = vadd.f32 -5.6925062e-05, %v7861_v2  ;;  %v8560_v34 = vadd.f32 1.0, %v8528_v42  ;;  %v8050_v6 = vmul.f32 %v8018_v30, %v16013_v33  ;;  %v8277_v39 = vadd.f32 -0.0073733293, %v8245_v61 }
 0x566   : > { %v8435_v54 = vsub.f32 2.0, %v8403_v40  ;;  %v7828_v32 = vadd.f32 -2.101024e-06, %v7796_v62  ;;  %v7607_v59 = vmul.f32 0.70710677, %v16076_v55  ;;  %v8499_v19 = vmul.f32 %v15966_v29, %v8083_v43 }
 0x567   : > { %v7925_v1 = vmul.f32 %v7893_v51, %v16046_v31  ;;  %v8592_v47 = vmul.f32 %v8560_v34, %v16017_v23  ;;  %v8309_v8 = vmul.f32 %v8277_v39, %v16046_v31  ;;  %v8212_v56 = vadd.f32 -0.001682827, %v8180_v41  ;;  %v16114_v39 = vpop.f32.mrb[45].mxu0 }
 0x568   : > { %v8467_v33 = vmul.f32 %v11354_v52, %v8435_v54  ;;  %v7860_v57 = vmul.f32 %v7828_v32, %v16066_v49  ;;  %v16093_v14 = vclamps-f32 %v7607_v59, 4.0  ;;  %v8082_v13 = vadd.f32 -0.016096033, %v8050_v6  ;;  %v17400_v52 = vld [vmem:[#allocation12_spill] sm:$0xff] }
 0x569   : > { %v7957_v20 = vadd.f32 -0.00073499064, %v7925_v1  ;;  %8624 = vst [vmem:[%s15910_s11 + $0x30] sm:$0xff] %v8592_v47  ;;  %v8341_v63 = vadd.f32 -0.014264739, %v8309_v8  ;;  %v8244_v21 = vmul.f32 %v8212_v56, %v16066_v49  ;;  %v10860_v45 = vadd.f32 %v15817_v24, %v17399_v60 }
 0x56a   : > { %v8531_v23 = vmul.f32 %v8499_v19, %v8467_v33  ;;  %v7892_v43 = vadd.f32 -5.6925062e-05, %v7860_v57  ;;  %v16102_v7 = vmul.f32 %v16093_v14, %v16093_v14  ;;  %v10861_v42 = vadd.f32 %v15823_v35, %v17400_v52 }
 0x56b   : > { %v7989_v29 = vmul.f32 %v7957_v20, %v16046_v31  ;;  %11357 = vrcp.f32 %v8341_v63  ;;  %v8276_v2 = vadd.f32 -0.0073733293, %v8244_v21  ;;  %v7510_v58 = vadd.f32 %v10860_v45, %v15671_v37 }
 0x56c   : > { %v11356_v30 = vpop.eup %11355  ;;  %v8563_v61 = vadd.f32 1.0, %v8531_v23  ;;  %v7924_v24 = vmul.f32 %v7892_v43, %v16066_v49  ;;  %v7735_v40 = vmul.f32 -2.7261424e-10, %v16102_v7  ;;  %v8119_v34 = vmul.f32 -1.45660715e-05, %v16102_v7  ;;  %v17401_v23 = vld [vmem:[#allocation21_spill] sm:$0xff] }
 0x56d   : > { %v8021_v26 = vadd.f32 -0.0029546, %v7989_v29  ;;  %v8402_v51 = vmul.f32 %v11356_v30, %v8338_v27  ;;  %v8308_v62 = vmul.f32 %v8276_v2, %v16066_v49  ;;  %v16112_v6 = vmul.f32 %v7510_v58, %v15633_v44 }
 0x56e   : > { %v8595_v35 = vmul.f32 %v8563_v61, %v16041_v38  ;;  %v7956_v54 = vadd.f32 -0.00073499064, %v7924_v24  ;;  %v7767_v1 = vadd.f32 2.7706815e-08, %v7735_v40  ;;  %v8498_v59 = vmul.f32 %v16001_v25, %v8082_v13 }
 0x56f   : > { %v8053_v41 = vmul.f32 %v8021_v26, %v16046_v31  ;;  %v8434_v32 = vsub.f32 2.0, %v8402_v51  ;;  %v8340_v47 = vadd.f32 -0.014264739, %v8308_v62  ;;  %v8151_v27 = vadd.f32 -0.00021337405, %v8119_v34  ;;  %v16149_v34 = vpop.f32.mrb[46].mxu0 }
 0x570   : > { %8627 = vst [vmem:[%s15910_s11 + $0x48] sm:$0xff] %v8595_v35  ;;  %v7988_v8 = vmul.f32 %v7956_v54, %v16066_v49  ;;  %v7799_v44 = vmul.f32 %v7767_v1, %v16102_v7  ;;  %v7606_v56 = vmul.f32 0.70710677, %v16112_v6  ;;  %v7513_v31 = vadd.f32 %v10861_v42, %v15671_v37 }
 0x571   : > { %v8085_v19 = vadd.f32 -0.016096033, %v8053_v41  ;;  %v8466_v33 = vmul.f32 %v11356_v30, %v8434_v32  ;;  %11359 = vrcp.f32 %v8340_v47  ;;  %v8183_v38 = vmul.f32 %v8151_v27, %v16102_v7  ;;  %v16162_v32 = vld [vmem:[%s16726_s5] ss:$0 sm:$0xff] }
 0x572   : > { %v7573_v20 = vmul.f32 0.5, %v15982_v22  ;;  %v8020_v57 = vadd.f32 -0.0029546, %v7988_v8  ;;  %v7831_v25 = vadd.f32 -2.101024e-06, %v7799_v44  ;;  %v16126_v13 = vclamps-f32 %v7606_v56, 4.0 }
 0x573   : > { %v8530_v21 = vmul.f32 %v8498_v59, %v8466_v33  ;;  %v8215_v60 = vadd.f32 -0.001682827, %v8183_v38  ;;  %v16129_v45 = vmul.f32 %v7513_v31, %v15643_v5  ;;  %v10862_v29 = vadd.f32 %v15827_v18, %v17401_v23  ;;  %v17402_v22 = vld [vmem:[#allocation38_spill] sm:$0xff]  ;;  %v16171_v23 = vpop.f32.mrb[47].mxu0 }
 0x574   : > { %v8052_v43 = vmul.f32 %v8020_v57, %v16066_v49  ;;  %v7863_v2 = vmul.f32 %v7831_v25, %v16102_v7  ;;  %v16137_v37 = vmul.f32 %v16126_v13, %v16126_v13  ;;  %v10863_v58 = vadd.f32 %v15837_v17, %v17402_v22 }
 0x575   : > { %v11358_v52 = vpop.eup %11357  ;;  %v8562_v42 = vadd.f32 1.0, %v8530_v21  ;;  %v8501_v30 = vmul.f32 %v16038_v48, %v8085_v19  ;;  %v8247_v5 = vmul.f32 %v8215_v60, %v16102_v7  ;;  %v7609_v18 = vmul.f32 0.70710677, %v16129_v45 }
 0x576   : > { %v8405_v61 = vmul.f32 %v11358_v52, %v8341_v63  ;;  %v8084_v49 = vadd.f32 -0.016096033, %v8052_v43  ;;  %v7895_v26 = vadd.f32 -5.6925062e-05, %v7863_v2  ;;  %v7734_v24 = vmul.f32 -2.7261424e-10, %v16137_v37 }
 0x577   : > { %v8594_v40 = vmul.f32 %v8562_v42, %v16080_v36  ;;  %v8279_v51 = vadd.f32 -0.0073733293, %v8247_v5  ;;  %v8118_v62 = vmul.f32 -1.45660715e-05, %v16137_v37  ;;  %v16147_v17 = vclamps-f32 %v7609_v18, 4.0 }
 0x578   : > { %v8437_v48 = vsub.f32 2.0, %v8405_v61  ;;  %v8500_v35 = vmul.f32 %v16055_v0, %v8084_v49  ;;  %v7927_v41 = vmul.f32 %v7895_v26, %v16102_v7  ;;  %v7766_v54 = vadd.f32 2.7706815e-08, %v7734_v24 }
 0x579   : > { %8626 = vst [vmem:[%s15910_s11 + $0x40] sm:$0xff] %v8594_v40  ;;  %v8311_v63 = vmul.f32 %v8279_v51, %v16102_v7  ;;  %v8150_v1 = vadd.f32 -0.00021337405, %v8118_v62  ;;  %v16157_v36 = vmul.f32 %v16147_v17, %v16147_v17  ;;  %v7512_v59 = vadd.f32 %v16162_v32, %v10862_v29 }
 0x57a   : > { %v8469_v27 = vmul.f32 %v11358_v52, %v8437_v48  ;;  %v7959_v0 = vadd.f32 -0.00073499064, %v7927_v41  ;;  %v7798_v19 = vmul.f32 %v7766_v54, %v16137_v37  ;;  %v7515_v8 = vadd.f32 %v16162_v32, %v10863_v58 }
 0x57b   : > { %v11360_v44 = vpop.eup %11359  ;;  %v8343_v56 = vadd.f32 -0.014264739, %v8311_v63  ;;  %v8182_v33 = vmul.f32 %v8150_v1, %v16137_v37  ;;  %v7737_v38 = vmul.f32 -2.7261424e-10, %v16157_v36  ;;  %v8121_v31 = vmul.f32 -1.45660715e-05, %v16157_v36 }
 0x57c   : > { %v8533_v57 = vmul.f32 %v8501_v30, %v8469_v27  ;;  %v8404_v25 = vmul.f32 %v11360_v44, %v8340_v47  ;;  %v7991_v21 = vmul.f32 %v7959_v0, %v16102_v7  ;;  %v7830_v60 = vadd.f32 -2.101024e-06, %v7798_v19 }
 0x57d   : > { %11361 = vrcp.f32 %v8343_v56  ;;  %v8214_v29 = vadd.f32 -0.001682827, %v8182_v33  ;;  %v7769_v43 = vadd.f32 2.7706815e-08, %v7737_v38  ;;  %v8153_v2 = vadd.f32 -0.00021337405, %v8121_v31 }
 0x57e   : > { %v8565_v22 = vadd.f32 1.0, %v8533_v57  ;;  %v8436_v58 = vsub.f32 2.0, %v8404_v25  ;;  %v8023_v52 = vadd.f32 -0.0029546, %v7991_v21  ;;  %v7862_v42 = vmul.f32 %v7830_v60, %v16137_v37 }
 0x57f   : > { %v8246_v5 = vmul.f32 %v8214_v29, %v16137_v37  ;;  %v7801_v30 = vmul.f32 %v7769_v43, %v16157_v36  ;;  %v8185_v47 = vmul.f32 %v8153_v2, %v16157_v36  ;;  %v16178_v18 = vmul.f32 %v7512_v59, %v15647_v50 }
 0x580   : > { %v8597_v61 = vmul.f32 %v8565_v22, %v7573_v20  ;;  %v8468_v49 = vmul.f32 %v11360_v44, %v8436_v58  ;;  %v8055_v26 = vmul.f32 %v8023_v52, %v16102_v7  ;;  %v7894_v24 = vadd.f32 -5.6925062e-05, %v7862_v42  ;;  %v17404_v42 = vld [vmem:[#allocation35_spill] sm:$0xff] }
 0x581   : > { %v8278_v40 = vadd.f32 -0.0073733293, %v8246_v5  ;;  %v7833_v51 = vadd.f32 -2.101024e-06, %v7801_v30  ;;  %v8217_v62 = vadd.f32 -0.001682827, %v8185_v47  ;;  %v16182_v48 = vmul.f32 %v7515_v8, %v15657_v12 }
 0x582   : > { %8629 = vst [vmem:[%s15910_s11 + $0x58] sm:$0xff] %v8597_v61  ;;  %v7572_v41 = vmul.f32 0.5, %v16028_v11  ;;  %v8532_v54 = vmul.f32 %v8500_v35, %v8468_v49  ;;  %v16187_v63 = vmul.f32 0.5, %v16076_v55  ;;  %v7926_v50 = vmul.f32 %v7894_v24, %v16137_v37  ;;  %v17403_v8 = vld [vmem:[#allocation18_spill] sm:$0xff]  ;;  %v17405_v5 = vld [vmem:[#allocation56_spill] sm:$0xff] }
 0x583   : > { %v8310_v20 = vmul.f32 %v8278_v40, %v16137_v37  ;;  %v7865_v7 = vmul.f32 %v7833_v51, %v16157_v36  ;;  %v8249_v1 = vmul.f32 %v8217_v62, %v16157_v36  ;;  %v7608_v59 = vmul.f32 0.70710677, %v16178_v18 }
 0x584   : > { %v8564_v27 = vadd.f32 1.0, %v8532_v54  ;;  %v8087_v12 = vadd.f32 -0.016096033, %v8055_v26  ;;  %v16195_v0 = vmul.f32 0.5, %v16112_v6  ;;  %v7958_v11 = vadd.f32 -0.00073499064, %v7926_v50 }
 0x585   : > { %v8342_v35 = vadd.f32 -0.014264739, %v8310_v20  ;;  %v7897_v55 = vadd.f32 -5.6925062e-05, %v7865_v7  ;;  %v8281_v19 = vadd.f32 -0.0073733293, %v8249_v1  ;;  %v10864_v44 = vadd.f32 %v15845_v46, %v17403_v8 }
 0x586   : > { %v8596_v33 = vmul.f32 %v8564_v27, %v7572_v41  ;;  %v7990_v38 = vmul.f32 %v7958_v11, %v16137_v37  ;;  %v16200_v31 = vclamps-f32 %v7608_v59, 4.0  ;;  %v7611_v57 = vmul.f32 0.70710677, %v16182_v48 }
 0x587   : > { %v11362_v25 = vpop.eup %11361  ;;  %11363 = vrcp.f32 %v8342_v35  ;;  %v7929_v21 = vmul.f32 %v7897_v55, %v16157_v36  ;;  %v8313_v6 = vmul.f32 %v8281_v19, %v16157_v36  ;;  %v7514_v60 = vadd.f32 %v16162_v32, %v10864_v44  ;;  %v17406_v44 = vld [vmem:[#allocation11_spill] sm:$0xff] }
 0x588   : > { %8628 = vst [vmem:[%s15910_s11 + $0x50] sm:$0xff] %v8596_v33  ;;  %v8407_v29 = vmul.f32 %v11362_v25, %v8343_v56  ;;  %v8022_v43 = vadd.f32 -0.0029546, %v7990_v38  ;;  %v16209_v46 = vmul.f32 %v16200_v31, %v16200_v31  ;;  %v16211_v2 = vclamps-f32 %v7611_v57, 4.0 }
 0x589   : > { %v7961_v22 = vadd.f32 -0.00073499064, %v7929_v21  ;;  %v8345_v58 = vadd.f32 -0.014264739, %v8313_v6  ;;  %v16214_v52 = vmul.f32 %v7514_v60, %v15661_v4  ;;  %v10865_v30 = vadd.f32 %v17405_v5, %v17404_v42 }
 0x58a   : > { %v8439_v47 = vsub.f32 2.0, %v8407_v29  ;;  %v8054_v61 = vmul.f32 %v8022_v43, %v16137_v37  ;;  %v7736_v56 = vmul.f32 -2.7261424e-10, %v16209_v46  ;;  %v8120_v49 = vmul.f32 -1.45660715e-05, %v16209_v46 }
 0x58b   : > { %v16222_v26 = vmul.f32 0.5, %v16129_v45  ;;  %v7993_v24 = vmul.f32 %v7961_v22, %v16157_v36  ;;  %11365 = vrcp.f32 %v8345_v58  ;;  %v16227_v4 = vmul.f32 %v16211_v2, %v16211_v2 }
 0x58c   : > { %v8471_v40 = vmul.f32 %v11362_v25, %v8439_v47  ;;  %v8503_v51 = vmul.f32 %v16093_v14, %v8087_v12  ;;  %v7768_v62 = vadd.f32 2.7706815e-08, %v7736_v56  ;;  %v8152_v41 = vadd.f32 -0.00021337405, %v8120_v49 }
 0x58d   : > { %v8025_v37 = vadd.f32 -0.0029546, %v7993_v24  ;;  %v7739_v54 = vmul.f32 -2.7261424e-10, %v16227_v4  ;;  %v8123_v50 = vmul.f32 -1.45660715e-05, %v16227_v4  ;;  %v7517_v45 = vadd.f32 %v16162_v32, %v10865_v30 }
 0x58e   : > { %v8535_v20 = vmul.f32 %v8503_v51, %v8471_v40  ;;  %v8086_v7 = vadd.f32 -0.016096033, %v8054_v61  ;;  %v7800_v1 = vmul.f32 %v7768_v62, %v16209_v46  ;;  %v8184_v59 = vmul.f32 %v8152_v41, %v16209_v46 }
 0x58f   : > { %v8057_v27 = vmul.f32 %v8025_v37, %v16157_v36  ;;  %v7771_v11 = vadd.f32 2.7706815e-08, %v7739_v54  ;;  %v8155_v55 = vadd.f32 -0.00021337405, %v8123_v50  ;;  %v7610_v14 = vmul.f32 0.70710677, %v16214_v52 }
 0x590   : > { %v8567_v12 = vadd.f32 1.0, %v8535_v20  ;;  %v7832_v19 = vadd.f32 -2.101024e-06, %v7800_v1  ;;  %v8216_v8 = vadd.f32 -0.001682827, %v8184_v59  ;;  %v16238_v33 = vmul.f32 %v7517_v45, %v17406_v44  ;;  %v17407_v45 = vld [vmem:[#allocation39_spill] sm:$0xff] }
 0x591   : > { %v11364_v38 = vpop.eup %11363  ;;  %v8089_v57 = vadd.f32 -0.016096033, %v8057_v27  ;;  %v7803_v25 = vmul.f32 %v7771_v11, %v16227_v4  ;;  %v8187_v21 = vmul.f32 %v8155_v55, %v16227_v4  ;;  %v16242_v6 = vclamps-f32 %v7610_v14, 4.0  ;;  %v17408_v20 = vld [vmem:[#allocation57_spill] sm:$0xff] }
 0x592   : > { %v8599_v36 = vmul.f32 %v8567_v12, %v16187_v63  ;;  %v8406_v60 = vmul.f32 %v11364_v38, %v8342_v35  ;;  %v7864_v29 = vmul.f32 %v7832_v19, %v16209_v46  ;;  %v8248_v43 = vmul.f32 %v8216_v8, %v16209_v46 }
 0x593   : > { %v8502_v22 = vmul.f32 %v16126_v13, %v8086_v7  ;;  %v7835_v42 = vadd.f32 -2.101024e-06, %v7803_v25  ;;  %v8219_v5 = vadd.f32 -0.001682827, %v8187_v21  ;;  %v16250_v30 = vmul.f32 %v16242_v6, %v16242_v6 }
 0x594   : > { %8631 = vst [vmem:[%s15910_s11 + $0x68] sm:$0xff] %v8599_v36  ;;  %v8438_v47 = vsub.f32 2.0, %v8406_v60  ;;  %v8505_v61 = vmul.f32 %v16147_v17, %v8089_v57  ;;  %v7896_v56 = vadd.f32 -5.6925062e-05, %v7864_v29  ;;  %v8280_v49 = vadd.f32 -0.0073733293, %v8248_v43 }
 0x595   : > { %v11366_v63 = vpop.eup %11365  ;;  %v7867_v35 = vmul.f32 %v7835_v42, %v16227_v4  ;;  %v8251_v24 = vmul.f32 %v8219_v5, %v16227_v4  ;;  %v7738_v40 = vmul.f32 -2.7261424e-10, %v16250_v30  ;;  %v8122_v13 = vmul.f32 -1.45660715e-05, %v16250_v30 }
 0x596   : > { %v8470_v51 = vmul.f32 %v11364_v38, %v8438_v47  ;;  %v8409_v62 = vmul.f32 %v11366_v63, %v8345_v58  ;;  %v7928_v41 = vmul.f32 %v7896_v56, %v16209_v46  ;;  %v8312_v37 = vmul.f32 %v8280_v49, %v16209_v46 }
 0x597   : > { %v7899_v54 = vadd.f32 -5.6925062e-05, %v7867_v35  ;;  %v8283_v50 = vadd.f32 -0.0073733293, %v8251_v24  ;;  %v7770_v17 = vadd.f32 2.7706815e-08, %v7738_v40  ;;  %v10866_v7 = vadd.f32 %v17408_v20, %v17407_v45 }
 0x598   : > { %v8534_v1 = vmul.f32 %v8502_v22, %v8470_v51  ;;  %v8441_v59 = vsub.f32 2.0, %v8409_v62  ;;  %v7960_v27 = vadd.f32 -0.00073499064, %v7928_v41  ;;  %v8344_v11 = vadd.f32 -0.014264739, %v8312_v37  ;;  %v17409_v24 = vld [vmem:[#allocation69_spill] sm:$0xff] }
 0x599   : > { %v7931_v55 = vmul.f32 %v7899_v54, %v16227_v4  ;;  %v8315_v14 = vmul.f32 %v8283_v50, %v16227_v4  ;;  %v7802_v58 = vmul.f32 %v7770_v17, %v16250_v30  ;;  %v8154_v12 = vadd.f32 -0.00021337405, %v8122_v13  ;;  %v17410_v40 = vld [vmem:[#allocation49_spill] sm:$0xff]  ;;  %v17411_v37 = vld [vmem:[#allocation70_spill] sm:$0xff] }
 0x59a   : > { %v8566_v19 = vadd.f32 1.0, %v8534_v1  ;;  %v8473_v8 = vmul.f32 %v11366_v63, %v8441_v59  ;;  %v7992_v44 = vmul.f32 %v7960_v27, %v16209_v46  ;;  %11367 = vrcp.f32 %v8344_v11 }
 0x59b   : > { %v7963_v38 = vadd.f32 -0.00073499064, %v7931_v55  ;;  %v8347_v57 = vadd.f32 -0.014264739, %v8315_v14  ;;  %v7834_v25 = vadd.f32 -2.101024e-06, %v7802_v58  ;;  %v8186_v21 = vmul.f32 %v8154_v12, %v16250_v30 }
 0x59c   : > { %v8598_v36 = vmul.f32 %v8566_v19, %v16195_v0  ;;  %v8537_v60 = vmul.f32 %v8505_v61, %v8473_v8  ;;  %v8024_v29 = vadd.f32 -0.0029546, %v7992_v44  ;;  %v7613_v43 = vmul.f32 0.70710677, %v16238_v33  ;;  %v17412_v19 = vld [vmem:[#allocation44_spill] sm:$0xff]  ;;  %v17414_v44 = vld [vmem:[#allocation66_spill] sm:$0xff] }
 0x59d   : > { %v7995_v22 = vmul.f32 %v7963_v38, %v16227_v4  ;;  %11369 = vrcp.f32 %v8347_v57  ;;  %v7866_v42 = vmul.f32 %v7834_v25, %v16250_v30  ;;  %v8218_v5 = vadd.f32 -0.001682827, %v8186_v21 }
 0x59e   : > { %8630 = vst [vmem:[%s15910_s11 + $0x60] sm:$0xff] %v8598_v36  ;;  %v8569_v47 = vadd.f32 1.0, %v8537_v60  ;;  %v8056_v56 = vmul.f32 %v8024_v29, %v16209_v46  ;;  %v16273_v49 = vclamps-f32 %v7613_v43, 4.0  ;;  %v7516_v63 = vadd.f32 %v16162_v32, %v10866_v7 }
 0x59f   : > { %v8027_v0 = vadd.f32 -0.0029546, %v7995_v22  ;;  %v7898_v61 = vadd.f32 -5.6925062e-05, %v7866_v42  ;;  %v8250_v35 = vmul.f32 %v8218_v5, %v16250_v30  ;;  %v10867_v13 = vadd.f32 %v17410_v40, %v17409_v24 }
 0x5a0   : > { %v8601_v51 = vmul.f32 %v8569_v47, %v16222_v26  ;;  %v8088_v62 = vadd.f32 -0.016096033, %v8056_v56  ;;  %v16282_v41 = vmul.f32 %v16273_v49, %v16273_v49  ;;  %v16285_v46 = vmul.f32 %v7516_v63, %v17411_v37 }
 0x5a1   : > { %v8059_v54 = vmul.f32 %v8027_v0, %v16227_v4  ;;  %v7930_v50 = vmul.f32 %v7898_v61, %v16250_v30  ;;  %v8282_v17 = vadd.f32 -0.0073733293, %v8250_v35  ;;  %v7519_v45 = vadd.f32 %v16162_v32, %v10867_v13 }
 0x5a2   : > { %8633 = vst [vmem:[%s15910_s11 + $0x78] sm:$0xff] %v8601_v51  ;;  %v7576_v20 = vmul.f32 0.5, %v16178_v18  ;;  %v16293_v26 = vmul.f32 0.5, %v16182_v48  ;;  %v7741_v7 = vmul.f32 -2.7261424e-10, %v16282_v41  ;;  %v17413_v18 = vld [vmem:[#allocation60_spill] sm:$0xff]  ;;  %v8504_v25 = vmul.f32 %v16200_v31, %v8088_v62 }
 0x5a3   : > { %v8125_v1 = vmul.f32 -1.45660715e-05, %v16282_v41  ;;  %v8091_v59 = vadd.f32 -0.016096033, %v8059_v54  ;;  %v7962_v27 = vadd.f32 -0.00073499064, %v7930_v50  ;;  %v8314_v55 = vmul.f32 %v8282_v17, %v16250_v30 }
 0x5a4   : > { %v7612_v4 = vmul.f32 0.70710677, %v16285_v46  ;;  %v11368_v14 = vpop.eup %11367  ;;  %v7773_v58 = vadd.f32 2.7706815e-08, %v7741_v7  ;;  %v16300_v8 = vmul.f32 %v7519_v45, %v17412_v19  ;;  %v10868_v48 = vadd.f32 %v17414_v44, %v17413_v18 }
 0x5a5   : > { %v8157_v12 = vadd.f32 -0.00021337405, %v8125_v1  ;;  %v8408_v38 = vmul.f32 %v11368_v14, %v8344_v11  ;;  %v7994_v21 = vmul.f32 %v7962_v27, %v16250_v30  ;;  %v8346_v36 = vadd.f32 -0.014264739, %v8314_v55 }
 0x5a6   : > { %v8507_v60 = vmul.f32 %v16211_v2, %v8091_v59  ;;  %v7805_v29 = vmul.f32 %v7773_v58, %v16282_v41  ;;  %v16309_v22 = vclamps-f32 %v7612_v4, 4.0  ;;  %v7615_v56 = vmul.f32 0.70710677, %v16300_v8 }
 0x5a7   : > { %v8189_v43 = vmul.f32 %v8157_v12, %v16282_v41  ;;  %v11370_v42 = vpop.eup %11369  ;;  %v8440_v5 = vsub.f32 2.0, %v8408_v38  ;;  %v8026_v47 = vadd.f32 -0.0029546, %v7994_v21  ;;  %11371 = vrcp.f32 %v8346_v36  ;;  %v17415_v21 = vld [vmem:[#allocation62_spill] sm:$0xff] }
 0x5a8   : > { %v8411_v11 = vmul.f32 %v11370_v42, %v8347_v57  ;;  %v7837_v63 = vadd.f32 -2.101024e-06, %v7805_v29  ;;  %v16314_v0 = vmul.f32 %v16309_v22, %v16309_v22  ;;  %v16317_v35 = vclamps-f32 %v7615_v56, 4.0 }
 0x5a9   : > { %v8221_v31 = vadd.f32 -0.001682827, %v8189_v43  ;;  %v8472_v2 = vmul.f32 %v11368_v14, %v8440_v5  ;;  %v8058_v61 = vmul.f32 %v8026_v47, %v16250_v30  ;;  %v7518_v24 = vadd.f32 %v16162_v32, %v10868_v48 }
 0x5aa   : > { %v8443_v40 = vsub.f32 2.0, %v8411_v11  ;;  %v7869_v13 = vmul.f32 %v7837_v63, %v16282_v41  ;;  %v7740_v57 = vmul.f32 -2.7261424e-10, %v16314_v0  ;;  %v8124_v54 = vmul.f32 -1.45660715e-05, %v16314_v0 }
 0x5ab   : > { %v8253_v51 = vmul.f32 %v8221_v31, %v16282_v41  ;;  %v8536_v62 = vmul.f32 %v8504_v25, %v8472_v2  ;;  %v8090_v37 = vadd.f32 -0.016096033, %v8058_v61  ;;  %v16326_v50 = vmul.f32 %v16317_v35, %v16317_v35 }
 0x5ac   : > { %v8475_v30 = vmul.f32 %v11370_v42, %v8443_v40  ;;  %v7901_v17 = vadd.f32 -5.6925062e-05, %v7869_v13  ;;  %v7772_v7 = vadd.f32 2.7706815e-08, %v7740_v57  ;;  %v16329_v59 = vmul.f32 0.5, %v16214_v52 }
 0x5ad   : > { %v8285_v45 = vadd.f32 -0.0073733293, %v8253_v51  ;;  %v8568_v1 = vadd.f32 1.0, %v8536_v62  ;;  %v8156_v27 = vadd.f32 -0.00021337405, %v8124_v54  ;;  %v16338_v29 = vmul.f32 %v7518_v24, %v17415_v21 }
 0x5ae   : > { %v7743_v55 = vmul.f32 -2.7261424e-10, %v16326_v50  ;;  %v8539_v4 = vmul.f32 %v8507_v60, %v8475_v30  ;;  %v7933_v14 = vmul.f32 %v7901_v17, %v16282_v41  ;;  %v7804_v12 = vmul.f32 %v7772_v7, %v16314_v0 }
 0x5af   : > { %v8317_v58 = vmul.f32 %v8285_v45, %v16282_v41  ;;  %v8600_v19 = vmul.f32 %v8568_v1, %v7576_v20  ;;  %v8188_v18 = vmul.f32 %v8156_v27, %v16314_v0  ;;  %v8127_v48 = vmul.f32 -1.45660715e-05, %v16326_v50  ;;  %v17416_v45 = vld [vmem:[#allocation30_spill] sm:$0xff] }
 0x5b0   : > { %v7775_v44 = vadd.f32 2.7706815e-08, %v7743_v55  ;;  %v8571_v38 = vadd.f32 1.0, %v8539_v4  ;;  %v7965_v52 = vadd.f32 -0.00073499064, %v7933_v14  ;;  %v8506_v40 = vmul.f32 %v16242_v6, %v8090_v37 }
 0x5b1   : > { %v8349_v25 = vadd.f32 -0.014264739, %v8317_v58  ;;  %v11372_v60 = vpop.eup %11371  ;;  %8632 = vst [vmem:[%s15910_s11 + $0x70] sm:$0xff] %v8600_v19  ;;  %v7836_v43 = vadd.f32 -2.101024e-06, %v7804_v12  ;;  %v10869_v7 = vadd.f32 %v15898_v28, %v17416_v45  ;;  %v17419_v45 = vld [vmem:[#allocation40_spill] sm:$0xff] }
 0x5b2   : > { %v8220_v42 = vadd.f32 -0.001682827, %v8188_v18  ;;  %v7807_v5 = vmul.f32 %v7775_v44, %v16326_v50  ;;  %v8159_v47 = vadd.f32 -0.00021337405, %v8127_v48  ;;  %v8603_v20 = vmul.f32 %v8571_v38, %v16293_v26 }
 0x5b3   : > { %v8410_v56 = vmul.f32 %v11372_v60, %v8346_v36  ;;  %v7997_v11 = vmul.f32 %v7965_v52, %v16282_v41  ;;  %11373 = vrcp.f32 %v8349_v25  ;;  %v7868_v63 = vmul.f32 %v7836_v43, %v16314_v0 }
 0x5b4   : > { %v8252_v31 = vmul.f32 %v8220_v42, %v16314_v0  ;;  %v7839_v2 = vadd.f32 -2.101024e-06, %v7807_v5  ;;  %v8191_v61 = vmul.f32 %v8159_v47, %v16326_v50  ;;  %8635 = vst [vmem:[%s15910_s11 + $0x88] sm:$0xff] %v8603_v20  ;;  %v7614_v51 = vmul.f32 0.70710677, %v16338_v29  ;;  %v17417_v20 = vld [vmem:[#allocation71_spill] sm:$0xff] }
 0x5b5   : > { %v8442_v24 = vsub.f32 2.0, %v8410_v56  ;;  %v8029_v13 = vadd.f32 -0.0029546, %v7997_v11  ;;  %v7900_v57 = vadd.f32 -5.6925062e-05, %v7868_v63  ;;  %v7581_v44 = vmul.f32 0.5, %v16238_v33 }
 0x5b6   : > { %v8284_v26 = vadd.f32 -0.0073733293, %v8252_v31  ;;  %v7871_v36 = vmul.f32 %v7839_v2, %v16326_v50  ;;  %v8223_v62 = vadd.f32 -0.001682827, %v8191_v61  ;;  %v16352_v17 = vclamps-f32 %v7614_v51, 4.0 }
 0x5b7   : > { %v8474_v54 = vmul.f32 %v11372_v60, %v8442_v24  ;;  %v8061_v30 = vmul.f32 %v8029_v13, %v16282_v41  ;;  %v7932_v1 = vmul.f32 %v7900_v57, %v16314_v0  ;;  %v7521_v41 = vadd.f32 %v16162_v32, %v10869_v7 }
 0x5b8   : > { %v8316_v6 = vmul.f32 %v8284_v26, %v16314_v0  ;;  %v7903_v37 = vadd.f32 -5.6925062e-05, %v7871_v36  ;;  %v8255_v27 = vmul.f32 %v8223_v62, %v16326_v50  ;;  %v16361_v14 = vmul.f32 %v16352_v17, %v16352_v17  ;;  %v17418_v36 = vld [vmem:[#allocation43_spill] sm:$0xff] }
 0x5b9   : > { %v8538_v55 = vmul.f32 %v8506_v40, %v8474_v54  ;;  %v8093_v4 = vadd.f32 -0.016096033, %v8061_v30  ;;  %v7964_v58 = vadd.f32 -0.00073499064, %v7932_v1  ;;  %v16372_v56 = vmul.f32 %v7521_v41, %v17417_v20  ;;  %v17420_v41 = vld [vmem:[#allocation51_spill] sm:$0xff] }
 0x5ba   : > { %v8348_v12 = vadd.f32 -0.014264739, %v8316_v6  ;;  %v7935_v19 = vmul.f32 %v7903_v37, %v16326_v50  ;;  %v8287_v28 = vadd.f32 -0.0073733293, %v8255_v27  ;;  %v7742_v48 = vmul.f32 -2.7261424e-10, %v16361_v14 }
 0x5bb   : > { %v8570_v18 = vadd.f32 1.0, %v8538_v55  ;;  %v8126_v38 = vmul.f32 -1.45660715e-05, %v16361_v14  ;;  %v7996_v52 = vmul.f32 %v7964_v58, %v16314_v0  ;;  %v16377_v2 = vmul.f32 0.5, %v16285_v46 }
 0x5bc   : > { %11375 = vrcp.f32 %v8348_v12  ;;  %v7967_v21 = vadd.f32 -0.00073499064, %v7935_v19  ;;  %v8319_v60 = vmul.f32 %v8287_v28, %v16326_v50  ;;  %v7774_v5 = vadd.f32 2.7706815e-08, %v7742_v48 }
 0x5bd   : > { %v11374_v43 = vpop.eup %11373  ;;  %v8602_v42 = vmul.f32 %v8570_v18, %v16329_v59  ;;  %v8158_v47 = vadd.f32 -0.00021337405, %v8126_v38  ;;  %v8028_v11 = vadd.f32 -0.0029546, %v7996_v52  ;;  %v7617_v59 = vmul.f32 0.70710677, %v16372_v56 }
 0x5be   : > { %v8413_v33 = vmul.f32 %v11374_v43, %v8349_v25  ;;  %v7999_v63 = vmul.f32 %v7967_v21, %v16326_v50  ;;  %v8351_v31 = vadd.f32 -0.014264739, %v8319_v60  ;;  %v7806_v61 = vmul.f32 %v7774_v5, %v16361_v14  ;;  %v17421_v38 = vld [vmem:[#allocation75_spill] sm:$0xff] }
 0x5bf   : > { %8634 = vst [vmem:[%s15910_s11 + $0x80] sm:$0xff] %v8602_v42  ;;  %v8190_v24 = vmul.f32 %v8158_v47, %v16361_v14  ;;  %v8060_v13 = vmul.f32 %v8028_v11, %v16314_v0  ;;  %v16383_v26 = vclamps-f32 %v7617_v59, 4.0  ;;  %v10870_v62 = vadd.f32 %v15927_v15, %v17418_v36 }
 0x5c0   : > { %v8445_v40 = vsub.f32 2.0, %v8413_v33  ;;  %v8031_v51 = vadd.f32 -0.0029546, %v7999_v63  ;;  %11377 = vrcp.f32 %v8351_v31  ;;  %v7838_v25 = vadd.f32 -2.101024e-06, %v7806_v61 }
 0x5c1   : > { %v8222_v57 = vadd.f32 -0.001682827, %v8190_v24  ;;  %v8509_v54 = vmul.f32 %v16273_v49, %v8093_v4  ;;  %v10871_v7 = vadd.f32 %v15978_v16, %v17419_v45  ;;  %v16395_v6 = vmul.f32 %v16383_v26, %v16383_v26 }
 0x5c2   : > { %v8477_v46 = vmul.f32 %v11374_v43, %v8445_v40  ;;  %v8063_v30 = vmul.f32 %v8031_v51, %v16326_v50  ;;  %v7870_v1 = vmul.f32 %v7838_v25, %v16361_v14  ;;  %v7520_v37 = vadd.f32 %v16162_v32, %v10870_v62 }
 0x5c3   : > { %v8254_v0 = vmul.f32 %v8222_v57, %v16361_v14  ;;  %v8092_v15 = vadd.f32 -0.016096033, %v8060_v13  ;;  %v16399_v55 = vmul.f32 0.5, %v16300_v8  ;;  %v7523_v49 = vadd.f32 %v16162_v32, %v10871_v7 }
 0x5c4   : > { %v8541_v27 = vmul.f32 %v8509_v54, %v8477_v46  ;;  %v7902_v50 = vadd.f32 -5.6925062e-05, %v7870_v1  ;;  %v7745_v16 = vmul.f32 -2.7261424e-10, %v16395_v6  ;;  %v16404_v58 = vmul.f32 %v7520_v37, %v17420_v41 }
 0x5c5   : > { %v8286_v4 = vadd.f32 -0.0073733293, %v8254_v0  ;;  %v8095_v18 = vadd.f32 -0.016096033, %v8063_v30  ;;  %v8129_v48 = vmul.f32 -1.45660715e-05, %v16395_v6  ;;  %v16408_v52 = vmul.f32 %v7523_v49, %v17421_v38 }
 0x5c6   : > { %v11376_v19 = vpop.eup %11375  ;;  %v8573_v28 = vadd.f32 1.0, %v8541_v27  ;;  %v7934_v21 = vmul.f32 %v7902_v50, %v16361_v14  ;;  %v7777_v43 = vadd.f32 2.7706815e-08, %v7745_v16  ;;  %v8508_v5 = vmul.f32 %v16309_v22, %v8092_v15  ;;  %v17422_v30 = vld [vmem:[#allocation41_spill] sm:$0xff] }
 0x5c7   : > { %v8412_v8 = vmul.f32 %v11376_v19, %v8348_v12  ;;  %v8318_v60 = vmul.f32 %v8286_v4, %v16361_v14  ;;  %v8161_v47 = vadd.f32 -0.00021337405, %v8129_v48  ;;  %v7616_v20 = vmul.f32 0.70710677, %v16404_v58 }
 0x5c8   : > { %v8605_v42 = vmul.f32 %v8573_v28, %v7581_v44  ;;  %v7966_v11 = vadd.f32 -0.00073499064, %v7934_v21  ;;  %v7809_v61 = vmul.f32 %v7777_v43, %v16395_v6  ;;  %v8511_v12 = vmul.f32 %v16317_v35, %v8095_v18 }
 0x5c9   : > { %v8444_v33 = vsub.f32 2.0, %v8412_v8  ;;  %v8350_v63 = vadd.f32 -0.014264739, %v8318_v60  ;;  %v8193_v59 = vmul.f32 %v8161_v47, %v16395_v6  ;;  %v16418_v40 = vclamps-f32 %v7616_v20, 4.0  ;;  %v17423_v47 = vld [vmem:[#allocation77_spill] sm:$0xff] }
 0x5ca   : > { %v11378_v24 = vpop.eup %11377  ;;  %8637 = vst [vmem:[%s15910_s11 + $0x98] sm:$0xff] %v8605_v42  ;;  %v7619_v44 = vmul.f32 0.70710677, %v16408_v52  ;;  %v7998_v51 = vmul.f32 %v7966_v11, %v16361_v14  ;;  %v7841_v25 = vadd.f32 -2.101024e-06, %v7809_v61  ;;  %v10872_v45 = vadd.f32 %v15987_v10, %v17422_v30 }
 0x5cb   : > { %v8476_v13 = vmul.f32 %v11376_v19, %v8444_v33  ;;  %v8415_v22 = vmul.f32 %v11378_v24, %v8351_v31  ;;  %11379 = vrcp.f32 %v8350_v63  ;;  %v8225_v57 = vadd.f32 -0.001682827, %v8193_v59 }
 0x5cc   : > { %v16424_v36 = vmul.f32 %v16418_v40, %v16418_v40  ;;  %v16426_v62 = vclamps-f32 %v7619_v44, 4.0  ;;  %v8030_v54 = vadd.f32 -0.0029546, %v7998_v51  ;;  %v7873_v7 = vmul.f32 %v7841_v25, %v16395_v6 }
 0x5cd   : > { %v8540_v35 = vmul.f32 %v8508_v5, %v8476_v13  ;;  %v8447_v46 = vsub.f32 2.0, %v8415_v22  ;;  %v8257_v31 = vmul.f32 %v8225_v57, %v16395_v6  ;;  %v7522_v16 = vadd.f32 %v16162_v32, %v10872_v45 }
 0x5ce   : > { %v7744_v1 = vmul.f32 -2.7261424e-10, %v16424_v36  ;;  %v8128_v0 = vmul.f32 -1.45660715e-05, %v16424_v36  ;;  %v8062_v15 = vmul.f32 %v8030_v54, %v16361_v14  ;;  %v16437_v49 = vmul.f32 %v16426_v62, %v16426_v62  ;;  %v17424_v54 = vld [vmem:[#allocation32_spill] sm:$0xff] }
 0x5cf   : > { %v8572_v37 = vadd.f32 1.0, %v8540_v35  ;;  %v8479_v27 = vmul.f32 %v11378_v24, %v8447_v46  ;;  %v7905_v50 = vadd.f32 -5.6925062e-05, %v7873_v7  ;;  %v8289_v4 = vadd.f32 -0.0073733293, %v8257_v31  ;;  %v17425_v31 = vld [vmem:[#allocation61_spill] sm:$0xff] }
 0x5d0   : > { %v7776_v10 = vadd.f32 2.7706815e-08, %v7744_v1  ;;  %v7582_v28 = vmul.f32 0.5, %v16338_v29  ;;  %v8160_v18 = vadd.f32 -0.00021337405, %v8128_v0  ;;  %v16450_v20 = vmul.f32 %v7522_v16, %v17423_v47 }
 0x5d1   : > { %v8604_v41 = vmul.f32 %v8572_v37, %v16377_v2  ;;  %v8543_v19 = vmul.f32 %v8511_v12, %v8479_v27  ;;  %v7937_v48 = vmul.f32 %v7905_v50, %v16395_v6  ;;  %v8321_v38 = vmul.f32 %v8289_v4, %v16395_v6 }
 0x5d2   : > { %v7808_v14 = vmul.f32 %v7776_v10, %v16424_v36  ;;  %v7747_v8 = vmul.f32 -2.7261424e-10, %v16437_v49  ;;  %v8094_v60 = vadd.f32 -0.016096033, %v8062_v15  ;;  %v8192_v43 = vmul.f32 %v8160_v18, %v16424_v36 }
 0x5d3   : > { %8636 = vst [vmem:[%s15910_s11 + $0x90] sm:$0xff] %v8604_v41  ;;  %v8575_v21 = vadd.f32 1.0, %v8543_v19  ;;  %v8131_v2 = vmul.f32 -1.45660715e-05, %v16437_v49  ;;  %v7969_v42 = vadd.f32 -0.00073499064, %v7937_v48  ;;  %v10874_v1 = vadd.f32 %v16058_v3, %v17425_v31 }
 0x5d4   : > { %v8353_v5 = vadd.f32 -0.014264739, %v8321_v38  ;;  %v7840_v29 = vadd.f32 -2.101024e-06, %v7808_v14  ;;  %v8224_v61 = vadd.f32 -0.001682827, %v8192_v43  ;;  %v8510_v22 = vmul.f32 %v16352_v17, %v8094_v60 }
 0x5d5   : > { %v11380_v33 = vpop.eup %11379  ;;  %v8607_v11 = vmul.f32 %v8575_v21, %v16399_v55  ;;  %v7779_v24 = vadd.f32 2.7706815e-08, %v7747_v8  ;;  %v8163_v12 = vadd.f32 -0.00021337405, %v8131_v2  ;;  %v8001_v44 = vmul.f32 %v7969_v42, %v16395_v6  ;;  %v17426_v48 = vld [vmem:[#allocation78_spill] sm:$0xff] }
 0x5d6   : > { %v8414_v59 = vmul.f32 %v11380_v33, %v8350_v63  ;;  %11381 = vrcp.f32 %v8353_v5  ;;  %v7872_v13 = vmul.f32 %v7840_v29, %v16424_v36  ;;  %v8256_v51 = vmul.f32 %v8224_v61, %v16424_v36 }
 0x5d7   : > { %8639 = vst [vmem:[%s15910_s11 + $0xa8] sm:$0xff] %v8607_v11  ;;  %v7811_v25 = vmul.f32 %v7779_v24, %v16437_v49  ;;  %v8195_v57 = vmul.f32 %v8163_v12, %v16437_v49  ;;  %v8033_v55 = vadd.f32 -0.0029546, %v8001_v44  ;;  %v10873_v63 = vadd.f32 %v16034_v53, %v17424_v54 }
 0x5d8   : > { %v8446_v35 = vsub.f32 2.0, %v8414_v59  ;;  %v7904_v46 = vadd.f32 -5.6925062e-05, %v7872_v13  ;;  %v8288_v30 = vadd.f32 -0.0073733293, %v8256_v51  ;;  %v7585_v16 = vmul.f32 0.5, %v16372_v56 }
 0x5d9   : > { %v7843_v45 = vadd.f32 -2.101024e-06, %v7811_v25  ;;  %v8227_v7 = vadd.f32 -0.001682827, %v8195_v57  ;;  %v8065_v17 = vmul.f32 %v8033_v55, %v16395_v6  ;;  %v7618_v27 = vmul.f32 0.70710677, %v16450_v20 }
 0x5da   : > { %v8478_v0 = vmul.f32 %v11380_v33, %v8446_v35  ;;  %v7936_v37 = vmul.f32 %v7904_v46, %v16424_v36  ;;  %v8320_v15 = vmul.f32 %v8288_v30, %v16424_v36  ;;  %v7525_v53 = vadd.f32 %v16162_v32, %v10873_v63  ;;  %v17427_v55 = vld [vmem:[#allocation64_spill] sm:$0xff]  ;;  %v17428_v30 = vld [vmem:[#allocation45_spill] sm:$0xff] }
 0x5db   : > { %v7875_v50 = vmul.f32 %v7843_v45, %v16437_v49  ;;  %v8259_v4 = vmul.f32 %v8227_v7, %v16437_v49  ;;  %v16472_v3 = vclamps-f32 %v7618_v27, 4.0  ;;  %v16478_v8 = vmul.f32 0.5, %v16404_v58 }
 0x5dc   : > { %v8542_v10 = vmul.f32 %v8510_v22, %v8478_v0  ;;  %v7968_v41 = vadd.f32 -0.00073499064, %v7936_v37  ;;  %v8352_v19 = vadd.f32 -0.014264739, %v8320_v15  ;;  %v16475_v38 = vmul.f32 %v7525_v53, %v17426_v48  ;;  %v17430_v0 = vld [vmem:[#allocation47_spill] sm:$0xff] }
 0x5dd   : > { %v7907_v6 = vadd.f32 -5.6925062e-05, %v7875_v50  ;;  %v8291_v18 = vadd.f32 -0.0073733293, %v8259_v4  ;;  %v16483_v60 = vmul.f32 %v16472_v3, %v16472_v3  ;;  %v8097_v56 = vadd.f32 -0.016096033, %v8065_v17 }
 0x5de   : > { %v8574_v14 = vadd.f32 1.0, %v8542_v10  ;;  %v8000_v21 = vmul.f32 %v7968_v41, %v16424_v36  ;;  %11383 = vrcp.f32 %v8352_v19  ;;  %v7621_v12 = vmul.f32 0.70710677, %v16475_v38 }
 0x5df   : > { %v7939_v43 = vmul.f32 %v7907_v6, %v16437_v49  ;;  %v8323_v2 = vmul.f32 %v8291_v18, %v16437_v49  ;;  %v7746_v33 = vmul.f32 -2.7261424e-10, %v16483_v60  ;;  %v8130_v58 = vmul.f32 -1.45660715e-05, %v16483_v60 }
 0x5e0   : > { %v11382_v42 = vpop.eup %11381  ;;  %v8606_v29 = vmul.f32 %v8574_v14, %v7582_v28  ;;  %v8032_v47 = vadd.f32 -0.0029546, %v8000_v21  ;;  %v7524_v22 = vadd.f32 %v16162_v32, %v10874_v1  ;;  %v16494_v25 = vclamps-f32 %v7621_v12, 4.0  ;;  %v17431_v14 = vld [vmem:[#allocation15_spill] sm:$0xff] }
 0x5e1   : > { %v8417_v11 = vmul.f32 %v11382_v42, %v8353_v5  ;;  %v7971_v61 = vadd.f32 -0.00073499064, %v7939_v43  ;;  %v8355_v24 = vadd.f32 -0.014264739, %v8323_v2  ;;  %v7778_v44 = vadd.f32 2.7706815e-08, %v7746_v33 }
 0x5e2   : > { %8638 = vst [vmem:[%s15910_s11 + $0xa0] sm:$0xff] %v8606_v29  ;;  %v8064_v59 = vmul.f32 %v8032_v47, %v16424_v36  ;;  %v8162_v13 = vadd.f32 -0.00021337405, %v8130_v58  ;;  %v8513_v57 = vmul.f32 %v16383_v26, %v8097_v56  ;;  %v16500_v46 = vmul.f32 %v7524_v22, %v17427_v55  ;;  %v17429_v26 = vld [vmem:[#allocation14_spill] sm:$0xff] }
 0x5e3   : > { %v8449_v51 = vsub.f32 2.0, %v8417_v11  ;;  %v8003_v28 = vmul.f32 %v7971_v61, %v16437_v49  ;;  %11385 = vrcp.f32 %v8355_v24  ;;  %v7810_v5 = vmul.f32 %v7778_v44, %v16483_v60 }
 0x5e4   : > { %v8194_v35 = vmul.f32 %v8162_v13, %v16483_v60  ;;  %v16504_v63 = vmul.f32 %v16494_v25, %v16494_v25  ;;  %v10875_v45 = vadd.f32 %v16085_v9, %v17428_v30  ;;  %v8096_v7 = vadd.f32 -0.016096033, %v8064_v59 }
 0x5e5   : > { %v8481_v36 = vmul.f32 %v11382_v42, %v8449_v51  ;;  %v8035_v54 = vadd.f32 -0.0029546, %v8003_v28  ;;  %v7842_v31 = vadd.f32 -2.101024e-06, %v7810_v5  ;;  %v16510_v17 = vmul.f32 %v17430_v0, %v17429_v26 }
 0x5e6   : > { %v8226_v1 = vadd.f32 -0.001682827, %v8194_v35  ;;  %v7749_v15 = vmul.f32 -2.7261424e-10, %v16504_v63  ;;  %v8133_v50 = vmul.f32 -1.45660715e-05, %v16504_v63  ;;  %v7527_v10 = vadd.f32 %v16162_v32, %v10875_v45 }
 0x5e7   : > { %v8545_v37 = vmul.f32 %v8513_v57, %v8481_v36  ;;  %v8067_v27 = vmul.f32 %v8035_v54, %v16437_v49  ;;  %v7874_v4 = vmul.f32 %v7842_v31, %v16483_v60  ;;  %v7620_v9 = vmul.f32 0.70710677, %v16500_v46 }
 0x5e8   : > { %v8258_v53 = vmul.f32 %v8226_v1, %v16483_v60  ;;  %v11384_v41 = vpop.eup %11383  ;;  %v7781_v48 = vadd.f32 2.7706815e-08, %v7749_v15  ;;  %v10876_v49 = vadd.f32 %v16114_v39, %v17431_v14  ;;  %v8165_v2 = vadd.f32 -0.00021337405, %v8133_v50 }
 0x5e9   : > { %v8577_v6 = vadd.f32 1.0, %v8545_v37  ;;  %v8099_v18 = vadd.f32 -0.016096033, %v8067_v27  ;;  %v8416_v21 = vmul.f32 %v11384_v41, %v8352_v19  ;;  %v7906_v56 = vadd.f32 -5.6925062e-05, %v7874_v4 }
 0x5ea   : > { %v8290_v43 = vadd.f32 -0.0073733293, %v8258_v53  ;;  %v8512_v29 = vmul.f32 %v16418_v40, %v8096_v7  ;;  %v7813_v47 = vmul.f32 %v7781_v48, %v16504_v63  ;;  %v16523_v33 = vclamps-f32 %v7620_v9, 4.0  ;;  %v17432_v40 = vld [vmem:[#allocation46_spill] sm:$0xff] }
 0x5eb   : > { %v8609_v42 = vmul.f32 %v8577_v6, %v7585_v16  ;;  %v8448_v58 = vsub.f32 2.0, %v8416_v21  ;;  %v7938_v11 = vmul.f32 %v7906_v56, %v16483_v60  ;;  %v8197_v12 = vmul.f32 %v8165_v2, %v16504_v63  ;;  %v17433_v21 = vld [vmem:[#allocation54_spill] sm:$0xff] }
 0x5ec   : > { %v8322_v61 = vmul.f32 %v8290_v43, %v16483_v60  ;;  %v8515_v39 = vmul.f32 %v16426_v62, %v8099_v18  ;;  %v7845_v19 = vadd.f32 -2.101024e-06, %v7813_v47  ;;  %v16532_v16 = vmul.f32 %v16523_v33, %v16523_v33  ;;  %v17434_v47 = vld [vmem:[#allocation16_spill] sm:$0xff] }
 0x5ed   : > { %v11386_v59 = vpop.eup %11385  ;;  %8641 = vst [vmem:[%s15910_s11 + $0xb8] sm:$0xff] %v8609_v42  ;;  %v16535_v44 = vmul.f32 %v7527_v10, %v17432_v40  ;;  %v8480_v13 = vmul.f32 %v11384_v41, %v8448_v58  ;;  %v7970_v51 = vadd.f32 -0.00073499064, %v7938_v11  ;;  %v8229_v5 = vadd.f32 -0.001682827, %v8197_v12  ;;  %v17435_v58 = vld [vmem:[#allocation36_spill] sm:$0xff] }
 0x5ee   : > { %v8419_v22 = vmul.f32 %v11386_v59, %v8355_v24  ;;  %v8354_v28 = vadd.f32 -0.014264739, %v8322_v61  ;;  %v7877_v57 = vmul.f32 %v7845_v19, %v16504_v63  ;;  %v7748_v35 = vmul.f32 -2.7261424e-10, %v16532_v16 }
 0x5ef   : > { %v8132_v55 = vmul.f32 -1.45660715e-05, %v16532_v16  ;;  %v8544_v62 = vmul.f32 %v8512_v29, %v8480_v13  ;;  %v8002_v54 = vmul.f32 %v7970_v51, %v16483_v60  ;;  %v8261_v45 = vmul.f32 %v8229_v5, %v16504_v63  ;;  %v17436_v13 = vld [vmem:[#allocation84_spill] sm:$0xff] }
 0x5f0   : > { %v8451_v36 = vsub.f32 2.0, %v8419_v22  ;;  %11387 = vrcp.f32 %v8354_v28  ;;  %v7909_v30 = vadd.f32 -5.6925062e-05, %v7877_v57  ;;  %v7780_v7 = vadd.f32 2.7706815e-08, %v7748_v35 }
 0x5f1   : > { %v8164_v31 = vadd.f32 -0.00021337405, %v8132_v55  ;;  %v8576_v24 = vadd.f32 1.0, %v8544_v62  ;;  %v8034_v26 = vadd.f32 -0.0029546, %v8002_v54  ;;  %v7526_v0 = vadd.f32 %v16162_v32, %v10876_v49 }
 0x5f2   : > { %v8483_v1 = vmul.f32 %v11386_v59, %v8451_v36  ;;  %v7941_v37 = vmul.f32 %v7909_v30, %v16504_v63  ;;  %v8293_v27 = vadd.f32 -0.0073733293, %v8261_v45  ;;  %v7812_v15 = vmul.f32 %v7780_v7, %v16532_v16  ;;  %v11439_v54 = vld [vmem:[%s16726_s5] ss:$0 sm:$0xff] }
 0x5f3   : > { %v8196_v50 = vmul.f32 %v8164_v31, %v16532_v16  ;;  %v8608_v4 = vmul.f32 %v8576_v24, %v16478_v8  ;;  %v8066_v9 = vmul.f32 %v8034_v26, %v16483_v60  ;;  %v7623_v10 = vmul.f32 0.70710677, %v16535_v44 }
 0x5f4   : > { %v8547_v53 = vmul.f32 %v8515_v39, %v8483_v1  ;;  %v7973_v41 = vadd.f32 -0.00073499064, %v7941_v37  ;;  %v8325_v6 = vmul.f32 %v8293_v27, %v16504_v63  ;;  %v7844_v18 = vadd.f32 -2.101024e-06, %v7812_v15 }
 0x5f5   : > { %v8228_v48 = vadd.f32 -0.001682827, %v8196_v50  ;;  %8640 = vst [vmem:[%s15910_s11 + $0xb0] sm:$0xff] %v8608_v4  ;;  %v7587_v32 = vmul.f32 0.5, %v16408_v52  ;;  %v16552_v49 = vclamps-f32 %v7623_v10, 4.0  ;;  %v16555_v56 = vmul.f32 %v7526_v0, %v17433_v21 }
 0x5f6   : > { %v8579_v14 = vadd.f32 1.0, %v8547_v53  ;;  %v8005_v8 = vmul.f32 %v7973_v41, %v16504_v63  ;;  %v8357_v60 = vadd.f32 -0.014264739, %v8325_v6  ;;  %v7876_v43 = vmul.f32 %v7844_v18, %v16532_v16 }
 0x5f7   : > { %v8260_v2 = vmul.f32 %v8228_v48, %v16532_v16  ;;  %v7586_v29 = vmul.f32 0.5, %v16450_v20  ;;  %v16563_v52 = vmul.f32 %v16552_v49, %v16552_v49  ;;  %v16567_v11 = vmul.f32 %v17435_v58, %v17434_v47 }
 0x5f8   : > { %v8611_v42 = vmul.f32 %v8579_v14, %v7587_v32  ;;  %v8098_v61 = vadd.f32 -0.016096033, %v8066_v9  ;;  %11389 = vrcp.f32 %v8357_v60  ;;  %v7908_v12 = vadd.f32 -5.6925062e-05, %v7876_v43 }
 0x5f9   : > { %v8292_v59 = vadd.f32 -0.0073733293, %v8260_v2  ;;  %v7751_v19 = vmul.f32 -2.7261424e-10, %v16563_v52  ;;  %v8135_v40 = vmul.f32 -1.45660715e-05, %v16563_v52  ;;  %v10877_v22 = vadd.f32 %v16149_v34, %v17436_v13 }
 0x5fa   : > { %v11388_v39 = vpop.eup %11387  ;;  %8643 = vst [vmem:[%s15910_s11 + $0xc8] sm:$0xff] %v8611_v42  ;;  %v7622_v20 = vmul.f32 0.70710677, %v16555_v56  ;;  %v8037_v57 = vadd.f32 -0.0029546, %v8005_v8  ;;  %v7940_v5 = vmul.f32 %v7908_v12, %v16532_v16  ;;  %v8514_v7 = vmul.f32 %v16472_v3, %v8098_v61  ;;  %v17437_v34 = vld [vmem:[#allocation85_spill] sm:$0xff] }
 0x5fb   : > { %v8418_v51 = vmul.f32 %v11388_v39, %v8354_v28  ;;  %v8324_v35 = vmul.f32 %v8292_v59, %v16532_v16  ;;  %v7783_v55 = vadd.f32 2.7706815e-08, %v7751_v19  ;;  %v8167_v62 = vadd.f32 -0.00021337405, %v8135_v40 }
 0x5fc   : > { %v16577_v36 = vclamps-f32 %v7622_v20, 4.0  ;;  %v7529_v30 = vadd.f32 %v11439_v54, %v10877_v22  ;;  %v7972_v31 = vadd.f32 -0.00073499064, %v7940_v5  ;;  %v10878_v28 = vadd.f32 %v16171_v23, %v17437_v34 }
 0x5fd   : > { %v8450_v45 = vsub.f32 2.0, %v8418_v51  ;;  %v8356_v24 = vadd.f32 -0.014264739, %v8324_v35  ;;  %v7815_v1 = vmul.f32 %v7783_v55, %v16563_v52  ;;  %v8199_v26 = vmul.f32 %v8167_v62, %v16563_v52 }
 0x5fe   : > { %v16589_v0 = vmul.f32 %v16577_v36, %v16577_v36  ;;  %v8069_v27 = vmul.f32 %v8037_v57, %v16504_v63  ;;  %v8004_v15 = vmul.f32 %v7972_v31, %v16532_v16  ;;  %v16594_v3 = vmul.f32 %v7529_v30, %v16510_v17 }
 0x5ff   : > { %v8482_v37 = vmul.f32 %v11388_v39, %v8450_v45  ;;  %11391 = vrcp.f32 %v8356_v24  ;;  %v7847_v50 = vadd.f32 -2.101024e-06, %v7815_v1  ;;  %v8231_v23 = vadd.f32 -0.001682827, %v8199_v26 }
 0x600   : > { %v7750_v4 = vmul.f32 -2.7261424e-10, %v16589_v0  ;;  %v7589_v9 = vmul.f32 0.5, %v16475_v38  ;;  %v8036_v10 = vadd.f32 -0.0029546, %v8004_v15  ;;  %v7528_v8 = vadd.f32 %v11439_v54, %v10878_v28 }
 0x601   : > { %v8546_v53 = vmul.f32 %v8514_v7, %v8482_v37  ;;  %v8134_v41 = vmul.f32 -1.45660715e-05, %v16589_v0  ;;  %v7879_v6 = vmul.f32 %v7847_v50, %v16563_v52  ;;  %v8263_v63 = vmul.f32 %v8231_v23, %v16563_v52 }
 0x602   : > { %v7782_v18 = vadd.f32 2.7706815e-08, %v7750_v4  ;;  %v7625_v48 = vmul.f32 0.70710677, %v16594_v3  ;;  %v11390_v17 = vpop.eup %11389  ;;  %v8101_v14 = vadd.f32 -0.016096033, %v8069_v27  ;;  %v8068_v58 = vmul.f32 %v8036_v10, %v16532_v16 }
 0x603   : > { %v8578_v32 = vadd.f32 1.0, %v8546_v53  ;;  %v8166_v21 = vadd.f32 -0.00021337405, %v8134_v41  ;;  %v8421_v43 = vmul.f32 %v11390_v17, %v8357_v60  ;;  %v7911_v2 = vadd.f32 -5.6925062e-05, %v7879_v6 }
 0x604   : > { %v8295_v42 = vadd.f32 -0.0073733293, %v8263_v63  ;;  %v7814_v38 = vmul.f32 %v7782_v18, %v16589_v0  ;;  %v16605_v12 = vclamps-f32 %v7625_v48, 4.0  ;;  %v8517_v60 = vmul.f32 %v16494_v25, %v8101_v14 }
 0x605   : > { %v8610_v47 = vmul.f32 %v8578_v32, %v7586_v29  ;;  %v8198_v61 = vmul.f32 %v8166_v21, %v16589_v0  ;;  %v8453_v59 = vsub.f32 2.0, %v8421_v43  ;;  %v7943_v39 = vmul.f32 %v7911_v2, %v16563_v52 }
 0x606   : > { %v8327_v19 = vmul.f32 %v8295_v42, %v16563_v52  ;;  %v7846_v40 = vadd.f32 -2.101024e-06, %v7814_v38  ;;  %v16613_v13 = vmul.f32 %v16605_v12, %v16605_v12  ;;  %v16616_v16 = vmul.f32 %v7528_v8, %v16567_v11 }
 0x607   : > { %8642 = vst [vmem:[%s15910_s11 + $0xc0] sm:$0xff] %v8610_v47  ;;  %v8230_v20 = vadd.f32 -0.001682827, %v8198_v61  ;;  %v8485_v29 = vmul.f32 %v11390_v17, %v8453_v59  ;;  %v7975_v22 = vadd.f32 -0.00073499064, %v7943_v39 }
 0x608   : > { %v8359_v51 = vadd.f32 -0.014264739, %v8327_v19  ;;  %v7878_v57 = vmul.f32 %v7846_v40, %v16589_v0  ;;  %v8100_v5 = vadd.f32 -0.016096033, %v8068_v58  ;;  %v7753_v55 = vmul.f32 -2.7261424e-10, %v16613_v13 }
 0x609   : > { %v8262_v35 = vmul.f32 %v8230_v20, %v16589_v0  ;;  %v8137_v25 = vmul.f32 -1.45660715e-05, %v16613_v13  ;;  %v11392_v62 = vpop.eup %11391  ;;  %v8549_v54 = vmul.f32 %v8517_v60, %v8485_v29  ;;  %v8007_v30 = vmul.f32 %v7975_v22, %v16563_v52 }
 0x60a   : > { %11393 = vrcp.f32 %v8359_v51  ;;  %v7910_v45 = vadd.f32 -5.6925062e-05, %v7878_v57  ;;  %v8420_v11 = vmul.f32 %v11392_v62, %v8356_v24  ;;  %v7785_v31 = vadd.f32 2.7706815e-08, %v7753_v55 }
 0x60b   : > { %v8294_v7 = vadd.f32 -0.0073733293, %v8262_v35  ;;  %v8169_v34 = vadd.f32 -0.00021337405, %v8137_v25  ;;  %v8581_v28 = vadd.f32 1.0, %v8549_v54  ;;  %v8516_v24 = vmul.f32 %v16523_v33, %v8100_v5 }
 0x60c   : > { %v8039_v1 = vadd.f32 -0.0029546, %v8007_v30  ;;  %v7942_v26 = vmul.f32 %v7910_v45, %v16589_v0  ;;  %v7624_v37 = vmul.f32 0.70710677, %v16616_v16  ;;  %v8452_v27 = vsub.f32 2.0, %v8420_v11 }
 0x60d   : > { %v8326_v15 = vmul.f32 %v8294_v7, %v16589_v0  ;;  %v7817_v50 = vmul.f32 %v7785_v31, %v16613_v13  ;;  %v8201_v23 = vmul.f32 %v8169_v34, %v16613_v13  ;;  %v8613_v4 = vmul.f32 %v8581_v28, %v7589_v9 }
 0x60e   : > { %v7974_v53 = vadd.f32 -0.00073499064, %v7942_v26  ;;  %v16629_v10 = vclamps-f32 %v7624_v37, 4.0  ;;  %v8484_v41 = vmul.f32 %v11392_v62, %v8452_v27  ;;  %v8071_v48 = vmul.f32 %v8039_v1, %v16563_v52 }
 0x60f   : > { %v8358_v6 = vadd.f32 -0.014264739, %v8326_v15  ;;  %v7849_v63 = vadd.f32 -2.101024e-06, %v7817_v50  ;;  %v8233_v18 = vadd.f32 -0.001682827, %v8201_v23 }
 0x610   : > { %8645 = vst [vmem:[%s15910_s11 + $0xd8] sm:$0xff] %v8613_v4  ;;  %v8006_v17 = vmul.f32 %v7974_v53, %v16589_v0  ;;  %v16636_v32 = vmul.f32 %v16629_v10, %v16629_v10  ;;  %v8548_v14 = vmul.f32 %v8516_v24, %v8484_v41  ;;  %v7588_v52 = vmul.f32 0.5, %v16500_v46 }
 0x611   : > { %11395 = vrcp.f32 %v8358_v6  ;;  %v7881_v33 = vmul.f32 %v7849_v63, %v16613_v13  ;;  %v8265_v9 = vmul.f32 %v8233_v18, %v16613_v13  ;;  %v8103_v58 = vadd.f32 -0.016096033, %v8071_v48 }
 0x612   : > { %v8038_v21 = vadd.f32 -0.0029546, %v8006_v17  ;;  %v7752_v8 = vmul.f32 -2.7261424e-10, %v16636_v32  ;;  %v8136_v43 = vmul.f32 -1.45660715e-05, %v16636_v32 }
 0x613   : > { %v8580_v2 = vadd.f32 1.0, %v8548_v14  ;;  %v7913_v42 = vadd.f32 -5.6925062e-05, %v7881_v33  ;;  %v8297_v38 = vadd.f32 -0.0073733293, %v8265_v9  ;;  %v8519_v62 = vmul.f32 %v16552_v49, %v8103_v58 }
 0x614   : > { %v11394_v47 = vpop.eup %11393  ;;  %v7784_v61 = vadd.f32 2.7706815e-08, %v7752_v8  ;;  %v8168_v59 = vadd.f32 -0.00021337405, %v8136_v43  ;;  %v8070_v46 = vmul.f32 %v8038_v21, %v16589_v0  ;;  %v7591_v1 = vmul.f32 0.5, %v16535_v44 }
 0x615   : > { %v8612_v39 = vmul.f32 %v8580_v2, %v7588_v52  ;;  %v8423_v19 = vmul.f32 %v11394_v47, %v8359_v51  ;;  %v7945_v40 = vmul.f32 %v7913_v42, %v16613_v13  ;;  %v8329_v60 = vmul.f32 %v8297_v38, %v16613_v13 }
 0x616   : > { %v7816_v20 = vmul.f32 %v7784_v61, %v16636_v32  ;;  %v8200_v29 = vmul.f32 %v8168_v59, %v16636_v32  ;;  %v8102_v7 = vadd.f32 -0.016096033, %v8070_v46  ;;  %v7590_v63 = vmul.f32 0.5, %v16555_v56 }
 0x617   : > { %8644 = vst [vmem:[%s15910_s11 + $0xd0] sm:$0xff] %v8612_v39  ;;  %v8455_v22 = vsub.f32 2.0, %v8423_v19  ;;  %v7977_v57 = vadd.f32 -0.00073499064, %v7945_v40  ;;  %v8361_v5 = vadd.f32 -0.014264739, %v8329_v60 }
 0x618   : > { %v7848_v35 = vadd.f32 -2.101024e-06, %v7816_v20  ;;  %v8232_v55 = vadd.f32 -0.001682827, %v8200_v29  ;;  %v8518_v50 = vmul.f32 %v16577_v36, %v8102_v7  ;;  %v7593_v52 = vmul.f32 0.5, %v16594_v3 }
 0x619   : > { %v8487_v25 = vmul.f32 %v11394_v47, %v8455_v22  ;;  %v8009_v51 = vmul.f32 %v7977_v57, %v16613_v13  ;;  %11397 = vrcp.f32 %v8361_v5 }
 0x61a   : > { %v7880_v54 = vmul.f32 %v7848_v35, %v16636_v32  ;;  %v8264_v30 = vmul.f32 %v8232_v55, %v16636_v32 }
 0x61b   : > { %v11396_v45 = vpop.eup %11395  ;;  %v8551_v11 = vmul.f32 %v8519_v62, %v8487_v25  ;;  %v8041_v0 = vadd.f32 -0.0029546, %v8009_v51 }
 0x61c   : > { %v8422_v31 = vmul.f32 %v11396_v45, %v8358_v6  ;;  %v7912_v34 = vadd.f32 -5.6925062e-05, %v7880_v54  ;;  %v8296_v28 = vadd.f32 -0.0073733293, %v8264_v30 }
 0x61d   : > { %v8583_v26 = vadd.f32 1.0, %v8551_v11  ;;  %v8073_v4 = vmul.f32 %v8041_v0, %v16613_v13 }
 0x61e   : > { %v8454_v37 = vsub.f32 2.0, %v8422_v31  ;;  %v7944_v49 = vmul.f32 %v7912_v34, %v16636_v32  ;;  %v8328_v27 = vmul.f32 %v8296_v28, %v16636_v32 }
 0x61f   : > { %v8615_v15 = vmul.f32 %v8583_v26, %v7591_v1  ;;  %v8105_v48 = vadd.f32 -0.016096033, %v8073_v4 }
 0x620   : > { %v8486_v23 = vmul.f32 %v11396_v45, %v8454_v37  ;;  %v7976_v24 = vadd.f32 -0.00073499064, %v7944_v49  ;;  %v8360_v53 = vadd.f32 -0.014264739, %v8328_v27 }
 0x621   : > { %8647 = vst [vmem:[%s15910_s11 + $0xe8] sm:$0xff] %v8615_v15  ;;  %v8521_v9 = vmul.f32 %v16605_v12, %v8105_v48  ;;  %v7592_v12 = vmul.f32 0.5, %v16616_v16 }
 0x622   : > { %v8550_v41 = vmul.f32 %v8518_v50, %v8486_v23  ;;  %v8008_v6 = vmul.f32 %v7976_v24, %v16636_v32  ;;  %11399 = vrcp.f32 %v8360_v53 }
 0x623   : > { %v11398_v44 = vpop.eup %11397 }
 0x624   : > { %v8582_v18 = vadd.f32 1.0, %v8550_v41  ;;  %v8425_v17 = vmul.f32 %v11398_v44, %v8361_v5  ;;  %v8040_v14 = vadd.f32 -0.0029546, %v8008_v6 }
 0x626   : > { %v8614_v36 = vmul.f32 %v8582_v18, %v7590_v63  ;;  %v8457_v33 = vsub.f32 2.0, %v8425_v17  ;;  %v8072_v21 = vmul.f32 %v8040_v14, %v16636_v32 }
 0x628   : > { %8646 = vst [vmem:[%s15910_s11 + $0xe0] sm:$0xff] %v8614_v36  ;;  %v8489_v13 = vmul.f32 %v11398_v44, %v8457_v33  ;;  %v8104_v2 = vadd.f32 -0.016096033, %v8072_v21 }
 0x62a   : > { %v8553_v8 = vmul.f32 %v8521_v9, %v8489_v13  ;;  %v8520_v61 = vmul.f32 %v16629_v10, %v8104_v2 }
 0x62c   : > { %v11400_v43 = vpop.eup %11399  ;;  %v8585_v56 = vadd.f32 1.0, %v8553_v8 }
 0x62d   : > { %v8424_v42 = vmul.f32 %v11400_v43, %v8360_v53 }
 0x62e   : > { %v8617_v38 = vmul.f32 %v8585_v56, %v7593_v52 }
 0x62f   : > { %v8456_v47 = vsub.f32 2.0, %v8424_v42 }
 0x630   : > { %8649 = vst [vmem:[%s15910_s11 + $0xf8] sm:$0xff] %v8617_v38 }
 0x631   : > { %v8488_v58 = vmul.f32 %v11400_v43, %v8456_v47 }
 0x633   : > { %v8552_v59 = vmul.f32 %v8520_v61, %v8488_v58 }
 0x635   : > { %v8584_v32 = vadd.f32 1.0, %v8552_v59 }
 0x637   : > { %v8616_v3 = vmul.f32 %v8584_v32, %v7592_v12 }
 0x639   : > { %8648 = vst [vmem:[%s15910_s11 + $0xf0] sm:$0xff] %v8616_v3 }
 0x63a   : > { %11453 = shalt.err (!%p11450_p3)
}
 0x63b   : > { %s11454_s9 = scalar_lea.hbm %s16673_s20, 4096  ;;  %s11458_s13 = scalar_lea.hbm %s16727_s6, 8192 }
 0x63c   : > { %p11455_p4 = scmp.ne.s32.totalorder %s16673_s20, %s11454_s9  ;;  %p11459_p9 = scmp.lt.u32.totalorder %s16673_s20, %s16727_s6 }
 0x63d   : > { %p11460_p10 = scmp.lt.u32.totalorder %s11458_s13, %s11454_s9  ;;  %p11462_p12 = scmp.lt.u32.totalorder %s11454_s9, %s16673_s20 }
 0x63e   : > { %p11456_p7 = pnand %p11455_p4, %p11581_p5 }
 0x63f   : > { %p11461_p11 = por %p11460_p10, %p11459_p9 }
 0x640   : > { %p11457_p8 = pneg %p11456_p7 }
 0x641   : > { %p11463_p13 = por %p11462_p12, %p11461_p11 }
 0x643   : > { %p11464_p0 = pnand %p11463_p13, %p11457_p8 }
 0x645   : > { %11467 = shalt.err (!%p11464_p0)
}
 0x646   : > { %s11506_s16 = smov 128   ;;  %s11507_s18 = smov 8  }
 0x647   : > { %11103 = dma.vmem_to_hbm [thread:$0]  (%p11581_p5), %s16675_s17, 4096, %s16673_s20, %s16680_s26, %s11506_s16, %s11506_s16, %s11507_s18  }
 0x648 PF: > { %p11109_p1 = scmp.ge.s32.totalorder %s11502_s24, 2  ;;  %s8679_s19 = sand.u32 1, %s11490_s21  }
 0x649   : > { %s8680_s25 = scalar_lea.sflag [#allocation4], %s8679_s19 }
 0x64a   : > { %p11106_p2 = pnand %p11109_p1, %p11585_p6 }
 0x64c   : > { %11485 = dma.done.wait (!%p11106_p2), %s8680_s25, 4096  }
 0x64d   : > { %11487 = vsyncadd (!%p11106_p2), %s8680_s25, 4294963200  ;;  %p16_p3 = scmp.ge.s32.totalorder %s11568_s27, 4   ;;  %s17438_s21 = smov %s11494_s22 }
 0x64e   : > { %s17439_s22 = smov %s11498_s23  ;;  %s17440_s23 = smov %s11579_s30 }
 0x64f   : > { %s17441_s24 = smov %s11568_s27  ;;  %18 = sbr.rel (!%p16_p3) target bundleno = 3 (0x3), region = 87 }
 0x656   :  { %8685 = vsyncpa [#allocation4], 1 }
 0x657   :  { %8687 = vsyncpa [#allocation4 + $0x1], 1 }

</bundles_post_ra>
